<compile_context>
chip_gen: v6e
topology: v6e:2x2x1
jax: 0.10.0
libtpu: 0.0.40
codegen_flags: <defaults>
</compile_context>

<pallas_src>
import functools
import math

import numpy as np

import jax
import jax.numpy as jnp
from jax.experimental import pallas as pl
from jax.experimental.pallas import tpu as pltpu


# ------------------------------ slab layout ----------------------------------

def _pack_layout(input_dim, output_dim, n_enc, n_dec):
    """Row offsets of every small parameter inside the f32 (K, H) vector slab."""
    off = {}
    r = 0

    def take(name, n):
        nonlocal r
        off[name] = r
        r += n

    take("emb_w", input_dim)                       # (In, H), offset 0 (aligned)
    take("emb_b", 1)
    take("ln_g", 1)
    take("ln_b", 1)
    for l in range(n_enc):
        take(f"enc_sa_b{l}", 1)
        take(f"enc_n1g{l}", 1); take(f"enc_n1b{l}", 1)
        take(f"enc_b2{l}", 1)
        take(f"enc_n2g{l}", 1); take(f"enc_n2b{l}", 1)
    take("enc_ng", 1); take("enc_nb", 1)
    for l in range(n_dec):
        take(f"dec_sa_b{l}", 1)
        take(f"dec_n1g{l}", 1); take(f"dec_n1b{l}", 1)
        take(f"ca_b{l}", 1)
        take(f"dec_n2g{l}", 1); take(f"dec_n2b{l}", 1)
        take(f"dec_b2{l}", 1)
        take(f"dec_n3g{l}", 1); take(f"dec_n3b{l}", 1)
    take("dec_ng", 1); take("dec_nb", 1)
    if r % 8:                                      # sublane-align the fc block
        take("_pad", 8 - (r % 8))
    take("fc_w", output_dim)                       # stored transposed: (Out, H)
    take("fc_b", 1)                                # zero-padded to H lanes
    off["_rows"] = r
    return off


# ------------------------------ fused kernel ---------------------------------

def _fused_transformer_kernel(
    x_ref, vec_ref, ffnb_ref, sa_ref, w1_ref, w2t_ref, o_ref,
    *, layout, input_dim, hidden_dim, output_dim, n_enc, n_dec, eps,
):
    H = hidden_dim
    f32 = jnp.float32

    # ---- slab accessors (static offsets, resolved at trace time) ------------
    def vrow(name):                                # (1, H) f32 slab row
        r = layout[name]
        return vec_ref[r:r + 1, :]

    def vrows(name, n):                            # (n, H) f32 slab rows
        r = layout[name]
        return vec_ref[r:r + n, :]

    def saw(idx):                                  # (H, H) bf16 folded attn W
        c = idx * H
        return sa_ref[:, c:c + H]

    # ---- math helpers --------------------------------------------------------
    def mm(x, w, b):                               # MXU matmul, f32 accumulate
        return jnp.dot(x.astype(w.dtype), w, preferred_element_type=f32) + b

    def mm_t(x, w_t, b):                           # x:(B,F) x w_t:(H,F) -> (B,H)
        return jax.lax.dot_general(
            x.astype(w_t.dtype), w_t, (((1,), (1,)), ((), ())),
            preferred_element_type=f32) + b

    def layer_norm(x, gname, bname):
        mu = jnp.mean(x, axis=-1, keepdims=True)
        xc = x - mu
        var = jnp.mean(xc * xc, axis=-1, keepdims=True)
        return xc * jax.lax.rsqrt(var + eps) * vrow(gname) + vrow(bname)

    def sigmoid(z):                                # logistic via EUP tanh
        return 0.5 * (jnp.tanh(0.5 * z) + 1.0)

    x = x_ref[...]

    # embedding -> dropout(eval: identity) -> LayerNorm; the seq dim (len 1)
    # is carried implicitly as (B, H).
    h = mm(x, vrows("emb_w", input_dim), vrow("emb_b"))
    h = layer_norm(h, "ln_g", "ln_b")

    # --------------------------- encoder (post-norm) -------------------------
    src = h
    for l in range(n_enc):                         # unrolled at trace time
        sa = mm(src, saw(l), vrow(f"enc_sa_b{l}"))                 # seq-1 fold
        src = layer_norm(src + sa, f"enc_n1g{l}", f"enc_n1b{l}")
        ff = jnp.maximum(mm(src, w1_ref[l], ffnb_ref[l:l + 1, :]), 0.0)
        ff = mm_t(ff, w2t_ref[l], vrow(f"enc_b2{l}"))              # lane-dense
        src = layer_norm(src + ff, f"enc_n2g{l}", f"enc_n2b{l}")
    memory = layer_norm(src, "enc_ng", "enc_nb")   # final encoder LayerNorm

    # --------------------------- decoder (post-norm) -------------------------
    tgt = h
    for l in range(n_dec):                         # unrolled at trace time
        sa = mm(tgt, saw(n_enc + l), vrow(f"dec_sa_b{l}"))
        tgt = layer_norm(tgt + sa, f"dec_n1g{l}", f"dec_n1b{l}")
        # cross-attention reads the constant encoder memory (seq-1 fold);
        # it does not depend on tgt, so the scheduler can hoist/overlap it.
        ca = mm(memory, saw(n_enc + n_dec + l), vrow(f"ca_b{l}"))
        tgt = layer_norm(tgt + ca, f"dec_n2g{l}", f"dec_n2b{l}")
        li = n_enc + l
        ff = jnp.maximum(mm(tgt, w1_ref[li], ffnb_ref[li:li + 1, :]), 0.0)
        ff = mm_t(ff, w2t_ref[li], vrow(f"dec_b2{l}"))
        tgt = layer_norm(tgt + ff, f"dec_n3g{l}", f"dec_n3b{l}")
    out = layer_norm(tgt, "dec_ng", "dec_nb")      # final decoder LayerNorm

    # mean over seq_len == 1 is the identity; final fc + sigmoid.
    fc_w_t = vrows("fc_w", output_dim)             # (Out, H) f32
    logits = jax.lax.dot_general(out, fc_w_t, (((1,), (1,)), ((), ())),
                                 preferred_element_type=f32)
    logits = logits + vrow("fc_b")[:, :output_dim]
    o_ref[...] = sigmoid(logits)


# ------------------------------ parameters -----------------------------------

def _keygen(seed):
    base = jax.random.PRNGKey(seed)
    i = 0
    while True:
        i += 1
        yield jax.random.fold_in(base, i)


def init_params(seed, input_dim, output_dim, nhead, num_encoder_layers,
                num_decoder_layers, hidden_dim, ffn_dim):
    # nhead only controls the head split of Q/K/V; at seq_len == 1 it does not
    # change the forward value (softmax over one key == 1 per head).
    del nhead
    keys = _keygen(seed)
    H, F = hidden_dim, ffn_dim
    Ne, Nd = num_encoder_layers, num_decoder_layers

    def lin(in_d, out_d):
        s = 1.0 / math.sqrt(in_d)
        w = jax.random.uniform(next(keys), (in_d, out_d), jnp.float32, -s, s)
        b = jax.random.uniform(next(keys), (out_d,), jnp.float32, -s, s)
        return np.asarray(w), np.asarray(b)

    def folded_attn():
        # seq_len == 1 => attention(x) == out_proj(V(x)).  Fold in f32:
        # W = Wv @ Wo, b = bv @ Wo + bo.  Q/K are never created.
        wv, bv = lin(H, H)
        wo, bo = lin(H, H)
        return wv @ wo, bv @ wo + bo

    ones = lambda: np.ones((H,), np.float32)
    zeros = lambda: np.zeros((H,), np.float32)

    pieces = {"ln_g": ones(), "ln_b": zeros()}
    pieces["emb_w"], pieces["emb_b"] = lin(input_dim, H)

    sa_blocks, dec_sa, dec_ca = [], [], []         # folded (H, H) attn weights
    w1_blocks, w2t_blocks, b1_rows = [], [], []

    for l in range(Ne):
        w, b = folded_attn(); sa_blocks.append(w); pieces[f"enc_sa_b{l}"] = b
        w1, b1 = lin(H, F);   w1_blocks.append(w1); b1_rows.append(b1)
        w2, b2 = lin(F, H);   w2t_blocks.append(w2.T); pieces[f"enc_b2{l}"] = b2
        pieces[f"enc_n1g{l}"], pieces[f"enc_n1b{l}"] = ones(), zeros()
        pieces[f"enc_n2g{l}"], pieces[f"enc_n2b{l}"] = ones(), zeros()
    pieces["enc_ng"], pieces["enc_nb"] = ones(), zeros()

    for l in range(Nd):
        w, b = folded_attn(); dec_sa.append(w); pieces[f"dec_sa_b{l}"] = b
        w, b = folded_attn(); dec_ca.append(w); pieces[f"ca_b{l}"] = b
        w1, b1 = lin(H, F);   w1_blocks.append(w1); b1_rows.append(b1)
        w2, b2 = lin(F, H);   w2t_blocks.append(w2.T); pieces[f"dec_b2{l}"] = b2
        for nm in ("n1", "n2", "n3"):
            pieces[f"dec_{nm}g{l}"], pieces[f"dec_{nm}b{l}"] = ones(), zeros()
    pieces["dec_ng"], pieces["dec_nb"] = ones(), zeros()

    fc_w, fc_b = lin(H, output_dim)
    pieces["fc_w"] = fc_w.T                              # (Out, H)
    pieces["fc_b"] = np.pad(fc_b, (0, H - output_dim))   # zero-pad to H lanes

    sa_blocks = sa_blocks + dec_sa + dec_ca              # order: encSA|decSA|decCA

    layout = _pack_layout(input_dim, output_dim, Ne, Nd)
    vec_slab = np.zeros((layout["_rows"], H), np.float32)
    for name, start in layout.items():
        if name.startswith("_"):
            continue
        arr = np.asarray(pieces[name], np.float32).reshape(-1, H)
        vec_slab[start:start + arr.shape[0]] = arr

    params = dict(
        vec_slab=jnp.asarray(vec_slab),                                   # (K, H)      f32
        ffn_b1=jnp.asarray(np.stack(b1_rows)),                            # (Ne+Nd, F)  f32
        sa_slab=jnp.asarray(np.concatenate(sa_blocks, axis=1),
                            dtype=jnp.bfloat16),                          # (H, Nw*H)   bf16
        w1_slab=jnp.asarray(np.stack(w1_blocks), dtype=jnp.bfloat16),     # (Ne+Nd,H,F) bf16
        w2t_slab=jnp.asarray(np.stack(w2t_blocks), dtype=jnp.bfloat16),   # (Ne+Nd,H,F) bf16 (transposed, lane-dense)
    )
    config = dict(layout=layout, input_dim=input_dim, hidden_dim=H,
                  output_dim=output_dim, n_enc=Ne, n_dec=Nd, ffn_dim=F)
    return params, config


# ------------------------------ forward pass ----------------------------------

def make_transformer_forward(config, eps=1e-5):
    layout = config["layout"]
    In, H, Out = config["input_dim"], config["hidden_dim"], config["output_dim"]
    Ne, Nd, F = config["n_enc"], config["n_dec"], config["ffn_dim"]

    kernel = functools.partial(
        _fused_transformer_kernel, layout=layout, input_dim=In, hidden_dim=H,
        output_dim=Out, n_enc=Ne, n_dec=Nd, eps=eps)

    def forward(params, x):
        # x: (batch, input_dim) f32
        B = x.shape[0]
        args = (x, params["vec_slab"], params["ffn_b1"], params["sa_slab"],
                params["w1_slab"], params["w2t_slab"])

        flops = 2 * B * In * H                          # embedding
        flops += (Ne + Nd) * 2 * B * (H * H + 2 * H * F)  # folded SA + FFN
        flops += Nd * 2 * B * H * H                     # folded cross-attn
        flops += 2 * B * H * Out                        # final fc
        transcendentals = B * (Out + 2 * Ne + 3 * Nd + 4)
        bytes_accessed = (sum(int(a.size) * a.dtype.itemsize for a in args)
                          + B * Out * 4)

        return pl.pallas_call(
            kernel,
            out_shape=jax.ShapeDtypeStruct((B, Out), jnp.float32),
            in_specs=[pl.BlockSpec(memory_space=pltpu.MemorySpace.VMEM)] * len(args),
            out_specs=pl.BlockSpec(memory_space=pltpu.MemorySpace.VMEM),
            cost_estimate=pl.CostEstimate(
                flops=int(flops),
                transcendentals=int(transcendentals),
                bytes_accessed=int(bytes_accessed)),
        )(*args)

    return forward


# --------------------------------- demo ---------------------------------------

if __name__ == "__main__":
    batch = 2
    input_dim, output_dim = 16, 4
    nhead, num_layers, hidden_dim = 4, 2, 32      # small TransformerModel config
    ffn_dim, num_decoder_layers = 2048, 6         # nn.Transformer defaults

    params, config = init_params(0, input_dim, output_dim, nhead, num_layers,
                                 num_decoder_layers, hidden_dim, ffn_dim)
    x = jax.random.normal(jax.random.PRNGKey(0), (batch, input_dim), jnp.float32)

    fwd = jax.jit(make_transformer_forward(config))
    y = fwd(params, x)
    jax.block_until_ready(y)

    assert y.shape == (batch, output_dim)
    assert bool(jnp.all(jnp.isfinite(y)))
    assert bool(jnp.all((y >= 0.0) & (y <= 1.0)))
    print("KERNEL_OK")
</pallas_src>

<mosaic_0001>
module attributes {stable_mosaic.version = 11 : i64} {
  func.func @_fused_transformer_kernel(%arg0: memref<2x16xf32, #tpu.memory_space<vmem>>, %arg1: memref<101x32xf32, #tpu.memory_space<vmem>>, %arg2: memref<8x2048xf32, #tpu.memory_space<vmem>>, %arg3: memref<32x448xbf16, #tpu.memory_space<vmem>>, %arg4: memref<8x32x2048xbf16, #tpu.memory_space<vmem>>, %arg5: memref<8x32x2048xbf16, #tpu.memory_space<vmem>>, %arg6: memref<2x4xf32, #tpu.memory_space<vmem>>) attributes {dimension_semantics = [], scalar_prefetch = 0 : i64, scratch_operands = 0 : i64, tpu.core_type = #tpu.core_type<tc>} {
    %c0 = arith.constant 0 : index
    %c0_0 = arith.constant 0 : index
    %0 = vector.load %arg0[%c0, %c0_0] : memref<2x16xf32, #tpu.memory_space<vmem>>, vector<2x16xf32>
    %c0_1 = arith.constant 0 : index
    %c0_2 = arith.constant 0 : index
    %1 = vector.load %arg1[%c0_1, %c0_2] : memref<101x32xf32, #tpu.memory_space<vmem>>, vector<16x32xf32>
    %c16 = arith.constant 16 : index
    %c0_3 = arith.constant 0 : index
    %2 = vector.load %arg1[%c16, %c0_3] : memref<101x32xf32, #tpu.memory_space<vmem>>, vector<1x32xf32>
    %cst = arith.constant dense<0.000000e+00> : vector<2x32xf32>
    %3 = tpu.matmul %0, %1, %cst {dimension_numbers = #tpu.dot_dimension_numbers<[1], [0], [0], [1], [0, 0, 1, 1], [], []>} : vector<2x16xf32>, vector<16x32xf32>, vector<2x32xf32> -> vector<2x32xf32>
    %4 = vector.broadcast %2 : vector<1x32xf32> to vector<2x32xf32>
    %5 = arith.addf %3, %4 : vector<2x32xf32>
    %cst_4 = arith.constant dense<0.000000e+00> : vector<2xf32>
    %6 = vector.multi_reduction <add>, %5, %cst_4 [1] : vector<2x32xf32> to vector<2xf32>
    %7 = vector.shape_cast %6 : vector<2xf32> to vector<2x1xf32>
    %cst_5 = arith.constant 3.200000e+01 : f32
    %8 = vector.broadcast %cst_5 : f32 to vector<2x1xf32>
    %9 = arith.divf %7, %8 : vector<2x1xf32>
    %10 = vector.broadcast %9 : vector<2x1xf32> to vector<2x32xf32>
    %11 = arith.subf %5, %10 : vector<2x32xf32>
    %12 = arith.mulf %11, %11 : vector<2x32xf32>
    %cst_6 = arith.constant dense<0.000000e+00> : vector<2xf32>
    %13 = vector.multi_reduction <add>, %12, %cst_6 [1] : vector<2x32xf32> to vector<2xf32>
    %14 = vector.shape_cast %13 : vector<2xf32> to vector<2x1xf32>
    %cst_7 = arith.constant 3.200000e+01 : f32
    %15 = vector.broadcast %cst_7 : f32 to vector<2x1xf32>
    %16 = arith.divf %14, %15 : vector<2x1xf32>
    %cst_8 = arith.constant 9.99999974E-6 : f32
    %17 = vector.broadcast %cst_8 : f32 to vector<2x1xf32>
    %18 = arith.addf %16, %17 : vector<2x1xf32>
    %19 = math.rsqrt %18 : vector<2x1xf32>
    %20 = vector.broadcast %19 : vector<2x1xf32> to vector<2x32xf32>
    %21 = arith.mulf %11, %20 : vector<2x32xf32>
    %c17 = arith.constant 17 : index
    %c0_9 = arith.constant 0 : index
    %22 = vector.load %arg1[%c17, %c0_9] : memref<101x32xf32, #tpu.memory_space<vmem>>, vector<1x32xf32>
    %23 = vector.broadcast %22 : vector<1x32xf32> to vector<2x32xf32>
    %24 = arith.mulf %21, %23 : vector<2x32xf32>
    %c18 = arith.constant 18 : index
    %c0_10 = arith.constant 0 : index
    %25 = vector.load %arg1[%c18, %c0_10] : memref<101x32xf32, #tpu.memory_space<vmem>>, vector<1x32xf32>
    %26 = vector.broadcast %25 : vector<1x32xf32> to vector<2x32xf32>
    %27 = arith.addf %24, %26 : vector<2x32xf32>
    %c0_11 = arith.constant 0 : index
    %c0_12 = arith.constant 0 : index
    %28 = vector.load %arg3[%c0_11, %c0_12] : memref<32x448xbf16, #tpu.memory_space<vmem>>, vector<32x32xbf16>
    %c19 = arith.constant 19 : index
    %c0_13 = arith.constant 0 : index
    %29 = vector.load %arg1[%c19, %c0_13] : memref<101x32xf32, #tpu.memory_space<vmem>>, vector<1x32xf32>
    %30 = arith.truncf %27 : vector<2x32xf32> to vector<2x32xbf16>
    %cst_14 = arith.constant dense<0.000000e+00> : vector<2x32xf32>
    %31 = tpu.matmul %30, %28, %cst_14 {dimension_numbers = #tpu.dot_dimension_numbers<[1], [0], [0], [1], [0, 0, 1, 1], [], []>} : vector<2x32xbf16>, vector<32x32xbf16>, vector<2x32xf32> -> vector<2x32xf32>
    %32 = vector.broadcast %29 : vector<1x32xf32> to vector<2x32xf32>
    %33 = arith.addf %31, %32 : vector<2x32xf32>
    %34 = arith.addf %27, %33 : vector<2x32xf32>
    %cst_15 = arith.constant dense<0.000000e+00> : vector<2xf32>
    %35 = vector.multi_reduction <add>, %34, %cst_15 [1] : vector<2x32xf32> to vector<2xf32>
    %36 = vector.shape_cast %35 : vector<2xf32> to vector<2x1xf32>
    %cst_16 = arith.constant 3.200000e+01 : f32
    %37 = vector.broadcast %cst_16 : f32 to vector<2x1xf32>
    %38 = arith.divf %36, %37 : vector<2x1xf32>
    %39 = vector.broadcast %38 : vector<2x1xf32> to vector<2x32xf32>
    %40 = arith.subf %34, %39 : vector<2x32xf32>
    %41 = arith.mulf %40, %40 : vector<2x32xf32>
    %cst_17 = arith.constant dense<0.000000e+00> : vector<2xf32>
    %42 = vector.multi_reduction <add>, %41, %cst_17 [1] : vector<2x32xf32> to vector<2xf32>
    %43 = vector.shape_cast %42 : vector<2xf32> to vector<2x1xf32>
    %cst_18 = arith.constant 3.200000e+01 : f32
    %44 = vector.broadcast %cst_18 : f32 to vector<2x1xf32>
    %45 = arith.divf %43, %44 : vector<2x1xf32>
    %cst_19 = arith.constant 9.99999974E-6 : f32
    %46 = vector.broadcast %cst_19 : f32 to vector<2x1xf32>
    %47 = arith.addf %45, %46 : vector<2x1xf32>
    %48 = math.rsqrt %47 : vector<2x1xf32>
    %49 = vector.broadcast %48 : vector<2x1xf32> to vector<2x32xf32>
    %50 = arith.mulf %40, %49 : vector<2x32xf32>
    %c20 = arith.constant 20 : index
    %c0_20 = arith.constant 0 : index
    %51 = vector.load %arg1[%c20, %c0_20] : memref<101x32xf32, #tpu.memory_space<vmem>>, vector<1x32xf32>
    %52 = vector.broadcast %51 : vector<1x32xf32> to vector<2x32xf32>
    %53 = arith.mulf %50, %52 : vector<2x32xf32>
    %c21 = arith.constant 21 : index
    %c0_21 = arith.constant 0 : index
    %54 = vector.load %arg1[%c21, %c0_21] : memref<101x32xf32, #tpu.memory_space<vmem>>, vector<1x32xf32>
    %55 = vector.broadcast %54 : vector<1x32xf32> to vector<2x32xf32>
    %56 = arith.addf %53, %55 : vector<2x32xf32>
    %c0_22 = arith.constant 0 : index
    %c0_23 = arith.constant 0 : index
    %c0_24 = arith.constant 0 : index
    %57 = vector.load %arg4[%c0_22, %c0_23, %c0_24] : memref<8x32x2048xbf16, #tpu.memory_space<vmem>>, vector<1x32x2048xbf16>
    %58 = vector.shape_cast %57 : vector<1x32x2048xbf16> to vector<32x2048xbf16>
    %c0_25 = arith.constant 0 : index
    %c0_26 = arith.constant 0 : index
    %59 = vector.load %arg2[%c0_25, %c0_26] : memref<8x2048xf32, #tpu.memory_space<vmem>>, vector<1x2048xf32>
    %60 = arith.truncf %56 : vector<2x32xf32> to vector<2x32xbf16>
    %cst_27 = arith.constant dense<0.000000e+00> : vector<2x2048xf32>
    %61 = tpu.matmul %60, %58, %cst_27 {dimension_numbers = #tpu.dot_dimension_numbers<[1], [0], [0], [1], [0, 0, 1, 1], [], []>} : vector<2x32xbf16>, vector<32x2048xbf16>, vector<2x2048xf32> -> vector<2x2048xf32>
    %62 = vector.broadcast %59 : vector<1x2048xf32> to vector<2x2048xf32>
    %63 = arith.addf %61, %62 : vector<2x2048xf32>
    %cst_28 = arith.constant 0.000000e+00 : f32
    %64 = vector.broadcast %cst_28 : f32 to vector<2x2048xf32>
    %65 = arith.maximumf %63, %64 : vector<2x2048xf32>
    %c0_29 = arith.constant 0 : index
    %c0_30 = arith.constant 0 : index
    %c0_31 = arith.constant 0 : index
    %66 = vector.load %arg5[%c0_29, %c0_30, %c0_31] : memref<8x32x2048xbf16, #tpu.memory_space<vmem>>, vector<1x32x2048xbf16>
    %67 = vector.shape_cast %66 : vector<1x32x2048xbf16> to vector<32x2048xbf16>
    %c22 = arith.constant 22 : index
    %c0_32 = arith.constant 0 : index
    %68 = vector.load %arg1[%c22, %c0_32] : memref<101x32xf32, #tpu.memory_space<vmem>>, vector<1x32xf32>
    %69 = arith.truncf %65 : vector<2x2048xf32> to vector<2x2048xbf16>
    %cst_33 = arith.constant dense<0.000000e+00> : vector<2x32xf32>
    %70 = tpu.matmul %69, %67, %cst_33 {dimension_numbers = #tpu.dot_dimension_numbers<[1], [1], [0], [0], [0, 0, 1, 0], [], []>} : vector<2x2048xbf16>, vector<32x2048xbf16>, vector<2x32xf32> -> vector<2x32xf32>
    %71 = vector.broadcast %68 : vector<1x32xf32> to vector<2x32xf32>
    %72 = arith.addf %70, %71 : vector<2x32xf32>
    %73 = arith.addf %56, %72 : vector<2x32xf32>
    %cst_34 = arith.constant dense<0.000000e+00> : vector<2xf32>
    %74 = vector.multi_reduction <add>, %73, %cst_34 [1] : vector<2x32xf32> to vector<2xf32>
    %75 = vector.shape_cast %74 : vector<2xf32> to vector<2x1xf32>
    %cst_35 = arith.constant 3.200000e+01 : f32
    %76 = vector.broadcast %cst_35 : f32 to vector<2x1xf32>
    %77 = arith.divf %75, %76 : vector<2x1xf32>
    %78 = vector.broadcast %77 : vector<2x1xf32> to vector<2x32xf32>
    %79 = arith.subf %73, %78 : vector<2x32xf32>
    %80 = arith.mulf %79, %79 : vector<2x32xf32>
    %cst_36 = arith.constant dense<0.000000e+00> : vector<2xf32>
    %81 = vector.multi_reduction <add>, %80, %cst_36 [1] : vector<2x32xf32> to vector<2xf32>
    %82 = vector.shape_cast %81 : vector<2xf32> to vector<2x1xf32>
    %cst_37 = arith.constant 3.200000e+01 : f32
    %83 = vector.broadcast %cst_37 : f32 to vector<2x1xf32>
    %84 = arith.divf %82, %83 : vector<2x1xf32>
    %cst_38 = arith.constant 9.99999974E-6 : f32
    %85 = vector.broadcast %cst_38 : f32 to vector<2x1xf32>
    %86 = arith.addf %84, %85 : vector<2x1xf32>
    %87 = math.rsqrt %86 : vector<2x1xf32>
    %88 = vector.broadcast %87 : vector<2x1xf32> to vector<2x32xf32>
    %89 = arith.mulf %79, %88 : vector<2x32xf32>
    %c23 = arith.constant 23 : index
    %c0_39 = arith.constant 0 : index
    %90 = vector.load %arg1[%c23, %c0_39] : memref<101x32xf32, #tpu.memory_space<vmem>>, vector<1x32xf32>
    %91 = vector.broadcast %90 : vector<1x32xf32> to vector<2x32xf32>
    %92 = arith.mulf %89, %91 : vector<2x32xf32>
    %c24 = arith.constant 24 : index
    %c0_40 = arith.constant 0 : index
    %93 = vector.load %arg1[%c24, %c0_40] : memref<101x32xf32, #tpu.memory_space<vmem>>, vector<1x32xf32>
    %94 = vector.broadcast %93 : vector<1x32xf32> to vector<2x32xf32>
    %95 = arith.addf %92, %94 : vector<2x32xf32>
    %c0_41 = arith.constant 0 : index
    %c32 = arith.constant 32 : index
    %96 = vector.load %arg3[%c0_41, %c32] : memref<32x448xbf16, #tpu.memory_space<vmem>>, vector<32x32xbf16>
    %c25 = arith.constant 25 : index
    %c0_42 = arith.constant 0 : index
    %97 = vector.load %arg1[%c25, %c0_42] : memref<101x32xf32, #tpu.memory_space<vmem>>, vector<1x32xf32>
    %98 = arith.truncf %95 : vector<2x32xf32> to vector<2x32xbf16>
    %cst_43 = arith.constant dense<0.000000e+00> : vector<2x32xf32>
    %99 = tpu.matmul %98, %96, %cst_43 {dimension_numbers = #tpu.dot_dimension_numbers<[1], [0], [0], [1], [0, 0, 1, 1], [], []>} : vector<2x32xbf16>, vector<32x32xbf16>, vector<2x32xf32> -> vector<2x32xf32>
    %100 = vector.broadcast %97 : vector<1x32xf32> to vector<2x32xf32>
    %101 = arith.addf %99, %100 : vector<2x32xf32>
    %102 = arith.addf %95, %101 : vector<2x32xf32>
    %cst_44 = arith.constant dense<0.000000e+00> : vector<2xf32>
    %103 = vector.multi_reduction <add>, %102, %cst_44 [1] : vector<2x32xf32> to vector<2xf32>
    %104 = vector.shape_cast %103 : vector<2xf32> to vector<2x1xf32>
    %cst_45 = arith.constant 3.200000e+01 : f32
    %105 = vector.broadcast %cst_45 : f32 to vector<2x1xf32>
    %106 = arith.divf %104, %105 : vector<2x1xf32>
    %107 = vector.broadcast %106 : vector<2x1xf32> to vector<2x32xf32>
    %108 = arith.subf %102, %107 : vector<2x32xf32>
    %109 = arith.mulf %108, %108 : vector<2x32xf32>
    %cst_46 = arith.constant dense<0.000000e+00> : vector<2xf32>
    %110 = vector.multi_reduction <add>, %109, %cst_46 [1] : vector<2x32xf32> to vector<2xf32>
    %111 = vector.shape_cast %110 : vector<2xf32> to vector<2x1xf32>
    %cst_47 = arith.constant 3.200000e+01 : f32
    %112 = vector.broadcast %cst_47 : f32 to vector<2x1xf32>
    %113 = arith.divf %111, %112 : vector<2x1xf32>
    %cst_48 = arith.constant 9.99999974E-6 : f32
    %114 = vector.broadcast %cst_48 : f32 to vector<2x1xf32>
    %115 = arith.addf %113, %114 : vector<2x1xf32>
    %116 = math.rsqrt %115 : vector<2x1xf32>
    %117 = vector.broadcast %116 : vector<2x1xf32> to vector<2x32xf32>
    %118 = arith.mulf %108, %117 : vector<2x32xf32>
    %c26 = arith.constant 26 : index
    %c0_49 = arith.constant 0 : index
    %119 = vector.load %arg1[%c26, %c0_49] : memref<101x32xf32, #tpu.memory_space<vmem>>, vector<1x32xf32>
    %120 = vector.broadcast %119 : vector<1x32xf32> to vector<2x32xf32>
    %121 = arith.mulf %118, %120 : vector<2x32xf32>
    %c27 = arith.constant 27 : index
    %c0_50 = arith.constant 0 : index
    %122 = vector.load %arg1[%c27, %c0_50] : memref<101x32xf32, #tpu.memory_space<vmem>>, vector<1x32xf32>
    %123 = vector.broadcast %122 : vector<1x32xf32> to vector<2x32xf32>
    %124 = arith.addf %121, %123 : vector<2x32xf32>
    %c1 = arith.constant 1 : index
    %c0_51 = arith.constant 0 : index
    %c0_52 = arith.constant 0 : index
    %125 = vector.load %arg4[%c1, %c0_51, %c0_52] : memref<8x32x2048xbf16, #tpu.memory_space<vmem>>, vector<1x32x2048xbf16>
    %126 = vector.shape_cast %125 : vector<1x32x2048xbf16> to vector<32x2048xbf16>
    %c1_53 = arith.constant 1 : index
    %c0_54 = arith.constant 0 : index
    %127 = vector.load %arg2[%c1_53, %c0_54] : memref<8x2048xf32, #tpu.memory_space<vmem>>, vector<1x2048xf32>
    %128 = arith.truncf %124 : vector<2x32xf32> to vector<2x32xbf16>
    %cst_55 = arith.constant dense<0.000000e+00> : vector<2x2048xf32>
    %129 = tpu.matmul %128, %126, %cst_55 {dimension_numbers = #tpu.dot_dimension_numbers<[1], [0], [0], [1], [0, 0, 1, 1], [], []>} : vector<2x32xbf16>, vector<32x2048xbf16>, vector<2x2048xf32> -> vector<2x2048xf32>
    %130 = vector.broadcast %127 : vector<1x2048xf32> to vector<2x2048xf32>
    %131 = arith.addf %129, %130 : vector<2x2048xf32>
    %cst_56 = arith.constant 0.000000e+00 : f32
    %132 = vector.broadcast %cst_56 : f32 to vector<2x2048xf32>
    %133 = arith.maximumf %131, %132 : vector<2x2048xf32>
    %c1_57 = arith.constant 1 : index
    %c0_58 = arith.constant 0 : index
    %c0_59 = arith.constant 0 : index
    %134 = vector.load %arg5[%c1_57, %c0_58, %c0_59] : memref<8x32x2048xbf16, #tpu.memory_space<vmem>>, vector<1x32x2048xbf16>
    %135 = vector.shape_cast %134 : vector<1x32x2048xbf16> to vector<32x2048xbf16>
    %c28 = arith.constant 28 : index
    %c0_60 = arith.constant 0 : index
    %136 = vector.load %arg1[%c28, %c0_60] : memref<101x32xf32, #tpu.memory_space<vmem>>, vector<1x32xf32>
    %137 = arith.truncf %133 : vector<2x2048xf32> to vector<2x2048xbf16>
    %cst_61 = arith.constant dense<0.000000e+00> : vector<2x32xf32>
    %138 = tpu.matmul %137, %135, %cst_61 {dimension_numbers = #tpu.dot_dimension_numbers<[1], [1], [0], [0], [0, 0, 1, 0], [], []>} : vector<2x2048xbf16>, vector<32x2048xbf16>, vector<2x32xf32> -> vector<2x32xf32>
    %139 = vector.broadcast %136 : vector<1x32xf32> to vector<2x32xf32>
    %140 = arith.addf %138, %139 : vector<2x32xf32>
    %141 = arith.addf %124, %140 : vector<2x32xf32>
    %cst_62 = arith.constant dense<0.000000e+00> : vector<2xf32>
    %142 = vector.multi_reduction <add>, %141, %cst_62 [1] : vector<2x32xf32> to vector<2xf32>
    %143 = vector.shape_cast %142 : vector<2xf32> to vector<2x1xf32>
    %cst_63 = arith.constant 3.200000e+01 : f32
    %144 = vector.broadcast %cst_63 : f32 to vector<2x1xf32>
    %145 = arith.divf %143, %144 : vector<2x1xf32>
    %146 = vector.broadcast %145 : vector<2x1xf32> to vector<2x32xf32>
    %147 = arith.subf %141, %146 : vector<2x32xf32>
    %148 = arith.mulf %147, %147 : vector<2x32xf32>
    %cst_64 = arith.constant dense<0.000000e+00> : vector<2xf32>
    %149 = vector.multi_reduction <add>, %148, %cst_64 [1] : vector<2x32xf32> to vector<2xf32>
    %150 = vector.shape_cast %149 : vector<2xf32> to vector<2x1xf32>
    %cst_65 = arith.constant 3.200000e+01 : f32
    %151 = vector.broadcast %cst_65 : f32 to vector<2x1xf32>
    %152 = arith.divf %150, %151 : vector<2x1xf32>
    %cst_66 = arith.constant 9.99999974E-6 : f32
    %153 = vector.broadcast %cst_66 : f32 to vector<2x1xf32>
    %154 = arith.addf %152, %153 : vector<2x1xf32>
    %155 = math.rsqrt %154 : vector<2x1xf32>
    %156 = vector.broadcast %155 : vector<2x1xf32> to vector<2x32xf32>
    %157 = arith.mulf %147, %156 : vector<2x32xf32>
    %c29 = arith.constant 29 : index
    %c0_67 = arith.constant 0 : index
    %158 = vector.load %arg1[%c29, %c0_67] : memref<101x32xf32, #tpu.memory_space<vmem>>, vector<1x32xf32>
    %159 = vector.broadcast %158 : vector<1x32xf32> to vector<2x32xf32>
    %160 = arith.mulf %157, %159 : vector<2x32xf32>
    %c30 = arith.constant 30 : index
    %c0_68 = arith.constant 0 : index
    %161 = vector.load %arg1[%c30, %c0_68] : memref<101x32xf32, #tpu.memory_space<vmem>>, vector<1x32xf32>
    %162 = vector.broadcast %161 : vector<1x32xf32> to vector<2x32xf32>
    %163 = arith.addf %160, %162 : vector<2x32xf32>
    %cst_69 = arith.constant dense<0.000000e+00> : vector<2xf32>
    %164 = vector.multi_reduction <add>, %163, %cst_69 [1] : vector<2x32xf32> to vector<2xf32>
    %165 = vector.shape_cast %164 : vector<2xf32> to vector<2x1xf32>
    %cst_70 = arith.constant 3.200000e+01 : f32
    %166 = vector.broadcast %cst_70 : f32 to vector<2x1xf32>
    %167 = arith.divf %165, %166 : vector<2x1xf32>
    %168 = vector.broadcast %167 : vector<2x1xf32> to vector<2x32xf32>
    %169 = arith.subf %163, %168 : vector<2x32xf32>
    %170 = arith.mulf %169, %169 : vector<2x32xf32>
    %cst_71 = arith.constant dense<0.000000e+00> : vector<2xf32>
    %171 = vector.multi_reduction <add>, %170, %cst_71 [1] : vector<2x32xf32> to vector<2xf32>
    %172 = vector.shape_cast %171 : vector<2xf32> to vector<2x1xf32>
    %cst_72 = arith.constant 3.200000e+01 : f32
    %173 = vector.broadcast %cst_72 : f32 to vector<2x1xf32>
    %174 = arith.divf %172, %173 : vector<2x1xf32>
    %cst_73 = arith.constant 9.99999974E-6 : f32
    %175 = vector.broadcast %cst_73 : f32 to vector<2x1xf32>
    %176 = arith.addf %174, %175 : vector<2x1xf32>
    %177 = math.rsqrt %176 : vector<2x1xf32>
    %178 = vector.broadcast %177 : vector<2x1xf32> to vector<2x32xf32>
    %179 = arith.mulf %169, %178 : vector<2x32xf32>
    %c31 = arith.constant 31 : index
    %c0_74 = arith.constant 0 : index
    %180 = vector.load %arg1[%c31, %c0_74] : memref<101x32xf32, #tpu.memory_space<vmem>>, vector<1x32xf32>
    %181 = vector.broadcast %180 : vector<1x32xf32> to vector<2x32xf32>
    %182 = arith.mulf %179, %181 : vector<2x32xf32>
    %c32_75 = arith.constant 32 : index
    %c0_76 = arith.constant 0 : index
    %183 = vector.load %arg1[%c32_75, %c0_76] : memref<101x32xf32, #tpu.memory_space<vmem>>, vector<1x32xf32>
    %184 = vector.broadcast %183 : vector<1x32xf32> to vector<2x32xf32>
    %185 = arith.addf %182, %184 : vector<2x32xf32>
    %c0_77 = arith.constant 0 : index
    %c64 = arith.constant 64 : index
    %186 = vector.load %arg3[%c0_77, %c64] : memref<32x448xbf16, #tpu.memory_space<vmem>>, vector<32x32xbf16>
    %c33 = arith.constant 33 : index
    %c0_78 = arith.constant 0 : index
    %187 = vector.load %arg1[%c33, %c0_78] : memref<101x32xf32, #tpu.memory_space<vmem>>, vector<1x32xf32>
    %188 = arith.truncf %27 : vector<2x32xf32> to vector<2x32xbf16>
    %cst_79 = arith.constant dense<0.000000e+00> : vector<2x32xf32>
    %189 = tpu.matmul %188, %186, %cst_79 {dimension_numbers = #tpu.dot_dimension_numbers<[1], [0], [0], [1], [0, 0, 1, 1], [], []>} : vector<2x32xbf16>, vector<32x32xbf16>, vector<2x32xf32> -> vector<2x32xf32>
    %190 = vector.broadcast %187 : vector<1x32xf32> to vector<2x32xf32>
    %191 = arith.addf %189, %190 : vector<2x32xf32>
    %192 = arith.addf %27, %191 : vector<2x32xf32>
    %cst_80 = arith.constant dense<0.000000e+00> : vector<2xf32>
    %193 = vector.multi_reduction <add>, %192, %cst_80 [1] : vector<2x32xf32> to vector<2xf32>
    %194 = vector.shape_cast %193 : vector<2xf32> to vector<2x1xf32>
    %cst_81 = arith.constant 3.200000e+01 : f32
    %195 = vector.broadcast %cst_81 : f32 to vector<2x1xf32>
    %196 = arith.divf %194, %195 : vector<2x1xf32>
    %197 = vector.broadcast %196 : vector<2x1xf32> to vector<2x32xf32>
    %198 = arith.subf %192, %197 : vector<2x32xf32>
    %199 = arith.mulf %198, %198 : vector<2x32xf32>
    %cst_82 = arith.constant dense<0.000000e+00> : vector<2xf32>
    %200 = vector.multi_reduction <add>, %199, %cst_82 [1] : vector<2x32xf32> to vector<2xf32>
    %201 = vector.shape_cast %200 : vector<2xf32> to vector<2x1xf32>
    %cst_83 = arith.constant 3.200000e+01 : f32
    %202 = vector.broadcast %cst_83 : f32 to vector<2x1xf32>
    %203 = arith.divf %201, %202 : vector<2x1xf32>
    %cst_84 = arith.constant 9.99999974E-6 : f32
    %204 = vector.broadcast %cst_84 : f32 to vector<2x1xf32>
    %205 = arith.addf %203, %204 : vector<2x1xf32>
    %206 = math.rsqrt %205 : vector<2x1xf32>
    %207 = vector.broadcast %206 : vector<2x1xf32> to vector<2x32xf32>
    %208 = arith.mulf %198, %207 : vector<2x32xf32>
    %c34 = arith.constant 34 : index
    %c0_85 = arith.constant 0 : index
    %209 = vector.load %arg1[%c34, %c0_85] : memref<101x32xf32, #tpu.memory_space<vmem>>, vector<1x32xf32>
    %210 = vector.broadcast %209 : vector<1x32xf32> to vector<2x32xf32>
    %211 = arith.mulf %208, %210 : vector<2x32xf32>
    %c35 = arith.constant 35 : index
    %c0_86 = arith.constant 0 : index
    %212 = vector.load %arg1[%c35, %c0_86] : memref<101x32xf32, #tpu.memory_space<vmem>>, vector<1x32xf32>
    %213 = vector.broadcast %212 : vector<1x32xf32> to vector<2x32xf32>
    %214 = arith.addf %211, %213 : vector<2x32xf32>
    %c0_87 = arith.constant 0 : index
    %c256 = arith.constant 256 : index
    %215 = vector.load %arg3[%c0_87, %c256] : memref<32x448xbf16, #tpu.memory_space<vmem>>, vector<32x32xbf16>
    %c36 = arith.constant 36 : index
    %c0_88 = arith.constant 0 : index
    %216 = vector.load %arg1[%c36, %c0_88] : memref<101x32xf32, #tpu.memory_space<vmem>>, vector<1x32xf32>
    %217 = arith.truncf %185 : vector<2x32xf32> to vector<2x32xbf16>
    %cst_89 = arith.constant dense<0.000000e+00> : vector<2x32xf32>
    %218 = tpu.matmul %217, %215, %cst_89 {dimension_numbers = #tpu.dot_dimension_numbers<[1], [0], [0], [1], [0, 0, 1, 1], [], []>} : vector<2x32xbf16>, vector<32x32xbf16>, vector<2x32xf32> -> vector<2x32xf32>
    %219 = vector.broadcast %216 : vector<1x32xf32> to vector<2x32xf32>
    %220 = arith.addf %218, %219 : vector<2x32xf32>
    %221 = arith.addf %214, %220 : vector<2x32xf32>
    %cst_90 = arith.constant dense<0.000000e+00> : vector<2xf32>
    %222 = vector.multi_reduction <add>, %221, %cst_90 [1] : vector<2x32xf32> to vector<2xf32>
    %223 = vector.shape_cast %222 : vector<2xf32> to vector<2x1xf32>
    %cst_91 = arith.constant 3.200000e+01 : f32
    %224 = vector.broadcast %cst_91 : f32 to vector<2x1xf32>
    %225 = arith.divf %223, %224 : vector<2x1xf32>
    %226 = vector.broadcast %225 : vector<2x1xf32> to vector<2x32xf32>
    %227 = arith.subf %221, %226 : vector<2x32xf32>
    %228 = arith.mulf %227, %227 : vector<2x32xf32>
    %cst_92 = arith.constant dense<0.000000e+00> : vector<2xf32>
    %229 = vector.multi_reduction <add>, %228, %cst_92 [1] : vector<2x32xf32> to vector<2xf32>
    %230 = vector.shape_cast %229 : vector<2xf32> to vector<2x1xf32>
    %cst_93 = arith.constant 3.200000e+01 : f32
    %231 = vector.broadcast %cst_93 : f32 to vector<2x1xf32>
    %232 = arith.divf %230, %231 : vector<2x1xf32>
    %cst_94 = arith.constant 9.99999974E-6 : f32
    %233 = vector.broadcast %cst_94 : f32 to vector<2x1xf32>
    %234 = arith.addf %232, %233 : vector<2x1xf32>
    %235 = math.rsqrt %234 : vector<2x1xf32>
    %236 = vector.broadcast %235 : vector<2x1xf32> to vector<2x32xf32>
    %237 = arith.mulf %227, %236 : vector<2x32xf32>
    %c37 = arith.constant 37 : index
    %c0_95 = arith.constant 0 : index
    %238 = vector.load %arg1[%c37, %c0_95] : memref<101x32xf32, #tpu.memory_space<vmem>>, vector<1x32xf32>
    %239 = vector.broadcast %238 : vector<1x32xf32> to vector<2x32xf32>
    %240 = arith.mulf %237, %239 : vector<2x32xf32>
    %c38 = arith.constant 38 : index
    %c0_96 = arith.constant 0 : index
    %241 = vector.load %arg1[%c38, %c0_96] : memref<101x32xf32, #tpu.memory_space<vmem>>, vector<1x32xf32>
    %242 = vector.broadcast %241 : vector<1x32xf32> to vector<2x32xf32>
    %243 = arith.addf %240, %242 : vector<2x32xf32>
    %c2 = arith.constant 2 : index
    %c0_97 = arith.constant 0 : index
    %c0_98 = arith.constant 0 : index
    %244 = vector.load %arg4[%c2, %c0_97, %c0_98] : memref<8x32x2048xbf16, #tpu.memory_space<vmem>>, vector<1x32x2048xbf16>
    %245 = vector.shape_cast %244 : vector<1x32x2048xbf16> to vector<32x2048xbf16>
    %c2_99 = arith.constant 2 : index
    %c0_100 = arith.constant 0 : index
    %246 = vector.load %arg2[%c2_99, %c0_100] : memref<8x2048xf32, #tpu.memory_space<vmem>>, vector<1x2048xf32>
    %247 = arith.truncf %243 : vector<2x32xf32> to vector<2x32xbf16>
    %cst_101 = arith.constant dense<0.000000e+00> : vector<2x2048xf32>
    %248 = tpu.matmul %247, %245, %cst_101 {dimension_numbers = #tpu.dot_dimension_numbers<[1], [0], [0], [1], [0, 0, 1, 1], [], []>} : vector<2x32xbf16>, vector<32x2048xbf16>, vector<2x2048xf32> -> vector<2x2048xf32>
    %249 = vector.broadcast %246 : vector<1x2048xf32> to vector<2x2048xf32>
    %250 = arith.addf %248, %249 : vector<2x2048xf32>
    %cst_102 = arith.constant 0.000000e+00 : f32
    %251 = vector.broadcast %cst_102 : f32 to vector<2x2048xf32>
    %252 = arith.maximumf %250, %251 : vector<2x2048xf32>
    %c2_103 = arith.constant 2 : index
    %c0_104 = arith.constant 0 : index
    %c0_105 = arith.constant 0 : index
    %253 = vector.load %arg5[%c2_103, %c0_104, %c0_105] : memref<8x32x2048xbf16, #tpu.memory_space<vmem>>, vector<1x32x2048xbf16>
    %254 = vector.shape_cast %253 : vector<1x32x2048xbf16> to vector<32x2048xbf16>
    %c39 = arith.constant 39 : index
    %c0_106 = arith.constant 0 : index
    %255 = vector.load %arg1[%c39, %c0_106] : memref<101x32xf32, #tpu.memory_space<vmem>>, vector<1x32xf32>
    %256 = arith.truncf %252 : vector<2x2048xf32> to vector<2x2048xbf16>
    %cst_107 = arith.constant dense<0.000000e+00> : vector<2x32xf32>
    %257 = tpu.matmul %256, %254, %cst_107 {dimension_numbers = #tpu.dot_dimension_numbers<[1], [1], [0], [0], [0, 0, 1, 0], [], []>} : vector<2x2048xbf16>, vector<32x2048xbf16>, vector<2x32xf32> -> vector<2x32xf32>
    %258 = vector.broadcast %255 : vector<1x32xf32> to vector<2x32xf32>
    %259 = arith.addf %257, %258 : vector<2x32xf32>
    %260 = arith.addf %243, %259 : vector<2x32xf32>
    %cst_108 = arith.constant dense<0.000000e+00> : vector<2xf32>
    %261 = vector.multi_reduction <add>, %260, %cst_108 [1] : vector<2x32xf32> to vector<2xf32>
    %262 = vector.shape_cast %261 : vector<2xf32> to vector<2x1xf32>
    %cst_109 = arith.constant 3.200000e+01 : f32
    %263 = vector.broadcast %cst_109 : f32 to vector<2x1xf32>
    %264 = arith.divf %262, %263 : vector<2x1xf32>
    %265 = vector.broadcast %264 : vector<2x1xf32> to vector<2x32xf32>
    %266 = arith.subf %260, %265 : vector<2x32xf32>
    %267 = arith.mulf %266, %266 : vector<2x32xf32>
    %cst_110 = arith.constant dense<0.000000e+00> : vector<2xf32>
    %268 = vector.multi_reduction <add>, %267, %cst_110 [1] : vector<2x32xf32> to vector<2xf32>
    %269 = vector.shape_cast %268 : vector<2xf32> to vector<2x1xf32>
    %cst_111 = arith.constant 3.200000e+01 : f32
    %270 = vector.broadcast %cst_111 : f32 to vector<2x1xf32>
    %271 = arith.divf %269, %270 : vector<2x1xf32>
    %cst_112 = arith.constant 9.99999974E-6 : f32
    %272 = vector.broadcast %cst_112 : f32 to vector<2x1xf32>
    %273 = arith.addf %271, %272 : vector<2x1xf32>
    %274 = math.rsqrt %273 : vector<2x1xf32>
    %275 = vector.broadcast %274 : vector<2x1xf32> to vector<2x32xf32>
    %276 = arith.mulf %266, %275 : vector<2x32xf32>
    %c40 = arith.constant 40 : index
    %c0_113 = arith.constant 0 : index
    %277 = vector.load %arg1[%c40, %c0_113] : memref<101x32xf32, #tpu.memory_space<vmem>>, vector<1x32xf32>
    %278 = vector.broadcast %277 : vector<1x32xf32> to vector<2x32xf32>
    %279 = arith.mulf %276, %278 : vector<2x32xf32>
    %c41 = arith.constant 41 : index
    %c0_114 = arith.constant 0 : index
    %280 = vector.load %arg1[%c41, %c0_114] : memref<101x32xf32, #tpu.memory_space<vmem>>, vector<1x32xf32>
    %281 = vector.broadcast %280 : vector<1x32xf32> to vector<2x32xf32>
    %282 = arith.addf %279, %281 : vector<2x32xf32>
    %c0_115 = arith.constant 0 : index
    %c96 = arith.constant 96 : index
    %283 = vector.load %arg3[%c0_115, %c96] : memref<32x448xbf16, #tpu.memory_space<vmem>>, vector<32x32xbf16>
    %c42 = arith.constant 42 : index
    %c0_116 = arith.constant 0 : index
    %284 = vector.load %arg1[%c42, %c0_116] : memref<101x32xf32, #tpu.memory_space<vmem>>, vector<1x32xf32>
    %285 = arith.truncf %282 : vector<2x32xf32> to vector<2x32xbf16>
    %cst_117 = arith.constant dense<0.000000e+00> : vector<2x32xf32>
    %286 = tpu.matmul %285, %283, %cst_117 {dimension_numbers = #tpu.dot_dimension_numbers<[1], [0], [0], [1], [0, 0, 1, 1], [], []>} : vector<2x32xbf16>, vector<32x32xbf16>, vector<2x32xf32> -> vector<2x32xf32>
    %287 = vector.broadcast %284 : vector<1x32xf32> to vector<2x32xf32>
    %288 = arith.addf %286, %287 : vector<2x32xf32>
    %289 = arith.addf %282, %288 : vector<2x32xf32>
    %cst_118 = arith.constant dense<0.000000e+00> : vector<2xf32>
    %290 = vector.multi_reduction <add>, %289, %cst_118 [1] : vector<2x32xf32> to vector<2xf32>
    %291 = vector.shape_cast %290 : vector<2xf32> to vector<2x1xf32>
    %cst_119 = arith.constant 3.200000e+01 : f32
    %292 = vector.broadcast %cst_119 : f32 to vector<2x1xf32>
    %293 = arith.divf %291, %292 : vector<2x1xf32>
    %294 = vector.broadcast %293 : vector<2x1xf32> to vector<2x32xf32>
    %295 = arith.subf %289, %294 : vector<2x32xf32>
    %296 = arith.mulf %295, %295 : vector<2x32xf32>
    %cst_120 = arith.constant dense<0.000000e+00> : vector<2xf32>
    %297 = vector.multi_reduction <add>, %296, %cst_120 [1] : vector<2x32xf32> to vector<2xf32>
    %298 = vector.shape_cast %297 : vector<2xf32> to vector<2x1xf32>
    %cst_121 = arith.constant 3.200000e+01 : f32
    %299 = vector.broadcast %cst_121 : f32 to vector<2x1xf32>
    %300 = arith.divf %298, %299 : vector<2x1xf32>
    %cst_122 = arith.constant 9.99999974E-6 : f32
    %301 = vector.broadcast %cst_122 : f32 to vector<2x1xf32>
    %302 = arith.addf %300, %301 : vector<2x1xf32>
    %303 = math.rsqrt %302 : vector<2x1xf32>
    %304 = vector.broadcast %303 : vector<2x1xf32> to vector<2x32xf32>
    %305 = arith.mulf %295, %304 : vector<2x32xf32>
    %c43 = arith.constant 43 : index
    %c0_123 = arith.constant 0 : index
    %306 = vector.load %arg1[%c43, %c0_123] : memref<101x32xf32, #tpu.memory_space<vmem>>, vector<1x32xf32>
    %307 = vector.broadcast %306 : vector<1x32xf32> to vector<2x32xf32>
    %308 = arith.mulf %305, %307 : vector<2x32xf32>
    %c44 = arith.constant 44 : index
    %c0_124 = arith.constant 0 : index
    %309 = vector.load %arg1[%c44, %c0_124] : memref<101x32xf32, #tpu.memory_space<vmem>>, vector<1x32xf32>
    %310 = vector.broadcast %309 : vector<1x32xf32> to vector<2x32xf32>
    %311 = arith.addf %308, %310 : vector<2x32xf32>
    %c0_125 = arith.constant 0 : index
    %c288 = arith.constant 288 : index
    %312 = vector.load %arg3[%c0_125, %c288] : memref<32x448xbf16, #tpu.memory_space<vmem>>, vector<32x32xbf16>
    %c45 = arith.constant 45 : index
    %c0_126 = arith.constant 0 : index
    %313 = vector.load %arg1[%c45, %c0_126] : memref<101x32xf32, #tpu.memory_space<vmem>>, vector<1x32xf32>
    %314 = arith.truncf %185 : vector<2x32xf32> to vector<2x32xbf16>
    %cst_127 = arith.constant dense<0.000000e+00> : vector<2x32xf32>
    %315 = tpu.matmul %314, %312, %cst_127 {dimension_numbers = #tpu.dot_dimension_numbers<[1], [0], [0], [1], [0, 0, 1, 1], [], []>} : vector<2x32xbf16>, vector<32x32xbf16>, vector<2x32xf32> -> vector<2x32xf32>
    %316 = vector.broadcast %313 : vector<1x32xf32> to vector<2x32xf32>
    %317 = arith.addf %315, %316 : vector<2x32xf32>
    %318 = arith.addf %311, %317 : vector<2x32xf32>
    %cst_128 = arith.constant dense<0.000000e+00> : vector<2xf32>
    %319 = vector.multi_reduction <add>, %318, %cst_128 [1] : vector<2x32xf32> to vector<2xf32>
    %320 = vector.shape_cast %319 : vector<2xf32> to vector<2x1xf32>
    %cst_129 = arith.constant 3.200000e+01 : f32
    %321 = vector.broadcast %cst_129 : f32 to vector<2x1xf32>
    %322 = arith.divf %320, %321 : vector<2x1xf32>
    %323 = vector.broadcast %322 : vector<2x1xf32> to vector<2x32xf32>
    %324 = arith.subf %318, %323 : vector<2x32xf32>
    %325 = arith.mulf %324, %324 : vector<2x32xf32>
    %cst_130 = arith.constant dense<0.000000e+00> : vector<2xf32>
    %326 = vector.multi_reduction <add>, %325, %cst_130 [1] : vector<2x32xf32> to vector<2xf32>
    %327 = vector.shape_cast %326 : vector<2xf32> to vector<2x1xf32>
    %cst_131 = arith.constant 3.200000e+01 : f32
    %328 = vector.broadcast %cst_131 : f32 to vector<2x1xf32>
    %329 = arith.divf %327, %328 : vector<2x1xf32>
    %cst_132 = arith.constant 9.99999974E-6 : f32
    %330 = vector.broadcast %cst_132 : f32 to vector<2x1xf32>
    %331 = arith.addf %329, %330 : vector<2x1xf32>
    %332 = math.rsqrt %331 : vector<2x1xf32>
    %333 = vector.broadcast %332 : vector<2x1xf32> to vector<2x32xf32>
    %334 = arith.mulf %324, %333 : vector<2x32xf32>
    %c46 = arith.constant 46 : index
    %c0_133 = arith.constant 0 : index
    %335 = vector.load %arg1[%c46, %c0_133] : memref<101x32xf32, #tpu.memory_space<vmem>>, vector<1x32xf32>
    %336 = vector.broadcast %335 : vector<1x32xf32> to vector<2x32xf32>
    %337 = arith.mulf %334, %336 : vector<2x32xf32>
    %c47 = arith.constant 47 : index
    %c0_134 = arith.constant 0 : index
    %338 = vector.load %arg1[%c47, %c0_134] : memref<101x32xf32, #tpu.memory_space<vmem>>, vector<1x32xf32>
    %339 = vector.broadcast %338 : vector<1x32xf32> to vector<2x32xf32>
    %340 = arith.addf %337, %339 : vector<2x32xf32>
    %c3 = arith.constant 3 : index
    %c0_135 = arith.constant 0 : index
    %c0_136 = arith.constant 0 : index
    %341 = vector.load %arg4[%c3, %c0_135, %c0_136] : memref<8x32x2048xbf16, #tpu.memory_space<vmem>>, vector<1x32x2048xbf16>
    %342 = vector.shape_cast %341 : vector<1x32x2048xbf16> to vector<32x2048xbf16>
    %c3_137 = arith.constant 3 : index
    %c0_138 = arith.constant 0 : index
    %343 = vector.load %arg2[%c3_137, %c0_138] : memref<8x2048xf32, #tpu.memory_space<vmem>>, vector<1x2048xf32>
    %344 = arith.truncf %340 : vector<2x32xf32> to vector<2x32xbf16>
    %cst_139 = arith.constant dense<0.000000e+00> : vector<2x2048xf32>
    %345 = tpu.matmul %344, %342, %cst_139 {dimension_numbers = #tpu.dot_dimension_numbers<[1], [0], [0], [1], [0, 0, 1, 1], [], []>} : vector<2x32xbf16>, vector<32x2048xbf16>, vector<2x2048xf32> -> vector<2x2048xf32>
    %346 = vector.broadcast %343 : vector<1x2048xf32> to vector<2x2048xf32>
    %347 = arith.addf %345, %346 : vector<2x2048xf32>
    %cst_140 = arith.constant 0.000000e+00 : f32
    %348 = vector.broadcast %cst_140 : f32 to vector<2x2048xf32>
    %349 = arith.maximumf %347, %348 : vector<2x2048xf32>
    %c3_141 = arith.constant 3 : index
    %c0_142 = arith.constant 0 : index
    %c0_143 = arith.constant 0 : index
    %350 = vector.load %arg5[%c3_141, %c0_142, %c0_143] : memref<8x32x2048xbf16, #tpu.memory_space<vmem>>, vector<1x32x2048xbf16>
    %351 = vector.shape_cast %350 : vector<1x32x2048xbf16> to vector<32x2048xbf16>
    %c48 = arith.constant 48 : index
    %c0_144 = arith.constant 0 : index
    %352 = vector.load %arg1[%c48, %c0_144] : memref<101x32xf32, #tpu.memory_space<vmem>>, vector<1x32xf32>
    %353 = arith.truncf %349 : vector<2x2048xf32> to vector<2x2048xbf16>
    %cst_145 = arith.constant dense<0.000000e+00> : vector<2x32xf32>
    %354 = tpu.matmul %353, %351, %cst_145 {dimension_numbers = #tpu.dot_dimension_numbers<[1], [1], [0], [0], [0, 0, 1, 0], [], []>} : vector<2x2048xbf16>, vector<32x2048xbf16>, vector<2x32xf32> -> vector<2x32xf32>
    %355 = vector.broadcast %352 : vector<1x32xf32> to vector<2x32xf32>
    %356 = arith.addf %354, %355 : vector<2x32xf32>
    %357 = arith.addf %340, %356 : vector<2x32xf32>
    %cst_146 = arith.constant dense<0.000000e+00> : vector<2xf32>
    %358 = vector.multi_reduction <add>, %357, %cst_146 [1] : vector<2x32xf32> to vector<2xf32>
    %359 = vector.shape_cast %358 : vector<2xf32> to vector<2x1xf32>
    %cst_147 = arith.constant 3.200000e+01 : f32
    %360 = vector.broadcast %cst_147 : f32 to vector<2x1xf32>
    %361 = arith.divf %359, %360 : vector<2x1xf32>
    %362 = vector.broadcast %361 : vector<2x1xf32> to vector<2x32xf32>
    %363 = arith.subf %357, %362 : vector<2x32xf32>
    %364 = arith.mulf %363, %363 : vector<2x32xf32>
    %cst_148 = arith.constant dense<0.000000e+00> : vector<2xf32>
    %365 = vector.multi_reduction <add>, %364, %cst_148 [1] : vector<2x32xf32> to vector<2xf32>
    %366 = vector.shape_cast %365 : vector<2xf32> to vector<2x1xf32>
    %cst_149 = arith.constant 3.200000e+01 : f32
    %367 = vector.broadcast %cst_149 : f32 to vector<2x1xf32>
    %368 = arith.divf %366, %367 : vector<2x1xf32>
    %cst_150 = arith.constant 9.99999974E-6 : f32
    %369 = vector.broadcast %cst_150 : f32 to vector<2x1xf32>
    %370 = arith.addf %368, %369 : vector<2x1xf32>
    %371 = math.rsqrt %370 : vector<2x1xf32>
    %372 = vector.broadcast %371 : vector<2x1xf32> to vector<2x32xf32>
    %373 = arith.mulf %363, %372 : vector<2x32xf32>
    %c49 = arith.constant 49 : index
    %c0_151 = arith.constant 0 : index
    %374 = vector.load %arg1[%c49, %c0_151] : memref<101x32xf32, #tpu.memory_space<vmem>>, vector<1x32xf32>
    %375 = vector.broadcast %374 : vector<1x32xf32> to vector<2x32xf32>
    %376 = arith.mulf %373, %375 : vector<2x32xf32>
    %c50 = arith.constant 50 : index
    %c0_152 = arith.constant 0 : index
    %377 = vector.load %arg1[%c50, %c0_152] : memref<101x32xf32, #tpu.memory_space<vmem>>, vector<1x32xf32>
    %378 = vector.broadcast %377 : vector<1x32xf32> to vector<2x32xf32>
    %379 = arith.addf %376, %378 : vector<2x32xf32>
    %c0_153 = arith.constant 0 : index
    %c128 = arith.constant 128 : index
    %380 = vector.load %arg3[%c0_153, %c128] : memref<32x448xbf16, #tpu.memory_space<vmem>>, vector<32x32xbf16>
    %c51 = arith.constant 51 : index
    %c0_154 = arith.constant 0 : index
    %381 = vector.load %arg1[%c51, %c0_154] : memref<101x32xf32, #tpu.memory_space<vmem>>, vector<1x32xf32>
    %382 = arith.truncf %379 : vector<2x32xf32> to vector<2x32xbf16>
    %cst_155 = arith.constant dense<0.000000e+00> : vector<2x32xf32>
    %383 = tpu.matmul %382, %380, %cst_155 {dimension_numbers = #tpu.dot_dimension_numbers<[1], [0], [0], [1], [0, 0, 1, 1], [], []>} : vector<2x32xbf16>, vector<32x32xbf16>, vector<2x32xf32> -> vector<2x32xf32>
    %384 = vector.broadcast %381 : vector<1x32xf32> to vector<2x32xf32>
    %385 = arith.addf %383, %384 : vector<2x32xf32>
    %386 = arith.addf %379, %385 : vector<2x32xf32>
    %cst_156 = arith.constant dense<0.000000e+00> : vector<2xf32>
    %387 = vector.multi_reduction <add>, %386, %cst_156 [1] : vector<2x32xf32> to vector<2xf32>
    %388 = vector.shape_cast %387 : vector<2xf32> to vector<2x1xf32>
    %cst_157 = arith.constant 3.200000e+01 : f32
    %389 = vector.broadcast %cst_157 : f32 to vector<2x1xf32>
    %390 = arith.divf %388, %389 : vector<2x1xf32>
    %391 = vector.broadcast %390 : vector<2x1xf32> to vector<2x32xf32>
    %392 = arith.subf %386, %391 : vector<2x32xf32>
    %393 = arith.mulf %392, %392 : vector<2x32xf32>
    %cst_158 = arith.constant dense<0.000000e+00> : vector<2xf32>
    %394 = vector.multi_reduction <add>, %393, %cst_158 [1] : vector<2x32xf32> to vector<2xf32>
    %395 = vector.shape_cast %394 : vector<2xf32> to vector<2x1xf32>
    %cst_159 = arith.constant 3.200000e+01 : f32
    %396 = vector.broadcast %cst_159 : f32 to vector<2x1xf32>
    %397 = arith.divf %395, %396 : vector<2x1xf32>
    %cst_160 = arith.constant 9.99999974E-6 : f32
    %398 = vector.broadcast %cst_160 : f32 to vector<2x1xf32>
    %399 = arith.addf %397, %398 : vector<2x1xf32>
    %400 = math.rsqrt %399 : vector<2x1xf32>
    %401 = vector.broadcast %400 : vector<2x1xf32> to vector<2x32xf32>
    %402 = arith.mulf %392, %401 : vector<2x32xf32>
    %c52 = arith.constant 52 : index
    %c0_161 = arith.constant 0 : index
    %403 = vector.load %arg1[%c52, %c0_161] : memref<101x32xf32, #tpu.memory_space<vmem>>, vector<1x32xf32>
    %404 = vector.broadcast %403 : vector<1x32xf32> to vector<2x32xf32>
    %405 = arith.mulf %402, %404 : vector<2x32xf32>
    %c53 = arith.constant 53 : index
    %c0_162 = arith.constant 0 : index
    %406 = vector.load %arg1[%c53, %c0_162] : memref<101x32xf32, #tpu.memory_space<vmem>>, vector<1x32xf32>
    %407 = vector.broadcast %406 : vector<1x32xf32> to vector<2x32xf32>
    %408 = arith.addf %405, %407 : vector<2x32xf32>
    %c0_163 = arith.constant 0 : index
    %c320 = arith.constant 320 : index
    %409 = vector.load %arg3[%c0_163, %c320] : memref<32x448xbf16, #tpu.memory_space<vmem>>, vector<32x32xbf16>
    %c54 = arith.constant 54 : index
    %c0_164 = arith.constant 0 : index
    %410 = vector.load %arg1[%c54, %c0_164] : memref<101x32xf32, #tpu.memory_space<vmem>>, vector<1x32xf32>
    %411 = arith.truncf %185 : vector<2x32xf32> to vector<2x32xbf16>
    %cst_165 = arith.constant dense<0.000000e+00> : vector<2x32xf32>
    %412 = tpu.matmul %411, %409, %cst_165 {dimension_numbers = #tpu.dot_dimension_numbers<[1], [0], [0], [1], [0, 0, 1, 1], [], []>} : vector<2x32xbf16>, vector<32x32xbf16>, vector<2x32xf32> -> vector<2x32xf32>
    %413 = vector.broadcast %410 : vector<1x32xf32> to vector<2x32xf32>
    %414 = arith.addf %412, %413 : vector<2x32xf32>
    %415 = arith.addf %408, %414 : vector<2x32xf32>
    %cst_166 = arith.constant dense<0.000000e+00> : vector<2xf32>
    %416 = vector.multi_reduction <add>, %415, %cst_166 [1] : vector<2x32xf32> to vector<2xf32>
    %417 = vector.shape_cast %416 : vector<2xf32> to vector<2x1xf32>
    %cst_167 = arith.constant 3.200000e+01 : f32
    %418 = vector.broadcast %cst_167 : f32 to vector<2x1xf32>
    %419 = arith.divf %417, %418 : vector<2x1xf32>
    %420 = vector.broadcast %419 : vector<2x1xf32> to vector<2x32xf32>
    %421 = arith.subf %415, %420 : vector<2x32xf32>
    %422 = arith.mulf %421, %421 : vector<2x32xf32>
    %cst_168 = arith.constant dense<0.000000e+00> : vector<2xf32>
    %423 = vector.multi_reduction <add>, %422, %cst_168 [1] : vector<2x32xf32> to vector<2xf32>
    %424 = vector.shape_cast %423 : vector<2xf32> to vector<2x1xf32>
    %cst_169 = arith.constant 3.200000e+01 : f32
    %425 = vector.broadcast %cst_169 : f32 to vector<2x1xf32>
    %426 = arith.divf %424, %425 : vector<2x1xf32>
    %cst_170 = arith.constant 9.99999974E-6 : f32
    %427 = vector.broadcast %cst_170 : f32 to vector<2x1xf32>
    %428 = arith.addf %426, %427 : vector<2x1xf32>
    %429 = math.rsqrt %428 : vector<2x1xf32>
    %430 = vector.broadcast %429 : vector<2x1xf32> to vector<2x32xf32>
    %431 = arith.mulf %421, %430 : vector<2x32xf32>
    %c55 = arith.constant 55 : index
    %c0_171 = arith.constant 0 : index
    %432 = vector.load %arg1[%c55, %c0_171] : memref<101x32xf32, #tpu.memory_space<vmem>>, vector<1x32xf32>
    %433 = vector.broadcast %432 : vector<1x32xf32> to vector<2x32xf32>
    %434 = arith.mulf %431, %433 : vector<2x32xf32>
    %c56 = arith.constant 56 : index
    %c0_172 = arith.constant 0 : index
    %435 = vector.load %arg1[%c56, %c0_172] : memref<101x32xf32, #tpu.memory_space<vmem>>, vector<1x32xf32>
    %436 = vector.broadcast %435 : vector<1x32xf32> to vector<2x32xf32>
    %437 = arith.addf %434, %436 : vector<2x32xf32>
    %c4 = arith.constant 4 : index
    %c0_173 = arith.constant 0 : index
    %c0_174 = arith.constant 0 : index
    %438 = vector.load %arg4[%c4, %c0_173, %c0_174] : memref<8x32x2048xbf16, #tpu.memory_space<vmem>>, vector<1x32x2048xbf16>
    %439 = vector.shape_cast %438 : vector<1x32x2048xbf16> to vector<32x2048xbf16>
    %c4_175 = arith.constant 4 : index
    %c0_176 = arith.constant 0 : index
    %440 = vector.load %arg2[%c4_175, %c0_176] : memref<8x2048xf32, #tpu.memory_space<vmem>>, vector<1x2048xf32>
    %441 = arith.truncf %437 : vector<2x32xf32> to vector<2x32xbf16>
    %cst_177 = arith.constant dense<0.000000e+00> : vector<2x2048xf32>
    %442 = tpu.matmul %441, %439, %cst_177 {dimension_numbers = #tpu.dot_dimension_numbers<[1], [0], [0], [1], [0, 0, 1, 1], [], []>} : vector<2x32xbf16>, vector<32x2048xbf16>, vector<2x2048xf32> -> vector<2x2048xf32>
    %443 = vector.broadcast %440 : vector<1x2048xf32> to vector<2x2048xf32>
    %444 = arith.addf %442, %443 : vector<2x2048xf32>
    %cst_178 = arith.constant 0.000000e+00 : f32
    %445 = vector.broadcast %cst_178 : f32 to vector<2x2048xf32>
    %446 = arith.maximumf %444, %445 : vector<2x2048xf32>
    %c4_179 = arith.constant 4 : index
    %c0_180 = arith.constant 0 : index
    %c0_181 = arith.constant 0 : index
    %447 = vector.load %arg5[%c4_179, %c0_180, %c0_181] : memref<8x32x2048xbf16, #tpu.memory_space<vmem>>, vector<1x32x2048xbf16>
    %448 = vector.shape_cast %447 : vector<1x32x2048xbf16> to vector<32x2048xbf16>
    %c57 = arith.constant 57 : index
    %c0_182 = arith.constant 0 : index
    %449 = vector.load %arg1[%c57, %c0_182] : memref<101x32xf32, #tpu.memory_space<vmem>>, vector<1x32xf32>
    %450 = arith.truncf %446 : vector<2x2048xf32> to vector<2x2048xbf16>
    %cst_183 = arith.constant dense<0.000000e+00> : vector<2x32xf32>
    %451 = tpu.matmul %450, %448, %cst_183 {dimension_numbers = #tpu.dot_dimension_numbers<[1], [1], [0], [0], [0, 0, 1, 0], [], []>} : vector<2x2048xbf16>, vector<32x2048xbf16>, vector<2x32xf32> -> vector<2x32xf32>
    %452 = vector.broadcast %449 : vector<1x32xf32> to vector<2x32xf32>
    %453 = arith.addf %451, %452 : vector<2x32xf32>
    %454 = arith.addf %437, %453 : vector<2x32xf32>
    %cst_184 = arith.constant dense<0.000000e+00> : vector<2xf32>
    %455 = vector.multi_reduction <add>, %454, %cst_184 [1] : vector<2x32xf32> to vector<2xf32>
    %456 = vector.shape_cast %455 : vector<2xf32> to vector<2x1xf32>
    %cst_185 = arith.constant 3.200000e+01 : f32
    %457 = vector.broadcast %cst_185 : f32 to vector<2x1xf32>
    %458 = arith.divf %456, %457 : vector<2x1xf32>
    %459 = vector.broadcast %458 : vector<2x1xf32> to vector<2x32xf32>
    %460 = arith.subf %454, %459 : vector<2x32xf32>
    %461 = arith.mulf %460, %460 : vector<2x32xf32>
    %cst_186 = arith.constant dense<0.000000e+00> : vector<2xf32>
    %462 = vector.multi_reduction <add>, %461, %cst_186 [1] : vector<2x32xf32> to vector<2xf32>
    %463 = vector.shape_cast %462 : vector<2xf32> to vector<2x1xf32>
    %cst_187 = arith.constant 3.200000e+01 : f32
    %464 = vector.broadcast %cst_187 : f32 to vector<2x1xf32>
    %465 = arith.divf %463, %464 : vector<2x1xf32>
    %cst_188 = arith.constant 9.99999974E-6 : f32
    %466 = vector.broadcast %cst_188 : f32 to vector<2x1xf32>
    %467 = arith.addf %465, %466 : vector<2x1xf32>
    %468 = math.rsqrt %467 : vector<2x1xf32>
    %469 = vector.broadcast %468 : vector<2x1xf32> to vector<2x32xf32>
    %470 = arith.mulf %460, %469 : vector<2x32xf32>
    %c58 = arith.constant 58 : index
    %c0_189 = arith.constant 0 : index
    %471 = vector.load %arg1[%c58, %c0_189] : memref<101x32xf32, #tpu.memory_space<vmem>>, vector<1x32xf32>
    %472 = vector.broadcast %471 : vector<1x32xf32> to vector<2x32xf32>
    %473 = arith.mulf %470, %472 : vector<2x32xf32>
    %c59 = arith.constant 59 : index
    %c0_190 = arith.constant 0 : index
    %474 = vector.load %arg1[%c59, %c0_190] : memref<101x32xf32, #tpu.memory_space<vmem>>, vector<1x32xf32>
    %475 = vector.broadcast %474 : vector<1x32xf32> to vector<2x32xf32>
    %476 = arith.addf %473, %475 : vector<2x32xf32>
    %c0_191 = arith.constant 0 : index
    %c160 = arith.constant 160 : index
    %477 = vector.load %arg3[%c0_191, %c160] : memref<32x448xbf16, #tpu.memory_space<vmem>>, vector<32x32xbf16>
    %c60 = arith.constant 60 : index
    %c0_192 = arith.constant 0 : index
    %478 = vector.load %arg1[%c60, %c0_192] : memref<101x32xf32, #tpu.memory_space<vmem>>, vector<1x32xf32>
    %479 = arith.truncf %476 : vector<2x32xf32> to vector<2x32xbf16>
    %cst_193 = arith.constant dense<0.000000e+00> : vector<2x32xf32>
    %480 = tpu.matmul %479, %477, %cst_193 {dimension_numbers = #tpu.dot_dimension_numbers<[1], [0], [0], [1], [0, 0, 1, 1], [], []>} : vector<2x32xbf16>, vector<32x32xbf16>, vector<2x32xf32> -> vector<2x32xf32>
    %481 = vector.broadcast %478 : vector<1x32xf32> to vector<2x32xf32>
    %482 = arith.addf %480, %481 : vector<2x32xf32>
    %483 = arith.addf %476, %482 : vector<2x32xf32>
    %cst_194 = arith.constant dense<0.000000e+00> : vector<2xf32>
    %484 = vector.multi_reduction <add>, %483, %cst_194 [1] : vector<2x32xf32> to vector<2xf32>
    %485 = vector.shape_cast %484 : vector<2xf32> to vector<2x1xf32>
    %cst_195 = arith.constant 3.200000e+01 : f32
    %486 = vector.broadcast %cst_195 : f32 to vector<2x1xf32>
    %487 = arith.divf %485, %486 : vector<2x1xf32>
    %488 = vector.broadcast %487 : vector<2x1xf32> to vector<2x32xf32>
    %489 = arith.subf %483, %488 : vector<2x32xf32>
    %490 = arith.mulf %489, %489 : vector<2x32xf32>
    %cst_196 = arith.constant dense<0.000000e+00> : vector<2xf32>
    %491 = vector.multi_reduction <add>, %490, %cst_196 [1] : vector<2x32xf32> to vector<2xf32>
    %492 = vector.shape_cast %491 : vector<2xf32> to vector<2x1xf32>
    %cst_197 = arith.constant 3.200000e+01 : f32
    %493 = vector.broadcast %cst_197 : f32 to vector<2x1xf32>
    %494 = arith.divf %492, %493 : vector<2x1xf32>
    %cst_198 = arith.constant 9.99999974E-6 : f32
    %495 = vector.broadcast %cst_198 : f32 to vector<2x1xf32>
    %496 = arith.addf %494, %495 : vector<2x1xf32>
    %497 = math.rsqrt %496 : vector<2x1xf32>
    %498 = vector.broadcast %497 : vector<2x1xf32> to vector<2x32xf32>
    %499 = arith.mulf %489, %498 : vector<2x32xf32>
    %c61 = arith.constant 61 : index
    %c0_199 = arith.constant 0 : index
    %500 = vector.load %arg1[%c61, %c0_199] : memref<101x32xf32, #tpu.memory_space<vmem>>, vector<1x32xf32>
    %501 = vector.broadcast %500 : vector<1x32xf32> to vector<2x32xf32>
    %502 = arith.mulf %499, %501 : vector<2x32xf32>
    %c62 = arith.constant 62 : index
    %c0_200 = arith.constant 0 : index
    %503 = vector.load %arg1[%c62, %c0_200] : memref<101x32xf32, #tpu.memory_space<vmem>>, vector<1x32xf32>
    %504 = vector.broadcast %503 : vector<1x32xf32> to vector<2x32xf32>
    %505 = arith.addf %502, %504 : vector<2x32xf32>
    %c0_201 = arith.constant 0 : index
    %c352 = arith.constant 352 : index
    %506 = vector.load %arg3[%c0_201, %c352] : memref<32x448xbf16, #tpu.memory_space<vmem>>, vector<32x32xbf16>
    %c63 = arith.constant 63 : index
    %c0_202 = arith.constant 0 : index
    %507 = vector.load %arg1[%c63, %c0_202] : memref<101x32xf32, #tpu.memory_space<vmem>>, vector<1x32xf32>
    %508 = arith.truncf %185 : vector<2x32xf32> to vector<2x32xbf16>
    %cst_203 = arith.constant dense<0.000000e+00> : vector<2x32xf32>
    %509 = tpu.matmul %508, %506, %cst_203 {dimension_numbers = #tpu.dot_dimension_numbers<[1], [0], [0], [1], [0, 0, 1, 1], [], []>} : vector<2x32xbf16>, vector<32x32xbf16>, vector<2x32xf32> -> vector<2x32xf32>
    %510 = vector.broadcast %507 : vector<1x32xf32> to vector<2x32xf32>
    %511 = arith.addf %509, %510 : vector<2x32xf32>
    %512 = arith.addf %505, %511 : vector<2x32xf32>
    %cst_204 = arith.constant dense<0.000000e+00> : vector<2xf32>
    %513 = vector.multi_reduction <add>, %512, %cst_204 [1] : vector<2x32xf32> to vector<2xf32>
    %514 = vector.shape_cast %513 : vector<2xf32> to vector<2x1xf32>
    %cst_205 = arith.constant 3.200000e+01 : f32
    %515 = vector.broadcast %cst_205 : f32 to vector<2x1xf32>
    %516 = arith.divf %514, %515 : vector<2x1xf32>
    %517 = vector.broadcast %516 : vector<2x1xf32> to vector<2x32xf32>
    %518 = arith.subf %512, %517 : vector<2x32xf32>
    %519 = arith.mulf %518, %518 : vector<2x32xf32>
    %cst_206 = arith.constant dense<0.000000e+00> : vector<2xf32>
    %520 = vector.multi_reduction <add>, %519, %cst_206 [1] : vector<2x32xf32> to vector<2xf32>
    %521 = vector.shape_cast %520 : vector<2xf32> to vector<2x1xf32>
    %cst_207 = arith.constant 3.200000e+01 : f32
    %522 = vector.broadcast %cst_207 : f32 to vector<2x1xf32>
    %523 = arith.divf %521, %522 : vector<2x1xf32>
    %cst_208 = arith.constant 9.99999974E-6 : f32
    %524 = vector.broadcast %cst_208 : f32 to vector<2x1xf32>
    %525 = arith.addf %523, %524 : vector<2x1xf32>
    %526 = math.rsqrt %525 : vector<2x1xf32>
    %527 = vector.broadcast %526 : vector<2x1xf32> to vector<2x32xf32>
    %528 = arith.mulf %518, %527 : vector<2x32xf32>
    %c64_209 = arith.constant 64 : index
    %c0_210 = arith.constant 0 : index
    %529 = vector.load %arg1[%c64_209, %c0_210] : memref<101x32xf32, #tpu.memory_space<vmem>>, vector<1x32xf32>
    %530 = vector.broadcast %529 : vector<1x32xf32> to vector<2x32xf32>
    %531 = arith.mulf %528, %530 : vector<2x32xf32>
    %c65 = arith.constant 65 : index
    %c0_211 = arith.constant 0 : index
    %532 = vector.load %arg1[%c65, %c0_211] : memref<101x32xf32, #tpu.memory_space<vmem>>, vector<1x32xf32>
    %533 = vector.broadcast %532 : vector<1x32xf32> to vector<2x32xf32>
    %534 = arith.addf %531, %533 : vector<2x32xf32>
    %c5 = arith.constant 5 : index
    %c0_212 = arith.constant 0 : index
    %c0_213 = arith.constant 0 : index
    %535 = vector.load %arg4[%c5, %c0_212, %c0_213] : memref<8x32x2048xbf16, #tpu.memory_space<vmem>>, vector<1x32x2048xbf16>
    %536 = vector.shape_cast %535 : vector<1x32x2048xbf16> to vector<32x2048xbf16>
    %c5_214 = arith.constant 5 : index
    %c0_215 = arith.constant 0 : index
    %537 = vector.load %arg2[%c5_214, %c0_215] : memref<8x2048xf32, #tpu.memory_space<vmem>>, vector<1x2048xf32>
    %538 = arith.truncf %534 : vector<2x32xf32> to vector<2x32xbf16>
    %cst_216 = arith.constant dense<0.000000e+00> : vector<2x2048xf32>
    %539 = tpu.matmul %538, %536, %cst_216 {dimension_numbers = #tpu.dot_dimension_numbers<[1], [0], [0], [1], [0, 0, 1, 1], [], []>} : vector<2x32xbf16>, vector<32x2048xbf16>, vector<2x2048xf32> -> vector<2x2048xf32>
    %540 = vector.broadcast %537 : vector<1x2048xf32> to vector<2x2048xf32>
    %541 = arith.addf %539, %540 : vector<2x2048xf32>
    %cst_217 = arith.constant 0.000000e+00 : f32
    %542 = vector.broadcast %cst_217 : f32 to vector<2x2048xf32>
    %543 = arith.maximumf %541, %542 : vector<2x2048xf32>
    %c5_218 = arith.constant 5 : index
    %c0_219 = arith.constant 0 : index
    %c0_220 = arith.constant 0 : index
    %544 = vector.load %arg5[%c5_218, %c0_219, %c0_220] : memref<8x32x2048xbf16, #tpu.memory_space<vmem>>, vector<1x32x2048xbf16>
    %545 = vector.shape_cast %544 : vector<1x32x2048xbf16> to vector<32x2048xbf16>
    %c66 = arith.constant 66 : index
    %c0_221 = arith.constant 0 : index
    %546 = vector.load %arg1[%c66, %c0_221] : memref<101x32xf32, #tpu.memory_space<vmem>>, vector<1x32xf32>
    %547 = arith.truncf %543 : vector<2x2048xf32> to vector<2x2048xbf16>
    %cst_222 = arith.constant dense<0.000000e+00> : vector<2x32xf32>
    %548 = tpu.matmul %547, %545, %cst_222 {dimension_numbers = #tpu.dot_dimension_numbers<[1], [1], [0], [0], [0, 0, 1, 0], [], []>} : vector<2x2048xbf16>, vector<32x2048xbf16>, vector<2x32xf32> -> vector<2x32xf32>
    %549 = vector.broadcast %546 : vector<1x32xf32> to vector<2x32xf32>
    %550 = arith.addf %548, %549 : vector<2x32xf32>
    %551 = arith.addf %534, %550 : vector<2x32xf32>
    %cst_223 = arith.constant dense<0.000000e+00> : vector<2xf32>
    %552 = vector.multi_reduction <add>, %551, %cst_223 [1] : vector<2x32xf32> to vector<2xf32>
    %553 = vector.shape_cast %552 : vector<2xf32> to vector<2x1xf32>
    %cst_224 = arith.constant 3.200000e+01 : f32
    %554 = vector.broadcast %cst_224 : f32 to vector<2x1xf32>
    %555 = arith.divf %553, %554 : vector<2x1xf32>
    %556 = vector.broadcast %555 : vector<2x1xf32> to vector<2x32xf32>
    %557 = arith.subf %551, %556 : vector<2x32xf32>
    %558 = arith.mulf %557, %557 : vector<2x32xf32>
    %cst_225 = arith.constant dense<0.000000e+00> : vector<2xf32>
    %559 = vector.multi_reduction <add>, %558, %cst_225 [1] : vector<2x32xf32> to vector<2xf32>
    %560 = vector.shape_cast %559 : vector<2xf32> to vector<2x1xf32>
    %cst_226 = arith.constant 3.200000e+01 : f32
    %561 = vector.broadcast %cst_226 : f32 to vector<2x1xf32>
    %562 = arith.divf %560, %561 : vector<2x1xf32>
    %cst_227 = arith.constant 9.99999974E-6 : f32
    %563 = vector.broadcast %cst_227 : f32 to vector<2x1xf32>
    %564 = arith.addf %562, %563 : vector<2x1xf32>
    %565 = math.rsqrt %564 : vector<2x1xf32>
    %566 = vector.broadcast %565 : vector<2x1xf32> to vector<2x32xf32>
    %567 = arith.mulf %557, %566 : vector<2x32xf32>
    %c67 = arith.constant 67 : index
    %c0_228 = arith.constant 0 : index
    %568 = vector.load %arg1[%c67, %c0_228] : memref<101x32xf32, #tpu.memory_space<vmem>>, vector<1x32xf32>
    %569 = vector.broadcast %568 : vector<1x32xf32> to vector<2x32xf32>
    %570 = arith.mulf %567, %569 : vector<2x32xf32>
    %c68 = arith.constant 68 : index
    %c0_229 = arith.constant 0 : index
    %571 = vector.load %arg1[%c68, %c0_229] : memref<101x32xf32, #tpu.memory_space<vmem>>, vector<1x32xf32>
    %572 = vector.broadcast %571 : vector<1x32xf32> to vector<2x32xf32>
    %573 = arith.addf %570, %572 : vector<2x32xf32>
    %c0_230 = arith.constant 0 : index
    %c192 = arith.constant 192 : index
    %574 = vector.load %arg3[%c0_230, %c192] : memref<32x448xbf16, #tpu.memory_space<vmem>>, vector<32x32xbf16>
    %c69 = arith.constant 69 : index
    %c0_231 = arith.constant 0 : index
    %575 = vector.load %arg1[%c69, %c0_231] : memref<101x32xf32, #tpu.memory_space<vmem>>, vector<1x32xf32>
    %576 = arith.truncf %573 : vector<2x32xf32> to vector<2x32xbf16>
    %cst_232 = arith.constant dense<0.000000e+00> : vector<2x32xf32>
    %577 = tpu.matmul %576, %574, %cst_232 {dimension_numbers = #tpu.dot_dimension_numbers<[1], [0], [0], [1], [0, 0, 1, 1], [], []>} : vector<2x32xbf16>, vector<32x32xbf16>, vector<2x32xf32> -> vector<2x32xf32>
    %578 = vector.broadcast %575 : vector<1x32xf32> to vector<2x32xf32>
    %579 = arith.addf %577, %578 : vector<2x32xf32>
    %580 = arith.addf %573, %579 : vector<2x32xf32>
    %cst_233 = arith.constant dense<0.000000e+00> : vector<2xf32>
    %581 = vector.multi_reduction <add>, %580, %cst_233 [1] : vector<2x32xf32> to vector<2xf32>
    %582 = vector.shape_cast %581 : vector<2xf32> to vector<2x1xf32>
    %cst_234 = arith.constant 3.200000e+01 : f32
    %583 = vector.broadcast %cst_234 : f32 to vector<2x1xf32>
    %584 = arith.divf %582, %583 : vector<2x1xf32>
    %585 = vector.broadcast %584 : vector<2x1xf32> to vector<2x32xf32>
    %586 = arith.subf %580, %585 : vector<2x32xf32>
    %587 = arith.mulf %586, %586 : vector<2x32xf32>
    %cst_235 = arith.constant dense<0.000000e+00> : vector<2xf32>
    %588 = vector.multi_reduction <add>, %587, %cst_235 [1] : vector<2x32xf32> to vector<2xf32>
    %589 = vector.shape_cast %588 : vector<2xf32> to vector<2x1xf32>
    %cst_236 = arith.constant 3.200000e+01 : f32
    %590 = vector.broadcast %cst_236 : f32 to vector<2x1xf32>
    %591 = arith.divf %589, %590 : vector<2x1xf32>
    %cst_237 = arith.constant 9.99999974E-6 : f32
    %592 = vector.broadcast %cst_237 : f32 to vector<2x1xf32>
    %593 = arith.addf %591, %592 : vector<2x1xf32>
    %594 = math.rsqrt %593 : vector<2x1xf32>
    %595 = vector.broadcast %594 : vector<2x1xf32> to vector<2x32xf32>
    %596 = arith.mulf %586, %595 : vector<2x32xf32>
    %c70 = arith.constant 70 : index
    %c0_238 = arith.constant 0 : index
    %597 = vector.load %arg1[%c70, %c0_238] : memref<101x32xf32, #tpu.memory_space<vmem>>, vector<1x32xf32>
    %598 = vector.broadcast %597 : vector<1x32xf32> to vector<2x32xf32>
    %599 = arith.mulf %596, %598 : vector<2x32xf32>
    %c71 = arith.constant 71 : index
    %c0_239 = arith.constant 0 : index
    %600 = vector.load %arg1[%c71, %c0_239] : memref<101x32xf32, #tpu.memory_space<vmem>>, vector<1x32xf32>
    %601 = vector.broadcast %600 : vector<1x32xf32> to vector<2x32xf32>
    %602 = arith.addf %599, %601 : vector<2x32xf32>
    %c0_240 = arith.constant 0 : index
    %c384 = arith.constant 384 : index
    %603 = vector.load %arg3[%c0_240, %c384] : memref<32x448xbf16, #tpu.memory_space<vmem>>, vector<32x32xbf16>
    %c72 = arith.constant 72 : index
    %c0_241 = arith.constant 0 : index
    %604 = vector.load %arg1[%c72, %c0_241] : memref<101x32xf32, #tpu.memory_space<vmem>>, vector<1x32xf32>
    %605 = arith.truncf %185 : vector<2x32xf32> to vector<2x32xbf16>
    %cst_242 = arith.constant dense<0.000000e+00> : vector<2x32xf32>
    %606 = tpu.matmul %605, %603, %cst_242 {dimension_numbers = #tpu.dot_dimension_numbers<[1], [0], [0], [1], [0, 0, 1, 1], [], []>} : vector<2x32xbf16>, vector<32x32xbf16>, vector<2x32xf32> -> vector<2x32xf32>
    %607 = vector.broadcast %604 : vector<1x32xf32> to vector<2x32xf32>
    %608 = arith.addf %606, %607 : vector<2x32xf32>
    %609 = arith.addf %602, %608 : vector<2x32xf32>
    %cst_243 = arith.constant dense<0.000000e+00> : vector<2xf32>
    %610 = vector.multi_reduction <add>, %609, %cst_243 [1] : vector<2x32xf32> to vector<2xf32>
    %611 = vector.shape_cast %610 : vector<2xf32> to vector<2x1xf32>
    %cst_244 = arith.constant 3.200000e+01 : f32
    %612 = vector.broadcast %cst_244 : f32 to vector<2x1xf32>
    %613 = arith.divf %611, %612 : vector<2x1xf32>
    %614 = vector.broadcast %613 : vector<2x1xf32> to vector<2x32xf32>
    %615 = arith.subf %609, %614 : vector<2x32xf32>
    %616 = arith.mulf %615, %615 : vector<2x32xf32>
    %cst_245 = arith.constant dense<0.000000e+00> : vector<2xf32>
    %617 = vector.multi_reduction <add>, %616, %cst_245 [1] : vector<2x32xf32> to vector<2xf32>
    %618 = vector.shape_cast %617 : vector<2xf32> to vector<2x1xf32>
    %cst_246 = arith.constant 3.200000e+01 : f32
    %619 = vector.broadcast %cst_246 : f32 to vector<2x1xf32>
    %620 = arith.divf %618, %619 : vector<2x1xf32>
    %cst_247 = arith.constant 9.99999974E-6 : f32
    %621 = vector.broadcast %cst_247 : f32 to vector<2x1xf32>
    %622 = arith.addf %620, %621 : vector<2x1xf32>
    %623 = math.rsqrt %622 : vector<2x1xf32>
    %624 = vector.broadcast %623 : vector<2x1xf32> to vector<2x32xf32>
    %625 = arith.mulf %615, %624 : vector<2x32xf32>
    %c73 = arith.constant 73 : index
    %c0_248 = arith.constant 0 : index
    %626 = vector.load %arg1[%c73, %c0_248] : memref<101x32xf32, #tpu.memory_space<vmem>>, vector<1x32xf32>
    %627 = vector.broadcast %626 : vector<1x32xf32> to vector<2x32xf32>
    %628 = arith.mulf %625, %627 : vector<2x32xf32>
    %c74 = arith.constant 74 : index
    %c0_249 = arith.constant 0 : index
    %629 = vector.load %arg1[%c74, %c0_249] : memref<101x32xf32, #tpu.memory_space<vmem>>, vector<1x32xf32>
    %630 = vector.broadcast %629 : vector<1x32xf32> to vector<2x32xf32>
    %631 = arith.addf %628, %630 : vector<2x32xf32>
    %c6 = arith.constant 6 : index
    %c0_250 = arith.constant 0 : index
    %c0_251 = arith.constant 0 : index
    %632 = vector.load %arg4[%c6, %c0_250, %c0_251] : memref<8x32x2048xbf16, #tpu.memory_space<vmem>>, vector<1x32x2048xbf16>
    %633 = vector.shape_cast %632 : vector<1x32x2048xbf16> to vector<32x2048xbf16>
    %c6_252 = arith.constant 6 : index
    %c0_253 = arith.constant 0 : index
    %634 = vector.load %arg2[%c6_252, %c0_253] : memref<8x2048xf32, #tpu.memory_space<vmem>>, vector<1x2048xf32>
    %635 = arith.truncf %631 : vector<2x32xf32> to vector<2x32xbf16>
    %cst_254 = arith.constant dense<0.000000e+00> : vector<2x2048xf32>
    %636 = tpu.matmul %635, %633, %cst_254 {dimension_numbers = #tpu.dot_dimension_numbers<[1], [0], [0], [1], [0, 0, 1, 1], [], []>} : vector<2x32xbf16>, vector<32x2048xbf16>, vector<2x2048xf32> -> vector<2x2048xf32>
    %637 = vector.broadcast %634 : vector<1x2048xf32> to vector<2x2048xf32>
    %638 = arith.addf %636, %637 : vector<2x2048xf32>
    %cst_255 = arith.constant 0.000000e+00 : f32
    %639 = vector.broadcast %cst_255 : f32 to vector<2x2048xf32>
    %640 = arith.maximumf %638, %639 : vector<2x2048xf32>
    %c6_256 = arith.constant 6 : index
    %c0_257 = arith.constant 0 : index
    %c0_258 = arith.constant 0 : index
    %641 = vector.load %arg5[%c6_256, %c0_257, %c0_258] : memref<8x32x2048xbf16, #tpu.memory_space<vmem>>, vector<1x32x2048xbf16>
    %642 = vector.shape_cast %641 : vector<1x32x2048xbf16> to vector<32x2048xbf16>
    %c75 = arith.constant 75 : index
    %c0_259 = arith.constant 0 : index
    %643 = vector.load %arg1[%c75, %c0_259] : memref<101x32xf32, #tpu.memory_space<vmem>>, vector<1x32xf32>
    %644 = arith.truncf %640 : vector<2x2048xf32> to vector<2x2048xbf16>
    %cst_260 = arith.constant dense<0.000000e+00> : vector<2x32xf32>
    %645 = tpu.matmul %644, %642, %cst_260 {dimension_numbers = #tpu.dot_dimension_numbers<[1], [1], [0], [0], [0, 0, 1, 0], [], []>} : vector<2x2048xbf16>, vector<32x2048xbf16>, vector<2x32xf32> -> vector<2x32xf32>
    %646 = vector.broadcast %643 : vector<1x32xf32> to vector<2x32xf32>
    %647 = arith.addf %645, %646 : vector<2x32xf32>
    %648 = arith.addf %631, %647 : vector<2x32xf32>
    %cst_261 = arith.constant dense<0.000000e+00> : vector<2xf32>
    %649 = vector.multi_reduction <add>, %648, %cst_261 [1] : vector<2x32xf32> to vector<2xf32>
    %650 = vector.shape_cast %649 : vector<2xf32> to vector<2x1xf32>
    %cst_262 = arith.constant 3.200000e+01 : f32
    %651 = vector.broadcast %cst_262 : f32 to vector<2x1xf32>
    %652 = arith.divf %650, %651 : vector<2x1xf32>
    %653 = vector.broadcast %652 : vector<2x1xf32> to vector<2x32xf32>
    %654 = arith.subf %648, %653 : vector<2x32xf32>
    %655 = arith.mulf %654, %654 : vector<2x32xf32>
    %cst_263 = arith.constant dense<0.000000e+00> : vector<2xf32>
    %656 = vector.multi_reduction <add>, %655, %cst_263 [1] : vector<2x32xf32> to vector<2xf32>
    %657 = vector.shape_cast %656 : vector<2xf32> to vector<2x1xf32>
    %cst_264 = arith.constant 3.200000e+01 : f32
    %658 = vector.broadcast %cst_264 : f32 to vector<2x1xf32>
    %659 = arith.divf %657, %658 : vector<2x1xf32>
    %cst_265 = arith.constant 9.99999974E-6 : f32
    %660 = vector.broadcast %cst_265 : f32 to vector<2x1xf32>
    %661 = arith.addf %659, %660 : vector<2x1xf32>
    %662 = math.rsqrt %661 : vector<2x1xf32>
    %663 = vector.broadcast %662 : vector<2x1xf32> to vector<2x32xf32>
    %664 = arith.mulf %654, %663 : vector<2x32xf32>
    %c76 = arith.constant 76 : index
    %c0_266 = arith.constant 0 : index
    %665 = vector.load %arg1[%c76, %c0_266] : memref<101x32xf32, #tpu.memory_space<vmem>>, vector<1x32xf32>
    %666 = vector.broadcast %665 : vector<1x32xf32> to vector<2x32xf32>
    %667 = arith.mulf %664, %666 : vector<2x32xf32>
    %c77 = arith.constant 77 : index
    %c0_267 = arith.constant 0 : index
    %668 = vector.load %arg1[%c77, %c0_267] : memref<101x32xf32, #tpu.memory_space<vmem>>, vector<1x32xf32>
    %669 = vector.broadcast %668 : vector<1x32xf32> to vector<2x32xf32>
    %670 = arith.addf %667, %669 : vector<2x32xf32>
    %c0_268 = arith.constant 0 : index
    %c224 = arith.constant 224 : index
    %671 = vector.load %arg3[%c0_268, %c224] : memref<32x448xbf16, #tpu.memory_space<vmem>>, vector<32x32xbf16>
    %c78 = arith.constant 78 : index
    %c0_269 = arith.constant 0 : index
    %672 = vector.load %arg1[%c78, %c0_269] : memref<101x32xf32, #tpu.memory_space<vmem>>, vector<1x32xf32>
    %673 = arith.truncf %670 : vector<2x32xf32> to vector<2x32xbf16>
    %cst_270 = arith.constant dense<0.000000e+00> : vector<2x32xf32>
    %674 = tpu.matmul %673, %671, %cst_270 {dimension_numbers = #tpu.dot_dimension_numbers<[1], [0], [0], [1], [0, 0, 1, 1], [], []>} : vector<2x32xbf16>, vector<32x32xbf16>, vector<2x32xf32> -> vector<2x32xf32>
    %675 = vector.broadcast %672 : vector<1x32xf32> to vector<2x32xf32>
    %676 = arith.addf %674, %675 : vector<2x32xf32>
    %677 = arith.addf %670, %676 : vector<2x32xf32>
    %cst_271 = arith.constant dense<0.000000e+00> : vector<2xf32>
    %678 = vector.multi_reduction <add>, %677, %cst_271 [1] : vector<2x32xf32> to vector<2xf32>
    %679 = vector.shape_cast %678 : vector<2xf32> to vector<2x1xf32>
    %cst_272 = arith.constant 3.200000e+01 : f32
    %680 = vector.broadcast %cst_272 : f32 to vector<2x1xf32>
    %681 = arith.divf %679, %680 : vector<2x1xf32>
    %682 = vector.broadcast %681 : vector<2x1xf32> to vector<2x32xf32>
    %683 = arith.subf %677, %682 : vector<2x32xf32>
    %684 = arith.mulf %683, %683 : vector<2x32xf32>
    %cst_273 = arith.constant dense<0.000000e+00> : vector<2xf32>
    %685 = vector.multi_reduction <add>, %684, %cst_273 [1] : vector<2x32xf32> to vector<2xf32>
    %686 = vector.shape_cast %685 : vector<2xf32> to vector<2x1xf32>
    %cst_274 = arith.constant 3.200000e+01 : f32
    %687 = vector.broadcast %cst_274 : f32 to vector<2x1xf32>
    %688 = arith.divf %686, %687 : vector<2x1xf32>
    %cst_275 = arith.constant 9.99999974E-6 : f32
    %689 = vector.broadcast %cst_275 : f32 to vector<2x1xf32>
    %690 = arith.addf %688, %689 : vector<2x1xf32>
    %691 = math.rsqrt %690 : vector<2x1xf32>
    %692 = vector.broadcast %691 : vector<2x1xf32> to vector<2x32xf32>
    %693 = arith.mulf %683, %692 : vector<2x32xf32>
    %c79 = arith.constant 79 : index
    %c0_276 = arith.constant 0 : index
    %694 = vector.load %arg1[%c79, %c0_276] : memref<101x32xf32, #tpu.memory_space<vmem>>, vector<1x32xf32>
    %695 = vector.broadcast %694 : vector<1x32xf32> to vector<2x32xf32>
    %696 = arith.mulf %693, %695 : vector<2x32xf32>
    %c80 = arith.constant 80 : index
    %c0_277 = arith.constant 0 : index
    %697 = vector.load %arg1[%c80, %c0_277] : memref<101x32xf32, #tpu.memory_space<vmem>>, vector<1x32xf32>
    %698 = vector.broadcast %697 : vector<1x32xf32> to vector<2x32xf32>
    %699 = arith.addf %696, %698 : vector<2x32xf32>
    %c0_278 = arith.constant 0 : index
    %c416 = arith.constant 416 : index
    %700 = vector.load %arg3[%c0_278, %c416] : memref<32x448xbf16, #tpu.memory_space<vmem>>, vector<32x32xbf16>
    %c81 = arith.constant 81 : index
    %c0_279 = arith.constant 0 : index
    %701 = vector.load %arg1[%c81, %c0_279] : memref<101x32xf32, #tpu.memory_space<vmem>>, vector<1x32xf32>
    %702 = arith.truncf %185 : vector<2x32xf32> to vector<2x32xbf16>
    %cst_280 = arith.constant dense<0.000000e+00> : vector<2x32xf32>
    %703 = tpu.matmul %702, %700, %cst_280 {dimension_numbers = #tpu.dot_dimension_numbers<[1], [0], [0], [1], [0, 0, 1, 1], [], []>} : vector<2x32xbf16>, vector<32x32xbf16>, vector<2x32xf32> -> vector<2x32xf32>
    %704 = vector.broadcast %701 : vector<1x32xf32> to vector<2x32xf32>
    %705 = arith.addf %703, %704 : vector<2x32xf32>
    %706 = arith.addf %699, %705 : vector<2x32xf32>
    %cst_281 = arith.constant dense<0.000000e+00> : vector<2xf32>
    %707 = vector.multi_reduction <add>, %706, %cst_281 [1] : vector<2x32xf32> to vector<2xf32>
    %708 = vector.shape_cast %707 : vector<2xf32> to vector<2x1xf32>
    %cst_282 = arith.constant 3.200000e+01 : f32
    %709 = vector.broadcast %cst_282 : f32 to vector<2x1xf32>
    %710 = arith.divf %708, %709 : vector<2x1xf32>
    %711 = vector.broadcast %710 : vector<2x1xf32> to vector<2x32xf32>
    %712 = arith.subf %706, %711 : vector<2x32xf32>
    %713 = arith.mulf %712, %712 : vector<2x32xf32>
    %cst_283 = arith.constant dense<0.000000e+00> : vector<2xf32>
    %714 = vector.multi_reduction <add>, %713, %cst_283 [1] : vector<2x32xf32> to vector<2xf32>
    %715 = vector.shape_cast %714 : vector<2xf32> to vector<2x1xf32>
    %cst_284 = arith.constant 3.200000e+01 : f32
    %716 = vector.broadcast %cst_284 : f32 to vector<2x1xf32>
    %717 = arith.divf %715, %716 : vector<2x1xf32>
    %cst_285 = arith.constant 9.99999974E-6 : f32
    %718 = vector.broadcast %cst_285 : f32 to vector<2x1xf32>
    %719 = arith.addf %717, %718 : vector<2x1xf32>
    %720 = math.rsqrt %719 : vector<2x1xf32>
    %721 = vector.broadcast %720 : vector<2x1xf32> to vector<2x32xf32>
    %722 = arith.mulf %712, %721 : vector<2x32xf32>
    %c82 = arith.constant 82 : index
    %c0_286 = arith.constant 0 : index
    %723 = vector.load %arg1[%c82, %c0_286] : memref<101x32xf32, #tpu.memory_space<vmem>>, vector<1x32xf32>
    %724 = vector.broadcast %723 : vector<1x32xf32> to vector<2x32xf32>
    %725 = arith.mulf %722, %724 : vector<2x32xf32>
    %c83 = arith.constant 83 : index
    %c0_287 = arith.constant 0 : index
    %726 = vector.load %arg1[%c83, %c0_287] : memref<101x32xf32, #tpu.memory_space<vmem>>, vector<1x32xf32>
    %727 = vector.broadcast %726 : vector<1x32xf32> to vector<2x32xf32>
    %728 = arith.addf %725, %727 : vector<2x32xf32>
    %c7 = arith.constant 7 : index
    %c0_288 = arith.constant 0 : index
    %c0_289 = arith.constant 0 : index
    %729 = vector.load %arg4[%c7, %c0_288, %c0_289] : memref<8x32x2048xbf16, #tpu.memory_space<vmem>>, vector<1x32x2048xbf16>
    %730 = vector.shape_cast %729 : vector<1x32x2048xbf16> to vector<32x2048xbf16>
    %c7_290 = arith.constant 7 : index
    %c0_291 = arith.constant 0 : index
    %731 = vector.load %arg2[%c7_290, %c0_291] : memref<8x2048xf32, #tpu.memory_space<vmem>>, vector<1x2048xf32>
    %732 = arith.truncf %728 : vector<2x32xf32> to vector<2x32xbf16>
    %cst_292 = arith.constant dense<0.000000e+00> : vector<2x2048xf32>
    %733 = tpu.matmul %732, %730, %cst_292 {dimension_numbers = #tpu.dot_dimension_numbers<[1], [0], [0], [1], [0, 0, 1, 1], [], []>} : vector<2x32xbf16>, vector<32x2048xbf16>, vector<2x2048xf32> -> vector<2x2048xf32>
    %734 = vector.broadcast %731 : vector<1x2048xf32> to vector<2x2048xf32>
    %735 = arith.addf %733, %734 : vector<2x2048xf32>
    %cst_293 = arith.constant 0.000000e+00 : f32
    %736 = vector.broadcast %cst_293 : f32 to vector<2x2048xf32>
    %737 = arith.maximumf %735, %736 : vector<2x2048xf32>
    %c7_294 = arith.constant 7 : index
    %c0_295 = arith.constant 0 : index
    %c0_296 = arith.constant 0 : index
    %738 = vector.load %arg5[%c7_294, %c0_295, %c0_296] : memref<8x32x2048xbf16, #tpu.memory_space<vmem>>, vector<1x32x2048xbf16>
    %739 = vector.shape_cast %738 : vector<1x32x2048xbf16> to vector<32x2048xbf16>
    %c84 = arith.constant 84 : index
    %c0_297 = arith.constant 0 : index
    %740 = vector.load %arg1[%c84, %c0_297] : memref<101x32xf32, #tpu.memory_space<vmem>>, vector<1x32xf32>
    %741 = arith.truncf %737 : vector<2x2048xf32> to vector<2x2048xbf16>
    %cst_298 = arith.constant dense<0.000000e+00> : vector<2x32xf32>
    %742 = tpu.matmul %741, %739, %cst_298 {dimension_numbers = #tpu.dot_dimension_numbers<[1], [1], [0], [0], [0, 0, 1, 0], [], []>} : vector<2x2048xbf16>, vector<32x2048xbf16>, vector<2x32xf32> -> vector<2x32xf32>
    %743 = vector.broadcast %740 : vector<1x32xf32> to vector<2x32xf32>
    %744 = arith.addf %742, %743 : vector<2x32xf32>
    %745 = arith.addf %728, %744 : vector<2x32xf32>
    %cst_299 = arith.constant dense<0.000000e+00> : vector<2xf32>
    %746 = vector.multi_reduction <add>, %745, %cst_299 [1] : vector<2x32xf32> to vector<2xf32>
    %747 = vector.shape_cast %746 : vector<2xf32> to vector<2x1xf32>
    %cst_300 = arith.constant 3.200000e+01 : f32
    %748 = vector.broadcast %cst_300 : f32 to vector<2x1xf32>
    %749 = arith.divf %747, %748 : vector<2x1xf32>
    %750 = vector.broadcast %749 : vector<2x1xf32> to vector<2x32xf32>
    %751 = arith.subf %745, %750 : vector<2x32xf32>
    %752 = arith.mulf %751, %751 : vector<2x32xf32>
    %cst_301 = arith.constant dense<0.000000e+00> : vector<2xf32>
    %753 = vector.multi_reduction <add>, %752, %cst_301 [1] : vector<2x32xf32> to vector<2xf32>
    %754 = vector.shape_cast %753 : vector<2xf32> to vector<2x1xf32>
    %cst_302 = arith.constant 3.200000e+01 : f32
    %755 = vector.broadcast %cst_302 : f32 to vector<2x1xf32>
    %756 = arith.divf %754, %755 : vector<2x1xf32>
    %cst_303 = arith.constant 9.99999974E-6 : f32
    %757 = vector.broadcast %cst_303 : f32 to vector<2x1xf32>
    %758 = arith.addf %756, %757 : vector<2x1xf32>
    %759 = math.rsqrt %758 : vector<2x1xf32>
    %760 = vector.broadcast %759 : vector<2x1xf32> to vector<2x32xf32>
    %761 = arith.mulf %751, %760 : vector<2x32xf32>
    %c85 = arith.constant 85 : index
    %c0_304 = arith.constant 0 : index
    %762 = vector.load %arg1[%c85, %c0_304] : memref<101x32xf32, #tpu.memory_space<vmem>>, vector<1x32xf32>
    %763 = vector.broadcast %762 : vector<1x32xf32> to vector<2x32xf32>
    %764 = arith.mulf %761, %763 : vector<2x32xf32>
    %c86 = arith.constant 86 : index
    %c0_305 = arith.constant 0 : index
    %765 = vector.load %arg1[%c86, %c0_305] : memref<101x32xf32, #tpu.memory_space<vmem>>, vector<1x32xf32>
    %766 = vector.broadcast %765 : vector<1x32xf32> to vector<2x32xf32>
    %767 = arith.addf %764, %766 : vector<2x32xf32>
    %cst_306 = arith.constant dense<0.000000e+00> : vector<2xf32>
    %768 = vector.multi_reduction <add>, %767, %cst_306 [1] : vector<2x32xf32> to vector<2xf32>
    %769 = vector.shape_cast %768 : vector<2xf32> to vector<2x1xf32>
    %cst_307 = arith.constant 3.200000e+01 : f32
    %770 = vector.broadcast %cst_307 : f32 to vector<2x1xf32>
    %771 = arith.divf %769, %770 : vector<2x1xf32>
    %772 = vector.broadcast %771 : vector<2x1xf32> to vector<2x32xf32>
    %773 = arith.subf %767, %772 : vector<2x32xf32>
    %774 = arith.mulf %773, %773 : vector<2x32xf32>
    %cst_308 = arith.constant dense<0.000000e+00> : vector<2xf32>
    %775 = vector.multi_reduction <add>, %774, %cst_308 [1] : vector<2x32xf32> to vector<2xf32>
    %776 = vector.shape_cast %775 : vector<2xf32> to vector<2x1xf32>
    %cst_309 = arith.constant 3.200000e+01 : f32
    %777 = vector.broadcast %cst_309 : f32 to vector<2x1xf32>
    %778 = arith.divf %776, %777 : vector<2x1xf32>
    %cst_310 = arith.constant 9.99999974E-6 : f32
    %779 = vector.broadcast %cst_310 : f32 to vector<2x1xf32>
    %780 = arith.addf %778, %779 : vector<2x1xf32>
    %781 = math.rsqrt %780 : vector<2x1xf32>
    %782 = vector.broadcast %781 : vector<2x1xf32> to vector<2x32xf32>
    %783 = arith.mulf %773, %782 : vector<2x32xf32>
    %c87 = arith.constant 87 : index
    %c0_311 = arith.constant 0 : index
    %784 = vector.load %arg1[%c87, %c0_311] : memref<101x32xf32, #tpu.memory_space<vmem>>, vector<1x32xf32>
    %785 = vector.broadcast %784 : vector<1x32xf32> to vector<2x32xf32>
    %786 = arith.mulf %783, %785 : vector<2x32xf32>
    %c88 = arith.constant 88 : index
    %c0_312 = arith.constant 0 : index
    %787 = vector.load %arg1[%c88, %c0_312] : memref<101x32xf32, #tpu.memory_space<vmem>>, vector<1x32xf32>
    %788 = vector.broadcast %787 : vector<1x32xf32> to vector<2x32xf32>
    %789 = arith.addf %786, %788 : vector<2x32xf32>
    %c96_313 = arith.constant 96 : index
    %c0_314 = arith.constant 0 : index
    %790 = vector.load %arg1[%c96_313, %c0_314] : memref<101x32xf32, #tpu.memory_space<vmem>>, vector<4x32xf32>
    %cst_315 = arith.constant dense<0.000000e+00> : vector<2x4xf32>
    %791 = tpu.matmul %789, %790, %cst_315 {dimension_numbers = #tpu.dot_dimension_numbers<[1], [1], [0], [0], [0, 0, 1, 0], [], []>} : vector<2x32xf32>, vector<4x32xf32>, vector<2x4xf32> -> vector<2x4xf32>
    %c100 = arith.constant 100 : index
    %c0_316 = arith.constant 0 : index
    %792 = vector.load %arg1[%c100, %c0_316] : memref<101x32xf32, #tpu.memory_space<vmem>>, vector<1x32xf32>
    %793 = vector.extract_strided_slice %792 {offsets = [0, 0], sizes = [1, 4], strides = [1, 1]} : vector<1x32xf32> to vector<1x4xf32>
    %794 = vector.broadcast %793 : vector<1x4xf32> to vector<2x4xf32>
    %795 = arith.addf %791, %794 : vector<2x4xf32>
    %cst_317 = arith.constant 5.000000e-01 : f32
    %796 = vector.broadcast %cst_317 : f32 to vector<2x4xf32>
    %797 = arith.mulf %796, %795 : vector<2x4xf32>
    %798 = math.tanh %797 : vector<2x4xf32>
    %cst_318 = arith.constant 1.000000e+00 : f32
    %799 = vector.broadcast %cst_318 : f32 to vector<2x4xf32>
    %800 = arith.addf %798, %799 : vector<2x4xf32>
    %cst_319 = arith.constant 5.000000e-01 : f32
    %801 = vector.broadcast %cst_319 : f32 to vector<2x4xf32>
    %802 = arith.mulf %801, %800 : vector<2x4xf32>
    %c0_320 = arith.constant 0 : index
    %c0_321 = arith.constant 0 : index
    %803 = vector.load %arg6[%c0_320, %c0_321] : memref<2x4xf32, #tpu.memory_space<vmem>>, vector<2x4xf32>
    tpu.vector_store %arg6[%c0_320, %c0_321], %802 {strides = array<i32>} : memref<2x4xf32, #tpu.memory_space<vmem>>, vector<2x4xf32>,
    return
  }
}

</mosaic_0001>

<bundles_post_ra>
// kernel: forward.1
= control target key start
LH: loop header
LB: loop body
LE: loop exit
PB: predicated region body
PF: predicated region fallthrough
CT: control target
= control target key end

     0   :  { %11 = vsyncpa [#allocation3], 0  ;;  %s13306_s0 = inlined_call_operand.vmem [shape: f32[2,16], index: 0, kind: input, shape index: {}]   ;;  %s13307_s1 = inlined_call_operand.vmem [shape: f32[101,32], index: 1, kind: input, shape index: {}]   ;;  %s13308_s2 = inlined_call_operand.vmem [shape: f32[8,2048], index: 2, kind: input, shape index: {}]   ;;  %s13309_s3 = inlined_call_operand.hbm [shape: bf16[32,448], index: 3, kind: input, shape index: {}]   ;;  %s13310_s4 = inlined_call_operand.hbm [shape: bf16[8,32,2048], index: 4, kind: input, shape index: {}]   ;;  %s13311_s5 = inlined_call_operand.hbm [shape: bf16[8,32,2048], index: 5, kind: input, shape index: {}]   ;;  %s13312_s6 = inlined_call_operand.hbm [shape: f32[2,4], index: 6, kind: output, shape index: {}]  }
   0x1   :  { %12 = vsyncpa [#allocation6], 0 }
   0x2   :  { %13 = vsyncpa [#allocation4], 0  ;;  %s12047_s21 = smov [#allocation5]  }
   0x3   :  { %s37_s22 = sshll.u32 %s12047_s21, 4  ;;  %s38_s22 = int_to_ptr.vmem [resolvable:$true] %s37_s22 }
   0x4   :  { %s11969_s23 = scalar_lea.vmem %s38_s22, 32768  ;;  %p11974_p1 = scmp.lt.s32.totalorder %s38_s22, %s38_s22 }
   0x5   :  { %p11970_p0 = scmp.ne.s32.totalorder %s38_s22, %s11969_s23  ;;  %p11975_p2 = scmp.lt.s32.totalorder %s11969_s23, %s11969_s23 }
   0x7   :  { %p11976_p3 = por %p11975_p2, %p11974_p1 }
   0x9   :  { %p11977_p4 = pnand %p11976_p3, %p11970_p0 }
   0xb   :  { %11980 = shalt.err (!%p11977_p4)
}
   0xc   :  { %s12048_s24 = smov 1024   ;;  %s12049_s25 = smov 64  }
   0xd   :  { %43 = dma.hbm_to_vmem [thread:$0]  %s13310_s4, 32768, %s38_s22, [#allocation6], %s12048_s24, %s12048_s24, %s12049_s25  }
   0xe   :  { %s12050_s28 = smov [#allocation2]  }
   0xf   :  { %s25_s29 = sshll.u32 %s12050_s28, 4  ;;  %s26_s29 = int_to_ptr.vmem [resolvable:$true] %s25_s29 }
  0x10   :  { %s11989_s30 = scalar_lea.vmem %s26_s29, 1024  ;;  %p11994_p6 = scmp.lt.s32.totalorder %s26_s29, %s26_s29 }
  0x11   :  { %p11990_p5 = scmp.ne.s32.totalorder %s26_s29, %s11989_s30  ;;  %p11995_p7 = scmp.lt.s32.totalorder %s11989_s30, %s11989_s30 }
  0x13   :  { %p11996_p8 = por %p11995_p7, %p11994_p6 }
  0x15   :  { %p11997_p9 = pnand %p11996_p8, %p11990_p5 }
  0x17   :  { %12000 = shalt.err (!%p11997_p9)
}
  0x18   :  { %s12051_s7 = smov 256   ;;  %s12052_s8 = smov 16  }
  0x19   :  { %31 = dma.hbm_to_vmem [thread:$0]  %s13309_s3, 1024, %s26_s29, [#allocation3], %s12051_s7, %s12051_s7, %s12052_s8  }
  0x1a   :  { %s12053_s11 = smov [#allocation7]  }
  0x1b   :  { %s49_s12 = sshll.u32 %s12053_s11, 4  ;;  %s50_s12 = int_to_ptr.vmem [resolvable:$true] %s49_s12 }
  0x1c   :  { %s12009_s4 = scalar_lea.vmem %s50_s12, 32768  ;;  %p12014_p11 = scmp.lt.s32.totalorder %s50_s12, %s50_s12 }
  0x1d   :  { %p12010_p10 = scmp.ne.s32.totalorder %s50_s12, %s12009_s4  ;;  %p12015_p12 = scmp.lt.s32.totalorder %s12009_s4, %s12009_s4 }
  0x1f   :  { %p12016_p13 = por %p12015_p12, %p12014_p11 }
  0x21   :  { %p12017_p0 = pnand %p12016_p13, %p12010_p10 }
  0x23   :  { %12020 = shalt.err (!%p12017_p0)
}
  0x24   :  { %55 = dma.hbm_to_vmem [thread:$0]  %s13311_s5, 32768, %s50_s12, [#allocation6], %s12048_s24, %s12048_s24, %s12049_s25  }
  0x25   :  { %12041 = dma.done.wait [#allocation3], 1024  }
  0x26   :  { %12042 = vsyncadd [#allocation3], 4294966272 }
  0x27   :  { %12043 = dma.done.wait [#allocation6], 65536  }
  0x28   :  { %12044 = vsyncadd [#allocation6], 4294901760  ;;  %v12054_v0 = vmov 0.0   ;;  %vm12055_vm0 = vmmov 0   ;;  %v68_v1 = vld [vmem:[%s13307_s1 + $0x8] sm:$0xff]  ;;  %v67_v2 = vld [vmem:[%s13307_s1] sm:$0xff] }
  0x29   :  { %11757 = vmatprep.subr.mxu0 %v12054_v0  ;;  %11761 = vmatprep.mubr.msk.f32.mxu0 %vm12055_vm0, %v12054_v0  ;;  %vm74_vm1 = vcmask 130048   ;;  %v66_v3 = vld [vmem:[%s13306_s0] sm:$0x3]  ;;  %v11005_v4 = vld [vmem:[%s13307_s1 + $0x10] ss:$0 sm:$0xff]  ;;  %vm148_vm2 = vcmask 254976  }
  0x2a   :  { %11764 = vmatprep.subr.bf16.mxu1 %v12054_v0  ;;  %11768 = vmatprep.mubr.msk.bf16.mxu1 %vm12055_vm0, %v12054_v0  ;;  %v12127_v14 = vld [vmem:[#allocation2 + $0x20] ss:$16 sps:$4 sm:$0xff]   ;;  %vm197_vm3 = vcmask 261120   ;;  %v284_v41 = vld [vmem:[#allocation5 + $0x88] sm:$0xff]  ;;  %v286_v57 = vld [vmem:[#allocation5 + $0x98] sm:$0xff]  ;;  %v12056_v60 = vmov 0  }
  0x2b   :  { %11758 = vmatpush3.msra.mxu0 %v68_v1  ;;  %11765 = vmatpush3.bf16.msra.mxu1 %v12127_v14  ;;  %v12130_v15 = vld [vmem:[#allocation2] ss:$16 sps:$4 sm:$0xff]   ;;  %v292_v43 = vld [vmem:[#allocation5 + $0xc8] sm:$0xff]  ;;  %v294_v59 = vld [vmem:[#allocation5 + $0xd8] sm:$0xff]  ;;  %s12057_s15 = smov 96   ;;  %s12058_s14 = smov 32  }
  0x2c   :  { %11759 = vmatprep.subr.mxu0 %v12054_v0  ;;  %11766 = vmatprep.subr.bf16.mxu1 %v12054_v0  ;;  %v11007_v20 = vld [vmem:[%s13307_s1 + $0x11] ss:$0 sm:$0xff]  ;;  %v11008_v22 = vld [vmem:[%s13307_s1 + $0x12] ss:$0 sm:$0xff]  ;;  %v11009_v26 = vld [vmem:[%s13307_s1 + $0x13] ss:$0 sm:$0xff]  ;;  %v11035_v45 = vcombine.low %v284_v41, %v292_v43  ;;  %v11036_v46 = vcombine.high %v284_v41, %v292_v43  ;;  %v11039_v62 = vcombine.low %v286_v57, %v294_v59 }
  0x2d   :  { %11760 = vmatpush3.msra.mxu0 %v67_v2  ;;  %v283_v39 = vld [vmem:[#allocation5 + $0x80] sm:$0xff]  ;;  %v268_v49 = vld [vmem:[#allocation5 + $0x8] sm:$0xff]  ;;  %v285_v55 = vld [vmem:[#allocation5 + $0x90] sm:$0xff]  ;;  %v11040_v63 = vcombine.high %v286_v57, %v294_v59  ;;  %s12059_s22 = smov [#allocation8]   ;;  %vm10987_vm4 = vcmask 25600  }
  0x2e   :  { %11762 = vmatmul.mubr.msk.f32.vlgmr.msra.gmra.mxu0 %vm74_vm1, %v66_v3  ;;  %v291_v40 = vld [vmem:[#allocation5 + $0xc0] sm:$0xff]  ;;  %v276_v51 = vld [vmem:[#allocation5 + $0x48] sm:$0xff]  ;;  %v293_v56 = vld [vmem:[#allocation5 + $0xd0] sm:$0xff]  ;;  %s10995_s23 = sshll.u32 %s12059_s22, 4  ;;  %s10996_s23 = int_to_ptr.vmem [resolvable:$true] %s10995_s23 }
  0x2f   :  { %11767 = vmatpush3.bf16.msra.mxu1 %v12130_v15  ;;  %v11034_v42 = vcombine.high %v283_v39, %v291_v40  ;;  %v11033_v44 = vcombine.low %v283_v39, %v291_v40  ;;  %v267_v47 = vld [vmem:[#allocation5] sm:$0xff]  ;;  %v11019_v53 = vcombine.low %v268_v49, %v276_v51  ;;  %v11020_v54 = vcombine.high %v268_v49, %v276_v51  ;;  %v290_v39 = vld [vmem:[#allocation5 + $0xb8] sm:$0xff]  ;;  %s12021_s24 = scalar_lea.vmem %s10996_s23, 32  ;;  %p12026_p2 = scmp.lt.s32.totalorder %s10996_s23, %s10996_s23 }
  0x30   :  { %605 = vmatprep.subr.bf16.mxu1 %v11036_v46  ;;  %v275_v48 = vld [vmem:[#allocation5 + $0x40] sm:$0xff]  ;;  %v11038_v58 = vcombine.high %v285_v55, %v293_v56  ;;  %584 = vmatprep.mubr.bf16.mxu0 %v12056_v60  ;;  %v11037_v61 = vcombine.low %v285_v55, %v293_v56  ;;  %v298_v40 = vld [vmem:[#allocation5 + $0xf8] sm:$0xff]  ;;  %v281_v46 = vld [vmem:[#allocation5 + $0x70] sm:$0xff]  ;;  %p12022_p1 = scmp.ne.s32.totalorder %s10996_s23, %s12021_s24  ;;  %p12027_p3 = scmp.lt.s32.totalorder %s12021_s24, %s12021_s24 }
  0x31   :  { %564 = vmatprep.subr.bf16.mxu0 %v11034_v42  ;;  %v11018_v50 = vcombine.high %v267_v47, %v275_v48  ;;  %v11017_v52 = vcombine.low %v267_v47, %v275_v48  ;;  %v274_v47 = vld [vmem:[#allocation5 + $0x38] sm:$0xff]  ;;  %v913_v55 = vld [vmem:[#allocation7 + $0x88] sm:$0xff] }
  0x32   :  { %565 = vmatpush1.bf16.msra.mxu0 %v11033_v44  ;;  %v11048_v44 = vcombine.high %v290_v39, %v298_v40  ;;  %v282_v48 = vld [vmem:[#allocation5 + $0x78] sm:$0xff]  ;;  %v921_v56 = vld [vmem:[#allocation7 + $0xc8] sm:$0xff]  ;;  %p12028_p4 = por %p12027_p3, %p12026_p2 }
  0x33   :  { %566 = vmatprep.subr.bf16.mxu0 %v11018_v50  ;;  %v11047_v50 = vcombine.low %v290_v39, %v298_v40 }
  0x34   :  { %p12029_p5 = pnand %p12028_p4, %p12022_p1 }
  0x36   :  { %567 = vmatpush1.bf16.msra.mxu0 %v11017_v52  ;;  %v11032_v52 = vcombine.high %v274_v47, %v282_v48 }
  0x37   :  { %646 = vmatprep.subr.bf16.mxu0 %v11038_v58  ;;  %v11031_v58 = vcombine.low %v274_v47, %v282_v48 }
  0xee   :  { %v144_v5 = vpop.f32.mrf.mxu0 }
  0xef   :  { %v145_v6 = vadd.f32 %v11005_v4, %v144_v5  ;;  %v11013_v5 = vld [vmem:[%s13307_s1 + $0x14] ss:$0 sm:$0xff] }
  0xf0   :  { %v11763_v7 = vpop.f32.mrf.mxu0 }
  0xf1   :  { %v149_v8 = vsel %vm148_vm2, %v145_v6, 0.0  ;;  %v11014_v7 = vld [vmem:[%s13307_s1 + $0x15] ss:$0 sm:$0xff] }
  0xf2   :  { %150 = vadd.xlane.f32.xlu0 %v149_v8 }
 0x17b   :  { %v151_v9 = vpop.xlane.xlu0 %150 }
 0x17c   :  { %v153_v10 = vmul.f32 0.03125, %v151_v9  ;;  %v269_v9 = vld [vmem:[#allocation5 + $0x10] sm:$0xff] }
 0x17e   :  { %v154_v11 = vsub.f32 %v145_v6, %v153_v10  ;;  %v277_v10 = vld [vmem:[#allocation5 + $0x50] sm:$0xff] }
 0x180   :  { %v155_v12 = vmul.f32 %v154_v11, %v154_v11 }
 0x182   :  { %v156_v13 = vsel %vm148_vm2, %v155_v12, 0.0  ;;  %v278_v12 = vld [vmem:[#allocation5 + $0x58] sm:$0xff] }
 0x183   :  { %157 = vadd.xlane.f32.xlu0 %v156_v13 }
 0x20c   :  { %v158_v16 = vpop.xlane.xlu0 %157 }
 0x20d   :  { %v159_v17 = vmul.f32 0.03125, %v158_v16 }
 0x20f   :  { %v160_v18 = vadd.f32 1e-05, %v159_v17  ;;  %v11022_v17 = vcombine.high %v269_v9, %v277_v10 }
 0x211   :  { %11902 = vrsqrt.f32 %v160_v18 }
 0x21e   :  { %v11903_v19 = vpop.eup %11902 }
 0x21f   :  { %v162_v21 = vmul.f32 %v11903_v19, %v154_v11  ;;  %v270_v11 = vld [vmem:[#allocation5 + $0x18] sm:$0xff]  ;;  %v287_v19 = vld [vmem:[#allocation5 + $0xa0] sm:$0xff] }
 0x220   :  { %v11024_v18 = vcombine.high %v270_v11, %v278_v12 }
 0x221   :  { %v168_v23 = vmul.f32 %v11007_v20, %v162_v21  ;;  %v295_v20 = vld [vmem:[#allocation5 + $0xe0] sm:$0xff]  ;;  %v288_v21 = vld [vmem:[#allocation5 + $0xa8] sm:$0xff] }
 0x223   :  { %v12140_v24 = vadd.f32 %v11008_v22, %v168_v23  ;;  %v296_v22 = vld [vmem:[#allocation5 + $0xe8] sm:$0xff]  ;;  %v11021_v23 = vcombine.low %v269_v9, %v277_v10  ;;  %v12190_v9 = vld [vmem:[#allocation7 + $0x90] sm:$0xff] }
 0x224   :  { %v12192_v10 = vld [vmem:[#allocation7 + $0xd0] sm:$0xff] }
 0x225   :  { %v12144_v25 = vpack.c.bf16 %v12140_v24, %v12140_v24 }
 0x227   :  { %11769 = vmatmul.mubr.msk.bf16.vlgmr.msra.gmra.mxu1 %vm197_vm3, %v12144_v25 }
 0x228   :  { %606 = vmatpush1.bf16.msra.mxu1 %v11035_v45  ;;  %625 = vmatprep.mubr.bf16.mxu1 %v12056_v60  ;;  %v273_v45 = vld [vmem:[#allocation5 + $0x30] sm:$0xff] }
 0x229   :  { %607 = vmatprep.subr.bf16.mxu1 %v11020_v54  ;;  %v11030_v51 = vcombine.high %v273_v45, %v281_v46  ;;  %v920_v54 = vld [vmem:[#allocation7 + $0xc0] sm:$0xff]  ;;  %v11029_v57 = vcombine.low %v273_v45, %v281_v46 }
 0x22c   :  { %608 = vmatpush1.bf16.msra.mxu1 %v11019_v53  ;;  %v912_v53 = vld [vmem:[#allocation7 + $0x80] sm:$0xff] }
 0x22d   :  { %687 = vmatprep.subr.bf16.mxu1 %v11040_v63  ;;  %v11075_v59 = vcombine.high %v912_v53, %v920_v54  ;;  %v11076_v63 = vcombine.low %v913_v55, %v921_v56 }
 0x2e7   :  { %v235_v27 = vpop.f32.mrf.mxu1 }
 0x2e8   :  { %v236_v28 = vadd.f32 %v11009_v26, %v235_v27  ;;  %v11023_v26 = vcombine.low %v270_v11, %v278_v12  ;;  %v11042_v27 = vcombine.high %v287_v19, %v295_v20  ;;  %v12194_v11 = vld [vmem:[#allocation7 + $0x98] sm:$0xff]  ;;  %v11079_v12 = vcombine.high %v12190_v9, %v12192_v10 }
 0x2e9   :  { %v11770_v29 = vpop.f32.mrf.mxu1 }
 0x2ea   :  { %v241_v30 = vadd.f32 %v236_v28, %v12140_v24  ;;  %v11044_v28 = vcombine.high %v288_v21, %v296_v22  ;;  %v271_v29 = vld [vmem:[#allocation5 + $0x20] sm:$0xff] }
 0x2eb   :  { %v238_v31 = vpop.f32.mrf.mxu1 }
 0x2ec   :  { %v242_v32 = vsel %vm148_vm2, %v241_v30, 0.0  ;;  %v272_v31 = vld [vmem:[#allocation5 + $0x28] sm:$0xff] }
 0x2ed   :  { %243 = vadd.xlane.f32.xlu1 %v242_v32  ;;  %v11771_v33 = vpop.f32.mrf.mxu1  ;;  %v280_v32 = vld [vmem:[#allocation5 + $0x68] sm:$0xff] }
 0x2ee   :  { %v11041_v33 = vcombine.low %v287_v19, %v295_v20  ;;  %v11027_v42 = vcombine.low %v272_v31, %v280_v32  ;;  %v309_v20 = vlaneseq }
 0x376   :  { %v244_v34 = vpop.xlane.xlu1 %243 }
 0x377   :  { %v245_v35 = vmul.f32 0.03125, %v244_v34  ;;  %v11043_v34 = vcombine.low %v288_v21, %v296_v22  ;;  %v310_v21 = vshrl.u32 %v309_v20, 7  ;;  %v299_v22 = vld [vmem:[%s13308_s2] ss:$8 sm:$0xf] }
 0x379   :  { %v246_v36 = vsub.f32 %v241_v30, %v245_v35  ;;  %v279_v30 = vld [vmem:[#allocation5 + $0x60] sm:$0xff] }
 0x37a   :  { %v11026_v35 = vcombine.high %v271_v29, %v279_v30  ;;  %v11025_v41 = vcombine.low %v271_v29, %v279_v30  ;;  %v12218_v29 = vsub.s32 1, %v310_v21  ;;  %v12220_v30 = vsub.s32 3, %v310_v21 }
 0x37b   :  { %v247_v37 = vmul.f32 %v246_v36, %v246_v36 }
 0x37d   :  { %v248_v38 = vsel %vm148_vm2, %v247_v37, 0.0  ;;  %v289_v37 = vld [vmem:[#allocation5 + $0xb0] sm:$0xff] }
 0x37e   :  { %249 = vadd.xlane.f32.xlu1 %v248_v38  ;;  %v297_v38 = vld [vmem:[#allocation5 + $0xf0] sm:$0xff] }
 0x37f   :  { %v11046_v43 = vcombine.high %v289_v37, %v297_v38  ;;  %v11045_v49 = vcombine.low %v289_v37, %v297_v38 }
 0x407   :  { %v250_v1 = vpop.xlane.xlu1 %249 }
 0x408   :  { %v251_v2 = vmul.f32 0.03125, %v250_v1  ;;  %v896_v1 = vld [vmem:[#allocation7] sm:$0xff] }
 0x40a   :  { %v252_v3 = vadd.f32 1e-05, %v251_v2  ;;  %v904_v2 = vld [vmem:[#allocation7 + $0x40] sm:$0xff] }
 0x40c   :  { %11904 = vrsqrt.f32 %v252_v3  ;;  %v897_v3 = vld [vmem:[#allocation7 + $0x8] sm:$0xff] }
 0x419   :  { %v11905_v4 = vpop.eup %11904 }
 0x41a   :  { %v254_v6 = vmul.f32 %v11905_v4, %v246_v36  ;;  %v11028_v36 = vcombine.high %v272_v31, %v280_v32  ;;  %v11059_v4 = vcombine.high %v896_v1, %v904_v2 }
 0x41c   :  { %v260_v8 = vmul.f32 %v11013_v5, %v254_v6  ;;  %v905_v5 = vld [vmem:[#allocation7 + $0x48] sm:$0xff]  ;;  %v11058_v6 = vcombine.low %v896_v1, %v904_v2 }
 0x41e   :  { %v12162_v13 = vadd.f32 %v11014_v7, %v260_v8  ;;  %v11060_v7 = vcombine.low %v897_v3, %v905_v5  ;;  %v11061_v8 = vcombine.high %v897_v3, %v905_v5 }
 0x420   :  { %v12166_v16 = vpack.c.bf16 %v12162_v13, %v12162_v13 }
 0x422   :  { %11049 = vmatmul.mubr.msk.bf16.vlgmr.msra.gmra.mxu0 %vm197_vm3, %v12166_v16  ;;  %11050 = vmatmul.mubr.msk.bf16.vlgmr.msra.gmra.mxu1 %vm197_vm3, %v12166_v16 }
 0x423   :  { %647 = vmatpush1.bf16.msra.mxu0 %v11037_v61  ;;  %688 = vmatpush1.bf16.msra.mxu1 %v11039_v62  ;;  %v11077_v61 = vcombine.high %v913_v55, %v921_v56  ;;  %v11074_v62 = vcombine.low %v912_v53, %v920_v54  ;;  %v899_v53 = vld [vmem:[#allocation7 + $0x18] sm:$0xff] }
 0x424   :  { %648 = vmatprep.subr.bf16.mxu0 %v11022_v17  ;;  %689 = vmatprep.subr.bf16.mxu1 %v11024_v18  ;;  %v11078_v17 = vcombine.low %v12190_v9, %v12192_v10  ;;  %v907_v54 = vld [vmem:[#allocation7 + $0x58] sm:$0xff] }
 0x425   :  { %666 = vmatprep.mubr.bf16.mxu0 %v12056_v60  ;;  %707 = vmatprep.mubr.bf16.mxu1 %v12056_v60  ;;  %v11015_v9 = vld [vmem:[%s13308_s2 + $0x40] ss:$8 sm:$0xf] }
 0x426   :  { %v11016_v10 = vld [vmem:[%s13308_s2 + $0x40] ss:$8 sm:$0xf0] }
 0x427   :  { %649 = vmatpush1.bf16.msra.mxu0 %v11021_v23  ;;  %690 = vmatpush1.bf16.msra.mxu1 %v11023_v26  ;;  %v300_v23 = vld [vmem:[%s13308_s2] ss:$8 sm:$0xf0] }
 0x428   :  { %728 = vmatprep.subr.bf16.mxu0 %v11042_v27  ;;  %769 = vmatprep.subr.bf16.mxu1 %v11044_v28  ;;  %v12212_v26 = vor.u32 %v300_v23, %v299_v22  ;;  %v12214_v27 = vsub.s32 0, %v310_v21  ;;  %v12216_v28 = vsub.s32 2, %v310_v21  ;;  %v916_v22 = vld [vmem:[#allocation7 + $0xa0] sm:$0xff] }
 0x42a   :  { %11051 = vmatmul.mubr.msk.bf16.vlgmr.msra.gmra.mxu0 %vm197_vm3, %v12166_v16  ;;  %11052 = vmatmul.mubr.msk.bf16.vlgmr.msra.gmra.mxu1 %vm197_vm3, %v12166_v16  ;;  %v312_v31 = vrot.slane %v12212_v26, %v12214_v27  ;;  %v320_v32 = vrot.slane %v12212_v26, %v12216_v28 }
 0x42b   :  { %729 = vmatpush1.bf16.msra.mxu0 %v11041_v33  ;;  %770 = vmatpush1.bf16.msra.mxu1 %v11043_v34  ;;  %v316_v33 = vrot.slane %v12212_v26, %v12218_v29  ;;  %v324_v34 = vrot.slane %v12212_v26, %v12220_v30 }
 0x42c   :  { %730 = vmatprep.subr.bf16.mxu0 %v11026_v35  ;;  %771 = vmatprep.subr.bf16.mxu1 %v11028_v36 }
 0x42d   :  { %748 = vmatprep.mubr.bf16.mxu0 %v12056_v60  ;;  %789 = vmatprep.mubr.bf16.mxu1 %v12056_v60 }
 0x42f   :  { %731 = vmatpush1.bf16.msra.mxu0 %v11025_v41  ;;  %772 = vmatpush1.bf16.msra.mxu1 %v11027_v42 }
 0x430   :  { %810 = vmatprep.subr.bf16.mxu0 %v11046_v43  ;;  %851 = vmatprep.subr.bf16.mxu1 %v11048_v44  ;;  %v12230_v43 = vsub.s32 5, %v310_v21  ;;  %v12232_v44 = vsub.s32 7, %v310_v21 }
 0x432   :  { %11053 = vmatmul.mubr.msk.bf16.vlgmr.msra.gmra.mxu0 %vm197_vm3, %v12166_v16  ;;  %11054 = vmatmul.mubr.msk.bf16.vlgmr.msra.gmra.mxu1 %vm197_vm3, %v12166_v16 }
 0x433   :  { %811 = vmatpush1.bf16.msra.mxu0 %v11045_v49  ;;  %852 = vmatpush1.bf16.msra.mxu1 %v11047_v50  ;;  %v12234_v49 = vld [vmem:[#allocation7 + $0x10] sm:$0xff] }
 0x434   :  { %812 = vmatprep.subr.bf16.mxu0 %v11030_v51  ;;  %853 = vmatprep.subr.bf16.mxu1 %v11032_v52  ;;  %v906_v52 = vld [vmem:[#allocation7 + $0x50] sm:$0xff] }
 0x435   :  { %830 = vmatprep.mubr.bf16.mxu0 %v12056_v60  ;;  %871 = vmatprep.mubr.bf16.mxu1 %v12056_v60  ;;  %v11063_v5 = vcombine.high %v12234_v49, %v906_v52 }
 0x437   :  { %813 = vmatpush1.bf16.msra.mxu0 %v11029_v57  ;;  %854 = vmatpush1.bf16.msra.mxu1 %v11031_v58  ;;  %v12236_v57 = vsub.s32 4, %v310_v21  ;;  %v12238_v58 = vsub.s32 6, %v310_v21 }
 0x438   :  { %1121 = vmatprep.subr.bf16.mxu0 %v11075_v59  ;;  %1161 = vmatprep.subr.bf16.mxu1 %v11077_v61 }
 0x43a   :  { %11055 = vmatmul.mubr.msk.bf16.vlgmr.msra.gmra.mxu0 %vm197_vm3, %v12166_v16  ;;  %11056 = vmatmul.mubr.msk.bf16.vlgmr.msra.gmra.mxu1 %vm197_vm3, %v12166_v16  ;;  %v12198_v16 = vld [vmem:[#allocation7 + $0xd8] sm:$0xff] }
 0x43b   :  { %1122 = vmatpush1.bf16.xpose.msra.mxu0 %v11074_v62  ;;  %1162 = vmatpush1.bf16.xpose.msra.mxu1 %v11076_v63  ;;  %v11080_v18 = vcombine.low %v12194_v11, %v12198_v16  ;;  %v11081_v19 = vcombine.high %v12194_v11, %v12198_v16  ;;  %v332_v62 = vrot.slane %v12212_v26, %v12230_v43 }
 0x43c   :  { %1123 = vmatprep.subr.bf16.mxu0 %v11059_v4  ;;  %1163 = vmatprep.subr.bf16.mxu1 %v11061_v8  ;;  %v340_v63 = vrot.slane %v12212_v26, %v12232_v44  ;;  %v328_v16 = vrot.slane %v12212_v26, %v12236_v57 }
 0x443   :  { %1124 = vmatpush1.bf16.xpose.msra.mxu0 %v11058_v6  ;;  %1164 = vmatpush1.bf16.xpose.msra.mxu1 %v11060_v7  ;;  %v11065_v6 = vcombine.high %v899_v53, %v907_v54 }
 0x444   :  { %1201 = vmatprep.subr.bf16.mxu0 %v11079_v12  ;;  %1241 = vmatprep.subr.bf16.mxu1 %v11081_v19  ;;  %v336_v19 = vrot.slane %v12212_v26, %v12238_v58 }
 0x4e2   :  { %v586_v35 = vpop.f32.mrf.mxu0  ;;  %v627_v36 = vpop.f32.mrf.mxu1 }
 0x4e3   :  { %v587_v37 = vadd.f32 %v586_v35, %v312_v31  ;;  %v628_v38 = vadd.f32 %v627_v36, %v320_v32  ;;  %v12255_v32 = vor.u32 %v11016_v10, %v11015_v9  ;;  %v925_v35 = vld [vmem:[#allocation7 + $0xe8] sm:$0xff]  ;;  %v11062_v36 = vcombine.low %v12234_v49, %v906_v52 }
 0x4e4   :  { %v588_v39 = vpop.f32.mrf.mxu0  ;;  %v629_v40 = vpop.f32.mrf.mxu1 }
 0x4e5   :  { %v589_v41 = vadd.f32 %v588_v39, %v316_v33  ;;  %v630_v42 = vadd.f32 %v629_v40, %v324_v34  ;;  %v880_v45 = vmax.f32 %v587_v37, 0.0  ;;  %v882_v46 = vmax.f32 %v628_v38, 0.0  ;;  %v924_v33 = vld [vmem:[#allocation7 + $0xe0] sm:$0xff]  ;;  %v917_v34 = vld [vmem:[#allocation7 + $0xa8] sm:$0xff] }
 0x4e6   :  { %v590_v47 = vpop.f32.mrf.mxu0  ;;  %v631_v48 = vpop.f32.mrf.mxu1  ;;  %v11064_v37 = vcombine.low %v899_v53, %v907_v54  ;;  %v348_v26 = vrot.slane %v12255_v32, %v12218_v29  ;;  %v356_v40 = vrot.slane %v12255_v32, %v12220_v30 }
 0x4e7   :  { %v881_v50 = vmax.f32 %v589_v41, 0.0  ;;  %v883_v51 = vmax.f32 %v630_v42, 0.0  ;;  %v929_v1 = vpack.c.bf16 %v880_v45, %v880_v45  ;;  %v931_v2 = vpack.c.bf16 %v882_v46, %v882_v46 }
 0x4e8   :  { %v591_v55 = vpop.f32.mrf.mxu0  ;;  %v632_v56 = vpop.f32.mrf.mxu1  ;;  %v11083_v47 = vcombine.high %v916_v22, %v924_v33  ;;  %v11085_v48 = vcombine.high %v917_v34, %v925_v35 }
 0x4e9   :  { %v930_v59 = vpack.c.bf16 %v881_v50, %v881_v50  ;;  %v932_v61 = vpack.c.bf16 %v883_v51, %v883_v51 }
 0x4ea   :  { %v668_v3 = vpop.f32.mrf.mxu0  ;;  %v709_v4 = vpop.f32.mrf.mxu1 }
 0x4eb   :  { %1141 = vmatprep.mubr.bf16.mxu0 %v930_v59  ;;  %1181 = vmatprep.mubr.bf16.mxu1 %v932_v61  ;;  %v669_v41 = vadd.f32 %v668_v3, %v328_v16  ;;  %v710_v42 = vadd.f32 %v709_v4, %v336_v19  ;;  %v901_v3 = vld [vmem:[#allocation7 + $0x28] sm:$0xff] }
 0x4ec   :  { %v670_v7 = vpop.f32.mrf.mxu0  ;;  %v711_v8 = vpop.f32.mrf.mxu1  ;;  %1142 = vmatmul.mubr.bf16.vlgmr.msra.gmra.mxu0 %v929_v1  ;;  %1182 = vmatmul.mubr.bf16.vlgmr.msra.gmra.mxu1 %v931_v2  ;;  %v908_v2 = vld [vmem:[#allocation7 + $0x60] sm:$0xff]  ;;  %v909_v4 = vld [vmem:[#allocation7 + $0x68] sm:$0xff] }
 0x4ed   :  { %v671_v11 = vadd.f32 %v670_v7, %v332_v62  ;;  %v712_v12 = vadd.f32 %v711_v8, %v340_v63  ;;  %1202 = vmatpush1.bf16.xpose.msra.mxu0 %v11078_v17  ;;  %1242 = vmatpush1.bf16.xpose.msra.mxu1 %v11080_v18  ;;  %v884_v53 = vmax.f32 %v669_v41, 0.0  ;;  %v886_v54 = vmax.f32 %v710_v42, 0.0  ;;  %v900_v62 = vld [vmem:[#allocation7 + $0x20] sm:$0xff] }
 0x4ee   :  { %v672_v20 = vpop.f32.mrf.mxu0  ;;  %v713_v21 = vpop.f32.mrf.mxu1  ;;  %1203 = vmatprep.subr.bf16.mxu0 %v11063_v5  ;;  %1243 = vmatprep.subr.bf16.mxu1 %v11065_v6  ;;  %v11082_v6 = vcombine.low %v916_v22, %v924_v33  ;;  %v11067_v16 = vcombine.high %v900_v62, %v908_v2  ;;  %v11069_v19 = vcombine.high %v901_v3, %v909_v4 }
 0x4ef   :  { %v885_v23 = vmax.f32 %v671_v11, 0.0  ;;  %v887_v31 = vmax.f32 %v712_v12, 0.0  ;;  %v933_v7 = vpack.c.bf16 %v884_v53, %v884_v53  ;;  %v935_v8 = vpack.c.bf16 %v886_v54, %v886_v54  ;;  %v902_v54 = vld [vmem:[#allocation7 + $0x30] sm:$0xff] }
 0x4f0   :  { %v673_v17 = vpop.f32.mrf.mxu0  ;;  %v714_v18 = vpop.f32.mrf.mxu1  ;;  %v11084_v12 = vcombine.low %v917_v34, %v925_v35  ;;  %v352_v33 = vrot.slane %v12255_v32, %v12216_v28  ;;  %v918_v34 = vld [vmem:[#allocation7 + $0xb0] sm:$0xff]  ;;  %v11068_v41 = vcombine.low %v901_v3, %v909_v4 }
 0x4f1   :  { %v934_v38 = vpack.c.bf16 %v885_v23, %v885_v23  ;;  %v936_v39 = vpack.c.bf16 %v887_v31, %v887_v31  ;;  %v344_v23 = vrot.slane %v12255_v32, %v12214_v27  ;;  %v926_v35 = vld [vmem:[#allocation7 + $0xf0] sm:$0xff]  ;;  %v364_v17 = vrot.slane %v12255_v32, %v12230_v43 }
 0x4f2   :  { %v750_v45 = vpop.f32.mrf.mxu0  ;;  %v791_v46 = vpop.f32.mrf.mxu1  ;;  %v11087_v42 = vcombine.high %v918_v34, %v926_v35 }
 0x4f3   :  { %1221 = vmatprep.mubr.bf16.mxu0 %v934_v38  ;;  %1261 = vmatprep.mubr.bf16.mxu1 %v936_v39  ;;  %v927_v38 = vld [vmem:[#allocation7 + $0xf8] sm:$0xff]  ;;  %v372_v39 = vrot.slane %v12255_v32, %v12232_v44 }
 0x4f4   :  { %v752_v50 = vpop.f32.mrf.mxu0  ;;  %v793_v51 = vpop.f32.mrf.mxu1 }
 0x4f5   :  { %v753_v49 = vadd.f32 %v752_v50, %v348_v26  ;;  %v794_v52 = vadd.f32 %v793_v51, %v356_v40  ;;  %1204 = vmatpush1.bf16.xpose.msra.mxu0 %v11062_v36  ;;  %1244 = vmatpush1.bf16.xpose.msra.mxu1 %v11064_v37  ;;  %v919_v37 = vld [vmem:[#allocation7 + $0xb8] sm:$0xff]  ;;  %v11066_v26 = vcombine.low %v900_v62, %v908_v2 }
 0x4f6   :  { %v754_v55 = vpop.f32.mrf.mxu0  ;;  %v795_v56 = vpop.f32.mrf.mxu1  ;;  %1281 = vmatprep.subr.bf16.mxu0 %v11083_v47  ;;  %1321 = vmatprep.subr.bf16.mxu1 %v11085_v48  ;;  %v751_v40 = vadd.f32 %v750_v45, %v344_v23  ;;  %v792_v47 = vadd.f32 %v791_v46, %v352_v33  ;;  %v11089_v48 = vcombine.high %v919_v37, %v927_v38  ;;  %v911_v62 = vld [vmem:[#allocation7 + $0x78] sm:$0xff] }
 0x4f7   :  { %v889_v59 = vmax.f32 %v753_v49, 0.0  ;;  %v891_v61 = vmax.f32 %v794_v52, 0.0  ;;  %v910_v55 = vld [vmem:[#allocation7 + $0x70] sm:$0xff] }
 0x4f8   :  { %v755_v63 = vpop.f32.mrf.mxu0  ;;  %v796_v1 = vpop.f32.mrf.mxu1  ;;  %v888_v49 = vmax.f32 %v751_v40, 0.0  ;;  %v890_v52 = vmax.f32 %v792_v47, 0.0  ;;  %v11071_v46 = vcombine.high %v902_v54, %v910_v55  ;;  %v11057_v40 = vld [vmem:[%s13307_s1 + $0x16] ss:$0 sm:$0xff] }
 0x4f9   :  { %v938_v5 = vpack.c.bf16 %v889_v59, %v889_v59  ;;  %v940_v9 = vpack.c.bf16 %v891_v61, %v891_v61  ;;  %v11086_v59 = vcombine.low %v918_v34, %v926_v35  ;;  %v903_v61 = vld [vmem:[#allocation7 + $0x38] sm:$0xff]  ;;  %v11088_v63 = vcombine.low %v919_v37, %v927_v38 }
 0x4fa   :  { %v12262_v10 = vpop.f32.mrf.mxu0  ;;  %v12264_v11 = vpop.f32.mrf.mxu1  ;;  %v937_v45 = vpack.c.bf16 %v888_v49, %v888_v49  ;;  %v939_v1 = vpack.c.bf16 %v890_v52, %v890_v52  ;;  %v11073_v3 = vcombine.high %v903_v61, %v911_v62 }
 0x4fc   :  { %1222 = vmatmul.mubr.bf16.vlgmr.msra.gmra.mxu0 %v933_v7  ;;  %1262 = vmatmul.mubr.bf16.vlgmr.msra.gmra.mxu1 %v935_v8  ;;  %v834_v20 = vpop.f32.mrf.mxu0  ;;  %v875_v21 = vpop.f32.mrf.mxu1  ;;  %v11070_v7 = vcombine.low %v902_v54, %v910_v55 }
 0x4fd   :  { %1282 = vmatpush1.bf16.xpose.msra.mxu0 %v11082_v6  ;;  %1301 = vmatprep.mubr.bf16.mxu0 %v938_v5  ;;  %v835_v50 = vadd.f32 %v834_v20, %v364_v17  ;;  %v876_v51 = vadd.f32 %v875_v21, %v372_v39  ;;  %v360_v5 = vrot.slane %v12255_v32, %v12236_v57 }
 0x4fe   :  { %1322 = vmatpush1.bf16.xpose.msra.mxu1 %v11084_v12  ;;  %1341 = vmatprep.mubr.bf16.mxu1 %v940_v9  ;;  %v836_v22 = vpop.f32.mrf.mxu0  ;;  %v877_v31 = vpop.f32.mrf.mxu1  ;;  %v368_v6 = vrot.slane %v12255_v32, %v12238_v58  ;;  %v11072_v9 = vcombine.low %v903_v61, %v911_v62 }
 0x4ff   :  { %1283 = vmatprep.subr.bf16.mxu0 %v11067_v16  ;;  %1323 = vmatprep.subr.bf16.mxu1 %v11069_v19  ;;  %v893_v53 = vmax.f32 %v835_v50, 0.0  ;;  %v895_v56 = vmax.f32 %v876_v51, 0.0  ;;  %v833_v8 = vadd.f32 %v12262_v10, %v360_v5 }
 0x500   :  { %v837_v18 = vpop.f32.mrf.mxu0  ;;  %v878_v36 = vpop.f32.mrf.mxu1  ;;  %v874_v12 = vadd.f32 %v12264_v11, %v368_v6 }
 0x501   :  { %v942_v2 = vpack.c.bf16 %v893_v53, %v893_v53  ;;  %v944_v4 = vpack.c.bf16 %v895_v56, %v895_v56  ;;  %v892_v16 = vmax.f32 %v833_v8, 0.0 }
 0x502   :  { %v894_v19 = vmax.f32 %v874_v12, 0.0 }
 0x503   :  { %v941_v20 = vpack.c.bf16 %v892_v16, %v892_v16 }
 0x504   :  { %v943_v21 = vpack.c.bf16 %v894_v19, %v894_v19 }
 0x505   :  { %1284 = vmatpush1.bf16.xpose.msra.mxu0 %v11066_v26 }
 0x506   :  { %1324 = vmatpush1.bf16.xpose.msra.mxu1 %v11068_v41  ;;  %1361 = vmatprep.subr.bf16.mxu0 %v11087_v42 }
 0x507   :  { %1401 = vmatprep.subr.bf16.mxu1 %v11089_v48 }
 0x50c   :  { %1302 = vmatmul.mubr.bf16.vlgmr.msra.gmra.mxu0 %v937_v45 }
 0x50d   :  { %1342 = vmatmul.mubr.bf16.vlgmr.msra.gmra.mxu1 %v939_v1  ;;  %1362 = vmatpush1.bf16.xpose.msra.mxu0 %v11086_v59 }
 0x50e   :  { %1381 = vmatprep.mubr.bf16.mxu0 %v942_v2  ;;  %1402 = vmatpush1.bf16.xpose.msra.mxu1 %v11088_v63 }
 0x50f   :  { %1421 = vmatprep.mubr.bf16.mxu1 %v944_v4  ;;  %1363 = vmatprep.subr.bf16.mxu0 %v11071_v46 }
 0x510   :  { %1403 = vmatprep.subr.bf16.mxu1 %v11073_v3 }
 0x515   :  { %1364 = vmatpush1.bf16.xpose.msra.mxu0 %v11070_v7 }
 0x516   :  { %1404 = vmatpush1.bf16.xpose.msra.mxu1 %v11072_v9  ;;  %11772 = vmatprep.subr.bf16.mxu0 %v12054_v0 }
 0x51c   :  { %1382 = vmatmul.mubr.bf16.vlgmr.msra.gmra.mxu0 %v941_v20 }
 0x51d   :  { %1422 = vmatmul.mubr.bf16.vlgmr.msra.gmra.mxu1 %v943_v21  ;;  %11776 = vmatprep.mubr.msk.bf16.mxu0 %vm12055_vm0, %v12054_v0 }
 0x51e   :  { %1855 = vmatprep.mubr.bf16.mxu1 %v12056_v60 }
 0x5ac   :  { %v1143_v32 = vpop.f32.mrf.mxu0  ;;  %v1183_v10 = vpop.f32.mrf.mxu1 }
 0x5ad   :  { %v1144_v41 = vadd.f32 %v11057_v40, %v1143_v32 }
 0x5ae   :  { %v1145_v23 = vpop.f32.mrf.mxu0  ;;  %v1185_v22 = vpop.f32.mrf.mxu1 }
 0x5af   :  { %v1184_v50 = vadd.f32 %v1183_v10, %v1144_v41  ;;  %v11090_v22 = vld [vmem:[%s13307_s1 + $0x17] ss:$0 sm:$0xff] }
 0x5b0   :  { %v1146_v11 = vpop.f32.mrf.mxu0  ;;  %v1186_v31 = vpop.f32.mrf.mxu1 }
 0x5b2   :  { %v1147_v33 = vpop.f32.mrf.mxu0  ;;  %v1187_v34 = vpop.f32.mrf.mxu1 }
 0x5bc   :  { %v1223_v35 = vpop.f32.mrf.mxu0  ;;  %v1263_v17 = vpop.f32.mrf.mxu1 }
 0x5bd   :  { %v1224_v52 = vadd.f32 %v1223_v35, %v1184_v50  ;;  %v11092_v35 = vld [vmem:[%s13307_s1 + $0x19] ss:$0 sm:$0xff]  ;;  %v1553_v50 = vld [vmem:[#allocation5 + $0x180] sm:$0xff] }
 0x5be   :  { %v1225_v18 = vpop.f32.mrf.mxu0  ;;  %v1265_v36 = vpop.f32.mrf.mxu1 }
 0x5bf   :  { %v1264_v56 = vadd.f32 %v1263_v17, %v1224_v52 }
 0x5c0   :  { %v1226_v37 = vpop.f32.mrf.mxu0  ;;  %v1266_v38 = vpop.f32.mrf.mxu1 }
 0x5c2   :  { %v1227_v39 = vpop.f32.mrf.mxu0  ;;  %v1267_v26 = vpop.f32.mrf.mxu1 }
 0x5cc   :  { %v1303_v42 = vpop.f32.mrf.mxu0 }
 0x5cd   :  { %v1343_v47 = vpop.f32.mrf.mxu1  ;;  %v1304_v59 = vadd.f32 %v1303_v42, %v1264_v56 }
 0x5ce   :  { %v1305_v48 = vpop.f32.mrf.mxu0 }
 0x5cf   :  { %v1345_v51 = vpop.f32.mrf.mxu1  ;;  %v1344_v61 = vadd.f32 %v1343_v47, %v1304_v59  ;;  %v1537_v59 = vld [vmem:[#allocation5 + $0x100] sm:$0xff] }
 0x5d0   :  { %v1306_v49 = vpop.f32.mrf.mxu0  ;;  %v1561_v51 = vld [vmem:[#allocation5 + $0x1c0] sm:$0xff] }
 0x5d1   :  { %v1346_v53 = vpop.f32.mrf.mxu1  ;;  %v1554_v49 = vld [vmem:[#allocation5 + $0x188] sm:$0xff]  ;;  %v11117_v52 = vcombine.high %v1553_v50, %v1561_v51 }
 0x5d2   :  { %v1307_v54 = vpop.f32.mrf.mxu0  ;;  %v1562_v53 = vld [vmem:[#allocation5 + $0x1c8] sm:$0xff] }
 0x5d3   :  { %v1347_v55 = vpop.f32.mrf.mxu1  ;;  %v11116_v54 = vcombine.low %v1553_v50, %v1561_v51  ;;  %v11119_v56 = vcombine.high %v1554_v49, %v1562_v53  ;;  %1835 = vmatprep.subr.bf16.mxu1 %v11117_v52 }
 0x5d4   :  { %v11118_v55 = vcombine.low %v1554_v49, %v1562_v53  ;;  %v1559_v53 = vld [vmem:[#allocation5 + $0x1b0] sm:$0xff] }
 0x5d5   :  { %1836 = vmatpush1.bf16.msra.mxu1 %v11116_v54  ;;  %v1567_v54 = vld [vmem:[#allocation5 + $0x1f0] sm:$0xff] }
 0x5dc   :  { %v1383_v62 = vpop.f32.mrf.mxu0 }
 0x5dd   :  { %v1384_v45 = vadd.f32 %v1383_v62, %v1344_v61  ;;  %v1423_v63 = vpop.f32.mrf.mxu1  ;;  %v1545_v61 = vld [vmem:[#allocation5 + $0x140] sm:$0xff]  ;;  %v1538_v62 = vld [vmem:[#allocation5 + $0x108] sm:$0xff] }
 0x5de   :  { %v1385_v1 = vpop.f32.mrf.mxu0 }
 0x5df   :  { %v1424_v46 = vadd.f32 %v1423_v63, %v1384_v45  ;;  %v1425_v2 = vpop.f32.mrf.mxu1  ;;  %v11101_v45 = vcombine.high %v1537_v59, %v1545_v61  ;;  %v1546_v63 = vld [vmem:[#allocation5 + $0x148] sm:$0xff]  ;;  %v11100_v1 = vcombine.low %v1537_v59, %v1545_v61 }
 0x5e0   :  { %v1386_v3 = vpop.f32.mrf.mxu0  ;;  %v11103_v2 = vcombine.high %v1538_v62, %v1546_v63 }
 0x5e1   :  { %v1426_v4 = vpop.f32.mrf.mxu1  ;;  %v1429_v5 = vadd.f32 %v1424_v46, %v12162_v13  ;;  %v11102_v46 = vcombine.low %v1538_v62, %v1546_v63  ;;  %1837 = vmatprep.subr.bf16.mxu1 %v11101_v45  ;;  %v1555_v3 = vld [vmem:[#allocation5 + $0x190] sm:$0xff]  ;;  %v11129_v62 = vcombine.high %v1559_v53, %v1567_v54 }
 0x5e2   :  { %v1387_v6 = vpop.f32.mrf.mxu0  ;;  %1838 = vmatpush1.bf16.msra.mxu1 %v11100_v1  ;;  %v1563_v4 = vld [vmem:[#allocation5 + $0x1d0] sm:$0xff] }
 0x5e3   :  { %v1427_v7 = vpop.f32.mrf.mxu1  ;;  %v1430_v8 = vsel %vm148_vm2, %v1429_v5, 0.0  ;;  %v11120_v6 = vcombine.low %v1555_v3, %v1563_v4  ;;  %v1543_v63 = vld [vmem:[#allocation5 + $0x130] sm:$0xff] }
 0x5e4   :  { %1431 = vadd.xlane.f32.xlu0 %v1430_v8  ;;  %v11121_v7 = vcombine.high %v1555_v3, %v1563_v4  ;;  %v1564_v8 = vld [vmem:[#allocation5 + $0x1d8] sm:$0xff]  ;;  %v1551_v1 = vld [vmem:[#allocation5 + $0x170] sm:$0xff]  ;;  %v11128_v3 = vcombine.low %v1559_v53, %v1567_v54 }
 0x5e6   :  { %1917 = vmatprep.subr.bf16.mxu1 %v11121_v7  ;;  %v2184_v7 = vld [vmem:[#allocation7 + $0x180] sm:$0xff] }
 0x5fa   :  { %1463 = vrot.lane.b32.xlu0 %v12127_v14, %s12057_s15 }
 0x66d   :  { %v1432_v9 = vpop.xlane.xlu0 %1431 }
 0x66e   :  { %v1433_v12 = vmul.f32 0.03125, %v1432_v9 }
 0x670   :  { %v1434_v16 = vsub.f32 %v1429_v5, %v1433_v12  ;;  %v1556_v5 = vld [vmem:[#allocation5 + $0x198] sm:$0xff] }
 0x671   :  { %v1464_v13 = vpop.permute.xlu0 %1463  ;;  %v11122_v9 = vcombine.low %v1556_v5, %v1564_v8  ;;  %v11123_v12 = vcombine.high %v1556_v5, %v1564_v8  ;;  %v11113_v5 = vcombine.high %v1543_v63, %v1551_v1  ;;  %v2192_v8 = vld [vmem:[#allocation7 + $0x1c0] sm:$0xff] }
 0x672   :  { %v1435_v19 = vmul.f32 %v1434_v16, %v1434_v16  ;;  %11773 = vmatpush3.bf16.msra.mxu0 %v1464_v13 }
 0x673   :  { %11774 = vmatprep.subr.bf16.mxu0 %v12054_v0 }
 0x674   :  { %v1436_v20 = vsel %vm148_vm2, %v1435_v19, 0.0 }
 0x675   :  { %1437 = vadd.xlane.f32.xlu1 %v1436_v20 }
 0x686   :  { %1461 = vrot.lane.b32.xlu1 %v12130_v15, %s12057_s15  ;;  %v11091_v15 = vld [vmem:[%s13307_s1 + $0x18] ss:$0 sm:$0xff] }
 0x6fe   :  { %v1438_v21 = vpop.xlane.xlu1 %1437 }
 0x6ff   :  { %v1439_v32 = vmul.f32 0.03125, %v1438_v21  ;;  %v11094_v21 = vld [vmem:[%s13307_s1 + $0x1a] ss:$0 sm:$0xff] }
 0x701   :  { %v1440_v10 = vadd.f32 1e-05, %v1439_v32 }
 0x702   :  { %v1462_v23 = vpop.permute.xlu1 %1461 }
 0x703   :  { %11906 = vrsqrt.f32 %v1440_v10  ;;  %11775 = vmatpush3.bf16.msra.mxu0 %v1462_v23  ;;  %v11095_v10 = vld [vmem:[%s13307_s1 + $0x1b] ss:$0 sm:$0xff] }
 0x704   :  { %1876 = vmatprep.subr.bf16.mxu0 %v11119_v56  ;;  %v1568_v56 = vld [vmem:[#allocation5 + $0x1f8] sm:$0xff] }
 0x710   :  { %v11907_v14 = vpop.eup %11906 }
 0x711   :  { %v1442_v11 = vmul.f32 %v11907_v14, %v1434_v16  ;;  %v1539_v14 = vld [vmem:[#allocation5 + $0x110] sm:$0xff] }
 0x713   :  { %v1448_v31 = vmul.f32 %v11090_v22, %v1442_v11  ;;  %v1547_v22 = vld [vmem:[#allocation5 + $0x150] sm:$0xff]  ;;  %v1540_v11 = vld [vmem:[#allocation5 + $0x118] sm:$0xff] }
 0x715   :  { %v1454_v33 = vadd.f32 %v11091_v15, %v1448_v31  ;;  %v1548_v15 = vld [vmem:[#allocation5 + $0x158] sm:$0xff] }
 0x717   :  { %v1456_v34 = vpack.c.bf16 %v1454_v33, %v1454_v33 }
 0x719   :  { %11777 = vmatmul.mubr.msk.bf16.vlgmr.msra.gmra.mxu0 %vm197_vm3, %v1456_v34  ;;  %v11105_v34 = vcombine.high %v1539_v14, %v1547_v22 }
 0x71a   :  { %1896 = vmatprep.mubr.bf16.mxu0 %v12056_v60  ;;  %1877 = vmatpush1.bf16.msra.mxu0 %v11118_v55  ;;  %v1560_v55 = vld [vmem:[#allocation5 + $0x1b8] sm:$0xff] }
 0x71b   :  { %1878 = vmatprep.subr.bf16.mxu0 %v11103_v2  ;;  %v11131_v45 = vcombine.high %v1560_v55, %v1568_v56  ;;  %v1552_v2 = vld [vmem:[#allocation5 + $0x178] sm:$0xff]  ;;  %v11130_v4 = vcombine.low %v1560_v55, %v1568_v56 }
 0x71e   :  { %1879 = vmatpush1.bf16.msra.mxu0 %v11102_v46  ;;  %v1544_v46 = vld [vmem:[#allocation5 + $0x138] sm:$0xff] }
 0x71f   :  { %1958 = vmatprep.subr.bf16.mxu0 %v11123_v12  ;;  %v2193_v12 = vld [vmem:[#allocation7 + $0x1c8] sm:$0xff] }
 0x7d9   :  { %v1504_v17 = vpop.f32.mrf.mxu0 }
 0x7da   :  { %v1505_v18 = vadd.f32 %v11092_v35, %v1504_v17  ;;  %v11107_v35 = vcombine.high %v1540_v11, %v1548_v15  ;;  %v1557_v17 = vld [vmem:[#allocation5 + $0x1a0] sm:$0xff] }
 0x7db   :  { %v11778_v36 = vpop.f32.mrf.mxu0 }
 0x7dc   :  { %v1510_v37 = vadd.f32 %v1505_v18, %v1454_v33  ;;  %v1565_v18 = vld [vmem:[#allocation5 + $0x1e0] sm:$0xff]  ;;  %v1558_v36 = vld [vmem:[#allocation5 + $0x1a8] sm:$0xff] }
 0x7dd   :  { %v1507_v38 = vpop.f32.mrf.mxu0  ;;  %v11124_v50 = vcombine.low %v1557_v17, %v1565_v18 }
 0x7de   :  { %v1511_v39 = vsel %vm148_vm2, %v1510_v37, 0.0  ;;  %v11104_v38 = vcombine.low %v1539_v14, %v1547_v22  ;;  %v2169_v14 = vld [vmem:[#allocation7 + $0x108] sm:$0xff] }
 0x7df   :  { %1512 = vadd.xlane.f32.xlu1 %v1511_v39  ;;  %v11779_v26 = vpop.f32.mrf.mxu0  ;;  %v11106_v39 = vcombine.low %v1540_v11, %v1548_v15  ;;  %v2177_v11 = vld [vmem:[#allocation7 + $0x148] sm:$0xff] }
 0x7e0   :  { %v11125_v26 = vcombine.high %v1557_v17, %v1565_v18  ;;  %v2186_v17 = vld [vmem:[#allocation7 + $0x190] sm:$0xff] }
 0x7e1   :  { %v2194_v18 = vld [vmem:[#allocation7 + $0x1d0] sm:$0xff] }
 0x868   :  { %v1513_v40 = vpop.xlane.xlu1 %1512 }
 0x869   :  { %v1514_v41 = vmul.f32 0.03125, %v1513_v40 }
 0x86b   :  { %v1515_v42 = vsub.f32 %v1510_v37, %v1514_v41  ;;  %v1566_v37 = vld [vmem:[#allocation5 + $0x1e8] sm:$0xff]  ;;  %v1541_v41 = vld [vmem:[#allocation5 + $0x120] sm:$0xff] }
 0x86c   :  { %v11127_v40 = vcombine.high %v1558_v36, %v1566_v37  ;;  %v11126_v51 = vcombine.low %v1558_v36, %v1566_v37  ;;  %v2187_v36 = vld [vmem:[#allocation7 + $0x198] sm:$0xff]  ;;  %v11162_v37 = vcombine.high %v2186_v17, %v2194_v18 }
 0x86d   :  { %v1516_v47 = vmul.f32 %v1515_v42, %v1515_v42 }
 0x86f   :  { %v1517_v48 = vsel %vm148_vm2, %v1516_v47, 0.0  ;;  %v1542_v47 = vld [vmem:[#allocation5 + $0x128] sm:$0xff] }
 0x870   :  { %1518 = vadd.xlane.f32.xlu0 %v1517_v48  ;;  %v1550_v48 = vld [vmem:[#allocation5 + $0x168] sm:$0xff] }
 0x871   :  { %v11111_v52 = vcombine.high %v1542_v47, %v1550_v48  ;;  %v11110_v61 = vcombine.low %v1542_v47, %v1550_v48 }
 0x8f9   :  { %v1519_v16 = vpop.xlane.xlu0 %1518 }
 0x8fa   :  { %v1520_v19 = vmul.f32 0.03125, %v1519_v16  ;;  %v11112_v16 = vcombine.low %v1543_v63, %v1551_v1 }
 0x8fc   :  { %v1521_v20 = vadd.f32 1e-05, %v1520_v19  ;;  %v11114_v19 = vcombine.low %v1544_v46, %v1552_v2 }
 0x8fe   :  { %11908 = vrsqrt.f32 %v1521_v20  ;;  %v11158_v20 = vcombine.high %v2184_v7, %v2192_v8 }
 0x90b   :  { %v11909_v13 = vpop.eup %11908 }
 0x90c   :  { %v1523_v32 = vmul.f32 %v11909_v13, %v1515_v42  ;;  %v1549_v42 = vld [vmem:[#allocation5 + $0x160] sm:$0xff] }
 0x90d   :  { %v11109_v49 = vcombine.high %v1541_v41, %v1549_v42  ;;  %v11108_v59 = vcombine.low %v1541_v41, %v1549_v42  ;;  %v11097_v41 = vld [vmem:[%s13308_s2 + $0x1] ss:$8 sm:$0xf0] }
 0x90e   :  { %v1529_v23 = vmul.f32 %v11094_v21, %v1523_v32  ;;  %v11157_v21 = vcombine.low %v2184_v7, %v2192_v8 }
 0x910   :  { %v12314_v31 = vadd.f32 %v11095_v10, %v1529_v23  ;;  %v2168_v10 = vld [vmem:[#allocation7 + $0x100] sm:$0xff] }
 0x911   :  { %v2176_v23 = vld [vmem:[#allocation7 + $0x140] sm:$0xff] }
 0x912   :  { %v12318_v33 = vpack.c.bf16 %v12314_v31, %v12314_v31  ;;  %v11142_v22 = vcombine.high %v2168_v10, %v2176_v23  ;;  %v11141_v15 = vcombine.low %v2168_v10, %v2176_v23 }
 0x914   :  { %11132 = vmatmul.mubr.msk.bf16.vlgmr.msra.gmra.mxu1 %vm197_vm3, %v12318_v33  ;;  %11133 = vmatmul.mubr.msk.bf16.vlgmr.msra.gmra.mxu0 %vm197_vm3, %v12318_v33 }
 0x915   :  { %1918 = vmatpush1.bf16.msra.mxu1 %v11120_v6  ;;  %1959 = vmatpush1.bf16.msra.mxu0 %v11122_v9  ;;  %v11115_v6 = vcombine.high %v1544_v46, %v1552_v2  ;;  %v2185_v9 = vld [vmem:[#allocation7 + $0x188] sm:$0xff]  ;;  %v12358_v46 = vld [vmem:[#allocation7 + $0x110] sm:$0xff] }
 0x916   :  { %1919 = vmatprep.subr.bf16.mxu1 %v11105_v34  ;;  %1960 = vmatprep.subr.bf16.mxu0 %v11107_v35  ;;  %v11160_v13 = vcombine.high %v2185_v9, %v2193_v12  ;;  %v11159_v32 = vcombine.low %v2185_v9, %v2193_v12  ;;  %v11143_v34 = vcombine.low %v2169_v14, %v2177_v11 }
 0x917   :  { %1937 = vmatprep.mubr.bf16.mxu1 %v12056_v60  ;;  %1978 = vmatprep.mubr.bf16.mxu0 %v12056_v60  ;;  %v11144_v35 = vcombine.high %v2169_v14, %v2177_v11  ;;  %v11098_v11 = vld [vmem:[%s13308_s2 + $0x41] ss:$8 sm:$0xf] }
 0x919   :  { %1920 = vmatpush1.bf16.msra.mxu1 %v11104_v38  ;;  %1961 = vmatpush1.bf16.msra.mxu0 %v11106_v39  ;;  %v2195_v38 = vld [vmem:[#allocation7 + $0x1d8] sm:$0xff] }
 0x91a   :  { %1999 = vmatprep.subr.bf16.mxu1 %v11125_v26  ;;  %2040 = vmatprep.subr.bf16.mxu0 %v11127_v40  ;;  %v11163_v39 = vcombine.low %v2187_v36, %v2195_v38  ;;  %v11164_v26 = vcombine.high %v2187_v36, %v2195_v38  ;;  %v11096_v40 = vld [vmem:[%s13308_s2 + $0x1] ss:$8 sm:$0xf] }
 0x91b   :  { %v12348_v42 = vor.u32 %v11097_v41, %v11096_v40  ;;  %v2188_v38 = vld [vmem:[#allocation7 + $0x1a0] sm:$0xff] }
 0x91c   :  { %11134 = vmatmul.mubr.msk.bf16.vlgmr.msra.gmra.mxu1 %vm197_vm3, %v12318_v33  ;;  %11135 = vmatmul.mubr.msk.bf16.vlgmr.msra.gmra.mxu0 %vm197_vm3, %v12318_v33 }
 0x91d   :  { %2000 = vmatpush1.bf16.msra.mxu1 %v11124_v50  ;;  %2041 = vmatpush1.bf16.msra.mxu0 %v11126_v51  ;;  %v1583_v47 = vrot.slane %v12348_v42, %v12214_v27  ;;  %v1591_v48 = vrot.slane %v12348_v42, %v12216_v28  ;;  %v1587_v50 = vrot.slane %v12348_v42, %v12218_v29 }
 0x91e   :  { %2001 = vmatprep.subr.bf16.mxu1 %v11109_v49  ;;  %2042 = vmatprep.subr.bf16.mxu0 %v11111_v52  ;;  %v1595_v51 = vrot.slane %v12348_v42, %v12220_v30 }
 0x91f   :  { %2019 = vmatprep.mubr.bf16.mxu1 %v12056_v60  ;;  %2060 = vmatprep.mubr.bf16.mxu0 %v12056_v60 }
 0x921   :  { %2002 = vmatpush1.bf16.msra.mxu1 %v11108_v59  ;;  %2043 = vmatpush1.bf16.msra.mxu0 %v11110_v61 }
 0x922   :  { %2081 = vmatprep.subr.bf16.mxu1 %v11129_v62  ;;  %2122 = vmatprep.subr.bf16.mxu0 %v11131_v45 }
 0x924   :  { %11136 = vmatmul.mubr.msk.bf16.vlgmr.msra.gmra.mxu1 %vm197_vm3, %v12318_v33  ;;  %11137 = vmatmul.mubr.msk.bf16.vlgmr.msra.gmra.mxu0 %vm197_vm3, %v12318_v33 }
 0x925   :  { %2082 = vmatpush1.bf16.msra.mxu1 %v11128_v3  ;;  %2123 = vmatpush1.bf16.msra.mxu0 %v11130_v4  ;;  %v2178_v4 = vld [vmem:[#allocation7 + $0x150] sm:$0xff] }
 0x926   :  { %2083 = vmatprep.subr.bf16.mxu1 %v11113_v5  ;;  %2124 = vmatprep.subr.bf16.mxu0 %v11115_v6  ;;  %v2171_v5 = vld [vmem:[#allocation7 + $0x118] sm:$0xff]  ;;  %v11146_v10 = vcombine.high %v12358_v46, %v2178_v4 }
 0x927   :  { %2101 = vmatprep.mubr.bf16.mxu1 %v12056_v60  ;;  %2142 = vmatprep.mubr.bf16.mxu0 %v12056_v60  ;;  %v2179_v6 = vld [vmem:[#allocation7 + $0x158] sm:$0xff] }
 0x928   :  { %v11148_v23 = vcombine.high %v2171_v5, %v2179_v6 }
 0x929   :  { %2084 = vmatpush1.bf16.msra.mxu1 %v11112_v16  ;;  %2125 = vmatpush1.bf16.msra.mxu0 %v11114_v19  ;;  %v1603_v16 = vrot.slane %v12348_v42, %v12230_v43  ;;  %v1611_v19 = vrot.slane %v12348_v42, %v12232_v44 }
 0x92a   :  { %2393 = vmatprep.subr.bf16.mxu1 %v11158_v20  ;;  %2433 = vmatprep.subr.bf16.mxu0 %v11160_v13 }
 0x92c   :  { %11138 = vmatmul.mubr.msk.bf16.vlgmr.msra.gmra.mxu1 %vm197_vm3, %v12318_v33  ;;  %11139 = vmatmul.mubr.msk.bf16.vlgmr.msra.gmra.mxu0 %vm197_vm3, %v12318_v33  ;;  %v11161_v33 = vcombine.low %v2186_v17, %v2194_v18  ;;  %v1599_v17 = vrot.slane %v12348_v42, %v12236_v57  ;;  %v1607_v18 = vrot.slane %v12348_v42, %v12238_v58 }
 0x92d   :  { %2394 = vmatpush1.bf16.xpose.msra.mxu1 %v11157_v21  ;;  %2434 = vmatpush1.bf16.xpose.msra.mxu0 %v11159_v32 }
 0x92e   :  { %2395 = vmatprep.subr.bf16.mxu1 %v11142_v22  ;;  %2435 = vmatprep.subr.bf16.mxu0 %v11144_v35 }
 0x935   :  { %2396 = vmatpush1.bf16.xpose.msra.mxu1 %v11141_v15  ;;  %2436 = vmatpush1.bf16.xpose.msra.mxu0 %v11143_v34  ;;  %v11099_v15 = vld [vmem:[%s13308_s2 + $0x41] ss:$8 sm:$0xf0] }
 0x936   :  { %2473 = vmatprep.subr.bf16.mxu1 %v11162_v37  ;;  %2513 = vmatprep.subr.bf16.mxu0 %v11164_v26  ;;  %v12375_v41 = vor.u32 %v11099_v15, %v11098_v11 }
 0x938   :  { %v1619_v42 = vrot.slane %v12375_v41, %v12218_v29 }
 0x9d4   :  { %v1857_v49 = vpop.f32.mrf.mxu1  ;;  %v1898_v52 = vpop.f32.mrf.mxu0 }
 0x9d5   :  { %v1858_v53 = vadd.f32 %v1857_v49, %v1583_v47  ;;  %v1899_v54 = vadd.f32 %v1898_v52, %v1591_v48  ;;  %v2196_v47 = vld [vmem:[#allocation7 + $0x1e0] sm:$0xff]  ;;  %v2189_v48 = vld [vmem:[#allocation7 + $0x1a8] sm:$0xff]  ;;  %v11147_v49 = vcombine.low %v2171_v5, %v2179_v6 }
 0x9d6   :  { %v1859_v55 = vpop.f32.mrf.mxu1  ;;  %v1900_v56 = vpop.f32.mrf.mxu0 }
 0x9d7   :  { %v1860_v59 = vadd.f32 %v1859_v55, %v1587_v50  ;;  %v1901_v61 = vadd.f32 %v1900_v56, %v1595_v51  ;;  %v2151_v62 = vmax.f32 %v1858_v53, 0.0  ;;  %v2153_v45 = vmax.f32 %v1899_v54, 0.0  ;;  %v2197_v50 = vld [vmem:[#allocation7 + $0x1e8] sm:$0xff] }
 0x9d8   :  { %v1861_v63 = vpop.f32.mrf.mxu1  ;;  %v1902_v1 = vpop.f32.mrf.mxu0  ;;  %v11145_v51 = vcombine.low %v12358_v46, %v2178_v4  ;;  %v1627_v54 = vrot.slane %v12375_v41, %v12220_v30  ;;  %v11167_v15 = vcombine.low %v2189_v48, %v2197_v50 }
 0x9d9   :  { %v2152_v2 = vmax.f32 %v1860_v59, 0.0  ;;  %v2154_v3 = vmax.f32 %v1901_v61, 0.0  ;;  %v2201_v20 = vpack.c.bf16 %v2151_v62, %v2151_v62  ;;  %v2203_v13 = vpack.c.bf16 %v2153_v45, %v2153_v45 }
 0x9da   :  { %v1862_v7 = vpop.f32.mrf.mxu1  ;;  %v1903_v8 = vpop.f32.mrf.mxu0  ;;  %v11166_v62 = vcombine.high %v2188_v38, %v2196_v47  ;;  %v11168_v45 = vcombine.high %v2189_v48, %v2197_v50  ;;  %v1635_v48 = vrot.slane %v12375_v41, %v12230_v43 }
 0x9db   :  { %v2202_v9 = vpack.c.bf16 %v2152_v2, %v2152_v2  ;;  %v2204_v12 = vpack.c.bf16 %v2154_v3, %v2154_v3 }
 0x9dc   :  { %v1939_v21 = vpop.f32.mrf.mxu1  ;;  %v1980_v32 = vpop.f32.mrf.mxu0 }
 0x9dd   :  { %2413 = vmatprep.mubr.bf16.mxu1 %v2202_v9  ;;  %2453 = vmatprep.mubr.bf16.mxu0 %v2204_v12  ;;  %v1940_v55 = vadd.f32 %v1939_v21, %v1599_v17  ;;  %v1981_v56 = vadd.f32 %v1980_v32, %v1607_v18  ;;  %v2172_v9 = vld [vmem:[#allocation7 + $0x120] sm:$0xff]  ;;  %v11165_v32 = vcombine.low %v2188_v38, %v2196_v47  ;;  %v2198_v47 = vld [vmem:[#allocation7 + $0x1f0] sm:$0xff] }
 0x9de   :  { %v1941_v14 = vpop.f32.mrf.mxu1  ;;  %v1982_v22 = vpop.f32.mrf.mxu0  ;;  %2414 = vmatmul.mubr.bf16.vlgmr.msra.gmra.mxu1 %v2201_v20  ;;  %2454 = vmatmul.mubr.bf16.vlgmr.msra.gmra.mxu0 %v2203_v13  ;;  %v2173_v20 = vld [vmem:[#allocation7 + $0x128] sm:$0xff] }
 0x9df   :  { %v1942_v34 = vadd.f32 %v1941_v14, %v1603_v16  ;;  %v1983_v35 = vadd.f32 %v1982_v22, %v1611_v19  ;;  %2474 = vmatpush1.bf16.xpose.msra.mxu1 %v11161_v33  ;;  %2514 = vmatpush1.bf16.xpose.msra.mxu0 %v11163_v39  ;;  %v2155_v3 = vmax.f32 %v1940_v55, 0.0  ;;  %v2157_v4 = vmax.f32 %v1981_v56, 0.0  ;;  %v2180_v19 = vld [vmem:[#allocation7 + $0x160] sm:$0xff]  ;;  %v2181_v13 = vld [vmem:[#allocation7 + $0x168] sm:$0xff] }
 0x9e0   :  { %v1943_v36 = vpop.f32.mrf.mxu1  ;;  %v1984_v37 = vpop.f32.mrf.mxu0  ;;  %2475 = vmatprep.subr.bf16.mxu1 %v11146_v10  ;;  %2515 = vmatprep.subr.bf16.mxu0 %v11148_v23 }
 0x9e1   :  { %v2156_v26 = vmax.f32 %v1942_v34, 0.0  ;;  %v2158_v40 = vmax.f32 %v1983_v35, 0.0  ;;  %v2205_v10 = vpack.c.bf16 %v2155_v3, %v2155_v3  ;;  %v2207_v23 = vpack.c.bf16 %v2157_v4, %v2157_v4  ;;  %v2182_v3 = vld [vmem:[#allocation7 + $0x170] sm:$0xff] }
 0x9e2   :  { %v1944_v33 = vpop.f32.mrf.mxu1  ;;  %v1985_v39 = vpop.f32.mrf.mxu0  ;;  %v11150_v34 = vcombine.high %v2172_v9, %v2180_v19  ;;  %v11152_v35 = vcombine.high %v2173_v20, %v2181_v13  ;;  %v1615_v36 = vrot.slane %v12375_v41, %v12214_v27 }
 0x9e3   :  { %v2206_v52 = vpack.c.bf16 %v2156_v26, %v2156_v26  ;;  %v2208_v53 = vpack.c.bf16 %v2158_v40, %v2158_v40  ;;  %v1623_v26 = vrot.slane %v12375_v41, %v12216_v28  ;;  %v2190_v40 = vld [vmem:[#allocation7 + $0x1b0] sm:$0xff]  ;;  %v2191_v39 = vld [vmem:[#allocation7 + $0x1b8] sm:$0xff] }
 0x9e4   :  { %v2021_v59 = vpop.f32.mrf.mxu1  ;;  %v2062_v61 = vpop.f32.mrf.mxu0 }
 0x9e5   :  { %2493 = vmatprep.mubr.bf16.mxu1 %v2206_v52  ;;  %2533 = vmatprep.mubr.bf16.mxu0 %v2208_v53  ;;  %v11149_v52 = vcombine.low %v2172_v9, %v2180_v19  ;;  %v2022_v53 = vadd.f32 %v2021_v59, %v1615_v36  ;;  %v2063_v55 = vadd.f32 %v2062_v61, %v1623_v26 }
 0x9e6   :  { %v2023_v63 = vpop.f32.mrf.mxu1  ;;  %v2064_v1 = vpop.f32.mrf.mxu0 }
 0x9e7   :  { %v2024_v46 = vadd.f32 %v2023_v63, %v1619_v42  ;;  %v2065_v2 = vadd.f32 %v2064_v1, %v1627_v54  ;;  %2476 = vmatpush1.bf16.xpose.msra.mxu1 %v11145_v51  ;;  %2516 = vmatpush1.bf16.xpose.msra.mxu0 %v11147_v49  ;;  %v2199_v51 = vld [vmem:[#allocation7 + $0x1f8] sm:$0xff]  ;;  %v1643_v49 = vrot.slane %v12375_v41, %v12232_v44  ;;  %v2159_v63 = vmax.f32 %v2022_v53, 0.0 }
 0x9e8   :  { %v2025_v5 = vpop.f32.mrf.mxu1  ;;  %v2066_v6 = vpop.f32.mrf.mxu0  ;;  %2553 = vmatprep.subr.bf16.mxu1 %v11166_v62  ;;  %2593 = vmatprep.subr.bf16.mxu0 %v11168_v45  ;;  %v11151_v42 = vcombine.low %v2173_v20, %v2181_v13  ;;  %v11170_v54 = vcombine.high %v2190_v40, %v2198_v47  ;;  %v11172_v56 = vcombine.high %v2191_v39, %v2199_v51  ;;  %v2161_v1 = vmax.f32 %v2063_v55, 0.0 }
 0x9e9   :  { %v2160_v7 = vmax.f32 %v2024_v46, 0.0  ;;  %v2162_v8 = vmax.f32 %v2065_v2, 0.0  ;;  %v2174_v2 = vld [vmem:[#allocation7 + $0x130] sm:$0xff]  ;;  %v11169_v5 = vcombine.low %v2190_v40, %v2198_v47  ;;  %v2175_v6 = vld [vmem:[#allocation7 + $0x138] sm:$0xff]  ;;  %v2209_v59 = vpack.c.bf16 %v2159_v63, %v2159_v63 }
 0x9ea   :  { %v2026_v12 = vpop.f32.mrf.mxu1  ;;  %v2067_v16 = vpop.f32.mrf.mxu0  ;;  %v2211_v9 = vpack.c.bf16 %v2161_v1, %v2161_v1  ;;  %v11154_v61 = vcombine.high %v2174_v2, %v2182_v3  ;;  %v1631_v20 = vrot.slane %v12375_v41, %v12236_v57  ;;  %v1639_v13 = vrot.slane %v12375_v41, %v12238_v58 }
 0x9eb   :  { %v2210_v21 = vpack.c.bf16 %v2160_v7, %v2160_v7  ;;  %v2212_v14 = vpack.c.bf16 %v2162_v8, %v2162_v8  ;;  %v2183_v7 = vld [vmem:[#allocation7 + $0x178] sm:$0xff]  ;;  %v11171_v8 = vcombine.low %v2191_v39, %v2199_v51 }
 0x9ec   :  { %v12382_v22 = vpop.f32.mrf.mxu1  ;;  %v12384_v11 = vpop.f32.mrf.mxu0  ;;  %v11156_v16 = vcombine.high %v2175_v6, %v2183_v7 }
 0x9ee   :  { %2494 = vmatmul.mubr.bf16.vlgmr.msra.gmra.mxu1 %v2205_v10  ;;  %2534 = vmatmul.mubr.bf16.vlgmr.msra.gmra.mxu0 %v2207_v23  ;;  %v2105_v17 = vpop.f32.mrf.mxu1  ;;  %v2146_v18 = vpop.f32.mrf.mxu0  ;;  %v11155_v10 = vcombine.low %v2175_v6, %v2183_v7  ;;  %v2145_v23 = vadd.f32 %v12384_v11, %v1639_v13 }
 0x9ef   :  { %2554 = vmatpush1.bf16.xpose.msra.mxu1 %v11165_v32  ;;  %2573 = vmatprep.mubr.bf16.mxu1 %v2210_v21  ;;  %v2106_v62 = vadd.f32 %v2105_v17, %v1635_v48  ;;  %v2147_v45 = vadd.f32 %v2146_v18, %v1643_v49  ;;  %v11153_v21 = vcombine.low %v2174_v2, %v2182_v3  ;;  %v11140_v49 = vld [vmem:[%s13307_s1 + $0x1c] ss:$0 sm:$0xff] }
 0x9f0   :  { %2594 = vmatpush1.bf16.xpose.msra.mxu0 %v11167_v15  ;;  %2613 = vmatprep.mubr.bf16.mxu0 %v2212_v14  ;;  %v2107_v37 = vpop.f32.mrf.mxu1  ;;  %v2148_v38 = vpop.f32.mrf.mxu0  ;;  %v2104_v32 = vadd.f32 %v12382_v22, %v1631_v20  ;;  %v2165_v15 = vmax.f32 %v2145_v23, 0.0 }
 0x9f1   :  { %2555 = vmatprep.subr.bf16.mxu1 %v11150_v34  ;;  %2595 = vmatprep.subr.bf16.mxu0 %v11152_v35  ;;  %v2164_v46 = vmax.f32 %v2106_v62, 0.0  ;;  %v2166_v4 = vmax.f32 %v2147_v45, 0.0 }
 0x9f2   :  { %v2108_v50 = vpop.f32.mrf.mxu1  ;;  %v2149_v33 = vpop.f32.mrf.mxu0  ;;  %v2163_v14 = vmax.f32 %v2104_v32, 0.0  ;;  %v2215_v35 = vpack.c.bf16 %v2165_v15, %v2165_v15 }
 0x9f3   :  { %v2214_v12 = vpack.c.bf16 %v2164_v46, %v2164_v46  ;;  %v2216_v19 = vpack.c.bf16 %v2166_v4, %v2166_v4 }
 0x9f4   :  { %v2213_v34 = vpack.c.bf16 %v2163_v14, %v2163_v14 }
 0x9f7   :  { %2556 = vmatpush1.bf16.xpose.msra.mxu1 %v11149_v52 }
 0x9f8   :  { %2596 = vmatpush1.bf16.xpose.msra.mxu0 %v11151_v42  ;;  %2633 = vmatprep.subr.bf16.mxu1 %v11170_v54 }
 0x9f9   :  { %2673 = vmatprep.subr.bf16.mxu0 %v11172_v56 }
 0x9fe   :  { %2574 = vmatmul.mubr.bf16.vlgmr.msra.gmra.mxu1 %v2209_v59 }
 0x9ff   :  { %2614 = vmatmul.mubr.bf16.vlgmr.msra.gmra.mxu0 %v2211_v9  ;;  %2634 = vmatpush1.bf16.xpose.msra.mxu1 %v11169_v5 }
 0xa00   :  { %2653 = vmatprep.mubr.bf16.mxu1 %v2214_v12  ;;  %2674 = vmatpush1.bf16.xpose.msra.mxu0 %v11171_v8 }
 0xa01   :  { %2693 = vmatprep.mubr.bf16.mxu0 %v2216_v19  ;;  %2635 = vmatprep.subr.bf16.mxu1 %v11154_v61 }
 0xa02   :  { %2675 = vmatprep.subr.bf16.mxu0 %v11156_v16 }
 0xa07   :  { %2636 = vmatpush1.bf16.xpose.msra.mxu1 %v11153_v21  ;;  %v12411_v21 = vld [vmem:[#allocation2 + $0x20] ss:$16 sps:$4 sm:$0xff]  }
 0xa08   :  { %2676 = vmatpush1.bf16.xpose.msra.mxu0 %v11155_v10  ;;  %11780 = vmatprep.subr.bf16.mxu1 %v12054_v0 }
 0xa09   :  { %11788 = vmatprep.subr.bf16.mxu0 %v12054_v0 }
 0xa0e   :  { %2654 = vmatmul.mubr.bf16.vlgmr.msra.gmra.mxu1 %v2213_v34 }
 0xa0f   :  { %2694 = vmatmul.mubr.bf16.vlgmr.msra.gmra.mxu0 %v2215_v35  ;;  %11784 = vmatprep.mubr.msk.bf16.mxu1 %vm12055_vm0, %v12054_v0 }
 0xa10   :  { %11792 = vmatprep.mubr.msk.bf16.mxu0 %vm12055_vm0, %v12054_v0 }
 0xa9e   :  { %v2415_v41 = vpop.f32.mrf.mxu1  ;;  %v2455_v22 = vpop.f32.mrf.mxu0 }
 0xa9f   :  { %v2416_v52 = vadd.f32 %v11140_v49, %v2415_v41  ;;  %v12435_v49 = vld [vmem:[#allocation2 + $0x28] ss:$16 sps:$4 sm:$0xff]  }
 0xaa0   :  { %v2417_v11 = vpop.f32.mrf.mxu1  ;;  %v2457_v17 = vpop.f32.mrf.mxu0  ;;  %11789 = vmatpush3.bf16.msra.mxu0 %v12435_v49 }
 0xaa1   :  { %v2456_v55 = vadd.f32 %v2455_v22, %v2416_v52  ;;  %11790 = vmatprep.subr.bf16.mxu0 %v12054_v0 }
 0xaa2   :  { %v2418_v18 = vpop.f32.mrf.mxu1  ;;  %v2458_v36 = vpop.f32.mrf.mxu0 }
 0xaa3   :  { %v11173_v18 = vld [vmem:[%s13307_s1 + $0x1d] ss:$0 sm:$0xff] }
 0xaa4   :  { %v2419_v37 = vpop.f32.mrf.mxu1  ;;  %v2459_v38 = vpop.f32.mrf.mxu0 }
 0xaa5   :  { %v11174_v37 = vld [vmem:[%s13307_s1 + $0x1e] ss:$0 sm:$0xff] }
 0xaae   :  { %v2495_v26 = vpop.f32.mrf.mxu1  ;;  %v2535_v40 = vpop.f32.mrf.mxu0 }
 0xaaf   :  { %v2496_v45 = vadd.f32 %v2495_v26, %v2456_v55 }
 0xab0   :  { %v2497_v47 = vpop.f32.mrf.mxu1  ;;  %v2537_v48 = vpop.f32.mrf.mxu0 }
 0xab1   :  { %v2536_v2 = vadd.f32 %v2535_v40, %v2496_v45 }
 0xab2   :  { %v2498_v50 = vpop.f32.mrf.mxu1  ;;  %v2538_v33 = vpop.f32.mrf.mxu0 }
 0xab4   :  { %v2499_v39 = vpop.f32.mrf.mxu1  ;;  %v2539_v51 = vpop.f32.mrf.mxu0 }
 0xab5   :  { %v11177_v39 = vld [vmem:[%s13307_s1 + $0x21] ss:$0 sm:$0xff] }
 0xabe   :  { %v2575_v53 = vpop.f32.mrf.mxu1 }
 0xabf   :  { %v2615_v42 = vpop.f32.mrf.mxu0  ;;  %v2576_v3 = vadd.f32 %v2575_v53, %v2536_v2  ;;  %v11175_v2 = vld [vmem:[%s13307_s1 + $0x1f] ss:$0 sm:$0xff] }
 0xac0   :  { %v2577_v54 = vpop.f32.mrf.mxu1 }
 0xac1   :  { %v2617_v56 = vpop.f32.mrf.mxu0  ;;  %v2616_v4 = vadd.f32 %v2615_v42, %v2576_v3  ;;  %v12438_v42 = vld [vmem:[#allocation2 + $0x8] ss:$16 sps:$4 sm:$0xff]  }
 0xac2   :  { %v2578_v62 = vpop.f32.mrf.mxu1  ;;  %11791 = vmatpush3.bf16.msra.mxu0 %v12438_v42 }
 0xac3   :  { %v2618_v63 = vpop.f32.mrf.mxu0 }
 0xac4   :  { %v2579_v1 = vpop.f32.mrf.mxu1 }
 0xac5   :  { %v2619_v46 = vpop.f32.mrf.mxu0 }
 0xace   :  { %v2655_v5 = vpop.f32.mrf.mxu1 }
 0xacf   :  { %v2656_v6 = vadd.f32 %v2655_v5, %v2616_v4  ;;  %v2695_v7 = vpop.f32.mrf.mxu0 }
 0xad0   :  { %v2657_v59 = vpop.f32.mrf.mxu1 }
 0xad1   :  { %v2696_v8 = vadd.f32 %v2695_v7, %v2656_v6  ;;  %v2697_v9 = vpop.f32.mrf.mxu0 }
 0xad2   :  { %v2658_v61 = vpop.f32.mrf.mxu1 }
 0xad3   :  { %v2698_v12 = vpop.f32.mrf.mxu0  ;;  %v2701_v16 = vadd.f32 %v2696_v8, %v12314_v31  ;;  %v12417_v31 = vld [vmem:[#allocation2] ss:$16 sps:$4 sm:$0xff]  }
 0xad4   :  { %v2659_v19 = vpop.f32.mrf.mxu1 }
 0xad5   :  { %v2699_v20 = vpop.f32.mrf.mxu0  ;;  %v2702_v13 = vsel %vm148_vm2, %v2701_v16, 0.0 }
 0xad6   :  { %2703 = vadd.xlane.f32.xlu0 %v2702_v13 }
 0xaec   :  { %2759 = vrot.lane.b32.xlu0 %v12411_v21, %s12049_s25 }
 0xb5f   :  { %v2704_v32 = vpop.xlane.xlu0 %2703 }
 0xb60   :  { %v2705_v10 = vmul.f32 0.03125, %v2704_v32  ;;  %v11179_v32 = vld [vmem:[%s13307_s1 + $0x22] ss:$0 sm:$0xff] }
 0xb62   :  { %v2706_v23 = vsub.f32 %v2701_v16, %v2705_v10 }
 0xb63   :  { %v2760_v34 = vpop.permute.xlu0 %2759 }
 0xb64   :  { %v2707_v14 = vmul.f32 %v2706_v23, %v2706_v23  ;;  %11781 = vmatpush3.bf16.msra.mxu1 %v2760_v34 }
 0xb65   :  { %11782 = vmatprep.subr.bf16.mxu1 %v12054_v0 }
 0xb66   :  { %v2708_v15 = vsel %vm148_vm2, %v2707_v14, 0.0  ;;  %v11180_v14 = vld [vmem:[%s13307_s1 + $0x23] ss:$0 sm:$0xff] }
 0xb67   :  { %2709 = vadd.xlane.f32.xlu1 %v2708_v15 }
 0xb78   :  { %2757 = vrot.lane.b32.xlu1 %v12417_v31, %s12049_s25 }
 0xbf0   :  { %v2710_v35 = vpop.xlane.xlu1 %2709 }
 0xbf1   :  { %v2711_v41 = vmul.f32 0.03125, %v2710_v35 }
 0xbf3   :  { %v2712_v22 = vadd.f32 1e-05, %v2711_v41 }
 0xbf4   :  { %v2758_v11 = vpop.permute.xlu1 %2757 }
 0xbf5   :  { %11910 = vrsqrt.f32 %v2712_v22  ;;  %11783 = vmatpush3.bf16.msra.mxu1 %v2758_v11 }
 0xbf8   :  { %11785 = vmatmul.mubr.msk.bf16.vlgmr.msra.gmra.mxu1 %vm197_vm3, %v12144_v25 }
 0xbf9   :  { %3239 = vmatprep.mubr.bf16.mxu1 %v12056_v60 }
 0xc02   :  { %v11911_v17 = vpop.eup %11910 }
 0xc03   :  { %v2714_v36 = vmul.f32 %v11911_v17, %v2706_v23  ;;  %v11181_v23 = vld [vmem:[%s13307_s1 + $0x24] ss:$0 sm:$0xff] }
 0xc05   :  { %v2720_v38 = vmul.f32 %v11173_v18, %v2714_v36 }
 0xc07   :  { %v2726_v26 = vadd.f32 %v11174_v37, %v2720_v38 }
 0xc09   :  { %v2727_v40 = vsel %vm148_vm2, %v2726_v26, 0.0 }
 0xc0a   :  { %2728 = vadd.xlane.f32.xlu1 %v2727_v40 }
 0xc93   :  { %v2729_v47 = vpop.xlane.xlu1 %2728 }
 0xc94   :  { %v2730_v48 = vmul.f32 0.03125, %v2729_v47  ;;  %v2937_v47 = vld [vmem:[#allocation5 + $0x280] sm:$0xff] }
 0xc96   :  { %v2731_v25 = vsub.f32 %v2726_v26, %v2730_v48  ;;  %v2945_v48 = vld [vmem:[#allocation5 + $0x2c0] sm:$0xff] }
 0xc98   :  { %v2732_v50 = vmul.f32 %v2731_v25, %v2731_v25 }
 0xc9a   :  { %v2733_v33 = vsel %vm148_vm2, %v2732_v50, 0.0  ;;  %v11208_v50 = vcombine.high %v2937_v47, %v2945_v48 }
 0xc9b   :  { %2734 = vadd.xlane.f32.xlu0 %v2733_v33  ;;  %v2946_v33 = vld [vmem:[#allocation5 + $0x2c8] sm:$0xff] }
 0xc9c   :  { %3219 = vmatprep.subr.bf16.mxu1 %v11208_v50 }
 0xcb8   :  { %v2797_v51 = vpop.f32.mrf.mxu1 }
 0xcb9   :  { %v2798_v52 = vadd.f32 %v11177_v39, %v2797_v51  ;;  %v11207_v39 = vcombine.low %v2937_v47, %v2945_v48  ;;  %v2933_v47 = vld [vmem:[#allocation5 + $0x260] sm:$0xff]  ;;  %v2926_v48 = vld [vmem:[#allocation5 + $0x228] sm:$0xff] }
 0xcba   :  { %v11786_v53 = vpop.f32.mrf.mxu1 }
 0xcbb   :  { %v2803_v54 = vadd.f32 %v2798_v52, %v12140_v24  ;;  %v11176_v24 = vld [vmem:[%s13307_s1 + $0x20] ss:$0 sm:$0xff]  ;;  %3220 = vmatpush1.bf16.msra.mxu1 %v11207_v39 }
 0xcbc   :  { %v2800_v55 = vpop.f32.mrf.mxu1  ;;  %v2921_v53 = vld [vmem:[#allocation5 + $0x200] sm:$0xff] }
 0xcbd   :  { %v2804_v56 = vsel %vm148_vm2, %v2803_v54, 0.0  ;;  %v2922_v55 = vld [vmem:[#allocation5 + $0x208] sm:$0xff] }
 0xcbe   :  { %2805 = vadd.xlane.f32.xlu0 %v2804_v56  ;;  %v11787_v62 = vpop.f32.mrf.mxu1 }
 0xcbf   :  { %v2930_v62 = vld [vmem:[#allocation5 + $0x248] sm:$0xff] }
 0xd24   :  { %v2735_v45 = vpop.xlane.xlu0 %2734 }
 0xd25   :  { %v2736_v63 = vmul.f32 0.03125, %v2735_v45 }
 0xd27   :  { %v2737_v1 = vadd.f32 1e-05, %v2736_v63  ;;  %v11193_v63 = vcombine.low %v2922_v55, %v2930_v62 }
 0xd29   :  { %11912 = vrsqrt.f32 %v2737_v1  ;;  %v11194_v1 = vcombine.high %v2922_v55, %v2930_v62  ;;  %v2952_v55 = vld [vmem:[#allocation5 + $0x2f8] sm:$0xff] }
 0xd36   :  { %v11913_v46 = vpop.eup %11912 }
 0xd37   :  { %v2739_v3 = vmul.f32 %v11913_v46, %v2731_v25  ;;  %v2938_v25 = vld [vmem:[#allocation5 + $0x288] sm:$0xff]  ;;  %v2939_v46 = vld [vmem:[#allocation5 + $0x290] sm:$0xff] }
 0xd38   :  { %v11209_v51 = vcombine.low %v2938_v25, %v2946_v33  ;;  %v11210_v52 = vcombine.high %v2938_v25, %v2946_v33  ;;  %v2934_v25 = vld [vmem:[#allocation5 + $0x268] sm:$0xff] }
 0xd39   :  { %v2745_v4 = vmul.f32 %v11175_v2, %v2739_v3  ;;  %v2947_v2 = vld [vmem:[#allocation5 + $0x2d0] sm:$0xff]  ;;  %v2940_v3 = vld [vmem:[#allocation5 + $0x298] sm:$0xff]  ;;  %v11201_v62 = vcombine.low %v2926_v48, %v2934_v25 }
 0xd3a   :  { %3260 = vmatprep.subr.bf16.mxu0 %v11210_v52  ;;  %v2943_v52 = vld [vmem:[#allocation5 + $0x2b0] sm:$0xff] }
 0xd3b   :  { %v2751_v5 = vadd.f32 %v11176_v24, %v2745_v4  ;;  %v11211_v24 = vcombine.low %v2939_v46, %v2947_v2  ;;  %v11212_v4 = vcombine.high %v2939_v46, %v2947_v2  ;;  %v2935_v46 = vld [vmem:[#allocation5 + $0x270] sm:$0xff]  ;;  %v2928_v2 = vld [vmem:[#allocation5 + $0x238] sm:$0xff] }
 0xd3d   :  { %v12450_v6 = vpack.c.bf16 %v2751_v5, %v2751_v5  ;;  %v2948_v5 = vld [vmem:[#allocation5 + $0x2d8] sm:$0xff] }
 0xd3f   :  { %11793 = vmatmul.mubr.msk.bf16.vlgmr.msra.gmra.mxu0 %vm197_vm3, %v12450_v6 }
 0xd40   :  { %3280 = vmatprep.mubr.bf16.mxu0 %v12056_v60  ;;  %3261 = vmatpush1.bf16.msra.mxu0 %v11209_v51  ;;  %v11202_v51 = vcombine.high %v2926_v48, %v2934_v25  ;;  %v11187_v48 = vld [vmem:[%s13308_s2 + $0x2] ss:$8 sm:$0xf] }
 0xd41   :  { %3262 = vmatprep.subr.bf16.mxu0 %v11194_v1  ;;  %v2927_v1 = vld [vmem:[#allocation5 + $0x230] sm:$0xff] }
 0xd42   :  { %v11188_v25 = vld [vmem:[%s13308_s2 + $0x2] ss:$8 sm:$0xf0] }
 0xd44   :  { %3263 = vmatpush1.bf16.msra.mxu0 %v11193_v63 }
 0xd47   :  { %v2806_v7 = vpop.xlane.xlu0 %2805 }
 0xd48   :  { %v2807_v59 = vmul.f32 0.03125, %v2806_v7  ;;  %v11213_v7 = vcombine.low %v2940_v3, %v2948_v5 }
 0xd4a   :  { %v2808_v8 = vsub.f32 %v2803_v54, %v2807_v59  ;;  %v2929_v54 = vld [vmem:[#allocation5 + $0x240] sm:$0xff]  ;;  %v11214_v59 = vcombine.high %v2940_v3, %v2948_v5  ;;  %v2936_v3 = vld [vmem:[#allocation5 + $0x278] sm:$0xff]  ;;  %v11204_v5 = vcombine.high %v2927_v1, %v2935_v46 }
 0xd4b   :  { %v11192_v56 = vcombine.high %v2921_v53, %v2929_v54  ;;  %v11191_v45 = vcombine.low %v2921_v53, %v2929_v54  ;;  %v2951_v53 = vld [vmem:[#allocation5 + $0x2f0] sm:$0xff]  ;;  %v2944_v54 = vld [vmem:[#allocation5 + $0x2b8] sm:$0xff] }
 0xd4c   :  { %v2809_v9 = vmul.f32 %v2808_v8, %v2808_v8  ;;  %3342 = vmatprep.subr.bf16.mxu0 %v11214_v59  ;;  %v11222_v63 = vcombine.high %v2944_v54, %v2952_v55  ;;  %v3568_v59 = vld [vmem:[#allocation7 + $0x280] sm:$0xff] }
 0xd4d   :  { %3221 = vmatprep.subr.bf16.mxu1 %v11192_v56 }
 0xd4e   :  { %v2810_v61 = vsel %vm148_vm2, %v2809_v9, 0.0  ;;  %3222 = vmatpush1.bf16.msra.mxu1 %v11191_v45  ;;  %v11220_v45 = vcombine.high %v2943_v52, %v2951_v53 }
 0xd4f   :  { %2811 = vadd.xlane.f32.xlu1 %v2810_v61  ;;  %3301 = vmatprep.subr.bf16.mxu1 %v11212_v4  ;;  %v11221_v4 = vcombine.low %v2944_v54, %v2952_v55 }
 0xdd8   :  { %v2812_v12 = vpop.xlane.xlu1 %2811 }
 0xdd9   :  { %v2813_v16 = vmul.f32 0.03125, %v2812_v12 }
 0xddb   :  { %v2814_v19 = vadd.f32 1e-05, %v2813_v16  ;;  %v11185_v16 = vld [vmem:[%s13307_s1 + $0x25] ss:$0 sm:$0xff] }
 0xddd   :  { %11914 = vrsqrt.f32 %v2814_v19 }
 0xdea   :  { %v11915_v20 = vpop.eup %11914 }
 0xdeb   :  { %v2816_v13 = vmul.f32 %v11915_v20, %v2808_v8  ;;  %v11186_v20 = vld [vmem:[%s13307_s1 + $0x26] ss:$0 sm:$0xff] }
 0xded   :  { %v2822_v10 = vmul.f32 %v11179_v32, %v2816_v13  ;;  %v2923_v32 = vld [vmem:[#allocation5 + $0x210] sm:$0xff] }
 0xdef   :  { %v2828_v35 = vadd.f32 %v11180_v14, %v2822_v10  ;;  %v2931_v10 = vld [vmem:[#allocation5 + $0x250] sm:$0xff]  ;;  %v2932_v14 = vld [vmem:[#allocation5 + $0x258] sm:$0xff] }
 0xdff   :  { %v2888_v15 = vpop.f32.mrf.mxu0 }
 0xe00   :  { %v2889_v34 = vadd.f32 %v11181_v23, %v2888_v15  ;;  %v2924_v23 = vld [vmem:[#allocation5 + $0x218] sm:$0xff] }
 0xe01   :  { %v11794_v41 = vpop.f32.mrf.mxu0 }
 0xe02   :  { %v2894_v22 = vadd.f32 %v2889_v34, %v2828_v35  ;;  %v11196_v35 = vcombine.high %v2923_v32, %v2931_v10  ;;  %v11198_v41 = vcombine.high %v2924_v23, %v2932_v14 }
 0xe03   :  { %v2891_v11 = vpop.f32.mrf.mxu0 }
 0xe04   :  { %v2895_v17 = vsel %vm148_vm2, %v2894_v22, 0.0  ;;  %v2949_v11 = vld [vmem:[#allocation5 + $0x2e0] sm:$0xff] }
 0xe05   :  { %v11795_v18 = vpop.f32.mrf.mxu0  ;;  %2896 = vadd.xlane.f32.xlu0 %v2895_v17  ;;  %v2942_v17 = vld [vmem:[#allocation5 + $0x2a8] sm:$0xff] }
 0xe06   :  { %v2950_v18 = vld [vmem:[#allocation5 + $0x2e8] sm:$0xff] }
 0xe07   :  { %v11217_v33 = vcombine.low %v2942_v17, %v2950_v18 }
 0xe8e   :  { %v2897_v36 = vpop.xlane.xlu0 %2896 }
 0xe8f   :  { %v2898_v37 = vmul.f32 0.03125, %v2897_v36  ;;  %v11195_v36 = vcombine.low %v2923_v32, %v2931_v10  ;;  %v3552_v10 = vld [vmem:[#allocation7 + $0x200] sm:$0xff] }
 0xe91   :  { %v2899_v38 = vsub.f32 %v2894_v22, %v2898_v37  ;;  %v2941_v22 = vld [vmem:[#allocation5 + $0x2a0] sm:$0xff]  ;;  %v11197_v37 = vcombine.low %v2924_v23, %v2932_v14  ;;  %v3553_v14 = vld [vmem:[#allocation7 + $0x208] sm:$0xff] }
 0xe92   :  { %v11215_v50 = vcombine.low %v2941_v22, %v2949_v11  ;;  %v3560_v23 = vld [vmem:[#allocation7 + $0x240] sm:$0xff] }
 0xe93   :  { %v2900_v26 = vmul.f32 %v2899_v38, %v2899_v38 }
 0xe95   :  { %v2901_v40 = vsel %vm148_vm2, %v2900_v26, 0.0  ;;  %v11218_v26 = vcombine.high %v2942_v17, %v2950_v18  ;;  %v3570_v18 = vld [vmem:[#allocation7 + $0x290] sm:$0xff] }
 0xe96   :  { %2902 = vadd.xlane.f32.xlu1 %v2901_v40  ;;  %v2925_v40 = vld [vmem:[#allocation5 + $0x220] sm:$0xff] }
 0xe97   :  { %v11200_v39 = vcombine.high %v2925_v40, %v2933_v47  ;;  %v11199_v56 = vcombine.low %v2925_v40, %v2933_v47 }
 0xf1f   :  { %v2903_v8 = vpop.xlane.xlu1 %2902 }
 0xf20   :  { %v2904_v9 = vmul.f32 0.03125, %v2903_v8  ;;  %v3576_v8 = vld [vmem:[#allocation7 + $0x2c0] sm:$0xff] }
 0xf22   :  { %v2905_v61 = vadd.f32 1e-05, %v2904_v9  ;;  %v3569_v9 = vld [vmem:[#allocation7 + $0x288] sm:$0xff] }
 0xf24   :  { %11916 = vrsqrt.f32 %v2905_v61  ;;  %v3577_v61 = vld [vmem:[#allocation7 + $0x2c8] sm:$0xff] }
 0xf25   :  { %v11250_v32 = vcombine.low %v3569_v9, %v3577_v61 }
 0xf31   :  { %v11917_v12 = vpop.eup %11916 }
 0xf32   :  { %v2907_v19 = vmul.f32 %v11917_v12, %v2899_v38  ;;  %v11216_v38 = vcombine.high %v2941_v22, %v2949_v11  ;;  %v11203_v12 = vcombine.low %v2927_v1, %v2935_v46  ;;  %v11232_v22 = vcombine.low %v3552_v10, %v3560_v23 }
 0xf34   :  { %v2913_v13 = vmul.f32 %v11185_v16, %v2907_v19  ;;  %v11205_v16 = vcombine.low %v2928_v2, %v2936_v3  ;;  %v11249_v19 = vcombine.high %v3568_v59, %v3576_v8 }
 0xf36   :  { %v12473_v15 = vadd.f32 %v11186_v20, %v2913_v13  ;;  %v11251_v20 = vcombine.high %v3569_v9, %v3577_v61  ;;  %v11248_v13 = vcombine.low %v3568_v59, %v3576_v8  ;;  %v3562_v59 = vld [vmem:[#allocation7 + $0x250] sm:$0xff]  ;;  %v3555_v8 = vld [vmem:[#allocation7 + $0x218] sm:$0xff] }
 0xf37   :  { %v3563_v9 = vld [vmem:[#allocation7 + $0x258] sm:$0xff] }
 0xf38   :  { %v12477_v34 = vpack.c.bf16 %v12473_v15, %v12473_v15 }
 0xf3a   :  { %11223 = vmatmul.mubr.msk.bf16.vlgmr.msra.gmra.mxu1 %vm197_vm3, %v12477_v34  ;;  %11224 = vmatmul.mubr.msk.bf16.vlgmr.msra.gmra.mxu0 %vm197_vm3, %v12477_v34 }
 0xf3b   :  { %3302 = vmatpush1.bf16.msra.mxu1 %v11211_v24  ;;  %3343 = vmatpush1.bf16.msra.mxu0 %v11213_v7  ;;  %v11219_v24 = vcombine.low %v2943_v52, %v2951_v53  ;;  %v11206_v7 = vcombine.high %v2928_v2, %v2936_v3 }
 0xf3c   :  { %3303 = vmatprep.subr.bf16.mxu1 %v11196_v35  ;;  %3344 = vmatprep.subr.bf16.mxu0 %v11198_v41  ;;  %v11233_v35 = vcombine.high %v3552_v10, %v3560_v23  ;;  %v3561_v41 = vld [vmem:[#allocation7 + $0x248] sm:$0xff] }
 0xf3d   :  { %3321 = vmatprep.mubr.bf16.mxu1 %v12056_v60  ;;  %3362 = vmatprep.mubr.bf16.mxu0 %v12056_v60  ;;  %v11234_v11 = vcombine.low %v3553_v14, %v3561_v41  ;;  %v11235_v17 = vcombine.high %v3553_v14, %v3561_v41  ;;  %v11239_v41 = vcombine.high %v3555_v8, %v3563_v9 }
 0xf3f   :  { %3304 = vmatpush1.bf16.msra.mxu1 %v11195_v36  ;;  %3345 = vmatpush1.bf16.msra.mxu0 %v11197_v37  ;;  %v3578_v36 = vld [vmem:[#allocation7 + $0x2d0] sm:$0xff]  ;;  %v3571_v37 = vld [vmem:[#allocation7 + $0x298] sm:$0xff] }
 0xf40   :  { %3383 = vmatprep.subr.bf16.mxu1 %v11216_v38  ;;  %3424 = vmatprep.subr.bf16.mxu0 %v11218_v26  ;;  %v11253_v38 = vcombine.high %v3570_v18, %v3578_v36  ;;  %v3579_v26 = vld [vmem:[#allocation7 + $0x2d8] sm:$0xff] }
 0xf41   :  { %v11254_v40 = vcombine.low %v3571_v37, %v3579_v26  ;;  %v11255_v47 = vcombine.high %v3571_v37, %v3579_v26 }
 0xf42   :  { %11225 = vmatmul.mubr.msk.bf16.vlgmr.msra.gmra.mxu1 %vm197_vm3, %v12477_v34  ;;  %11226 = vmatmul.mubr.msk.bf16.vlgmr.msra.gmra.mxu0 %vm197_vm3, %v12477_v34 }
 0xf43   :  { %3384 = vmatpush1.bf16.msra.mxu1 %v11215_v50  ;;  %3425 = vmatpush1.bf16.msra.mxu0 %v11217_v33  ;;  %v12507_v50 = vor.u32 %v11188_v25, %v11187_v48  ;;  %v3572_v25 = vld [vmem:[#allocation7 + $0x2a0] sm:$0xff] }
 0xf44   :  { %3385 = vmatprep.subr.bf16.mxu1 %v11200_v39  ;;  %3426 = vmatprep.subr.bf16.mxu0 %v11202_v51 }
 0xf45   :  { %3403 = vmatprep.mubr.bf16.mxu1 %v12056_v60  ;;  %3444 = vmatprep.mubr.bf16.mxu0 %v12056_v60  ;;  %v2967_v33 = vrot.slane %v12507_v50, %v12214_v27  ;;  %v2975_v39 = vrot.slane %v12507_v50, %v12216_v28  ;;  %v2971_v51 = vrot.slane %v12507_v50, %v12218_v29 }
 0xf46   :  { %v2979_v52 = vrot.slane %v12507_v50, %v12220_v30  ;;  %v2991_v26 = vrot.slane %v12507_v50, %v12238_v58 }
 0xf47   :  { %3386 = vmatpush1.bf16.msra.mxu1 %v11199_v56  ;;  %3427 = vmatpush1.bf16.msra.mxu0 %v11201_v62 }
 0xf48   :  { %3465 = vmatprep.subr.bf16.mxu1 %v11220_v45  ;;  %3506 = vmatprep.subr.bf16.mxu0 %v11222_v63 }
 0xf4a   :  { %11227 = vmatmul.mubr.msk.bf16.vlgmr.msra.gmra.mxu1 %vm197_vm3, %v12477_v34  ;;  %11228 = vmatmul.mubr.msk.bf16.vlgmr.msra.gmra.mxu0 %vm197_vm3, %v12477_v34 }
 0xf4b   :  { %3466 = vmatpush1.bf16.msra.mxu1 %v11219_v24  ;;  %3507 = vmatpush1.bf16.msra.mxu0 %v11221_v4  ;;  %v12517_v4 = vld [vmem:[#allocation7 + $0x210] sm:$0xff] }
 0xf4c   :  { %3467 = vmatprep.subr.bf16.mxu1 %v11204_v5  ;;  %3508 = vmatprep.subr.bf16.mxu0 %v11206_v7 }
 0xf4d   :  { %3485 = vmatprep.mubr.bf16.mxu1 %v12056_v60  ;;  %3526 = vmatprep.mubr.bf16.mxu0 %v12056_v60 }
 0xf4f   :  { %3468 = vmatpush1.bf16.msra.mxu1 %v11203_v12  ;;  %3509 = vmatpush1.bf16.msra.mxu0 %v11205_v16 }
 0xf50   :  { %3777 = vmatprep.subr.bf16.mxu1 %v11249_v19  ;;  %3817 = vmatprep.subr.bf16.mxu0 %v11251_v20  ;;  %v2987_v20 = vrot.slane %v12507_v50, %v12230_v43 }
 0xf52   :  { %11229 = vmatmul.mubr.msk.bf16.vlgmr.msra.gmra.mxu1 %vm197_vm3, %v12477_v34  ;;  %11230 = vmatmul.mubr.msk.bf16.vlgmr.msra.gmra.mxu0 %vm197_vm3, %v12477_v34  ;;  %v11252_v34 = vcombine.low %v3570_v18, %v3578_v36  ;;  %v11190_v18 = vld [vmem:[%s13308_s2 + $0x42] ss:$8 sm:$0xf0] }
 0xf53   :  { %3778 = vmatpush1.bf16.xpose.msra.mxu1 %v11248_v13  ;;  %3818 = vmatpush1.bf16.xpose.msra.mxu0 %v11250_v32  ;;  %v2995_v13 = vrot.slane %v12507_v50, %v12232_v44 }
 0xf54   :  { %3779 = vmatprep.subr.bf16.mxu1 %v11233_v35  ;;  %3819 = vmatprep.subr.bf16.mxu0 %v11235_v17  ;;  %v11237_v35 = vcombine.high %v12517_v4, %v3562_v59  ;;  %v11189_v17 = vld [vmem:[%s13308_s2 + $0x42] ss:$8 sm:$0xf] }
 0xf5b   :  { %3780 = vmatpush1.bf16.xpose.msra.mxu1 %v11232_v22  ;;  %3820 = vmatpush1.bf16.xpose.msra.mxu0 %v11234_v11 }
 0xf5c   :  { %3857 = vmatprep.subr.bf16.mxu1 %v11253_v38  ;;  %3897 = vmatprep.subr.bf16.mxu0 %v11255_v47  ;;  %v2983_v38 = vrot.slane %v12507_v50, %v12236_v57 }
 0xffa   :  { %v3241_v53 = vpop.f32.mrf.mxu1  ;;  %v3282_v54 = vpop.f32.mrf.mxu0 }
 0xffb   :  { %v3242_v55 = vadd.f32 %v3241_v53, %v2967_v33  ;;  %v3283_v56 = vadd.f32 %v3282_v54, %v2975_v39  ;;  %v3573_v53 = vld [vmem:[#allocation7 + $0x2a8] sm:$0xff] }
 0xffc   :  { %v3243_v62 = vpop.f32.mrf.mxu1  ;;  %v3284_v45 = vpop.f32.mrf.mxu0  ;;  %v3581_v54 = vld [vmem:[#allocation7 + $0x2e8] sm:$0xff] }
 0xffd   :  { %v3244_v63 = vadd.f32 %v3243_v62, %v2971_v51  ;;  %v3285_v1 = vadd.f32 %v3284_v45, %v2979_v52  ;;  %v3535_v46 = vmax.f32 %v3242_v55, 0.0  ;;  %v3537_v2 = vmax.f32 %v3283_v56, 0.0  ;;  %v3580_v52 = vld [vmem:[#allocation7 + $0x2e0] sm:$0xff] }
 0xffe   :  { %v3245_v3 = vpop.f32.mrf.mxu1  ;;  %v3286_v24 = vpop.f32.mrf.mxu0  ;;  %v12534_v51 = vor.u32 %v11190_v18, %v11189_v17  ;;  %v11236_v55 = vcombine.low %v12517_v4, %v3562_v59  ;;  %v11238_v56 = vcombine.low %v3555_v8, %v3563_v9 }
 0xfff   :  { %v3536_v5 = vmax.f32 %v3244_v63, 0.0  ;;  %v3538_v7 = vmax.f32 %v3285_v1, 0.0  ;;  %v3585_v32 = vpack.c.bf16 %v3535_v46, %v3535_v46  ;;  %v3587_v10 = vpack.c.bf16 %v3537_v2, %v3537_v2 }
0x1000   :  { %v3246_v61 = vpop.f32.mrf.mxu1  ;;  %v3287_v12 = vpop.f32.mrf.mxu0  ;;  %v3003_v50 = vrot.slane %v12534_v51, %v12218_v29  ;;  %v3011_v63 = vrot.slane %v12534_v51, %v12220_v30  ;;  %v11257_v24 = vcombine.high %v3572_v25, %v3580_v52 }
0x1001   :  { %v3586_v16 = vpack.c.bf16 %v3536_v5, %v3536_v5  ;;  %v3588_v19 = vpack.c.bf16 %v3538_v7, %v3538_v7  ;;  %v11259_v5 = vcombine.high %v3573_v53, %v3581_v54 }
0x1002   :  { %v3323_v23 = vpop.f32.mrf.mxu1  ;;  %v3364_v14 = vpop.f32.mrf.mxu0 }
0x1003   :  { %3797 = vmatprep.mubr.bf16.mxu1 %v3586_v16  ;;  %3837 = vmatprep.mubr.bf16.mxu0 %v3588_v19  ;;  %v3324_v1 = vadd.f32 %v3323_v23, %v2983_v38  ;;  %v3365_v46 = vadd.f32 %v3364_v14, %v2991_v26  ;;  %v3564_v23 = vld [vmem:[#allocation7 + $0x260] sm:$0xff]  ;;  %v3557_v14 = vld [vmem:[#allocation7 + $0x228] sm:$0xff]  ;;  %v11258_v38 = vcombine.low %v3573_v53, %v3581_v54  ;;  %v3574_v53 = vld [vmem:[#allocation7 + $0x2b0] sm:$0xff] }
0x1004   :  { %v3325_v22 = vpop.f32.mrf.mxu1  ;;  %v3366_v11 = vpop.f32.mrf.mxu0  ;;  %3798 = vmatmul.mubr.bf16.vlgmr.msra.gmra.mxu1 %v3585_v32  ;;  %3838 = vmatmul.mubr.bf16.vlgmr.msra.gmra.mxu0 %v3587_v10  ;;  %v3582_v54 = vld [vmem:[#allocation7 + $0x2f0] sm:$0xff] }
0x1005   :  { %v3326_v36 = vadd.f32 %v3325_v22, %v2987_v20  ;;  %v3367_v37 = vadd.f32 %v3366_v11, %v2995_v13  ;;  %3858 = vmatpush1.bf16.xpose.msra.mxu1 %v11252_v34  ;;  %3898 = vmatpush1.bf16.xpose.msra.mxu0 %v11254_v40  ;;  %v3539_v8 = vmax.f32 %v3324_v1, 0.0  ;;  %v3541_v9 = vmax.f32 %v3365_v46, 0.0  ;;  %v3556_v13 = vld [vmem:[#allocation7 + $0x220] sm:$0xff] }
0x1006   :  { %v3327_v47 = vpop.f32.mrf.mxu1  ;;  %v3368_v48 = vpop.f32.mrf.mxu0  ;;  %3859 = vmatprep.subr.bf16.mxu1 %v11237_v35  ;;  %3899 = vmatprep.subr.bf16.mxu0 %v11239_v41  ;;  %v3565_v35 = vld [vmem:[#allocation7 + $0x268] sm:$0xff]  ;;  %v11256_v22 = vcombine.low %v3572_v25, %v3580_v52  ;;  %v11241_v26 = vcombine.high %v3556_v13, %v3564_v23 }
0x1007   :  { %v3540_v33 = vmax.f32 %v3326_v36, 0.0  ;;  %v3542_v39 = vmax.f32 %v3367_v37, 0.0  ;;  %v3589_v11 = vpack.c.bf16 %v3539_v8, %v3539_v8  ;;  %v3591_v17 = vpack.c.bf16 %v3541_v9, %v3541_v9 }
0x1008   :  { %v3328_v34 = vpop.f32.mrf.mxu1  ;;  %v3369_v40 = vpop.f32.mrf.mxu0  ;;  %v11243_v47 = vcombine.high %v3557_v14, %v3565_v35  ;;  %v11242_v46 = vcombine.low %v3557_v14, %v3565_v35 }
0x1009   :  { %v3590_v62 = vpack.c.bf16 %v3540_v33, %v3540_v33  ;;  %v3592_v45 = vpack.c.bf16 %v3542_v39, %v3542_v39  ;;  %v2999_v39 = vrot.slane %v12534_v51, %v12214_v27  ;;  %v3007_v34 = vrot.slane %v12534_v51, %v12216_v28 }
0x100a   :  { %v3405_v2 = vpop.f32.mrf.mxu1  ;;  %v3446_v3 = vpop.f32.mrf.mxu0  ;;  %v3019_v40 = vrot.slane %v12534_v51, %v12230_v43 }
0x100b   :  { %3877 = vmatprep.mubr.bf16.mxu1 %v3590_v62  ;;  %3917 = vmatprep.mubr.bf16.mxu0 %v3592_v45  ;;  %v3575_v62 = vld [vmem:[#allocation7 + $0x2b8] sm:$0xff]  ;;  %v3406_v1 = vadd.f32 %v3405_v2, %v2999_v39 }
0x100c   :  { %v3407_v7 = vpop.f32.mrf.mxu1  ;;  %v3448_v61 = vpop.f32.mrf.mxu0  ;;  %v3583_v45 = vld [vmem:[#allocation7 + $0x2f8] sm:$0xff] }
0x100d   :  { %v3408_v4 = vadd.f32 %v3407_v7, %v3003_v50  ;;  %v3449_v59 = vadd.f32 %v3448_v61, %v3011_v63  ;;  %3860 = vmatpush1.bf16.xpose.msra.mxu1 %v11236_v55  ;;  %3900 = vmatpush1.bf16.xpose.msra.mxu0 %v11238_v56  ;;  %v3027_v50 = vrot.slane %v12534_v51, %v12232_v44 }
0x100e   :  { %v3409_v12 = vpop.f32.mrf.mxu1  ;;  %v3450_v16 = vpop.f32.mrf.mxu0  ;;  %3937 = vmatprep.subr.bf16.mxu1 %v11257_v24  ;;  %3977 = vmatprep.subr.bf16.mxu0 %v11259_v5  ;;  %v11240_v63 = vcombine.low %v3556_v13, %v3564_v23  ;;  %v11261_v24 = vcombine.high %v3574_v53, %v3582_v54  ;;  %v3447_v5 = vadd.f32 %v3446_v3, %v3007_v34  ;;  %v3567_v13 = vld [vmem:[#allocation7 + $0x278] sm:$0xff] }
0x100f   :  { %v3544_v19 = vmax.f32 %v3408_v4, 0.0  ;;  %v3546_v20 = vmax.f32 %v3449_v59, 0.0  ;;  %v11263_v7 = vcombine.high %v3575_v62, %v3583_v45  ;;  %v3543_v59 = vmax.f32 %v3406_v1, 0.0  ;;  %v3558_v12 = vld [vmem:[#allocation7 + $0x230] sm:$0xff] }
0x1010   :  { %v3410_v32 = vpop.f32.mrf.mxu1  ;;  %v3451_v10 = vpop.f32.mrf.mxu0  ;;  %v3545_v8 = vmax.f32 %v3447_v5, 0.0  ;;  %v3566_v16 = vld [vmem:[#allocation7 + $0x270] sm:$0xff] }
0x1011   :  { %v3594_v41 = vpack.c.bf16 %v3544_v19, %v3544_v19  ;;  %v3596_v18 = vpack.c.bf16 %v3546_v20, %v3546_v20  ;;  %v11260_v20 = vcombine.low %v3574_v53, %v3582_v54  ;;  %v3559_v32 = vld [vmem:[#allocation7 + $0x238] sm:$0xff]  ;;  %v3593_v2 = vpack.c.bf16 %v3543_v59, %v3543_v59 }
0x1012   :  { %v12541_v36 = vpop.f32.mrf.mxu1  ;;  %v12543_v37 = vpop.f32.mrf.mxu0  ;;  %v11262_v10 = vcombine.low %v3575_v62, %v3583_v45  ;;  %v3595_v23 = vpack.c.bf16 %v3545_v8, %v3545_v8  ;;  %v11245_v3 = vcombine.high %v3558_v12, %v3566_v16  ;;  %v11247_v35 = vcombine.high %v3559_v32, %v3567_v13 }
0x1014   :  { %3878 = vmatmul.mubr.bf16.vlgmr.msra.gmra.mxu1 %v3589_v11  ;;  %3918 = vmatmul.mubr.bf16.vlgmr.msra.gmra.mxu0 %v3591_v17  ;;  %v3489_v48 = vpop.f32.mrf.mxu1  ;;  %v3530_v33 = vpop.f32.mrf.mxu0  ;;  %v3023_v11 = vrot.slane %v12534_v51, %v12238_v58  ;;  %v11244_v17 = vcombine.low %v3558_v12, %v3566_v16 }
0x1015   :  { %3938 = vmatpush1.bf16.xpose.msra.mxu1 %v11256_v22  ;;  %3957 = vmatprep.mubr.bf16.mxu1 %v3594_v41  ;;  %v3490_v61 = vadd.f32 %v3489_v48, %v3019_v40  ;;  %v3531_v4 = vadd.f32 %v3530_v33, %v3027_v50  ;;  %v3015_v22 = vrot.slane %v12534_v51, %v12236_v57 }
0x1016   :  { %3978 = vmatpush1.bf16.xpose.msra.mxu0 %v11258_v38  ;;  %3997 = vmatprep.mubr.bf16.mxu0 %v3596_v18  ;;  %v3491_v25 = vpop.f32.mrf.mxu1  ;;  %v3532_v52 = vpop.f32.mrf.mxu0  ;;  %v11246_v38 = vcombine.low %v3559_v32, %v3567_v13 }
0x1017   :  { %3939 = vmatprep.subr.bf16.mxu1 %v11241_v26  ;;  %3979 = vmatprep.subr.bf16.mxu0 %v11243_v47  ;;  %v3548_v9 = vmax.f32 %v3490_v61, 0.0  ;;  %v3550_v19 = vmax.f32 %v3531_v4, 0.0  ;;  %v3488_v18 = vadd.f32 %v12541_v36, %v3015_v22  ;;  %v3529_v26 = vadd.f32 %v12543_v37, %v3023_v11 }
0x1018   :  { %v3492_v55 = vpop.f32.mrf.mxu1  ;;  %v3533_v56 = vpop.f32.mrf.mxu0 }
0x1019   :  { %v3598_v14 = vpack.c.bf16 %v3548_v9, %v3548_v9  ;;  %v3600_v41 = vpack.c.bf16 %v3550_v19, %v3550_v19  ;;  %v3547_v47 = vmax.f32 %v3488_v18, 0.0  ;;  %v3549_v48 = vmax.f32 %v3529_v26, 0.0 }
0x101b   :  { %v3597_v33 = vpack.c.bf16 %v3547_v47, %v3547_v47  ;;  %v3599_v39 = vpack.c.bf16 %v3549_v48, %v3549_v48 }
0x101d   :  { %3940 = vmatpush1.bf16.xpose.msra.mxu1 %v11240_v63 }
0x101e   :  { %3980 = vmatpush1.bf16.xpose.msra.mxu0 %v11242_v46  ;;  %4017 = vmatprep.subr.bf16.mxu1 %v11261_v24  ;;  %v11231_v46 = vld [vmem:[%s13307_s1 + $0x27] ss:$0 sm:$0xff] }
0x101f   :  { %4057 = vmatprep.subr.bf16.mxu0 %v11263_v7 }
0x1024   :  { %3958 = vmatmul.mubr.bf16.vlgmr.msra.gmra.mxu1 %v3593_v2 }
0x1025   :  { %3998 = vmatmul.mubr.bf16.vlgmr.msra.gmra.mxu0 %v3595_v23  ;;  %4018 = vmatpush1.bf16.xpose.msra.mxu1 %v11260_v20 }
0x1026   :  { %4037 = vmatprep.mubr.bf16.mxu1 %v3598_v14  ;;  %4058 = vmatpush1.bf16.xpose.msra.mxu0 %v11262_v10 }
0x1027   :  { %4077 = vmatprep.mubr.bf16.mxu0 %v3600_v41  ;;  %4019 = vmatprep.subr.bf16.mxu1 %v11245_v3 }
0x1028   :  { %4059 = vmatprep.subr.bf16.mxu0 %v11247_v35 }
0x102d   :  { %4020 = vmatpush1.bf16.xpose.msra.mxu1 %v11244_v17 }
0x102e   :  { %4060 = vmatpush1.bf16.xpose.msra.mxu0 %v11246_v38  ;;  %11796 = vmatprep.subr.bf16.mxu1 %v12054_v0 }
0x102f   :  { %11804 = vmatprep.subr.bf16.mxu0 %v12054_v0 }
0x1034   :  { %4038 = vmatmul.mubr.bf16.vlgmr.msra.gmra.mxu1 %v3597_v33 }
0x1035   :  { %4078 = vmatmul.mubr.bf16.vlgmr.msra.gmra.mxu0 %v3599_v39  ;;  %11800 = vmatprep.mubr.msk.bf16.mxu1 %vm12055_vm0, %v12054_v0 }
0x1036   :  { %11808 = vmatprep.mubr.msk.bf16.mxu0 %vm12055_vm0, %v12054_v0 }
0x10c4   :  { %v3799_v51 = vpop.f32.mrf.mxu1  ;;  %v3839_v36 = vpop.f32.mrf.mxu0 }
0x10c5   :  { %v3800_v24 = vadd.f32 %v11231_v46, %v3799_v51 }
0x10c6   :  { %v3801_v37 = vpop.f32.mrf.mxu1  ;;  %v3841_v25 = vpop.f32.mrf.mxu0 }
0x10c7   :  { %v3840_v4 = vadd.f32 %v3839_v36, %v3800_v24 }
0x10c8   :  { %v3802_v52 = vpop.f32.mrf.mxu1  ;;  %v3842_v34 = vpop.f32.mrf.mxu0 }
0x10c9   :  { %v11265_v34 = vld [vmem:[%s13307_s1 + $0x29] ss:$0 sm:$0xff] }
0x10ca   :  { %v3803_v53 = vpop.f32.mrf.mxu1  ;;  %v3843_v54 = vpop.f32.mrf.mxu0 }
0x10d4   :  { %v3879_v40 = vpop.f32.mrf.mxu1  ;;  %v3919_v55 = vpop.f32.mrf.mxu0 }
0x10d5   :  { %v3880_v9 = vadd.f32 %v3879_v40, %v3840_v4 }
0x10d6   :  { %v3881_v56 = vpop.f32.mrf.mxu1  ;;  %v3921_v62 = vpop.f32.mrf.mxu0 }
0x10d7   :  { %v3920_v20 = vadd.f32 %v3919_v55, %v3880_v9 }
0x10d8   :  { %v3882_v45 = vpop.f32.mrf.mxu1  ;;  %v3922_v50 = vpop.f32.mrf.mxu0 }
0x10d9   :  { %v11266_v50 = vld [vmem:[%s13307_s1 + $0x2a] ss:$0 sm:$0xff] }
0x10da   :  { %v3883_v63 = vpop.f32.mrf.mxu1  ;;  %v3923_v1 = vpop.f32.mrf.mxu0 }
0x10e4   :  { %v3959_v5 = vpop.f32.mrf.mxu1 }
0x10e5   :  { %v3999_v7 = vpop.f32.mrf.mxu0  ;;  %v3960_v32 = vadd.f32 %v3959_v5, %v3920_v20 }
0x10e6   :  { %v3961_v61 = vpop.f32.mrf.mxu1 }
0x10e7   :  { %v4001_v59 = vpop.f32.mrf.mxu0  ;;  %v4000_v13 = vadd.f32 %v3999_v7, %v3960_v32 }
0x10e8   :  { %v3962_v8 = vpop.f32.mrf.mxu1 }
0x10e9   :  { %v4002_v12 = vpop.f32.mrf.mxu0 }
0x10ea   :  { %v3963_v16 = vpop.f32.mrf.mxu1 }
0x10eb   :  { %v4003_v19 = vpop.f32.mrf.mxu0 }
0x10f4   :  { %v4039_v2 = vpop.f32.mrf.mxu1 }
0x10f5   :  { %v4040_v10 = vadd.f32 %v4039_v2, %v4000_v13  ;;  %v4079_v23 = vpop.f32.mrf.mxu0  ;;  %v11268_v13 = vld [vmem:[%s13307_s1 + $0x2b] ss:$0 sm:$0xff] }
0x10f6   :  { %v4041_v3 = vpop.f32.mrf.mxu1 }
0x10f7   :  { %v4080_v14 = vadd.f32 %v4079_v23, %v4040_v10  ;;  %v4081_v35 = vpop.f32.mrf.mxu0  ;;  %v11270_v10 = vld [vmem:[%s13307_s1 + $0x2d] ss:$0 sm:$0xff]  ;;  %v11269_v23 = vld [vmem:[%s13307_s1 + $0x2c] ss:$0 sm:$0xff] }
0x10f8   :  { %v4042_v41 = vpop.f32.mrf.mxu1 }
0x10f9   :  { %v4082_v22 = vpop.f32.mrf.mxu0  ;;  %v4085_v11 = vadd.f32 %v4080_v14, %v12473_v15 }
0x10fa   :  { %v4043_v17 = vpop.f32.mrf.mxu1 }
0x10fb   :  { %v4083_v18 = vpop.f32.mrf.mxu0  ;;  %v4086_v38 = vsel %vm148_vm2, %v4085_v11, 0.0 }
0x10fc   :  { %4087 = vadd.xlane.f32.xlu0 %v4086_v38 }
0x1112   :  { %4119 = vrot.lane.b32.xlu0 %v12411_v21, %s12058_s14 }
0x1185   :  { %v4088_v26 = vpop.xlane.xlu0 %4087 }
0x1186   :  { %v4089_v47 = vmul.f32 0.03125, %v4088_v26 }
0x1188   :  { %v4090_v48 = vsub.f32 %v4085_v11, %v4089_v47  ;;  %v4286_v47 = vld [vmem:[#allocation5 + $0x380] sm:$0xff] }
0x1189   :  { %v4120_v15 = vpop.permute.xlu0 %4119 }
0x118a   :  { %v4091_v33 = vmul.f32 %v4090_v48, %v4090_v48  ;;  %11797 = vmatpush3.bf16.msra.mxu1 %v4120_v15  ;;  %v4295_v15 = vld [vmem:[#allocation5 + $0x3c8] sm:$0xff] }
0x118b   :  { %11798 = vmatprep.subr.bf16.mxu1 %v12054_v0 }
0x118c   :  { %v4092_v39 = vsel %vm148_vm2, %v4091_v33, 0.0  ;;  %v4287_v33 = vld [vmem:[#allocation5 + $0x388] sm:$0xff] }
0x118d   :  { %4093 = vadd.xlane.f32.xlu1 %v4092_v39 }
0x119e   :  { %4117 = vrot.lane.b32.xlu1 %v12417_v31, %s12058_s14 }
0x11a2   :  { %4199 = vrot.lane.b32.xlu1 %v12435_v49, %s12057_s15 }
0x11a6   :  { %4197 = vrot.lane.b32.xlu1 %v12438_v42, %s12057_s15  ;;  %v11264_v42 = vld [vmem:[%s13307_s1 + $0x28] ss:$0 sm:$0xff] }
0x1216   :  { %v4094_v21 = vpop.xlane.xlu1 %4093 }
0x1217   :  { %v4095_v51 = vmul.f32 0.03125, %v4094_v21 }
0x1219   :  { %v4096_v36 = vadd.f32 1e-05, %v4095_v51  ;;  %v11296_v51 = vcombine.low %v4287_v33, %v4295_v15 }
0x121a   :  { %v4118_v37 = vpop.permute.xlu1 %4117 }
0x121b   :  { %11918 = vrsqrt.f32 %v4096_v36  ;;  %11799 = vmatpush3.bf16.msra.mxu1 %v4118_v37  ;;  %v11297_v36 = vcombine.high %v4287_v33, %v4295_v15  ;;  %v4270_v37 = vld [vmem:[#allocation5 + $0x300] sm:$0xff]  ;;  %v4300_v15 = vld [vmem:[#allocation5 + $0x3f0] sm:$0xff] }
0x121e   :  { %v4200_v25 = vpop.permute.xlu1 %4199 }
0x121f   :  { %11805 = vmatpush3.bf16.msra.mxu0 %v4200_v25  ;;  %v4278_v25 = vld [vmem:[#allocation5 + $0x340] sm:$0xff] }
0x1220   :  { %11806 = vmatprep.subr.bf16.mxu0 %v12054_v0 }
0x1222   :  { %v4198_v31 = vpop.permute.xlu1 %4197 }
0x1223   :  { %11807 = vmatpush3.bf16.msra.mxu0 %v4198_v31  ;;  %v4271_v31 = vld [vmem:[#allocation5 + $0x308] sm:$0xff] }
0x1224   :  { %4609 = vmatprep.subr.bf16.mxu0 %v11297_v36 }
0x1226   :  { %11809 = vmatmul.mubr.msk.bf16.vlgmr.msra.gmra.mxu0 %vm197_vm3, %v12450_v6 }
0x1227   :  { %4629 = vmatprep.mubr.bf16.mxu0 %v12056_v60  ;;  %4610 = vmatpush1.bf16.msra.mxu0 %v11296_v51  ;;  %v4301_v51 = vld [vmem:[#allocation5 + $0x3f8] sm:$0xff] }
0x1228   :  { %v11919_v49 = vpop.eup %11918 }
0x1229   :  { %v4098_v52 = vmul.f32 %v11919_v49, %v4090_v48  ;;  %v4294_v48 = vld [vmem:[#allocation5 + $0x3c0] sm:$0xff]  ;;  %v11279_v49 = vcombine.high %v4270_v37, %v4278_v25 }
0x122a   :  { %v11295_v39 = vcombine.high %v4286_v47, %v4294_v48  ;;  %v11294_v21 = vcombine.low %v4286_v47, %v4294_v48 }
0x122b   :  { %v4104_v53 = vmul.f32 %v11264_v42, %v4098_v52  ;;  %v4279_v42 = vld [vmem:[#allocation5 + $0x348] sm:$0xff]  ;;  %v11278_v52 = vcombine.low %v4270_v37, %v4278_v25 }
0x122c   :  { %4568 = vmatprep.subr.bf16.mxu1 %v11295_v39  ;;  %v4292_v39 = vld [vmem:[#allocation5 + $0x3b0] sm:$0xff] }
0x122d   :  { %v4110_v54 = vadd.f32 %v11265_v34, %v4104_v53  ;;  %v11280_v34 = vcombine.low %v4271_v31, %v4279_v42  ;;  %v11281_v53 = vcombine.high %v4271_v31, %v4279_v42  ;;  %v11307_v25 = vcombine.high %v4292_v39, %v4300_v15  ;;  %v4284_v42 = vld [vmem:[#allocation5 + $0x370] sm:$0xff] }
0x122f   :  { %v4112_v40 = vpack.c.bf16 %v4110_v54, %v4110_v54  ;;  %4611 = vmatprep.subr.bf16.mxu0 %v11281_v53  ;;  %v11306_v53 = vcombine.low %v4292_v39, %v4300_v15 }
0x1230   :  { %4612 = vmatpush1.bf16.msra.mxu0 %v11280_v34  ;;  %v4285_v34 = vld [vmem:[#allocation5 + $0x378] sm:$0xff] }
0x1231   :  { %11801 = vmatmul.mubr.msk.bf16.vlgmr.msra.gmra.mxu1 %vm197_vm3, %v4112_v40  ;;  %v4296_v40 = vld [vmem:[#allocation5 + $0x3d0] sm:$0xff] }
0x1232   :  { %4588 = vmatprep.mubr.bf16.mxu1 %v12056_v60  ;;  %4569 = vmatpush1.bf16.msra.mxu1 %v11294_v21  ;;  %v4293_v21 = vld [vmem:[#allocation5 + $0x3b8] sm:$0xff] }
0x1233   :  { %4570 = vmatprep.subr.bf16.mxu1 %v11279_v49  ;;  %v11309_v31 = vcombine.high %v4293_v21, %v4301_v51  ;;  %v4276_v49 = vld [vmem:[#allocation5 + $0x330] sm:$0xff] }
0x1236   :  { %4571 = vmatpush1.bf16.msra.mxu1 %v11278_v52  ;;  %v4277_v52 = vld [vmem:[#allocation5 + $0x338] sm:$0xff] }
0x12e6   :  { %v4237_v55 = vpop.f32.mrf.mxu0 }
0x12e7   :  { %v4238_v14 = vadd.f32 %v11270_v10, %v4237_v55  ;;  %v4289_v55 = vld [vmem:[#allocation5 + $0x398] sm:$0xff]  ;;  %v4298_v10 = vld [vmem:[#allocation5 + $0x3e0] sm:$0xff] }
0x12e8   :  { %v11810_v56 = vpop.f32.mrf.mxu0 }
0x12ea   :  { %v4240_v62 = vpop.f32.mrf.mxu0 }
0x12ec   :  { %v11811_v45 = vpop.f32.mrf.mxu0 }
0x12ed   :  { %v4297_v45 = vld [vmem:[#allocation5 + $0x3d8] sm:$0xff] }
0x12f1   :  { %v4160_v63 = vpop.f32.mrf.mxu1 }
0x12f2   :  { %v4161_v1 = vadd.f32 %v11266_v50, %v4160_v63  ;;  %v11300_v50 = vcombine.low %v4289_v55, %v4297_v45  ;;  %v11301_v63 = vcombine.high %v4289_v55, %v4297_v45  ;;  %v11293_v55 = vcombine.high %v4277_v52, %v4285_v34  ;;  %v4918_v45 = vld [vmem:[#allocation7 + $0x388] sm:$0xff] }
0x12f3   :  { %v11802_v46 = vpop.f32.mrf.mxu1 }
0x12f4   :  { %v4166_v24 = vadd.f32 %v4161_v1, %v4110_v54  ;;  %v4288_v54 = vld [vmem:[#allocation5 + $0x390] sm:$0xff]  ;;  %4691 = vmatprep.subr.bf16.mxu0 %v11301_v63  ;;  %v11290_v63 = vcombine.low %v4276_v49, %v4284_v42 }
0x12f5   :  { %v4163_v5 = vpop.f32.mrf.mxu1  ;;  %v11298_v56 = vcombine.low %v4288_v54, %v4296_v40  ;;  %v11299_v62 = vcombine.high %v4288_v54, %v4296_v40  ;;  %v11308_v54 = vcombine.low %v4293_v21, %v4301_v51  ;;  %v11291_v40 = vcombine.high %v4276_v49, %v4284_v42  ;;  %v12658_v42 = vld [vmem:[#allocation7 + $0x310] sm:$0xff] }
0x12f6   :  { %v4167_v7 = vsel %vm148_vm2, %v4166_v24, 0.0 }
0x12f7   :  { %4168 = vadd.xlane.f32.xlu0 %v4167_v7  ;;  %v11803_v61 = vpop.f32.mrf.mxu1  ;;  %4650 = vmatprep.subr.bf16.mxu1 %v11299_v62  ;;  %v11272_v7 = vld [vmem:[%s13307_s1 + $0x2e] ss:$0 sm:$0xff]  ;;  %v4925_v62 = vld [vmem:[#allocation7 + $0x3c0] sm:$0xff] }
0x1380   :  { %v4169_v4 = vpop.xlane.xlu0 %4168 }
0x1381   :  { %v4170_v59 = vmul.f32 0.03125, %v4169_v4  ;;  %v11273_v4 = vld [vmem:[%s13307_s1 + $0x2f] ss:$0 sm:$0xff] }
0x1383   :  { %v4171_v8 = vsub.f32 %v4166_v24, %v4170_v59 }
0x1385   :  { %v4172_v9 = vmul.f32 %v4171_v8, %v4171_v8 }
0x1387   :  { %v4173_v12 = vsel %vm148_vm2, %v4172_v9, 0.0  ;;  %v4280_v9 = vld [vmem:[#allocation5 + $0x350] sm:$0xff] }
0x1388   :  { %4174 = vadd.xlane.f32.xlu1 %v4173_v12  ;;  %v4273_v12 = vld [vmem:[#allocation5 + $0x318] sm:$0xff] }
0x1411   :  { %v4175_v16 = vpop.xlane.xlu1 %4174 }
0x1412   :  { %v4176_v19 = vmul.f32 0.03125, %v4175_v16  ;;  %v4281_v16 = vld [vmem:[#allocation5 + $0x358] sm:$0xff] }
0x1414   :  { %v4177_v20 = vadd.f32 1e-05, %v4176_v19 }
0x1416   :  { %11920 = vrsqrt.f32 %v4177_v20 }
0x1423   :  { %v11921_v32 = vpop.eup %11920 }
0x1424   :  { %v4179_v2 = vmul.f32 %v11921_v32, %v4171_v8  ;;  %v4272_v8 = vld [vmem:[#allocation5 + $0x310] sm:$0xff] }
0x1425   :  { %v11283_v32 = vcombine.high %v4272_v8, %v4280_v9 }
0x1426   :  { %v4185_v3 = vmul.f32 %v11268_v13, %v4179_v2  ;;  %v11285_v13 = vcombine.high %v4273_v12, %v4281_v16  ;;  %v4290_v2 = vld [vmem:[#allocation5 + $0x3a0] sm:$0xff] }
0x1428   :  { %v4191_v35 = vadd.f32 %v11269_v23, %v4185_v3  ;;  %v4291_v23 = vld [vmem:[#allocation5 + $0x3a8] sm:$0xff] }
0x1429   :  { %v4299_v3 = vld [vmem:[#allocation5 + $0x3e8] sm:$0xff] }
0x142a   :  { %v4243_v41 = vadd.f32 %v4238_v14, %v4191_v35  ;;  %v11282_v14 = vcombine.low %v4272_v8, %v4280_v9  ;;  %v11284_v35 = vcombine.low %v4273_v12, %v4281_v16  ;;  %v11304_v47 = vcombine.low %v4291_v23, %v4299_v3  ;;  %v4910_v9 = vld [vmem:[#allocation7 + $0x348] sm:$0xff] }
0x142c   :  { %v4244_v22 = vsel %vm148_vm2, %v4243_v41, 0.0 }
0x142d   :  { %4245 = vadd.xlane.f32.xlu0 %v4244_v22  ;;  %v11305_v22 = vcombine.high %v4291_v23, %v4299_v3  ;;  %v4928_v3 = vld [vmem:[#allocation7 + $0x3d8] sm:$0xff] }
0x14b6   :  { %v4246_v11 = vpop.xlane.xlu0 %4245 }
0x14b7   :  { %v4247_v17 = vmul.f32 0.03125, %v4246_v11  ;;  %v4274_v11 = vld [vmem:[#allocation5 + $0x320] sm:$0xff] }
0x14b9   :  { %v4248_v18 = vsub.f32 %v4243_v41, %v4247_v17  ;;  %v11303_v41 = vcombine.high %v4290_v2, %v4298_v10  ;;  %v4282_v17 = vld [vmem:[#allocation5 + $0x360] sm:$0xff] }
0x14ba   :  { %v11287_v48 = vcombine.high %v4274_v11, %v4282_v17  ;;  %v11286_v36 = vcombine.low %v4274_v11, %v4282_v17 }
0x14bb   :  { %v4249_v38 = vmul.f32 %v4248_v18, %v4248_v18 }
0x14bd   :  { %v4250_v26 = vsel %vm148_vm2, %v4249_v38, 0.0  ;;  %v4283_v38 = vld [vmem:[#allocation5 + $0x368] sm:$0xff] }
0x14be   :  { %4251 = vadd.xlane.f32.xlu0 %v4250_v26  ;;  %v11302_v26 = vcombine.low %v4290_v2, %v4298_v10  ;;  %v4927_v2 = vld [vmem:[#allocation7 + $0x3d0] sm:$0xff]  ;;  %v4920_v10 = vld [vmem:[#allocation7 + $0x398] sm:$0xff] }
0x1547   :  { %v4252_v1 = vpop.xlane.xlu0 %4251 }
0x1548   :  { %v4253_v46 = vmul.f32 0.03125, %v4252_v1  ;;  %v11292_v1 = vcombine.low %v4277_v52, %v4285_v34 }
0x154a   :  { %v4254_v24 = vadd.f32 1e-05, %v4253_v46 }
0x154c   :  { %11922 = vrsqrt.f32 %v4254_v24 }
0x1559   :  { %v11923_v5 = vpop.eup %11922 }
0x155a   :  { %v4256_v61 = vmul.f32 %v11923_v5, %v4248_v18  ;;  %v4275_v18 = vld [vmem:[#allocation5 + $0x328] sm:$0xff] }
0x155b   :  { %v11289_v33 = vcombine.high %v4275_v18, %v4283_v38  ;;  %v11288_v37 = vcombine.low %v4275_v18, %v4283_v38 }
0x155c   :  { %v4262_v59 = vmul.f32 %v11272_v7, %v4256_v61  ;;  %v4901_v61 = vld [vmem:[#allocation7 + $0x300] sm:$0xff] }
0x155e   :  { %v12614_v19 = vadd.f32 %v11273_v4, %v4262_v59  ;;  %v4909_v4 = vld [vmem:[#allocation7 + $0x340] sm:$0xff]  ;;  %v4902_v59 = vld [vmem:[#allocation7 + $0x308] sm:$0xff] }
0x155f   :  { %v11320_v8 = vcombine.high %v4901_v61, %v4909_v4  ;;  %v11319_v12 = vcombine.low %v4901_v61, %v4909_v4  ;;  %v11321_v16 = vcombine.low %v4902_v59, %v4910_v9 }
0x1560   :  { %v12618_v20 = vpack.c.bf16 %v12614_v19, %v12614_v19 }
0x1562   :  { %11310 = vmatmul.mubr.msk.bf16.vlgmr.msra.gmra.mxu1 %vm197_vm3, %v12618_v20  ;;  %11311 = vmatmul.mubr.msk.bf16.vlgmr.msra.gmra.mxu0 %vm197_vm3, %v12618_v20 }
0x1563   :  { %4651 = vmatpush1.bf16.msra.mxu1 %v11298_v56  ;;  %4692 = vmatpush1.bf16.msra.mxu0 %v11300_v50  ;;  %v4917_v56 = vld [vmem:[#allocation7 + $0x380] sm:$0xff]  ;;  %v4926_v50 = vld [vmem:[#allocation7 + $0x3c8] sm:$0xff] }
0x1564   :  { %4652 = vmatprep.subr.bf16.mxu1 %v11283_v32  ;;  %4693 = vmatprep.subr.bf16.mxu0 %v11285_v13  ;;  %v11336_v46 = vcombine.high %v4917_v56, %v4925_v62  ;;  %v11338_v24 = vcombine.high %v4918_v45, %v4926_v50  ;;  %v11335_v5 = vcombine.low %v4917_v56, %v4925_v62  ;;  %v4919_v13 = vld [vmem:[#allocation7 + $0x390] sm:$0xff] }
0x1565   :  { %4670 = vmatprep.mubr.bf16.mxu1 %v12056_v60  ;;  %4711 = vmatprep.mubr.bf16.mxu0 %v12056_v60  ;;  %v11337_v7 = vcombine.low %v4918_v45, %v4926_v50  ;;  %v11322_v32 = vcombine.high %v4902_v59, %v4910_v9  ;;  %v11340_v23 = vcombine.high %v4919_v13, %v4927_v2  ;;  %v11277_v9 = vld [vmem:[%s13308_s2 + $0x43] ss:$8 sm:$0xf0] }
0x1567   :  { %4653 = vmatpush1.bf16.msra.mxu1 %v11282_v14  ;;  %4694 = vmatpush1.bf16.msra.mxu0 %v11284_v35  ;;  %v11341_v14 = vcombine.low %v4920_v10, %v4928_v3  ;;  %v11342_v35 = vcombine.high %v4920_v10, %v4928_v3 }
0x1568   :  { %4732 = vmatprep.subr.bf16.mxu1 %v11303_v41  ;;  %4773 = vmatprep.subr.bf16.mxu0 %v11305_v22  ;;  %v11274_v41 = vld [vmem:[%s13308_s2 + $0x3] ss:$8 sm:$0xf] }
0x1569   :  { %v11275_v22 = vld [vmem:[%s13308_s2 + $0x3] ss:$8 sm:$0xf0] }
0x156a   :  { %11312 = vmatmul.mubr.msk.bf16.vlgmr.msra.gmra.mxu1 %vm197_vm3, %v12618_v20  ;;  %11313 = vmatmul.mubr.msk.bf16.vlgmr.msra.gmra.mxu0 %vm197_vm3, %v12618_v20  ;;  %v12648_v11 = vor.u32 %v11275_v22, %v11274_v41  ;;  %v4929_v22 = vld [vmem:[#allocation7 + $0x3e0] sm:$0xff] }
0x156b   :  { %4733 = vmatpush1.bf16.msra.mxu1 %v11302_v26  ;;  %4774 = vmatpush1.bf16.msra.mxu0 %v11304_v47 }
0x156c   :  { %4734 = vmatprep.subr.bf16.mxu1 %v11287_v48  ;;  %4775 = vmatprep.subr.bf16.mxu0 %v11289_v33  ;;  %v4316_v17 = vrot.slane %v12648_v11, %v12214_v27  ;;  %v4324_v18 = vrot.slane %v12648_v11, %v12216_v28  ;;  %v4320_v38 = vrot.slane %v12648_v11, %v12218_v29 }
0x156d   :  { %4752 = vmatprep.mubr.bf16.mxu1 %v12056_v60  ;;  %4793 = vmatprep.mubr.bf16.mxu0 %v12056_v60  ;;  %v4328_v26 = vrot.slane %v12648_v11, %v12220_v30  ;;  %v4336_v50 = vrot.slane %v12648_v11, %v12230_v43 }
0x156f   :  { %4735 = vmatpush1.bf16.msra.mxu1 %v11286_v36  ;;  %4776 = vmatpush1.bf16.msra.mxu0 %v11288_v37 }
0x1570   :  { %4814 = vmatprep.subr.bf16.mxu1 %v11307_v25  ;;  %4855 = vmatprep.subr.bf16.mxu0 %v11309_v31 }
0x1572   :  { %11314 = vmatmul.mubr.msk.bf16.vlgmr.msra.gmra.mxu1 %vm197_vm3, %v12618_v20  ;;  %11315 = vmatmul.mubr.msk.bf16.vlgmr.msra.gmra.mxu0 %vm197_vm3, %v12618_v20 }
0x1573   :  { %4815 = vmatpush1.bf16.msra.mxu1 %v11306_v53  ;;  %4856 = vmatpush1.bf16.msra.mxu0 %v11308_v54  ;;  %v4911_v53 = vld [vmem:[#allocation7 + $0x350] sm:$0xff]  ;;  %v4904_v54 = vld [vmem:[#allocation7 + $0x318] sm:$0xff] }
0x1574   :  { %4816 = vmatprep.subr.bf16.mxu1 %v11291_v40  ;;  %4857 = vmatprep.subr.bf16.mxu0 %v11293_v55  ;;  %v4912_v40 = vld [vmem:[#allocation7 + $0x358] sm:$0xff] }
0x1575   :  { %4834 = vmatprep.mubr.bf16.mxu1 %v12056_v60  ;;  %4875 = vmatprep.mubr.bf16.mxu0 %v12056_v60  ;;  %v11326_v61 = vcombine.high %v4904_v54, %v4912_v40 }
0x1577   :  { %4817 = vmatpush1.bf16.msra.mxu1 %v11290_v63  ;;  %4858 = vmatpush1.bf16.msra.mxu0 %v11292_v1  ;;  %v4344_v63 = vrot.slane %v12648_v11, %v12232_v44 }
0x1578   :  { %5126 = vmatprep.subr.bf16.mxu1 %v11336_v46  ;;  %5166 = vmatprep.subr.bf16.mxu0 %v11338_v24 }
0x157a   :  { %11316 = vmatmul.mubr.msk.bf16.vlgmr.msra.gmra.mxu1 %vm197_vm3, %v12618_v20  ;;  %11317 = vmatmul.mubr.msk.bf16.vlgmr.msra.gmra.mxu0 %vm197_vm3, %v12618_v20  ;;  %v11339_v20 = vcombine.low %v4919_v13, %v4927_v2  ;;  %v4340_v13 = vrot.slane %v12648_v11, %v12238_v58 }
0x157b   :  { %5127 = vmatpush1.bf16.xpose.msra.mxu1 %v11335_v5  ;;  %5167 = vmatpush1.bf16.xpose.msra.mxu0 %v11337_v7  ;;  %v11324_v7 = vcombine.high %v12658_v42, %v4911_v53 }
0x157c   :  { %5128 = vmatprep.subr.bf16.mxu1 %v11320_v8  ;;  %5168 = vmatprep.subr.bf16.mxu0 %v11322_v32  ;;  %v11276_v8 = vld [vmem:[%s13308_s2 + $0x43] ss:$8 sm:$0xf]  ;;  %v4332_v32 = vrot.slane %v12648_v11, %v12236_v57 }
0x157d   :  { %v12675_v41 = vor.u32 %v11277_v9, %v11276_v8 }
0x157f   :  { %v4352_v11 = vrot.slane %v12675_v41, %v12218_v29 }
0x1583   :  { %5129 = vmatpush1.bf16.xpose.msra.mxu1 %v11319_v12  ;;  %5169 = vmatpush1.bf16.xpose.msra.mxu0 %v11321_v16 }
0x1584   :  { %5206 = vmatprep.subr.bf16.mxu1 %v11340_v23  ;;  %5246 = vmatprep.subr.bf16.mxu0 %v11342_v35  ;;  %v4921_v23 = vld [vmem:[#allocation7 + $0x3a0] sm:$0xff] }
0x1622   :  { %v4590_v47 = vpop.f32.mrf.mxu1  ;;  %v4631_v48 = vpop.f32.mrf.mxu0 }
0x1623   :  { %v4591_v33 = vadd.f32 %v4590_v47, %v4316_v17  ;;  %v4632_v39 = vadd.f32 %v4631_v48, %v4324_v18  ;;  %v4922_v17 = vld [vmem:[#allocation7 + $0x3a8] sm:$0xff] }
0x1624   :  { %v4592_v15 = vpop.f32.mrf.mxu1  ;;  %v4633_v21 = vpop.f32.mrf.mxu0  ;;  %v4930_v18 = vld [vmem:[#allocation7 + $0x3e8] sm:$0xff] }
0x1625   :  { %v4593_v51 = vadd.f32 %v4592_v15, %v4320_v38  ;;  %v4634_v36 = vadd.f32 %v4633_v21, %v4328_v26  ;;  %v4884_v37 = vmax.f32 %v4591_v33, 0.0  ;;  %v4886_v25 = vmax.f32 %v4632_v39, 0.0 }
0x1626   :  { %v4594_v31 = vpop.f32.mrf.mxu1  ;;  %v4635_v49 = vpop.f32.mrf.mxu0  ;;  %v11323_v38 = vcombine.low %v12658_v42, %v4911_v53  ;;  %v11325_v26 = vcombine.low %v4904_v54, %v4912_v40  ;;  %v4360_v33 = vrot.slane %v12675_v41, %v12220_v30  ;;  %v11345_v8 = vcombine.low %v4922_v17, %v4930_v18 }
0x1627   :  { %v4885_v52 = vmax.f32 %v4593_v51, 0.0  ;;  %v4887_v34 = vmax.f32 %v4634_v36, 0.0  ;;  %v4934_v1 = vpack.c.bf16 %v4884_v37, %v4884_v37  ;;  %v4936_v46 = vpack.c.bf16 %v4886_v25, %v4886_v25 }
0x1628   :  { %v4595_v55 = vpop.f32.mrf.mxu1  ;;  %v4636_v56 = vpop.f32.mrf.mxu0  ;;  %v11344_v36 = vcombine.high %v4921_v23, %v4929_v22  ;;  %v11346_v37 = vcombine.high %v4922_v17, %v4930_v18 }
0x1629   :  { %v4935_v62 = vpack.c.bf16 %v4885_v52, %v4885_v52  ;;  %v4937_v45 = vpack.c.bf16 %v4887_v34, %v4887_v34  ;;  %v4905_v56 = vld [vmem:[#allocation7 + $0x320] sm:$0xff] }
0x162a   :  { %v4672_v24 = vpop.f32.mrf.mxu1  ;;  %v4713_v5 = vpop.f32.mrf.mxu0 }
0x162b   :  { %5146 = vmatprep.mubr.bf16.mxu1 %v4935_v62  ;;  %5186 = vmatprep.mubr.bf16.mxu0 %v4937_v45  ;;  %v4673_v39 = vadd.f32 %v4672_v24, %v4332_v32  ;;  %v4714_v15 = vadd.f32 %v4713_v5, %v4340_v13  ;;  %v11343_v24 = vcombine.low %v4921_v23, %v4929_v22 }
0x162c   :  { %v4674_v4 = vpop.f32.mrf.mxu1  ;;  %v4715_v59 = vpop.f32.mrf.mxu0  ;;  %5147 = vmatmul.mubr.bf16.vlgmr.msra.gmra.mxu1 %v4934_v1  ;;  %5187 = vmatmul.mubr.bf16.vlgmr.msra.gmra.mxu0 %v4936_v46  ;;  %v4914_v1 = vld [vmem:[#allocation7 + $0x368] sm:$0xff]  ;;  %v4348_v13 = vrot.slane %v12675_v41, %v12214_v27  ;;  %v4356_v23 = vrot.slane %v12675_v41, %v12216_v28  ;;  %v4368_v22 = vrot.slane %v12675_v41, %v12230_v43 }
0x162d   :  { %v4675_v12 = vadd.f32 %v4674_v4, %v4336_v50  ;;  %v4716_v16 = vadd.f32 %v4715_v59, %v4344_v63  ;;  %5207 = vmatpush1.bf16.xpose.msra.mxu1 %v11339_v20  ;;  %5247 = vmatpush1.bf16.xpose.msra.mxu0 %v11341_v14  ;;  %v4888_v52 = vmax.f32 %v4673_v39, 0.0  ;;  %v4890_v34 = vmax.f32 %v4714_v15, 0.0  ;;  %v4913_v50 = vld [vmem:[#allocation7 + $0x360] sm:$0xff]  ;;  %v4906_v63 = vld [vmem:[#allocation7 + $0x328] sm:$0xff] }
0x162e   :  { %v4676_v2 = vpop.f32.mrf.mxu1  ;;  %v4717_v10 = vpop.f32.mrf.mxu0  ;;  %5208 = vmatprep.subr.bf16.mxu1 %v11324_v7  ;;  %5248 = vmatprep.subr.bf16.mxu0 %v11326_v61  ;;  %v11328_v9 = vcombine.high %v4905_v56, %v4913_v50 }
0x162f   :  { %v4889_v3 = vmax.f32 %v4675_v12, 0.0  ;;  %v4891_v35 = vmax.f32 %v4716_v16, 0.0  ;;  %v4938_v5 = vpack.c.bf16 %v4888_v52, %v4888_v52  ;;  %v4940_v7 = vpack.c.bf16 %v4890_v34, %v4890_v34 }
0x1630   :  { %v4677_v20 = vpop.f32.mrf.mxu1  ;;  %v4718_v14 = vpop.f32.mrf.mxu0  ;;  %v11330_v12 = vcombine.high %v4906_v63, %v4914_v1 }
0x1631   :  { %v4939_v47 = vpack.c.bf16 %v4889_v3, %v4889_v3  ;;  %v4941_v48 = vpack.c.bf16 %v4891_v35, %v4891_v35  ;;  %v4923_v3 = vld [vmem:[#allocation7 + $0x3b0] sm:$0xff]  ;;  %v4924_v20 = vld [vmem:[#allocation7 + $0x3b8] sm:$0xff] }
0x1632   :  { %v4754_v21 = vpop.f32.mrf.mxu1  ;;  %v4795_v51 = vpop.f32.mrf.mxu0  ;;  %v4931_v35 = vld [vmem:[#allocation7 + $0x3f0] sm:$0xff]  ;;  %v4932_v14 = vld [vmem:[#allocation7 + $0x3f8] sm:$0xff] }
0x1633   :  { %5226 = vmatprep.mubr.bf16.mxu1 %v4939_v47  ;;  %5266 = vmatprep.mubr.bf16.mxu0 %v4941_v48  ;;  %v4755_v47 = vadd.f32 %v4754_v21, %v4348_v13  ;;  %v11329_v48 = vcombine.low %v4906_v63, %v4914_v1  ;;  %v11350_v39 = vcombine.high %v4924_v20, %v4932_v14 }
0x1634   :  { %v4756_v25 = vpop.f32.mrf.mxu1  ;;  %v4797_v31 = vpop.f32.mrf.mxu0  ;;  %v11347_v34 = vcombine.low %v4923_v3, %v4931_v35  ;;  %v4372_v63 = vrot.slane %v12675_v41, %v12238_v58 }
0x1635   :  { %v4757_v49 = vadd.f32 %v4756_v25, %v4352_v11  ;;  %v4798_v42 = vadd.f32 %v4797_v31, %v4360_v33  ;;  %5209 = vmatpush1.bf16.xpose.msra.mxu1 %v11323_v38  ;;  %5249 = vmatpush1.bf16.xpose.msra.mxu0 %v11325_v26  ;;  %v4376_v38 = vrot.slane %v12675_v41, %v12232_v44 }
0x1636   :  { %v4758_v53 = vpop.f32.mrf.mxu1  ;;  %v4799_v54 = vpop.f32.mrf.mxu0  ;;  %5286 = vmatprep.subr.bf16.mxu1 %v11344_v36  ;;  %5326 = vmatprep.subr.bf16.mxu0 %v11346_v37  ;;  %v11327_v26 = vcombine.low %v4905_v56, %v4913_v50  ;;  %v11348_v11 = vcombine.high %v4923_v3, %v4931_v35  ;;  %v4796_v33 = vadd.f32 %v4795_v51, %v4356_v23  ;;  %v4892_v37 = vmax.f32 %v4755_v47, 0.0 }
0x1637   :  { %v4893_v40 = vmax.f32 %v4757_v49, 0.0  ;;  %v4895_v55 = vmax.f32 %v4798_v42, 0.0  ;;  %v4907_v49 = vld [vmem:[#allocation7 + $0x330] sm:$0xff]  ;;  %v4908_v53 = vld [vmem:[#allocation7 + $0x338] sm:$0xff]  ;;  %v4364_v50 = vrot.slane %v12675_v41, %v12236_v57 }
0x1638   :  { %v4759_v62 = vpop.f32.mrf.mxu1  ;;  %v4800_v45 = vpop.f32.mrf.mxu0  ;;  %v4894_v25 = vmax.f32 %v4796_v33, 0.0  ;;  %v4915_v42 = vld [vmem:[#allocation7 + $0x370] sm:$0xff]  ;;  %v4916_v54 = vld [vmem:[#allocation7 + $0x378] sm:$0xff]  ;;  %v4942_v21 = vpack.c.bf16 %v4892_v37, %v4892_v37 }
0x1639   :  { %v4943_v46 = vpack.c.bf16 %v4893_v40, %v4893_v40  ;;  %v4945_v61 = vpack.c.bf16 %v4895_v55, %v4895_v55  ;;  %v11349_v40 = vcombine.low %v4924_v20, %v4932_v14  ;;  %v11332_v51 = vcombine.high %v4907_v49, %v4915_v42  ;;  %v11318_v14 = vld [vmem:[%s13307_s1 + $0x30] ss:$0 sm:$0xff] }
0x163a   :  { %v12682_v4 = vpop.f32.mrf.mxu1  ;;  %v12684_v59 = vpop.f32.mrf.mxu0  ;;  %v4944_v55 = vpack.c.bf16 %v4894_v25, %v4894_v25  ;;  %v11334_v62 = vcombine.high %v4908_v53, %v4916_v54  ;;  %v11331_v1 = vcombine.low %v4907_v49, %v4915_v42 }
0x163c   :  { %5227 = vmatmul.mubr.bf16.vlgmr.msra.gmra.mxu1 %v4938_v5  ;;  %5267 = vmatmul.mubr.bf16.vlgmr.msra.gmra.mxu0 %v4940_v7  ;;  %v4838_v16 = vpop.f32.mrf.mxu1  ;;  %v4879_v32 = vpop.f32.mrf.mxu0  ;;  %v4878_v5 = vadd.f32 %v12684_v59, %v4372_v63  ;;  %v12711_v63 = vld [vmem:[#allocation2 + $0x28] ss:$16 sps:$4 sm:$0xff]  }
0x163d   :  { %5287 = vmatpush1.bf16.xpose.msra.mxu1 %v11343_v24  ;;  %5306 = vmatprep.mubr.bf16.mxu1 %v4943_v46  ;;  %v4839_v15 = vadd.f32 %v4838_v16, %v4368_v22  ;;  %v4880_v36 = vadd.f32 %v4879_v32, %v4376_v38  ;;  %v4837_v46 = vadd.f32 %v12682_v4, %v4364_v50 }
0x163e   :  { %5327 = vmatpush1.bf16.xpose.msra.mxu0 %v11345_v8  ;;  %5346 = vmatprep.mubr.bf16.mxu0 %v4945_v61  ;;  %v4840_v2 = vpop.f32.mrf.mxu1  ;;  %v4881_v10 = vpop.f32.mrf.mxu0  ;;  %v11333_v24 = vcombine.low %v4908_v53, %v4916_v54  ;;  %v4898_v61 = vmax.f32 %v4878_v5, 0.0 }
0x163f   :  { %5288 = vmatprep.subr.bf16.mxu1 %v11328_v9  ;;  %5328 = vmatprep.subr.bf16.mxu0 %v11330_v12  ;;  %v4897_v31 = vmax.f32 %v4839_v15, 0.0  ;;  %v4899_v52 = vmax.f32 %v4880_v36, 0.0  ;;  %v4896_v7 = vmax.f32 %v4837_v46, 0.0 }
0x1640   :  { %v4841_v17 = vpop.f32.mrf.mxu1  ;;  %v4882_v18 = vpop.f32.mrf.mxu0  ;;  %v4948_v9 = vpack.c.bf16 %v4898_v61, %v4898_v61 }
0x1641   :  { %v4947_v56 = vpack.c.bf16 %v4897_v31, %v4897_v31  ;;  %v4949_v45 = vpack.c.bf16 %v4899_v52, %v4899_v52  ;;  %v4946_v8 = vpack.c.bf16 %v4896_v7, %v4896_v7 }
0x1645   :  { %5289 = vmatpush1.bf16.xpose.msra.mxu1 %v11327_v26 }
0x1646   :  { %5329 = vmatpush1.bf16.xpose.msra.mxu0 %v11329_v48  ;;  %5366 = vmatprep.subr.bf16.mxu1 %v11348_v11 }
0x1647   :  { %5406 = vmatprep.subr.bf16.mxu0 %v11350_v39 }
0x164c   :  { %5307 = vmatmul.mubr.bf16.vlgmr.msra.gmra.mxu1 %v4942_v21 }
0x164d   :  { %5347 = vmatmul.mubr.bf16.vlgmr.msra.gmra.mxu0 %v4944_v55  ;;  %5367 = vmatpush1.bf16.xpose.msra.mxu1 %v11347_v34 }
0x164e   :  { %5386 = vmatprep.mubr.bf16.mxu1 %v4947_v56  ;;  %5407 = vmatpush1.bf16.xpose.msra.mxu0 %v11349_v40 }
0x164f   :  { %5426 = vmatprep.mubr.bf16.mxu0 %v4949_v45  ;;  %5368 = vmatprep.subr.bf16.mxu1 %v11332_v51 }
0x1650   :  { %5408 = vmatprep.subr.bf16.mxu0 %v11334_v62 }
0x1655   :  { %5369 = vmatpush1.bf16.xpose.msra.mxu1 %v11331_v1 }
0x1656   :  { %5409 = vmatpush1.bf16.xpose.msra.mxu0 %v11333_v24  ;;  %11812 = vmatprep.subr.bf16.mxu1 %v12054_v0 }
0x1657   :  { %11820 = vmatprep.subr.bf16.mxu0 %v12054_v0 }
0x165c   :  { %5387 = vmatmul.mubr.bf16.vlgmr.msra.gmra.mxu1 %v4946_v8  ;;  %v12721_v8 = vld [vmem:[#allocation2 + $0x24] ss:$16 sps:$4 sm:$0xff]  }
0x165d   :  { %5427 = vmatmul.mubr.bf16.vlgmr.msra.gmra.mxu0 %v4948_v9  ;;  %11816 = vmatprep.mubr.msk.bf16.mxu1 %vm12055_vm0, %v12054_v0  ;;  %v12724_v9 = vld [vmem:[#allocation2 + $0x4] ss:$16 sps:$4 sm:$0xff]  }
0x165e   :  { %11824 = vmatprep.mubr.msk.bf16.mxu0 %vm12055_vm0, %v12054_v0  ;;  %11813 = vmatpush3.bf16.msra.mxu1 %v12721_v8 }
0x165f   :  { %11814 = vmatprep.subr.bf16.mxu1 %v12054_v0 }
0x1662   :  { %11815 = vmatpush3.bf16.msra.mxu1 %v12724_v9 }
0x16ec   :  { %v5148_v41 = vpop.f32.mrf.mxu1  ;;  %v5188_v4 = vpop.f32.mrf.mxu0 }
0x16ed   :  { %v5149_v38 = vadd.f32 %v11318_v14, %v5148_v41 }
0x16ee   :  { %v5150_v59 = vpop.f32.mrf.mxu1  ;;  %v5190_v12 = vpop.f32.mrf.mxu0 }
0x16ef   :  { %v5189_v11 = vadd.f32 %v5188_v4, %v5149_v38 }
0x16f0   :  { %v5151_v16 = vpop.f32.mrf.mxu1  ;;  %v5191_v32 = vpop.f32.mrf.mxu0 }
0x16f1   :  { %v11351_v32 = vld [vmem:[%s13307_s1 + $0x31] ss:$0 sm:$0xff] }
0x16f2   :  { %v5152_v13 = vpop.f32.mrf.mxu1  ;;  %v5192_v2 = vpop.f32.mrf.mxu0 }
0x16f3   :  { %v11352_v2 = vld [vmem:[%s13307_s1 + $0x32] ss:$0 sm:$0xff] }
0x16fc   :  { %v5228_v10 = vpop.f32.mrf.mxu1  ;;  %v5268_v23 = vpop.f32.mrf.mxu0 }
0x16fd   :  { %v5229_v15 = vadd.f32 %v5228_v10, %v5189_v11 }
0x16fe   :  { %v5230_v3 = vpop.f32.mrf.mxu1  ;;  %v5270_v35 = vpop.f32.mrf.mxu0 }
0x16ff   :  { %v5269_v31 = vadd.f32 %v5268_v23, %v5229_v15 }
0x1700   :  { %v5231_v22 = vpop.f32.mrf.mxu1  ;;  %v5271_v17 = vpop.f32.mrf.mxu0 }
0x1702   :  { %v5232_v18 = vpop.f32.mrf.mxu1  ;;  %v5272_v20 = vpop.f32.mrf.mxu0 }
0x1703   :  { %v11353_v20 = vld [vmem:[%s13307_s1 + $0x33] ss:$0 sm:$0xff] }
0x170c   :  { %v5308_v26 = vpop.f32.mrf.mxu1 }
0x170d   :  { %v5348_v47 = vpop.f32.mrf.mxu0  ;;  %v5309_v49 = vadd.f32 %v5308_v26, %v5269_v31 }
0x170e   :  { %v5310_v48 = vpop.f32.mrf.mxu1 }
0x170f   :  { %v5350_v33 = vpop.f32.mrf.mxu0  ;;  %v5349_v42 = vadd.f32 %v5348_v47, %v5309_v49 }
0x1710   :  { %v5311_v39 = vpop.f32.mrf.mxu1 }
0x1711   :  { %v5351_v36 = vpop.f32.mrf.mxu0 }
0x1712   :  { %v5312_v37 = vpop.f32.mrf.mxu1 }
0x1713   :  { %v5352_v25 = vpop.f32.mrf.mxu0 }
0x171c   :  { %v5388_v52 = vpop.f32.mrf.mxu1 }
0x171d   :  { %v5389_v34 = vadd.f32 %v5388_v52, %v5349_v42  ;;  %v5428_v53 = vpop.f32.mrf.mxu0 }
0x171e   :  { %v5390_v54 = vpop.f32.mrf.mxu1 }
0x171f   :  { %v5429_v21 = vadd.f32 %v5428_v53, %v5389_v34  ;;  %v5430_v40 = vpop.f32.mrf.mxu0  ;;  %v11357_v34 = vld [vmem:[%s13307_s1 + $0x34] ss:$0 sm:$0xff]  ;;  %v11359_v54 = vld [vmem:[%s13307_s1 + $0x36] ss:$0 sm:$0xff] }
0x1720   :  { %v5391_v55 = vpop.f32.mrf.mxu1 }
0x1721   :  { %v5431_v51 = vpop.f32.mrf.mxu0  ;;  %v5434_v56 = vadd.f32 %v5429_v21, %v12614_v19  ;;  %v12717_v19 = vld [vmem:[#allocation2 + $0x8] ss:$16 sps:$4 sm:$0xff]   ;;  %v11358_v21 = vld [vmem:[%s13307_s1 + $0x35] ss:$0 sm:$0xff] }
0x1722   :  { %v5392_v62 = vpop.f32.mrf.mxu1 }
0x1723   :  { %v5432_v45 = vpop.f32.mrf.mxu0  ;;  %v5435_v50 = vsel %vm148_vm2, %v5434_v56, 0.0 }
0x1724   :  { %5436 = vadd.xlane.f32.xlu0 %v5435_v50 }
0x173a   :  { %5558 = vrot.lane.b32.xlu0 %v12711_v63, %s12049_s25 }
0x17ad   :  { %v5437_v1 = vpop.xlane.xlu0 %5436 }
0x17ae   :  { %v5438_v46 = vmul.f32 0.03125, %v5437_v1 }
0x17b0   :  { %v5439_v24 = vsub.f32 %v5434_v56, %v5438_v46 }
0x17b1   :  { %v5559_v61 = vpop.permute.xlu0 %5558 }
0x17b2   :  { %v5440_v5 = vmul.f32 %v5439_v24, %v5439_v24  ;;  %11821 = vmatpush3.bf16.msra.mxu0 %v5559_v61  ;;  %v5646_v61 = vld [vmem:[#allocation5 + $0x488] sm:$0xff] }
0x17b3   :  { %11822 = vmatprep.subr.bf16.mxu0 %v12054_v0 }
0x17b4   :  { %v5441_v7 = vsel %vm148_vm2, %v5440_v5, 0.0  ;;  %v5645_v5 = vld [vmem:[#allocation5 + $0x480] sm:$0xff] }
0x17b5   :  { %5442 = vadd.xlane.f32.xlu1 %v5441_v7  ;;  %v5653_v7 = vld [vmem:[#allocation5 + $0x4c0] sm:$0xff] }
0x17c6   :  { %5556 = vrot.lane.b32.xlu1 %v12717_v19, %s12049_s25 }
0x183e   :  { %v5443_v41 = vpop.xlane.xlu1 %5442 }
0x183f   :  { %v5444_v4 = vmul.f32 0.03125, %v5443_v41  ;;  %v11384_v41 = vcombine.high %v5645_v5, %v5653_v7 }
0x1841   :  { %v5445_v59 = vadd.f32 1e-05, %v5444_v4  ;;  %v5654_v4 = vld [vmem:[#allocation5 + $0x4c8] sm:$0xff]  ;;  %5927 = vmatprep.subr.bf16.mxu1 %v11384_v41 }
0x1842   :  { %v5557_v12 = vpop.permute.xlu1 %5556 }
0x1843   :  { %11924 = vrsqrt.f32 %v5445_v59  ;;  %11823 = vmatpush3.bf16.msra.mxu0 %v5557_v12  ;;  %v11383_v59 = vcombine.low %v5645_v5, %v5653_v7  ;;  %v11385_v12 = vcombine.low %v5646_v61, %v5654_v4  ;;  %v5641_v5 = vld [vmem:[#allocation5 + $0x460] sm:$0xff]  ;;  %v5634_v7 = vld [vmem:[#allocation5 + $0x428] sm:$0xff] }
0x1846   :  { %11825 = vmatmul.mubr.msk.bf16.vlgmr.msra.gmra.mxu0 %vm197_vm3, %v12450_v6 }
0x1847   :  { %5988 = vmatprep.mubr.bf16.mxu0 %v12056_v60 }
0x1850   :  { %v11925_v16 = vpop.eup %11924 }
0x1851   :  { %v5447_v13 = vmul.f32 %v11925_v16, %v5439_v24  ;;  %v11386_v16 = vcombine.high %v5646_v61, %v5654_v4  ;;  %v5642_v61 = vld [vmem:[#allocation5 + $0x468] sm:$0xff] }
0x1853   :  { %v5453_v10 = vmul.f32 %v11351_v32, %v5447_v13  ;;  %5968 = vmatprep.subr.bf16.mxu0 %v11386_v16  ;;  %v5629_v32 = vld [vmem:[#allocation5 + $0x400] sm:$0xff]  ;;  %v5651_v16 = vld [vmem:[#allocation5 + $0x4b0] sm:$0xff] }
0x1854   :  { %v5637_v13 = vld [vmem:[#allocation5 + $0x440] sm:$0xff]  ;;  %5969 = vmatpush1.bf16.msra.mxu0 %v11385_v12  ;;  %v11378_v12 = vcombine.high %v5634_v7, %v5642_v61 }
0x1855   :  { %v5459_v23 = vadd.f32 %v11352_v2, %v5453_v10  ;;  %v5630_v2 = vld [vmem:[#allocation5 + $0x408] sm:$0xff]  ;;  %v11368_v10 = vcombine.high %v5629_v32, %v5637_v13 }
0x1857   :  { %v5465_v3 = vpack.c.bf16 %v5459_v23, %v5459_v23 }
0x1859   :  { %11817 = vmatmul.mubr.msk.bf16.vlgmr.msra.gmra.mxu1 %vm197_vm3, %v5465_v3  ;;  %v11367_v3 = vcombine.low %v5629_v32, %v5637_v13  ;;  %v5659_v32 = vld [vmem:[#allocation5 + $0x4f0] sm:$0xff]  ;;  %v5652_v13 = vld [vmem:[#allocation5 + $0x4b8] sm:$0xff] }
0x185a   :  { %5947 = vmatprep.mubr.bf16.mxu1 %v12056_v60  ;;  %5928 = vmatpush1.bf16.msra.mxu1 %v11383_v59 }
0x185b   :  { %5929 = vmatprep.subr.bf16.mxu1 %v11368_v10 }
0x185e   :  { %5930 = vmatpush1.bf16.msra.mxu1 %v11367_v3  ;;  %v11396_v3 = vcombine.high %v5651_v16, %v5659_v32 }
0x1906   :  { %v5596_v35 = vpop.f32.mrf.mxu0 }
0x1907   :  { %v5597_v55 = vadd.f32 %v11359_v54, %v5596_v35 }
0x1908   :  { %v11826_v22 = vpop.f32.mrf.mxu0 }
0x190a   :  { %v5599_v17 = vpop.f32.mrf.mxu0 }
0x190b   :  { %v5647_v17 = vld [vmem:[#allocation5 + $0x490] sm:$0xff] }
0x190c   :  { %v11827_v18 = vpop.f32.mrf.mxu0 }
0x190d   :  { %v5655_v18 = vld [vmem:[#allocation5 + $0x4d0] sm:$0xff] }
0x1919   :  { %v5519_v14 = vpop.f32.mrf.mxu1 }
0x191a   :  { %v5520_v38 = vadd.f32 %v11353_v20, %v5519_v14  ;;  %v5648_v20 = vld [vmem:[#allocation5 + $0x498] sm:$0xff]  ;;  %v11387_v14 = vcombine.low %v5647_v17, %v5655_v18 }
0x191b   :  { %v11818_v26 = vpop.f32.mrf.mxu1 }
0x191c   :  { %v5525_v47 = vadd.f32 %v5520_v38, %v5459_v23  ;;  %v5638_v23 = vld [vmem:[#allocation5 + $0x448] sm:$0xff]  ;;  %v11388_v38 = vcombine.high %v5647_v17, %v5655_v18  ;;  %v5656_v26 = vld [vmem:[#allocation5 + $0x4d8] sm:$0xff]  ;;  %v5643_v17 = vld [vmem:[#allocation5 + $0x470] sm:$0xff] }
0x191d   :  { %v5522_v48 = vpop.f32.mrf.mxu1  ;;  %v11369_v35 = vcombine.low %v5630_v2, %v5638_v23  ;;  %v11370_v22 = vcombine.high %v5630_v2, %v5638_v23  ;;  %v5660_v2 = vld [vmem:[#allocation5 + $0x4f8] sm:$0xff]  ;;  %v11377_v23 = vcombine.low %v5634_v7, %v5642_v61 }
0x191e   :  { %v5526_v11 = vsel %vm148_vm2, %v5525_v47, 0.0  ;;  %v11390_v48 = vcombine.high %v5648_v20, %v5656_v26  ;;  %6009 = vmatprep.subr.bf16.mxu1 %v11388_v38  ;;  %v5636_v18 = vld [vmem:[#allocation5 + $0x438] sm:$0xff]  ;;  %v11397_v38 = vcombine.low %v5652_v13, %v5660_v2 }
0x191f   :  { %5527 = vadd.xlane.f32.xlu1 %v5526_v11  ;;  %v11819_v33 = vpop.f32.mrf.mxu1  ;;  %5970 = vmatprep.subr.bf16.mxu0 %v11370_v22  ;;  %v5635_v22 = vld [vmem:[#allocation5 + $0x430] sm:$0xff] }
0x1920   :  { %5971 = vmatpush1.bf16.msra.mxu0 %v11369_v35  ;;  %v11398_v35 = vcombine.high %v5652_v13, %v5660_v2  ;;  %v11363_v7 = vld [vmem:[%s13308_s2 + $0x4] ss:$8 sm:$0xf] }
0x1921   :  { %6050 = vmatprep.subr.bf16.mxu0 %v11390_v48  ;;  %v6276_v48 = vld [vmem:[#allocation7 + $0x480] sm:$0xff] }
0x1922   :  { %v11364_v61 = vld [vmem:[%s13308_s2 + $0x4] ss:$8 sm:$0xf0] }
0x19a8   :  { %v5528_v39 = vpop.xlane.xlu1 %5527 }
0x19a9   :  { %v5529_v15 = vmul.f32 0.03125, %v5528_v39 }
0x19ab   :  { %v5530_v36 = vsub.f32 %v5525_v47, %v5529_v15  ;;  %v11389_v47 = vcombine.low %v5648_v20, %v5656_v26  ;;  %v5644_v20 = vld [vmem:[#allocation5 + $0x478] sm:$0xff]  ;;  %v11380_v26 = vcombine.high %v5635_v22, %v5643_v17 }
0x19ad   :  { %v5531_v37 = vmul.f32 %v5530_v36, %v5530_v36 }
0x19af   :  { %v5532_v25 = vsel %vm148_vm2, %v5531_v37, 0.0 }
0x19b0   :  { %5533 = vadd.xlane.f32.xlu0 %v5532_v25  ;;  %v11362_v25 = vld [vmem:[%s13307_s1 + $0x38] ss:$0 sm:$0xff] }
0x1a39   :  { %v5534_v31 = vpop.xlane.xlu0 %5533 }
0x1a3a   :  { %v5535_v49 = vmul.f32 0.03125, %v5534_v31 }
0x1a3c   :  { %v5536_v42 = vadd.f32 1e-05, %v5535_v49  ;;  %v5631_v49 = vld [vmem:[#allocation5 + $0x410] sm:$0xff] }
0x1a3e   :  { %11926 = vrsqrt.f32 %v5536_v42  ;;  %v5639_v42 = vld [vmem:[#allocation5 + $0x450] sm:$0xff] }
0x1a4b   :  { %v11927_v52 = vpop.eup %11926 }
0x1a4c   :  { %v5538_v53 = vmul.f32 %v11927_v52, %v5530_v36  ;;  %v11361_v36 = vld [vmem:[%s13307_s1 + $0x37] ss:$0 sm:$0xff]  ;;  %v5632_v52 = vld [vmem:[#allocation5 + $0x418] sm:$0xff] }
0x1a4e   :  { %v5544_v40 = vmul.f32 %v11357_v34, %v5538_v53  ;;  %v5640_v34 = vld [vmem:[#allocation5 + $0x458] sm:$0xff] }
0x1a50   :  { %v5550_v51 = vadd.f32 %v11358_v21, %v5544_v40  ;;  %v11372_v21 = vcombine.high %v5631_v49, %v5639_v42  ;;  %v11374_v40 = vcombine.high %v5632_v52, %v5640_v34 }
0x1a52   :  { %v5602_v56 = vadd.f32 %v5597_v55, %v5550_v51  ;;  %v5649_v55 = vld [vmem:[#allocation5 + $0x4a0] sm:$0xff] }
0x1a53   :  { %v5657_v51 = vld [vmem:[#allocation5 + $0x4e0] sm:$0xff] }
0x1a54   :  { %v5603_v62 = vsel %vm148_vm2, %v5602_v56, 0.0  ;;  %v11391_v41 = vcombine.low %v5649_v55, %v5657_v51 }
0x1a55   :  { %5604 = vadd.xlane.f32.xlu0 %v5603_v62  ;;  %v5658_v62 = vld [vmem:[#allocation5 + $0x4e8] sm:$0xff] }
0x1ade   :  { %v5605_v45 = vpop.xlane.xlu0 %5604 }
0x1adf   :  { %v5606_v50 = vmul.f32 0.03125, %v5605_v45  ;;  %v11371_v45 = vcombine.low %v5631_v49, %v5639_v42  ;;  %v6260_v42 = vld [vmem:[#allocation7 + $0x400] sm:$0xff] }
0x1ae1   :  { %v5607_v1 = vsub.f32 %v5602_v56, %v5606_v50  ;;  %v5650_v56 = vld [vmem:[#allocation5 + $0x4a8] sm:$0xff]  ;;  %v11373_v50 = vcombine.low %v5632_v52, %v5640_v34  ;;  %v6268_v52 = vld [vmem:[#allocation7 + $0x440] sm:$0xff] }
0x1ae2   :  { %v11393_v4 = vcombine.low %v5650_v56, %v5658_v62  ;;  %v6261_v34 = vld [vmem:[#allocation7 + $0x408] sm:$0xff] }
0x1ae3   :  { %v5608_v46 = vmul.f32 %v5607_v1, %v5607_v1 }
0x1ae5   :  { %v5609_v24 = vsel %vm148_vm2, %v5608_v46, 0.0  ;;  %v11394_v46 = vcombine.high %v5650_v56, %v5658_v62  ;;  %v6278_v62 = vld [vmem:[#allocation7 + $0x490] sm:$0xff] }
0x1ae6   :  { %5610 = vadd.xlane.f32.xlu1 %v5609_v24  ;;  %v5633_v24 = vld [vmem:[#allocation5 + $0x420] sm:$0xff] }
0x1ae7   :  { %v11376_v59 = vcombine.high %v5633_v24, %v5641_v5  ;;  %v11375_v10 = vcombine.low %v5633_v24, %v5641_v5 }
0x1b6f   :  { %v5611_v11 = vpop.xlane.xlu1 %5610 }
0x1b70   :  { %v5612_v33 = vmul.f32 0.03125, %v5611_v11  ;;  %v6284_v11 = vld [vmem:[#allocation7 + $0x4c0] sm:$0xff] }
0x1b72   :  { %v5613_v39 = vadd.f32 1e-05, %v5612_v33  ;;  %v6277_v33 = vld [vmem:[#allocation7 + $0x488] sm:$0xff] }
0x1b74   :  { %11928 = vrsqrt.f32 %v5613_v39  ;;  %v6285_v39 = vld [vmem:[#allocation7 + $0x4c8] sm:$0xff] }
0x1b75   :  { %v11426_v49 = vcombine.low %v6277_v33, %v6285_v39 }
0x1b81   :  { %v11929_v15 = vpop.eup %11928 }
0x1b82   :  { %v5615_v37 = vmul.f32 %v11929_v15, %v5607_v1  ;;  %v11392_v1 = vcombine.high %v5649_v55, %v5657_v51  ;;  %v11379_v15 = vcombine.low %v5635_v22, %v5643_v17  ;;  %v11408_v55 = vcombine.low %v6260_v42, %v6268_v52 }
0x1b84   :  { %v5621_v31 = vmul.f32 %v11361_v36, %v5615_v37  ;;  %v11381_v36 = vcombine.low %v5636_v18, %v5644_v20  ;;  %v11425_v37 = vcombine.high %v6276_v48, %v6284_v11 }
0x1b86   :  { %v12761_v53 = vadd.f32 %v11362_v25, %v5621_v31  ;;  %v11427_v25 = vcombine.high %v6277_v33, %v6285_v39  ;;  %v11424_v31 = vcombine.low %v6276_v48, %v6284_v11  ;;  %v6270_v48 = vld [vmem:[#allocation7 + $0x450] sm:$0xff]  ;;  %v6263_v11 = vld [vmem:[#allocation7 + $0x418] sm:$0xff] }
0x1b87   :  { %v6271_v33 = vld [vmem:[#allocation7 + $0x458] sm:$0xff] }
0x1b88   :  { %v12765_v54 = vpack.c.bf16 %v12761_v53, %v12761_v53 }
0x1b8a   :  { %11399 = vmatmul.mubr.msk.bf16.vlgmr.msra.gmra.mxu1 %vm197_vm3, %v12765_v54  ;;  %11400 = vmatmul.mubr.msk.bf16.vlgmr.msra.gmra.mxu0 %vm197_vm3, %v12765_v54 }
0x1b8b   :  { %6010 = vmatpush1.bf16.msra.mxu1 %v11387_v14  ;;  %6051 = vmatpush1.bf16.msra.mxu0 %v11389_v47  ;;  %v11395_v14 = vcombine.low %v5651_v16, %v5659_v32  ;;  %v11382_v47 = vcombine.high %v5636_v18, %v5644_v20 }
0x1b8c   :  { %6011 = vmatprep.subr.bf16.mxu1 %v11372_v21  ;;  %6052 = vmatprep.subr.bf16.mxu0 %v11374_v40  ;;  %v11409_v21 = vcombine.high %v6260_v42, %v6268_v52  ;;  %v6269_v40 = vld [vmem:[#allocation7 + $0x448] sm:$0xff] }
0x1b8d   :  { %6029 = vmatprep.mubr.bf16.mxu1 %v12056_v60  ;;  %6070 = vmatprep.mubr.bf16.mxu0 %v12056_v60  ;;  %v11410_v51 = vcombine.low %v6261_v34, %v6269_v40  ;;  %v11411_v56 = vcombine.high %v6261_v34, %v6269_v40  ;;  %v11415_v40 = vcombine.high %v6263_v11, %v6271_v33 }
0x1b8f   :  { %6012 = vmatpush1.bf16.msra.mxu1 %v11371_v45  ;;  %6053 = vmatpush1.bf16.msra.mxu0 %v11373_v50  ;;  %v6286_v45 = vld [vmem:[#allocation7 + $0x4d0] sm:$0xff]  ;;  %v6279_v50 = vld [vmem:[#allocation7 + $0x498] sm:$0xff] }
0x1b90   :  { %6091 = vmatprep.subr.bf16.mxu1 %v11392_v1  ;;  %6132 = vmatprep.subr.bf16.mxu0 %v11394_v46  ;;  %v11429_v1 = vcombine.high %v6278_v62, %v6286_v45  ;;  %v6287_v46 = vld [vmem:[#allocation7 + $0x4d8] sm:$0xff] }
0x1b91   :  { %v11430_v24 = vcombine.low %v6279_v50, %v6287_v46  ;;  %v11431_v5 = vcombine.high %v6279_v50, %v6287_v46 }
0x1b92   :  { %11401 = vmatmul.mubr.msk.bf16.vlgmr.msra.gmra.mxu1 %vm197_vm3, %v12765_v54  ;;  %11402 = vmatmul.mubr.msk.bf16.vlgmr.msra.gmra.mxu0 %vm197_vm3, %v12765_v54 }
0x1b93   :  { %6092 = vmatpush1.bf16.msra.mxu1 %v11391_v41  ;;  %6133 = vmatpush1.bf16.msra.mxu0 %v11393_v4  ;;  %v12795_v41 = vor.u32 %v11364_v61, %v11363_v7  ;;  %v6280_v61 = vld [vmem:[#allocation7 + $0x4a0] sm:$0xff] }
0x1b94   :  { %6093 = vmatprep.subr.bf16.mxu1 %v11376_v59  ;;  %6134 = vmatprep.subr.bf16.mxu0 %v11378_v12 }
0x1b95   :  { %6111 = vmatprep.mubr.bf16.mxu1 %v12056_v60  ;;  %6152 = vmatprep.mubr.bf16.mxu0 %v12056_v60  ;;  %v5675_v4 = vrot.slane %v12795_v41, %v12214_v27  ;;  %v5683_v59 = vrot.slane %v12795_v41, %v12216_v28  ;;  %v5679_v12 = vrot.slane %v12795_v41, %v12218_v29 }
0x1b96   :  { %v5687_v16 = vrot.slane %v12795_v41, %v12220_v30  ;;  %v5699_v46 = vrot.slane %v12795_v41, %v12238_v58 }
0x1b97   :  { %6094 = vmatpush1.bf16.msra.mxu1 %v11375_v10  ;;  %6135 = vmatpush1.bf16.msra.mxu0 %v11377_v23 }
0x1b98   :  { %6173 = vmatprep.subr.bf16.mxu1 %v11396_v3  ;;  %6214 = vmatprep.subr.bf16.mxu0 %v11398_v35 }
0x1b9a   :  { %11403 = vmatmul.mubr.msk.bf16.vlgmr.msra.gmra.mxu1 %vm197_vm3, %v12765_v54  ;;  %11404 = vmatmul.mubr.msk.bf16.vlgmr.msra.gmra.mxu0 %vm197_vm3, %v12765_v54 }
0x1b9b   :  { %6174 = vmatpush1.bf16.msra.mxu1 %v11395_v14  ;;  %6215 = vmatpush1.bf16.msra.mxu0 %v11397_v38  ;;  %v12805_v38 = vld [vmem:[#allocation7 + $0x410] sm:$0xff] }
0x1b9c   :  { %6175 = vmatprep.subr.bf16.mxu1 %v11380_v26  ;;  %6216 = vmatprep.subr.bf16.mxu0 %v11382_v47 }
0x1b9d   :  { %6193 = vmatprep.mubr.bf16.mxu1 %v12056_v60  ;;  %6234 = vmatprep.mubr.bf16.mxu0 %v12056_v60 }
0x1b9f   :  { %6176 = vmatpush1.bf16.msra.mxu1 %v11379_v15  ;;  %6217 = vmatpush1.bf16.msra.mxu0 %v11381_v36 }
0x1ba0   :  { %6485 = vmatprep.subr.bf16.mxu1 %v11425_v37  ;;  %6525 = vmatprep.subr.bf16.mxu0 %v11427_v25  ;;  %v5695_v25 = vrot.slane %v12795_v41, %v12230_v43 }
0x1ba2   :  { %11405 = vmatmul.mubr.msk.bf16.vlgmr.msra.gmra.mxu1 %vm197_vm3, %v12765_v54  ;;  %11406 = vmatmul.mubr.msk.bf16.vlgmr.msra.gmra.mxu0 %vm197_vm3, %v12765_v54  ;;  %v11428_v54 = vcombine.low %v6278_v62, %v6286_v45  ;;  %v11366_v62 = vld [vmem:[%s13308_s2 + $0x44] ss:$8 sm:$0xf0] }
0x1ba3   :  { %6486 = vmatpush1.bf16.xpose.msra.mxu1 %v11424_v31  ;;  %6526 = vmatpush1.bf16.xpose.msra.mxu0 %v11426_v49  ;;  %v5703_v31 = vrot.slane %v12795_v41, %v12232_v44 }
0x1ba4   :  { %6487 = vmatprep.subr.bf16.mxu1 %v11409_v21  ;;  %6527 = vmatprep.subr.bf16.mxu0 %v11411_v56  ;;  %v11413_v21 = vcombine.high %v12805_v38, %v6270_v48  ;;  %v11365_v56 = vld [vmem:[%s13308_s2 + $0x44] ss:$8 sm:$0xf] }
0x1bab   :  { %6488 = vmatpush1.bf16.xpose.msra.mxu1 %v11408_v55  ;;  %6528 = vmatpush1.bf16.xpose.msra.mxu0 %v11410_v51 }
0x1bac   :  { %6565 = vmatprep.subr.bf16.mxu1 %v11429_v1  ;;  %6605 = vmatprep.subr.bf16.mxu0 %v11431_v5  ;;  %v5691_v1 = vrot.slane %v12795_v41, %v12236_v57 }
0x1c4a   :  { %v5949_v32 = vpop.f32.mrf.mxu1  ;;  %v5990_v13 = vpop.f32.mrf.mxu0 }
0x1c4b   :  { %v5950_v2 = vadd.f32 %v5949_v32, %v5675_v4  ;;  %v5991_v10 = vadd.f32 %v5990_v13, %v5683_v59  ;;  %v6281_v32 = vld [vmem:[#allocation7 + $0x4a8] sm:$0xff] }
0x1c4c   :  { %v5951_v23 = vpop.f32.mrf.mxu1  ;;  %v5992_v3 = vpop.f32.mrf.mxu0  ;;  %v6289_v13 = vld [vmem:[#allocation7 + $0x4e8] sm:$0xff] }
0x1c4d   :  { %v5952_v35 = vadd.f32 %v5951_v23, %v5679_v12  ;;  %v5993_v22 = vadd.f32 %v5992_v3, %v5687_v16  ;;  %v6243_v17 = vmax.f32 %v5950_v2, 0.0  ;;  %v6245_v18 = vmax.f32 %v5991_v10, 0.0  ;;  %v6288_v16 = vld [vmem:[#allocation7 + $0x4e0] sm:$0xff] }
0x1c4e   :  { %v5953_v20 = vpop.f32.mrf.mxu1  ;;  %v5994_v14 = vpop.f32.mrf.mxu0  ;;  %v12822_v12 = vor.u32 %v11366_v62, %v11365_v56  ;;  %v11412_v2 = vcombine.low %v12805_v38, %v6270_v48  ;;  %v11414_v10 = vcombine.low %v6263_v11, %v6271_v33 }
0x1c4f   :  { %v6244_v26 = vmax.f32 %v5952_v35, 0.0  ;;  %v6246_v47 = vmax.f32 %v5993_v22, 0.0  ;;  %v6293_v49 = vpack.c.bf16 %v6243_v17, %v6243_v17  ;;  %v6295_v42 = vpack.c.bf16 %v6245_v18, %v6245_v18 }
0x1c50   :  { %v5954_v39 = vpop.f32.mrf.mxu1  ;;  %v5995_v15 = vpop.f32.mrf.mxu0  ;;  %v5711_v41 = vrot.slane %v12822_v12, %v12218_v29  ;;  %v5719_v35 = vrot.slane %v12822_v12, %v12220_v30  ;;  %v11433_v14 = vcombine.high %v6280_v61, %v6288_v16 }
0x1c51   :  { %v6294_v36 = vpack.c.bf16 %v6244_v26, %v6244_v26  ;;  %v6296_v37 = vpack.c.bf16 %v6246_v47, %v6246_v47  ;;  %v11435_v26 = vcombine.high %v6281_v32, %v6289_v13 }
0x1c52   :  { %v6031_v52 = vpop.f32.mrf.mxu1  ;;  %v6072_v34 = vpop.f32.mrf.mxu0 }
0x1c53   :  { %6505 = vmatprep.mubr.bf16.mxu1 %v6294_v36  ;;  %6545 = vmatprep.mubr.bf16.mxu0 %v6296_v37  ;;  %v6032_v22 = vadd.f32 %v6031_v52, %v5691_v1  ;;  %v6073_v17 = vadd.f32 %v6072_v34, %v5699_v46  ;;  %v6272_v52 = vld [vmem:[#allocation7 + $0x460] sm:$0xff]  ;;  %v6265_v34 = vld [vmem:[#allocation7 + $0x428] sm:$0xff]  ;;  %v11434_v1 = vcombine.low %v6281_v32, %v6289_v13  ;;  %v6282_v32 = vld [vmem:[#allocation7 + $0x4b0] sm:$0xff] }
0x1c54   :  { %v6033_v55 = vpop.f32.mrf.mxu1  ;;  %v6074_v51 = vpop.f32.mrf.mxu0  ;;  %6506 = vmatmul.mubr.bf16.vlgmr.msra.gmra.mxu1 %v6293_v49  ;;  %6546 = vmatmul.mubr.bf16.vlgmr.msra.gmra.mxu0 %v6295_v42  ;;  %v6290_v13 = vld [vmem:[#allocation7 + $0x4f0] sm:$0xff] }
0x1c55   :  { %v6034_v45 = vadd.f32 %v6033_v55, %v5695_v25  ;;  %v6075_v50 = vadd.f32 %v6074_v51, %v5703_v31  ;;  %6566 = vmatpush1.bf16.xpose.msra.mxu1 %v11428_v54  ;;  %6606 = vmatpush1.bf16.xpose.msra.mxu0 %v11430_v24  ;;  %v6247_v11 = vmax.f32 %v6032_v22, 0.0  ;;  %v6249_v33 = vmax.f32 %v6073_v17, 0.0  ;;  %v6264_v31 = vld [vmem:[#allocation7 + $0x420] sm:$0xff] }
0x1c56   :  { %v6035_v5 = vpop.f32.mrf.mxu1  ;;  %v6076_v7 = vpop.f32.mrf.mxu0  ;;  %6567 = vmatprep.subr.bf16.mxu1 %v11413_v21  ;;  %6607 = vmatprep.subr.bf16.mxu0 %v11415_v40  ;;  %v6273_v21 = vld [vmem:[#allocation7 + $0x468] sm:$0xff]  ;;  %v11432_v55 = vcombine.low %v6280_v61, %v6288_v16  ;;  %v11417_v46 = vcombine.high %v6264_v31, %v6272_v52 }
0x1c57   :  { %v6248_v4 = vmax.f32 %v6034_v45, 0.0  ;;  %v6250_v59 = vmax.f32 %v6075_v50, 0.0  ;;  %v6297_v51 = vpack.c.bf16 %v6247_v11, %v6247_v11  ;;  %v6299_v56 = vpack.c.bf16 %v6249_v33, %v6249_v33 }
0x1c58   :  { %v6036_v54 = vpop.f32.mrf.mxu1  ;;  %v6077_v24 = vpop.f32.mrf.mxu0  ;;  %v11419_v5 = vcombine.high %v6265_v34, %v6273_v21  ;;  %v11418_v17 = vcombine.low %v6265_v34, %v6273_v21 }
0x1c59   :  { %v6298_v23 = vpack.c.bf16 %v6248_v4, %v6248_v4  ;;  %v6300_v3 = vpack.c.bf16 %v6250_v59, %v6250_v59  ;;  %v5707_v59 = vrot.slane %v12822_v12, %v12214_v27  ;;  %v5715_v54 = vrot.slane %v12822_v12, %v12216_v28 }
0x1c5a   :  { %v6113_v18 = vpop.f32.mrf.mxu1  ;;  %v6154_v20 = vpop.f32.mrf.mxu0  ;;  %v5727_v24 = vrot.slane %v12822_v12, %v12230_v43 }
0x1c5b   :  { %6585 = vmatprep.mubr.bf16.mxu1 %v6298_v23  ;;  %6625 = vmatprep.mubr.bf16.mxu0 %v6300_v3  ;;  %v6283_v23 = vld [vmem:[#allocation7 + $0x4b8] sm:$0xff]  ;;  %v6114_v22 = vadd.f32 %v6113_v18, %v5707_v59 }
0x1c5c   :  { %v6115_v47 = vpop.f32.mrf.mxu1  ;;  %v6156_v39 = vpop.f32.mrf.mxu0  ;;  %v6291_v3 = vld [vmem:[#allocation7 + $0x4f8] sm:$0xff] }
0x1c5d   :  { %v6116_v38 = vadd.f32 %v6115_v47, %v5711_v41  ;;  %v6157_v48 = vadd.f32 %v6156_v39, %v5719_v35  ;;  %6568 = vmatpush1.bf16.xpose.msra.mxu1 %v11412_v2  ;;  %6608 = vmatpush1.bf16.xpose.msra.mxu0 %v11414_v10  ;;  %v5735_v41 = vrot.slane %v12822_v12, %v12232_v44 }
0x1c5e   :  { %v6117_v15 = vpop.f32.mrf.mxu1  ;;  %v6158_v36 = vpop.f32.mrf.mxu0  ;;  %6645 = vmatprep.subr.bf16.mxu1 %v11433_v14  ;;  %6685 = vmatprep.subr.bf16.mxu0 %v11435_v26  ;;  %v11416_v35 = vcombine.low %v6264_v31, %v6272_v52  ;;  %v11437_v14 = vcombine.high %v6282_v32, %v6290_v13  ;;  %v6155_v26 = vadd.f32 %v6154_v20, %v5715_v54  ;;  %v6275_v31 = vld [vmem:[#allocation7 + $0x478] sm:$0xff] }
0x1c5f   :  { %v6252_v37 = vmax.f32 %v6116_v38, 0.0  ;;  %v6254_v25 = vmax.f32 %v6157_v48, 0.0  ;;  %v11439_v47 = vcombine.high %v6283_v23, %v6291_v3  ;;  %v6251_v48 = vmax.f32 %v6114_v22, 0.0  ;;  %v6266_v15 = vld [vmem:[#allocation7 + $0x430] sm:$0xff] }
0x1c60   :  { %v6118_v49 = vpop.f32.mrf.mxu1  ;;  %v6159_v42 = vpop.f32.mrf.mxu0  ;;  %v6253_v11 = vmax.f32 %v6155_v26, 0.0  ;;  %v6274_v36 = vld [vmem:[#allocation7 + $0x470] sm:$0xff] }
0x1c61   :  { %v6302_v40 = vpack.c.bf16 %v6252_v37, %v6252_v37  ;;  %v6304_v62 = vpack.c.bf16 %v6254_v25, %v6254_v25  ;;  %v11436_v25 = vcombine.low %v6282_v32, %v6290_v13  ;;  %v6267_v49 = vld [vmem:[#allocation7 + $0x438] sm:$0xff]  ;;  %v6301_v18 = vpack.c.bf16 %v6251_v48, %v6251_v48 }
0x1c62   :  { %v12829_v45 = vpop.f32.mrf.mxu1  ;;  %v12831_v50 = vpop.f32.mrf.mxu0  ;;  %v11438_v42 = vcombine.low %v6283_v23, %v6291_v3  ;;  %v6303_v52 = vpack.c.bf16 %v6253_v11, %v6253_v11  ;;  %v11421_v20 = vcombine.high %v6266_v15, %v6274_v36  ;;  %v11423_v21 = vcombine.high %v6267_v49, %v6275_v31 }
0x1c64   :  { %6586 = vmatmul.mubr.bf16.vlgmr.msra.gmra.mxu1 %v6297_v51  ;;  %6626 = vmatmul.mubr.bf16.vlgmr.msra.gmra.mxu0 %v6299_v56  ;;  %v6197_v7 = vpop.f32.mrf.mxu1  ;;  %v6238_v4 = vpop.f32.mrf.mxu0  ;;  %v5731_v51 = vrot.slane %v12822_v12, %v12238_v58  ;;  %v11420_v56 = vcombine.low %v6266_v15, %v6274_v36 }
0x1c65   :  { %6646 = vmatpush1.bf16.xpose.msra.mxu1 %v11432_v55  ;;  %6665 = vmatprep.mubr.bf16.mxu1 %v6302_v40  ;;  %v6198_v39 = vadd.f32 %v6197_v7, %v5727_v24  ;;  %v6239_v38 = vadd.f32 %v6238_v4, %v5735_v41  ;;  %v5723_v55 = vrot.slane %v12822_v12, %v12236_v57 }
0x1c66   :  { %6686 = vmatpush1.bf16.xpose.msra.mxu0 %v11434_v1  ;;  %6705 = vmatprep.mubr.bf16.mxu0 %v6304_v62  ;;  %v6199_v61 = vpop.f32.mrf.mxu1  ;;  %v6240_v16 = vpop.f32.mrf.mxu0  ;;  %v11422_v1 = vcombine.low %v6267_v49, %v6275_v31 }
0x1c67   :  { %6647 = vmatprep.subr.bf16.mxu1 %v11417_v46  ;;  %6687 = vmatprep.subr.bf16.mxu0 %v11419_v5  ;;  %v6256_v33 = vmax.f32 %v6198_v39, 0.0  ;;  %v6258_v37 = vmax.f32 %v6239_v38, 0.0  ;;  %v6196_v62 = vadd.f32 %v12829_v45, %v5723_v55  ;;  %v6237_v46 = vadd.f32 %v12831_v50, %v5731_v51 }
0x1c68   :  { %v6200_v2 = vpop.f32.mrf.mxu1  ;;  %v6241_v10 = vpop.f32.mrf.mxu0 }
0x1c69   :  { %v6306_v34 = vpack.c.bf16 %v6256_v33, %v6256_v33  ;;  %v6308_v40 = vpack.c.bf16 %v6258_v37, %v6258_v37  ;;  %v6255_v5 = vmax.f32 %v6196_v62, 0.0  ;;  %v6257_v7 = vmax.f32 %v6237_v46, 0.0 }
0x1c6b   :  { %v6305_v4 = vpack.c.bf16 %v6255_v5, %v6255_v5  ;;  %v6307_v59 = vpack.c.bf16 %v6257_v7, %v6257_v7 }
0x1c6d   :  { %6648 = vmatpush1.bf16.xpose.msra.mxu1 %v11416_v35 }
0x1c6e   :  { %6688 = vmatpush1.bf16.xpose.msra.mxu0 %v11418_v17  ;;  %6725 = vmatprep.subr.bf16.mxu1 %v11437_v14  ;;  %v11407_v17 = vld [vmem:[%s13307_s1 + $0x39] ss:$0 sm:$0xff] }
0x1c6f   :  { %6765 = vmatprep.subr.bf16.mxu0 %v11439_v47 }
0x1c74   :  { %6666 = vmatmul.mubr.bf16.vlgmr.msra.gmra.mxu1 %v6301_v18 }
0x1c75   :  { %6706 = vmatmul.mubr.bf16.vlgmr.msra.gmra.mxu0 %v6303_v52  ;;  %6726 = vmatpush1.bf16.xpose.msra.mxu1 %v11436_v25 }
0x1c76   :  { %6745 = vmatprep.mubr.bf16.mxu1 %v6306_v34  ;;  %6766 = vmatpush1.bf16.xpose.msra.mxu0 %v11438_v42 }
0x1c77   :  { %6785 = vmatprep.mubr.bf16.mxu0 %v6308_v40  ;;  %6727 = vmatprep.subr.bf16.mxu1 %v11421_v20 }
0x1c78   :  { %6767 = vmatprep.subr.bf16.mxu0 %v11423_v21 }
0x1c7d   :  { %6728 = vmatpush1.bf16.xpose.msra.mxu1 %v11420_v56 }
0x1c7e   :  { %6768 = vmatpush1.bf16.xpose.msra.mxu0 %v11422_v1  ;;  %11828 = vmatprep.subr.bf16.mxu1 %v12054_v0 }
0x1c7f   :  { %11836 = vmatprep.subr.bf16.mxu0 %v12054_v0 }
0x1c84   :  { %6746 = vmatmul.mubr.bf16.vlgmr.msra.gmra.mxu1 %v6305_v4 }
0x1c85   :  { %6786 = vmatmul.mubr.bf16.vlgmr.msra.gmra.mxu0 %v6307_v59  ;;  %11832 = vmatprep.mubr.msk.bf16.mxu1 %vm12055_vm0, %v12054_v0 }
0x1c86   :  { %11840 = vmatprep.mubr.msk.bf16.mxu0 %vm12055_vm0, %v12054_v0 }
0x1d14   :  { %v6507_v12 = vpop.f32.mrf.mxu1  ;;  %v6547_v45 = vpop.f32.mrf.mxu0 }
0x1d15   :  { %v6508_v14 = vadd.f32 %v11407_v17, %v6507_v12 }
0x1d16   :  { %v6509_v50 = vpop.f32.mrf.mxu1  ;;  %v6549_v61 = vpop.f32.mrf.mxu0 }
0x1d17   :  { %v6548_v38 = vadd.f32 %v6547_v45, %v6508_v14 }
0x1d18   :  { %v6510_v16 = vpop.f32.mrf.mxu1  ;;  %v6550_v54 = vpop.f32.mrf.mxu0 }
0x1d19   :  { %v11441_v54 = vld [vmem:[%s13307_s1 + $0x3b] ss:$0 sm:$0xff] }
0x1d1a   :  { %v6511_v32 = vpop.f32.mrf.mxu1  ;;  %v6551_v13 = vpop.f32.mrf.mxu0 }
0x1d24   :  { %v6587_v24 = vpop.f32.mrf.mxu1  ;;  %v6627_v2 = vpop.f32.mrf.mxu0 }
0x1d25   :  { %v6588_v33 = vadd.f32 %v6587_v24, %v6548_v38 }
0x1d26   :  { %v6589_v10 = vpop.f32.mrf.mxu1  ;;  %v6629_v23 = vpop.f32.mrf.mxu0 }
0x1d27   :  { %v6628_v25 = vadd.f32 %v6627_v2, %v6588_v33 }
0x1d28   :  { %v6590_v3 = vpop.f32.mrf.mxu1  ;;  %v6630_v41 = vpop.f32.mrf.mxu0 }
0x1d29   :  { %v11442_v41 = vld [vmem:[%s13307_s1 + $0x3c] ss:$0 sm:$0xff] }
0x1d2a   :  { %v6591_v35 = vpop.f32.mrf.mxu1  ;;  %v6631_v22 = vpop.f32.mrf.mxu0 }
0x1d34   :  { %v6667_v26 = vpop.f32.mrf.mxu1 }
0x1d35   :  { %v6707_v47 = vpop.f32.mrf.mxu0  ;;  %v6668_v49 = vadd.f32 %v6667_v26, %v6628_v25 }
0x1d36   :  { %v6669_v39 = vpop.f32.mrf.mxu1 }
0x1d37   :  { %v6709_v48 = vpop.f32.mrf.mxu0  ;;  %v6708_v31 = vadd.f32 %v6707_v47, %v6668_v49 }
0x1d38   :  { %v6670_v11 = vpop.f32.mrf.mxu1 }
0x1d39   :  { %v6710_v15 = vpop.f32.mrf.mxu0 }
0x1d3a   :  { %v6671_v36 = vpop.f32.mrf.mxu1 }
0x1d3b   :  { %v6711_v37 = vpop.f32.mrf.mxu0 }
0x1d44   :  { %v6747_v18 = vpop.f32.mrf.mxu1 }
0x1d45   :  { %v6748_v42 = vadd.f32 %v6747_v18, %v6708_v31  ;;  %v6787_v52 = vpop.f32.mrf.mxu0  ;;  %v11444_v31 = vld [vmem:[%s13307_s1 + $0x3d] ss:$0 sm:$0xff] }
0x1d46   :  { %v6749_v20 = vpop.f32.mrf.mxu1 }
0x1d47   :  { %v6788_v34 = vadd.f32 %v6787_v52, %v6748_v42  ;;  %v6789_v21 = vpop.f32.mrf.mxu0  ;;  %v11446_v42 = vld [vmem:[%s13307_s1 + $0x3f] ss:$0 sm:$0xff]  ;;  %v11445_v52 = vld [vmem:[%s13307_s1 + $0x3e] ss:$0 sm:$0xff] }
0x1d48   :  { %v6750_v40 = vpop.f32.mrf.mxu1 }
0x1d49   :  { %v6790_v55 = vpop.f32.mrf.mxu0  ;;  %v6793_v51 = vadd.f32 %v6788_v34, %v12761_v53 }
0x1d4a   :  { %v6751_v56 = vpop.f32.mrf.mxu1 }
0x1d4b   :  { %v6791_v62 = vpop.f32.mrf.mxu0  ;;  %v6794_v1 = vsel %vm148_vm2, %v6793_v51, 0.0 }
0x1d4c   :  { %6795 = vadd.xlane.f32.xlu0 %v6794_v1 }
0x1d62   :  { %6827 = vrot.lane.b32.xlu0 %v12721_v8, %s12057_s15 }
0x1dd5   :  { %v6796_v46 = vpop.xlane.xlu0 %6795 }
0x1dd6   :  { %v6797_v5 = vmul.f32 0.03125, %v6796_v46 }
0x1dd8   :  { %v6798_v7 = vsub.f32 %v6793_v51, %v6797_v5  ;;  %v6994_v5 = vld [vmem:[#allocation5 + $0x580] sm:$0xff] }
0x1dd9   :  { %v6828_v53 = vpop.permute.xlu0 %6827 }
0x1dda   :  { %v6799_v4 = vmul.f32 %v6798_v7, %v6798_v7  ;;  %11829 = vmatpush3.bf16.msra.mxu1 %v6828_v53  ;;  %v7003_v53 = vld [vmem:[#allocation5 + $0x5c8] sm:$0xff] }
0x1ddb   :  { %11830 = vmatprep.subr.bf16.mxu1 %v12054_v0 }
0x1ddc   :  { %v6800_v59 = vsel %vm148_vm2, %v6799_v4, 0.0  ;;  %v6995_v4 = vld [vmem:[#allocation5 + $0x588] sm:$0xff] }
0x1ddd   :  { %6801 = vadd.xlane.f32.xlu1 %v6800_v59 }
0x1dee   :  { %6825 = vrot.lane.b32.xlu1 %v12724_v9, %s12057_s15 }
0x1df2   :  { %6907 = vrot.lane.b32.xlu1 %v12711_v63, %s12058_s14 }
0x1df6   :  { %6905 = vrot.lane.b32.xlu1 %v12717_v19, %s12058_s14  ;;  %v11440_v19 = vld [vmem:[%s13307_s1 + $0x3a] ss:$0 sm:$0xff] }
0x1e66   :  { %v6802_v8 = vpop.xlane.xlu1 %6801 }
0x1e67   :  { %v6803_v12 = vmul.f32 0.03125, %v6802_v8 }
0x1e69   :  { %v6804_v45 = vadd.f32 1e-05, %v6803_v12  ;;  %v11472_v12 = vcombine.low %v6995_v4, %v7003_v53 }
0x1e6a   :  { %v6826_v50 = vpop.permute.xlu1 %6825 }
0x1e6b   :  { %11930 = vrsqrt.f32 %v6804_v45  ;;  %11831 = vmatpush3.bf16.msra.mxu1 %v6826_v50  ;;  %v11473_v45 = vcombine.high %v6995_v4, %v7003_v53  ;;  %v6978_v50 = vld [vmem:[#allocation5 + $0x500] sm:$0xff]  ;;  %v7008_v53 = vld [vmem:[#allocation5 + $0x5f0] sm:$0xff] }
0x1e6e   :  { %v6908_v61 = vpop.permute.xlu1 %6907 }
0x1e6f   :  { %11837 = vmatpush3.bf16.msra.mxu0 %v6908_v61  ;;  %v6986_v61 = vld [vmem:[#allocation5 + $0x540] sm:$0xff] }
0x1e70   :  { %11838 = vmatprep.subr.bf16.mxu0 %v12054_v0 }
0x1e72   :  { %v6906_v9 = vpop.permute.xlu1 %6905 }
0x1e73   :  { %11839 = vmatpush3.bf16.msra.mxu0 %v6906_v9  ;;  %v6979_v9 = vld [vmem:[#allocation5 + $0x508] sm:$0xff] }
0x1e74   :  { %7317 = vmatprep.subr.bf16.mxu0 %v11473_v45 }
0x1e76   :  { %11841 = vmatmul.mubr.msk.bf16.vlgmr.msra.gmra.mxu0 %vm197_vm3, %v12450_v6 }
0x1e77   :  { %7337 = vmatprep.mubr.bf16.mxu0 %v12056_v60  ;;  %7318 = vmatpush1.bf16.msra.mxu0 %v11472_v12  ;;  %v7009_v12 = vld [vmem:[#allocation5 + $0x5f8] sm:$0xff] }
0x1e78   :  { %v11931_v63 = vpop.eup %11930 }
0x1e79   :  { %v6806_v16 = vmul.f32 %v11931_v63, %v6798_v7  ;;  %v7002_v7 = vld [vmem:[#allocation5 + $0x5c0] sm:$0xff]  ;;  %v11455_v63 = vcombine.high %v6978_v50, %v6986_v61 }
0x1e7a   :  { %v11471_v59 = vcombine.high %v6994_v5, %v7002_v7  ;;  %v11470_v8 = vcombine.low %v6994_v5, %v7002_v7 }
0x1e7b   :  { %v6812_v32 = vmul.f32 %v11440_v19, %v6806_v16  ;;  %v6987_v19 = vld [vmem:[#allocation5 + $0x548] sm:$0xff]  ;;  %v11454_v16 = vcombine.low %v6978_v50, %v6986_v61 }
0x1e7c   :  { %7276 = vmatprep.subr.bf16.mxu1 %v11471_v59  ;;  %v7000_v59 = vld [vmem:[#allocation5 + $0x5b0] sm:$0xff] }
0x1e7d   :  { %v6818_v13 = vadd.f32 %v11441_v54, %v6812_v32  ;;  %v11456_v54 = vcombine.low %v6979_v9, %v6987_v19  ;;  %v11457_v32 = vcombine.high %v6979_v9, %v6987_v19  ;;  %v11483_v61 = vcombine.high %v7000_v59, %v7008_v53  ;;  %v6992_v19 = vld [vmem:[#allocation5 + $0x570] sm:$0xff] }
0x1e7f   :  { %v6820_v24 = vpack.c.bf16 %v6818_v13, %v6818_v13  ;;  %7319 = vmatprep.subr.bf16.mxu0 %v11457_v32  ;;  %v11482_v32 = vcombine.low %v7000_v59, %v7008_v53 }
0x1e80   :  { %7320 = vmatpush1.bf16.msra.mxu0 %v11456_v54  ;;  %v6993_v54 = vld [vmem:[#allocation5 + $0x578] sm:$0xff] }
0x1e81   :  { %11833 = vmatmul.mubr.msk.bf16.vlgmr.msra.gmra.mxu1 %vm197_vm3, %v6820_v24  ;;  %v7004_v24 = vld [vmem:[#allocation5 + $0x5d0] sm:$0xff] }
0x1e82   :  { %7296 = vmatprep.mubr.bf16.mxu1 %v12056_v60  ;;  %7277 = vmatpush1.bf16.msra.mxu1 %v11470_v8  ;;  %v7001_v8 = vld [vmem:[#allocation5 + $0x5b8] sm:$0xff] }
0x1e83   :  { %7278 = vmatprep.subr.bf16.mxu1 %v11455_v63  ;;  %v11485_v9 = vcombine.high %v7001_v8, %v7009_v12  ;;  %v6984_v63 = vld [vmem:[#allocation5 + $0x530] sm:$0xff] }
0x1e86   :  { %7279 = vmatpush1.bf16.msra.mxu1 %v11454_v16  ;;  %v6985_v16 = vld [vmem:[#allocation5 + $0x538] sm:$0xff] }
0x1f36   :  { %v6945_v2 = vpop.f32.mrf.mxu0 }
0x1f37   :  { %v6946_v34 = vadd.f32 %v11446_v42, %v6945_v2  ;;  %v6997_v2 = vld [vmem:[#allocation5 + $0x598] sm:$0xff]  ;;  %v7006_v42 = vld [vmem:[#allocation5 + $0x5e0] sm:$0xff] }
0x1f38   :  { %v11842_v10 = vpop.f32.mrf.mxu0 }
0x1f3a   :  { %v6948_v23 = vpop.f32.mrf.mxu0 }
0x1f3c   :  { %v11843_v3 = vpop.f32.mrf.mxu0 }
0x1f3d   :  { %v7005_v3 = vld [vmem:[#allocation5 + $0x5d8] sm:$0xff] }
0x1f41   :  { %v6868_v35 = vpop.f32.mrf.mxu1 }
0x1f42   :  { %v6869_v22 = vadd.f32 %v11442_v41, %v6868_v35  ;;  %v11476_v41 = vcombine.low %v6997_v2, %v7005_v3  ;;  %v11477_v35 = vcombine.high %v6997_v2, %v7005_v3  ;;  %v11469_v2 = vcombine.high %v6985_v16, %v6993_v54  ;;  %v7626_v3 = vld [vmem:[#allocation7 + $0x588] sm:$0xff] }
0x1f43   :  { %v11834_v17 = vpop.f32.mrf.mxu1 }
0x1f44   :  { %v6874_v14 = vadd.f32 %v6869_v22, %v6818_v13  ;;  %v6996_v13 = vld [vmem:[#allocation5 + $0x590] sm:$0xff]  ;;  %7399 = vmatprep.subr.bf16.mxu0 %v11477_v35  ;;  %v11466_v35 = vcombine.low %v6984_v63, %v6992_v19 }
0x1f45   :  { %v6871_v26 = vpop.f32.mrf.mxu1  ;;  %v11474_v10 = vcombine.low %v6996_v13, %v7004_v24  ;;  %v11475_v23 = vcombine.high %v6996_v13, %v7004_v24  ;;  %v11484_v13 = vcombine.low %v7001_v8, %v7009_v12  ;;  %v11467_v24 = vcombine.high %v6984_v63, %v6992_v19  ;;  %v12946_v19 = vld [vmem:[#allocation7 + $0x510] sm:$0xff] }
0x1f46   :  { %v6875_v47 = vsel %vm148_vm2, %v6874_v14, 0.0 }
0x1f47   :  { %6876 = vadd.xlane.f32.xlu0 %v6875_v47  ;;  %v11835_v39 = vpop.f32.mrf.mxu1  ;;  %7358 = vmatprep.subr.bf16.mxu1 %v11475_v23  ;;  %v11448_v47 = vld [vmem:[%s13307_s1 + $0x40] ss:$0 sm:$0xff] }
0x1f48   :  { %v7633_v23 = vld [vmem:[#allocation7 + $0x5c0] sm:$0xff] }
0x1fd0   :  { %v6877_v38 = vpop.xlane.xlu0 %6876 }
0x1fd1   :  { %v6878_v48 = vmul.f32 0.03125, %v6877_v38  ;;  %v11449_v38 = vld [vmem:[%s13307_s1 + $0x41] ss:$0 sm:$0xff] }
0x1fd3   :  { %v6879_v11 = vsub.f32 %v6874_v14, %v6878_v48 }
0x1fd5   :  { %v6880_v33 = vmul.f32 %v6879_v11, %v6879_v11 }
0x1fd7   :  { %v6881_v15 = vsel %vm148_vm2, %v6880_v33, 0.0  ;;  %v6988_v33 = vld [vmem:[#allocation5 + $0x550] sm:$0xff] }
0x1fd8   :  { %6882 = vadd.xlane.f32.xlu1 %v6881_v15  ;;  %v6981_v15 = vld [vmem:[#allocation5 + $0x518] sm:$0xff] }
0x2061   :  { %v6883_v36 = vpop.xlane.xlu1 %6882 }
0x2062   :  { %v6884_v37 = vmul.f32 0.03125, %v6883_v36  ;;  %v6989_v36 = vld [vmem:[#allocation5 + $0x558] sm:$0xff] }
0x2064   :  { %v6885_v25 = vadd.f32 1e-05, %v6884_v37 }
0x2066   :  { %11932 = vrsqrt.f32 %v6885_v25 }
0x2073   :  { %v11933_v49 = vpop.eup %11932 }
0x2074   :  { %v6887_v18 = vmul.f32 %v11933_v49, %v6879_v11  ;;  %v6980_v11 = vld [vmem:[#allocation5 + $0x510] sm:$0xff] }
0x2075   :  { %v11459_v49 = vcombine.high %v6980_v11, %v6988_v33 }
0x2076   :  { %v6893_v20 = vmul.f32 %v11444_v31, %v6887_v18  ;;  %v11461_v31 = vcombine.high %v6981_v15, %v6989_v36  ;;  %v6998_v18 = vld [vmem:[#allocation5 + $0x5a0] sm:$0xff] }
0x2078   :  { %v6899_v21 = vadd.f32 %v11445_v52, %v6893_v20  ;;  %v6999_v52 = vld [vmem:[#allocation5 + $0x5a8] sm:$0xff] }
0x2079   :  { %v7007_v20 = vld [vmem:[#allocation5 + $0x5e8] sm:$0xff] }
0x207a   :  { %v6951_v40 = vadd.f32 %v6946_v34, %v6899_v21  ;;  %v11458_v34 = vcombine.low %v6980_v11, %v6988_v33  ;;  %v11460_v21 = vcombine.low %v6981_v15, %v6989_v36  ;;  %v11480_v5 = vcombine.low %v6999_v52, %v7007_v20  ;;  %v7618_v33 = vld [vmem:[#allocation7 + $0x548] sm:$0xff] }
0x207c   :  { %v6952_v55 = vsel %vm148_vm2, %v6951_v40, 0.0 }
0x207d   :  { %6953 = vadd.xlane.f32.xlu0 %v6952_v55  ;;  %v11481_v55 = vcombine.high %v6999_v52, %v7007_v20  ;;  %v7636_v20 = vld [vmem:[#allocation7 + $0x5d8] sm:$0xff] }
0x2106   :  { %v6954_v51 = vpop.xlane.xlu0 %6953 }
0x2107   :  { %v6955_v56 = vmul.f32 0.03125, %v6954_v51  ;;  %v6982_v51 = vld [vmem:[#allocation5 + $0x520] sm:$0xff] }
0x2109   :  { %v6956_v62 = vsub.f32 %v6951_v40, %v6955_v56  ;;  %v11479_v40 = vcombine.high %v6998_v18, %v7006_v42  ;;  %v6990_v56 = vld [vmem:[#allocation5 + $0x560] sm:$0xff] }
0x210a   :  { %v11463_v7 = vcombine.high %v6982_v51, %v6990_v56  ;;  %v11462_v45 = vcombine.low %v6982_v51, %v6990_v56 }
0x210b   :  { %v6957_v1 = vmul.f32 %v6956_v62, %v6956_v62 }
0x210d   :  { %v6958_v46 = vsel %vm148_vm2, %v6957_v1, 0.0  ;;  %v6991_v1 = vld [vmem:[#allocation5 + $0x568] sm:$0xff] }
0x210e   :  { %6959 = vadd.xlane.f32.xlu0 %v6958_v46  ;;  %v11478_v46 = vcombine.low %v6998_v18, %v7006_v42  ;;  %v7635_v18 = vld [vmem:[#allocation7 + $0x5d0] sm:$0xff]  ;;  %v7628_v42 = vld [vmem:[#allocation7 + $0x598] sm:$0xff] }
0x2197   :  { %v6960_v22 = vpop.xlane.xlu0 %6959 }
0x2198   :  { %v6961_v17 = vmul.f32 0.03125, %v6960_v22  ;;  %v11468_v22 = vcombine.low %v6985_v16, %v6993_v54 }
0x219a   :  { %v6962_v14 = vadd.f32 1e-05, %v6961_v17 }
0x219c   :  { %11934 = vrsqrt.f32 %v6962_v14 }
0x21a9   :  { %v11935_v26 = vpop.eup %11934 }
0x21aa   :  { %v6964_v39 = vmul.f32 %v11935_v26, %v6956_v62  ;;  %v6983_v62 = vld [vmem:[#allocation5 + $0x528] sm:$0xff] }
0x21ab   :  { %v11465_v4 = vcombine.high %v6983_v62, %v6991_v1  ;;  %v11464_v50 = vcombine.low %v6983_v62, %v6991_v1 }
0x21ac   :  { %v6970_v48 = vmul.f32 %v11448_v47, %v6964_v39  ;;  %v7609_v39 = vld [vmem:[#allocation7 + $0x500] sm:$0xff] }
0x21ae   :  { %v12902_v37 = vadd.f32 %v11449_v38, %v6970_v48  ;;  %v7617_v38 = vld [vmem:[#allocation7 + $0x540] sm:$0xff]  ;;  %v7610_v48 = vld [vmem:[#allocation7 + $0x508] sm:$0xff] }
0x21af   :  { %v11496_v11 = vcombine.high %v7609_v39, %v7617_v38  ;;  %v11495_v15 = vcombine.low %v7609_v39, %v7617_v38  ;;  %v11497_v36 = vcombine.low %v7610_v48, %v7618_v33 }
0x21b0   :  { %v12906_v25 = vpack.c.bf16 %v12902_v37, %v12902_v37 }
0x21b2   :  { %11486 = vmatmul.mubr.msk.bf16.vlgmr.msra.gmra.mxu1 %vm197_vm3, %v12906_v25  ;;  %11487 = vmatmul.mubr.msk.bf16.vlgmr.msra.gmra.mxu0 %vm197_vm3, %v12906_v25 }
0x21b3   :  { %7359 = vmatpush1.bf16.msra.mxu1 %v11474_v10  ;;  %7400 = vmatpush1.bf16.msra.mxu0 %v11476_v41  ;;  %v7625_v10 = vld [vmem:[#allocation7 + $0x580] sm:$0xff]  ;;  %v7634_v41 = vld [vmem:[#allocation7 + $0x5c8] sm:$0xff] }
0x21b4   :  { %7360 = vmatprep.subr.bf16.mxu1 %v11459_v49  ;;  %7401 = vmatprep.subr.bf16.mxu0 %v11461_v31  ;;  %v11512_v17 = vcombine.high %v7625_v10, %v7633_v23  ;;  %v11514_v14 = vcombine.high %v7626_v3, %v7634_v41  ;;  %v11511_v26 = vcombine.low %v7625_v10, %v7633_v23  ;;  %v7627_v31 = vld [vmem:[#allocation7 + $0x590] sm:$0xff] }
0x21b5   :  { %7378 = vmatprep.mubr.bf16.mxu1 %v12056_v60  ;;  %7419 = vmatprep.mubr.bf16.mxu0 %v12056_v60  ;;  %v11513_v47 = vcombine.low %v7626_v3, %v7634_v41  ;;  %v11498_v49 = vcombine.high %v7610_v48, %v7618_v33  ;;  %v11516_v52 = vcombine.high %v7627_v31, %v7635_v18  ;;  %v11453_v33 = vld [vmem:[%s13308_s2 + $0x45] ss:$8 sm:$0xf0] }
0x21b7   :  { %7361 = vmatpush1.bf16.msra.mxu1 %v11458_v34  ;;  %7402 = vmatpush1.bf16.msra.mxu0 %v11460_v21  ;;  %v11517_v34 = vcombine.low %v7628_v42, %v7636_v20  ;;  %v11518_v21 = vcombine.high %v7628_v42, %v7636_v20 }
0x21b8   :  { %7440 = vmatprep.subr.bf16.mxu1 %v11479_v40  ;;  %7481 = vmatprep.subr.bf16.mxu0 %v11481_v55  ;;  %v11450_v40 = vld [vmem:[%s13308_s2 + $0x5] ss:$8 sm:$0xf] }
0x21b9   :  { %v11451_v55 = vld [vmem:[%s13308_s2 + $0x5] ss:$8 sm:$0xf0] }
0x21ba   :  { %11488 = vmatmul.mubr.msk.bf16.vlgmr.msra.gmra.mxu1 %vm197_vm3, %v12906_v25  ;;  %11489 = vmatmul.mubr.msk.bf16.vlgmr.msra.gmra.mxu0 %vm197_vm3, %v12906_v25  ;;  %v12936_v51 = vor.u32 %v11451_v55, %v11450_v40  ;;  %v7637_v55 = vld [vmem:[#allocation7 + $0x5e0] sm:$0xff] }
0x21bb   :  { %7441 = vmatpush1.bf16.msra.mxu1 %v11478_v46  ;;  %7482 = vmatpush1.bf16.msra.mxu0 %v11480_v5 }
0x21bc   :  { %7442 = vmatprep.subr.bf16.mxu1 %v11463_v7  ;;  %7483 = vmatprep.subr.bf16.mxu0 %v11465_v4  ;;  %v7024_v56 = vrot.slane %v12936_v51, %v12214_v27  ;;  %v7032_v62 = vrot.slane %v12936_v51, %v12216_v28  ;;  %v7028_v1 = vrot.slane %v12936_v51, %v12218_v29 }
0x21bd   :  { %7460 = vmatprep.mubr.bf16.mxu1 %v12056_v60  ;;  %7501 = vmatprep.mubr.bf16.mxu0 %v12056_v60  ;;  %v7036_v46 = vrot.slane %v12936_v51, %v12220_v30  ;;  %v7044_v41 = vrot.slane %v12936_v51, %v12230_v43 }
0x21bf   :  { %7443 = vmatpush1.bf16.msra.mxu1 %v11462_v45  ;;  %7484 = vmatpush1.bf16.msra.mxu0 %v11464_v50 }
0x21c0   :  { %7522 = vmatprep.subr.bf16.mxu1 %v11483_v61  ;;  %7563 = vmatprep.subr.bf16.mxu0 %v11485_v9 }
0x21c2   :  { %11490 = vmatmul.mubr.msk.bf16.vlgmr.msra.gmra.mxu1 %vm197_vm3, %v12906_v25  ;;  %11491 = vmatmul.mubr.msk.bf16.vlgmr.msra.gmra.mxu0 %vm197_vm3, %v12906_v25 }
0x21c3   :  { %7523 = vmatpush1.bf16.msra.mxu1 %v11482_v32  ;;  %7564 = vmatpush1.bf16.msra.mxu0 %v11484_v13  ;;  %v7619_v32 = vld [vmem:[#allocation7 + $0x550] sm:$0xff]  ;;  %v7612_v13 = vld [vmem:[#allocation7 + $0x518] sm:$0xff] }
0x21c4   :  { %7524 = vmatprep.subr.bf16.mxu1 %v11467_v24  ;;  %7565 = vmatprep.subr.bf16.mxu0 %v11469_v2  ;;  %v7620_v24 = vld [vmem:[#allocation7 + $0x558] sm:$0xff] }
0x21c5   :  { %7542 = vmatprep.mubr.bf16.mxu1 %v12056_v60  ;;  %7583 = vmatprep.mubr.bf16.mxu0 %v12056_v60  ;;  %v11502_v39 = vcombine.high %v7612_v13, %v7620_v24 }
0x21c7   :  { %7525 = vmatpush1.bf16.msra.mxu1 %v11466_v35  ;;  %7566 = vmatpush1.bf16.msra.mxu0 %v11468_v22  ;;  %v7052_v35 = vrot.slane %v12936_v51, %v12232_v44 }
0x21c8   :  { %7834 = vmatprep.subr.bf16.mxu1 %v11512_v17  ;;  %7874 = vmatprep.subr.bf16.mxu0 %v11514_v14 }
0x21ca   :  { %11492 = vmatmul.mubr.msk.bf16.vlgmr.msra.gmra.mxu1 %vm197_vm3, %v12906_v25  ;;  %11493 = vmatmul.mubr.msk.bf16.vlgmr.msra.gmra.mxu0 %vm197_vm3, %v12906_v25  ;;  %v11515_v25 = vcombine.low %v7627_v31, %v7635_v18  ;;  %v7048_v31 = vrot.slane %v12936_v51, %v12238_v58 }
0x21cb   :  { %7835 = vmatpush1.bf16.xpose.msra.mxu1 %v11511_v26  ;;  %7875 = vmatpush1.bf16.xpose.msra.mxu0 %v11513_v47  ;;  %v11500_v47 = vcombine.high %v12946_v19, %v7619_v32 }
0x21cc   :  { %7836 = vmatprep.subr.bf16.mxu1 %v11496_v11  ;;  %7876 = vmatprep.subr.bf16.mxu0 %v11498_v49  ;;  %v11452_v11 = vld [vmem:[%s13308_s2 + $0x45] ss:$8 sm:$0xf]  ;;  %v7040_v49 = vrot.slane %v12936_v51, %v12236_v57 }
0x21cd   :  { %v12963_v40 = vor.u32 %v11453_v33, %v11452_v11 }
0x21cf   :  { %v7060_v51 = vrot.slane %v12963_v40, %v12218_v29 }
0x21d3   :  { %7837 = vmatpush1.bf16.xpose.msra.mxu1 %v11495_v15  ;;  %7877 = vmatpush1.bf16.xpose.msra.mxu0 %v11497_v36 }
0x21d4   :  { %7914 = vmatprep.subr.bf16.mxu1 %v11516_v52  ;;  %7954 = vmatprep.subr.bf16.mxu0 %v11518_v21  ;;  %v7629_v52 = vld [vmem:[#allocation7 + $0x5a0] sm:$0xff] }
0x2272   :  { %v7298_v5 = vpop.f32.mrf.mxu1  ;;  %v7339_v7 = vpop.f32.mrf.mxu0 }
0x2273   :  { %v7299_v4 = vadd.f32 %v7298_v5, %v7024_v56  ;;  %v7340_v59 = vadd.f32 %v7339_v7, %v7032_v62  ;;  %v7630_v56 = vld [vmem:[#allocation7 + $0x5a8] sm:$0xff] }
0x2274   :  { %v7300_v53 = vpop.f32.mrf.mxu1  ;;  %v7341_v8 = vpop.f32.mrf.mxu0  ;;  %v7638_v62 = vld [vmem:[#allocation7 + $0x5e8] sm:$0xff] }
0x2275   :  { %v7301_v12 = vadd.f32 %v7300_v53, %v7028_v1  ;;  %v7342_v45 = vadd.f32 %v7341_v8, %v7036_v46  ;;  %v7592_v50 = vmax.f32 %v7299_v4, 0.0  ;;  %v7594_v61 = vmax.f32 %v7340_v59, 0.0 }
0x2276   :  { %v7302_v9 = vpop.f32.mrf.mxu1  ;;  %v7343_v63 = vpop.f32.mrf.mxu0  ;;  %v11499_v1 = vcombine.low %v12946_v19, %v7619_v32  ;;  %v11501_v46 = vcombine.low %v7612_v13, %v7620_v24  ;;  %v7068_v4 = vrot.slane %v12963_v40, %v12220_v30  ;;  %v11521_v11 = vcombine.low %v7630_v56, %v7638_v62 }
0x2277   :  { %v7593_v16 = vmax.f32 %v7301_v12, 0.0  ;;  %v7595_v54 = vmax.f32 %v7342_v45, 0.0  ;;  %v7642_v22 = vpack.c.bf16 %v7592_v50, %v7592_v50  ;;  %v7644_v17 = vpack.c.bf16 %v7594_v61, %v7594_v61 }
0x2278   :  { %v7303_v2 = vpop.f32.mrf.mxu1  ;;  %v7344_v10 = vpop.f32.mrf.mxu0  ;;  %v11520_v45 = vcombine.high %v7629_v52, %v7637_v55  ;;  %v11522_v50 = vcombine.high %v7630_v56, %v7638_v62 }
0x2279   :  { %v7643_v23 = vpack.c.bf16 %v7593_v16, %v7593_v16  ;;  %v7645_v3 = vpack.c.bf16 %v7595_v54, %v7595_v54  ;;  %v7613_v10 = vld [vmem:[#allocation7 + $0x520] sm:$0xff] }
0x227a   :  { %v7380_v14 = vpop.f32.mrf.mxu1  ;;  %v7421_v26 = vpop.f32.mrf.mxu0 }
0x227b   :  { %7854 = vmatprep.mubr.bf16.mxu1 %v7643_v23  ;;  %7894 = vmatprep.mubr.bf16.mxu0 %v7645_v3  ;;  %v7381_v59 = vadd.f32 %v7380_v14, %v7040_v49  ;;  %v7422_v53 = vadd.f32 %v7421_v26, %v7048_v31  ;;  %v11519_v14 = vcombine.low %v7629_v52, %v7637_v55 }
0x227c   :  { %v7382_v38 = vpop.f32.mrf.mxu1  ;;  %v7423_v48 = vpop.f32.mrf.mxu0  ;;  %7855 = vmatmul.mubr.bf16.vlgmr.msra.gmra.mxu1 %v7642_v22  ;;  %7895 = vmatmul.mubr.bf16.vlgmr.msra.gmra.mxu0 %v7644_v17  ;;  %v7622_v22 = vld [vmem:[#allocation7 + $0x568] sm:$0xff]  ;;  %v7056_v31 = vrot.slane %v12963_v40, %v12214_v27  ;;  %v7064_v52 = vrot.slane %v12963_v40, %v12216_v28  ;;  %v7076_v55 = vrot.slane %v12963_v40, %v12230_v43 }
0x227d   :  { %v7383_v15 = vadd.f32 %v7382_v38, %v7044_v41  ;;  %v7424_v36 = vadd.f32 %v7423_v48, %v7052_v35  ;;  %7915 = vmatpush1.bf16.xpose.msra.mxu1 %v11515_v25  ;;  %7955 = vmatpush1.bf16.xpose.msra.mxu0 %v11517_v34  ;;  %v7596_v16 = vmax.f32 %v7381_v59, 0.0  ;;  %v7598_v54 = vmax.f32 %v7422_v53, 0.0  ;;  %v7621_v41 = vld [vmem:[#allocation7 + $0x560] sm:$0xff]  ;;  %v7614_v35 = vld [vmem:[#allocation7 + $0x528] sm:$0xff] }
0x227e   :  { %v7384_v18 = vpop.f32.mrf.mxu1  ;;  %v7425_v42 = vpop.f32.mrf.mxu0  ;;  %7916 = vmatprep.subr.bf16.mxu1 %v11500_v47  ;;  %7956 = vmatprep.subr.bf16.mxu0 %v11502_v39  ;;  %v11504_v33 = vcombine.high %v7613_v10, %v7621_v41 }
0x227f   :  { %v7597_v20 = vmax.f32 %v7383_v15, 0.0  ;;  %v7599_v21 = vmax.f32 %v7424_v36, 0.0  ;;  %v7646_v26 = vpack.c.bf16 %v7596_v16, %v7596_v16  ;;  %v7648_v47 = vpack.c.bf16 %v7598_v54, %v7598_v54 }
0x2280   :  { %v7385_v25 = vpop.f32.mrf.mxu1  ;;  %v7426_v34 = vpop.f32.mrf.mxu0  ;;  %v11506_v15 = vcombine.high %v7614_v35, %v7622_v22 }
0x2281   :  { %v7647_v5 = vpack.c.bf16 %v7597_v20, %v7597_v20  ;;  %v7649_v7 = vpack.c.bf16 %v7599_v21, %v7599_v21  ;;  %v7631_v20 = vld [vmem:[#allocation7 + $0x5b0] sm:$0xff]  ;;  %v7632_v25 = vld [vmem:[#allocation7 + $0x5b8] sm:$0xff] }
0x2282   :  { %v7462_v8 = vpop.f32.mrf.mxu1  ;;  %v7503_v12 = vpop.f32.mrf.mxu0  ;;  %v7639_v21 = vld [vmem:[#allocation7 + $0x5f0] sm:$0xff]  ;;  %v7640_v34 = vld [vmem:[#allocation7 + $0x5f8] sm:$0xff] }
0x2283   :  { %7934 = vmatprep.mubr.bf16.mxu1 %v7647_v5  ;;  %7974 = vmatprep.mubr.bf16.mxu0 %v7649_v7  ;;  %v7463_v5 = vadd.f32 %v7462_v8, %v7056_v31  ;;  %v11505_v7 = vcombine.low %v7614_v35, %v7622_v22  ;;  %v11526_v59 = vcombine.high %v7632_v25, %v7640_v34 }
0x2284   :  { %v7464_v61 = vpop.f32.mrf.mxu1  ;;  %v7505_v9 = vpop.f32.mrf.mxu0  ;;  %v11523_v54 = vcombine.low %v7631_v20, %v7639_v21  ;;  %v7080_v35 = vrot.slane %v12963_v40, %v12238_v58 }
0x2285   :  { %v7465_v63 = vadd.f32 %v7464_v61, %v7060_v51  ;;  %v7506_v19 = vadd.f32 %v7505_v9, %v7068_v4  ;;  %7917 = vmatpush1.bf16.xpose.msra.mxu1 %v11499_v1  ;;  %7957 = vmatpush1.bf16.xpose.msra.mxu0 %v11501_v46  ;;  %v7084_v1 = vrot.slane %v12963_v40, %v12232_v44 }
0x2286   :  { %v7466_v32 = vpop.f32.mrf.mxu1  ;;  %v7507_v13 = vpop.f32.mrf.mxu0  ;;  %7994 = vmatprep.subr.bf16.mxu1 %v11520_v45  ;;  %8034 = vmatprep.subr.bf16.mxu0 %v11522_v50  ;;  %v11503_v46 = vcombine.low %v7613_v10, %v7621_v41  ;;  %v11524_v51 = vcombine.high %v7631_v20, %v7639_v21  ;;  %v7504_v4 = vadd.f32 %v7503_v12, %v7064_v52  ;;  %v7600_v50 = vmax.f32 %v7463_v5, 0.0 }
0x2287   :  { %v7601_v24 = vmax.f32 %v7465_v63, 0.0  ;;  %v7603_v2 = vmax.f32 %v7506_v19, 0.0  ;;  %v7615_v63 = vld [vmem:[#allocation7 + $0x530] sm:$0xff]  ;;  %v7616_v32 = vld [vmem:[#allocation7 + $0x538] sm:$0xff]  ;;  %v7072_v41 = vrot.slane %v12963_v40, %v12236_v57 }
0x2288   :  { %v7467_v23 = vpop.f32.mrf.mxu1  ;;  %v7508_v3 = vpop.f32.mrf.mxu0  ;;  %v7602_v61 = vmax.f32 %v7504_v4, 0.0  ;;  %v7623_v19 = vld [vmem:[#allocation7 + $0x570] sm:$0xff]  ;;  %v7624_v13 = vld [vmem:[#allocation7 + $0x578] sm:$0xff]  ;;  %v7650_v8 = vpack.c.bf16 %v7600_v50, %v7600_v50 }
0x2289   :  { %v7651_v17 = vpack.c.bf16 %v7601_v24, %v7601_v24  ;;  %v7653_v39 = vpack.c.bf16 %v7603_v2, %v7603_v2  ;;  %v11525_v24 = vcombine.low %v7632_v25, %v7640_v34  ;;  %v11508_v12 = vcombine.high %v7615_v63, %v7623_v19 }
0x228a   :  { %v12970_v38 = vpop.f32.mrf.mxu1  ;;  %v12972_v48 = vpop.f32.mrf.mxu0  ;;  %v7652_v2 = vpack.c.bf16 %v7602_v61, %v7602_v61  ;;  %v11510_v23 = vcombine.high %v7616_v32, %v7624_v13  ;;  %v11507_v22 = vcombine.low %v7615_v63, %v7623_v19 }
0x228c   :  { %7935 = vmatmul.mubr.bf16.vlgmr.msra.gmra.mxu1 %v7646_v26  ;;  %7975 = vmatmul.mubr.bf16.vlgmr.msra.gmra.mxu0 %v7648_v47  ;;  %v7546_v36 = vpop.f32.mrf.mxu1  ;;  %v7587_v49 = vpop.f32.mrf.mxu0  ;;  %v7586_v26 = vadd.f32 %v12972_v48, %v7080_v35 }
0x228d   :  { %7995 = vmatpush1.bf16.xpose.msra.mxu1 %v11519_v14  ;;  %8014 = vmatprep.mubr.bf16.mxu1 %v7651_v17  ;;  %v7547_v53 = vadd.f32 %v7546_v36, %v7076_v55  ;;  %v7588_v45 = vadd.f32 %v7587_v49, %v7084_v1  ;;  %v7545_v17 = vadd.f32 %v12970_v38, %v7072_v41  ;;  %v12992_v38 = vld [vmem:[#allocation2 + $0xc] ss:$16 sps:$4 sm:$0xff]  }
0x228e   :  { %8035 = vmatpush1.bf16.xpose.msra.mxu0 %v11521_v11  ;;  %8054 = vmatprep.mubr.bf16.mxu0 %v7653_v39  ;;  %v7548_v18 = vpop.f32.mrf.mxu1  ;;  %v7589_v42 = vpop.f32.mrf.mxu0  ;;  %v11509_v14 = vcombine.low %v7616_v32, %v7624_v13  ;;  %v7606_v39 = vmax.f32 %v7586_v26, 0.0 }
0x228f   :  { %7996 = vmatprep.subr.bf16.mxu1 %v11504_v33  ;;  %8036 = vmatprep.subr.bf16.mxu0 %v11506_v15  ;;  %v7605_v9 = vmax.f32 %v7547_v53, 0.0  ;;  %v7607_v16 = vmax.f32 %v7588_v45, 0.0  ;;  %v7604_v47 = vmax.f32 %v7545_v17, 0.0  ;;  %v11900_v33 = vld [vmem:[#allocation2 + $0x2c] ss:$16 sps:$4 sm:$0xff]  }
0x2290   :  { %v7549_v56 = vpop.f32.mrf.mxu1  ;;  %v7590_v62 = vpop.f32.mrf.mxu0  ;;  %v7656_v40 = vpack.c.bf16 %v7606_v39, %v7606_v39  ;;  %v13006_v39 = vld [vmem:[#allocation2 + $0x24] ss:$16 sps:$4 sm:$0xff]  }
0x2291   :  { %v7655_v10 = vpack.c.bf16 %v7605_v9, %v7605_v9  ;;  %v7657_v3 = vpack.c.bf16 %v7607_v16, %v7607_v16  ;;  %v7654_v11 = vpack.c.bf16 %v7604_v47, %v7604_v47 }
0x2295   :  { %7997 = vmatpush1.bf16.xpose.msra.mxu1 %v11503_v46  ;;  %v11494_v46 = vld [vmem:[%s13307_s1 + $0x42] ss:$0 sm:$0xff] }
0x2296   :  { %8037 = vmatpush1.bf16.xpose.msra.mxu0 %v11505_v7  ;;  %8074 = vmatprep.subr.bf16.mxu1 %v11524_v51 }
0x2297   :  { %8114 = vmatprep.subr.bf16.mxu0 %v11526_v59 }
0x229c   :  { %8015 = vmatmul.mubr.bf16.vlgmr.msra.gmra.mxu1 %v7650_v8 }
0x229d   :  { %8055 = vmatmul.mubr.bf16.vlgmr.msra.gmra.mxu0 %v7652_v2  ;;  %8075 = vmatpush1.bf16.xpose.msra.mxu1 %v11523_v54 }
0x229e   :  { %8094 = vmatprep.mubr.bf16.mxu1 %v7655_v10  ;;  %8115 = vmatpush1.bf16.xpose.msra.mxu0 %v11525_v24 }
0x229f   :  { %8134 = vmatprep.mubr.bf16.mxu0 %v7657_v3  ;;  %8076 = vmatprep.subr.bf16.mxu1 %v11508_v12 }
0x22a0   :  { %8116 = vmatprep.subr.bf16.mxu0 %v11510_v23 }
0x22a5   :  { %8077 = vmatpush1.bf16.xpose.msra.mxu1 %v11507_v22 }
0x22a6   :  { %8117 = vmatpush1.bf16.xpose.msra.mxu0 %v11509_v14  ;;  %11844 = vmatprep.subr.bf16.mxu1 %v12054_v0 }
0x22a7   :  { %11852 = vmatprep.subr.bf16.mxu0 %v12054_v0 }
0x22ac   :  { %8095 = vmatmul.mubr.bf16.vlgmr.msra.gmra.mxu1 %v7654_v11 }
0x22ad   :  { %8135 = vmatmul.mubr.bf16.vlgmr.msra.gmra.mxu0 %v7656_v40  ;;  %11848 = vmatprep.mubr.msk.bf16.mxu1 %vm12055_vm0, %v12054_v0 }
0x22ae   :  { %11853 = vmatpush3.bf16.msra.mxu0 %v11900_v33  ;;  %11856 = vmatprep.mubr.msk.bf16.mxu0 %vm12055_vm0, %v12054_v0 }
0x22af   :  { %11854 = vmatprep.subr.bf16.mxu0 %v12054_v0 }
0x22b2   :  { %11855 = vmatpush3.bf16.msra.mxu0 %v12992_v38 }
0x22b5   :  { %11857 = vmatmul.mubr.msk.bf16.vlgmr.msra.gmra.mxu0 %vm197_vm3, %v12450_v6 }
0x22b6   :  { %8696 = vmatprep.mubr.bf16.mxu0 %v12056_v60 }
0x233c   :  { %v7856_v48 = vpop.f32.mrf.mxu1  ;;  %v7896_v15 = vpop.f32.mrf.mxu0 }
0x233d   :  { %v7857_v5 = vadd.f32 %v11494_v46, %v7856_v48 }
0x233e   :  { %v7858_v36 = vpop.f32.mrf.mxu1  ;;  %v7898_v49 = vpop.f32.mrf.mxu0 }
0x233f   :  { %v7897_v59 = vadd.f32 %v7896_v15, %v7857_v5  ;;  %v13011_v15 = vld [vmem:[#allocation2 + $0x4] ss:$16 sps:$4 sm:$0xff]  }
0x2340   :  { %v7859_v31 = vpop.f32.mrf.mxu1  ;;  %v7899_v18 = vpop.f32.mrf.mxu0 }
0x2342   :  { %v7860_v42 = vpop.f32.mrf.mxu1  ;;  %v7900_v52 = vpop.f32.mrf.mxu0 }
0x234c   :  { %v7936_v20 = vpop.f32.mrf.mxu1  ;;  %v7976_v21 = vpop.f32.mrf.mxu0 }
0x234d   :  { %v7937_v50 = vadd.f32 %v7936_v20, %v7897_v59  ;;  %v11527_v20 = vld [vmem:[%s13307_s1 + $0x43] ss:$0 sm:$0xff] }
0x234e   :  { %v7938_v55 = vpop.f32.mrf.mxu1  ;;  %v7978_v56 = vpop.f32.mrf.mxu0 }
0x234f   :  { %v7977_v19 = vadd.f32 %v7976_v21, %v7937_v50  ;;  %v11528_v55 = vld [vmem:[%s13307_s1 + $0x44] ss:$0 sm:$0xff] }
0x2350   :  { %v7939_v62 = vpop.f32.mrf.mxu1  ;;  %v7979_v25 = vpop.f32.mrf.mxu0 }
0x2352   :  { %v7940_v34 = vpop.f32.mrf.mxu1  ;;  %v7980_v1 = vpop.f32.mrf.mxu0 }
0x2353   :  { %v11529_v34 = vld [vmem:[%s13307_s1 + $0x45] ss:$0 sm:$0xff] }
0x235c   :  { %v8016_v7 = vpop.f32.mrf.mxu1 }
0x235d   :  { %v8056_v51 = vpop.f32.mrf.mxu0  ;;  %v8017_v16 = vadd.f32 %v8016_v7, %v7977_v19 }
0x235e   :  { %v8018_v4 = vpop.f32.mrf.mxu1 }
0x235f   :  { %v8058_v53 = vpop.f32.mrf.mxu0  ;;  %v8057_v54 = vadd.f32 %v8056_v51, %v8017_v16 }
0x2360   :  { %v8019_v45 = vpop.f32.mrf.mxu1 }
0x2361   :  { %v8059_v61 = vpop.f32.mrf.mxu0 }
0x2362   :  { %v8020_v9 = vpop.f32.mrf.mxu1 }
0x2363   :  { %v8060_v63 = vpop.f32.mrf.mxu0 }
0x236c   :  { %v8096_v32 = vpop.f32.mrf.mxu1 }
0x236d   :  { %v8097_v13 = vadd.f32 %v8096_v32, %v8057_v54  ;;  %v8136_v8 = vpop.f32.mrf.mxu0  ;;  %v11531_v32 = vld [vmem:[%s13307_s1 + $0x46] ss:$0 sm:$0xff] }
0x236e   :  { %v8098_v24 = vpop.f32.mrf.mxu1 }
0x236f   :  { %v8137_v2 = vadd.f32 %v8136_v8, %v8097_v13  ;;  %v8138_v12 = vpop.f32.mrf.mxu0  ;;  %v11533_v8 = vld [vmem:[%s13307_s1 + $0x48] ss:$0 sm:$0xff]  ;;  %v11532_v24 = vld [vmem:[%s13307_s1 + $0x47] ss:$0 sm:$0xff] }
0x2370   :  { %v8099_v10 = vpop.f32.mrf.mxu1 }
0x2371   :  { %v8139_v23 = vpop.f32.mrf.mxu0  ;;  %v8142_v3 = vadd.f32 %v8137_v2, %v12902_v37 }
0x2372   :  { %v8100_v41 = vpop.f32.mrf.mxu1 }
0x2373   :  { %v8140_v35 = vpop.f32.mrf.mxu0  ;;  %v8143_v22 = vsel %vm148_vm2, %v8142_v3, 0.0 }
0x2374   :  { %8144 = vadd.xlane.f32.xlu0 %v8143_v22 }
0x2375   :  { %v8304_v17 = vpop.f32.mrf.mxu0 }
0x2376   :  { %v8305_v12 = vadd.f32 %v11533_v8, %v8304_v17 }
0x2377   :  { %v11858_v14 = vpop.f32.mrf.mxu0 }
0x2379   :  { %v8307_v26 = vpop.f32.mrf.mxu0 }
0x237b   :  { %v11859_v47 = vpop.f32.mrf.mxu0 }
0x237c   :  { %v8353_v47 = vld [vmem:[#allocation5 + $0x680] sm:$0xff] }
0x238a   :  { %8176 = vrot.lane.b32.xlu0 %v13006_v39, %s12049_s25 }
0x23fd   :  { %v8145_v11 = vpop.xlane.xlu0 %8144 }
0x23fe   :  { %v8146_v33 = vmul.f32 0.03125, %v8145_v11  ;;  %v8361_v11 = vld [vmem:[#allocation5 + $0x6c0] sm:$0xff] }
0x2400   :  { %v8147_v40 = vsub.f32 %v8142_v3, %v8146_v33  ;;  %v8354_v33 = vld [vmem:[#allocation5 + $0x688] sm:$0xff] }
0x2401   :  { %v8177_v36 = vpop.permute.xlu0 %8176 }
0x2402   :  { %v8148_v48 = vmul.f32 %v8147_v40, %v8147_v40  ;;  %11845 = vmatpush3.bf16.msra.mxu1 %v8177_v36 }
0x2403   :  { %11846 = vmatprep.subr.bf16.mxu1 %v12054_v0 }
0x2404   :  { %v8149_v37 = vsel %vm148_vm2, %v8148_v48, 0.0  ;;  %v8362_v48 = vld [vmem:[#allocation5 + $0x6c8] sm:$0xff] }
0x2405   :  { %8150 = vadd.xlane.f32.xlu1 %v8149_v37  ;;  %v11559_v37 = vcombine.low %v8353_v47, %v8361_v11  ;;  %v11561_v36 = vcombine.low %v8354_v33, %v8362_v48  ;;  %v11562_v17 = vcombine.high %v8354_v33, %v8362_v48 }
0x2407   :  { %8676 = vmatprep.subr.bf16.mxu0 %v11562_v17  ;;  %v8367_v17 = vld [vmem:[#allocation5 + $0x6f0] sm:$0xff] }
0x2408   :  { %8677 = vmatpush1.bf16.msra.mxu0 %v11561_v36  ;;  %v8359_v36 = vld [vmem:[#allocation5 + $0x6b0] sm:$0xff] }
0x2416   :  { %8174 = vrot.lane.b32.xlu1 %v13011_v15, %s12049_s25 }
0x248e   :  { %v8151_v49 = vpop.xlane.xlu1 %8150 }
0x248f   :  { %v8152_v31 = vmul.f32 0.03125, %v8151_v49  ;;  %v8337_v49 = vld [vmem:[#allocation5 + $0x600] sm:$0xff] }
0x2491   :  { %v8153_v18 = vadd.f32 1e-05, %v8152_v31  ;;  %v8345_v31 = vld [vmem:[#allocation5 + $0x640] sm:$0xff] }
0x2492   :  { %v8175_v42 = vpop.permute.xlu1 %8174 }
0x2493   :  { %11936 = vrsqrt.f32 %v8153_v18  ;;  %11847 = vmatpush3.bf16.msra.mxu1 %v8175_v42  ;;  %v8338_v18 = vld [vmem:[#allocation5 + $0x608] sm:$0xff]  ;;  %v11544_v42 = vcombine.high %v8337_v49, %v8345_v31 }
0x24a0   :  { %v11937_v52 = vpop.eup %11936 }
0x24a1   :  { %v8155_v21 = vmul.f32 %v11937_v52, %v8147_v40  ;;  %v11560_v40 = vcombine.high %v8353_v47, %v8361_v11  ;;  %v8346_v52 = vld [vmem:[#allocation5 + $0x648] sm:$0xff] }
0x24a2   :  { %v8342_v47 = vld [vmem:[#allocation5 + $0x628] sm:$0xff] }
0x24a3   :  { %v8161_v56 = vmul.f32 %v11527_v20, %v8155_v21  ;;  %8635 = vmatprep.subr.bf16.mxu1 %v11560_v40  ;;  %v11543_v20 = vcombine.low %v8337_v49, %v8345_v31  ;;  %v11545_v21 = vcombine.low %v8338_v18, %v8346_v52  ;;  %v8350_v11 = vld [vmem:[#allocation5 + $0x668] sm:$0xff]  ;;  %v8360_v49 = vld [vmem:[#allocation5 + $0x6b8] sm:$0xff] }
0x24a4   :  { %v8368_v31 = vld [vmem:[#allocation5 + $0x6f8] sm:$0xff] }
0x24a5   :  { %v8167_v62 = vadd.f32 %v11528_v55, %v8161_v56  ;;  %v11546_v55 = vcombine.high %v8338_v18, %v8346_v52  ;;  %v8355_v56 = vld [vmem:[#allocation5 + $0x690] sm:$0xff]  ;;  %v11572_v52 = vcombine.high %v8359_v36, %v8367_v17 }
0x24a7   :  { %v8169_v25 = vpack.c.bf16 %v8167_v62, %v8167_v62  ;;  %8678 = vmatprep.subr.bf16.mxu0 %v11546_v55  ;;  %v8351_v55 = vld [vmem:[#allocation5 + $0x670] sm:$0xff] }
0x24a8   :  { %8679 = vmatpush1.bf16.msra.mxu0 %v11545_v21  ;;  %v8343_v21 = vld [vmem:[#allocation5 + $0x630] sm:$0xff] }
0x24a9   :  { %11849 = vmatmul.mubr.msk.bf16.vlgmr.msra.gmra.mxu1 %vm197_vm3, %v8169_v25  ;;  %v8356_v25 = vld [vmem:[#allocation5 + $0x698] sm:$0xff] }
0x24aa   :  { %8655 = vmatprep.mubr.bf16.mxu1 %v12056_v60  ;;  %8636 = vmatpush1.bf16.msra.mxu1 %v11559_v37  ;;  %v11554_v37 = vcombine.high %v8342_v47, %v8350_v11 }
0x24ab   :  { %8637 = vmatprep.subr.bf16.mxu1 %v11544_v42  ;;  %v11553_v42 = vcombine.low %v8342_v47, %v8350_v11  ;;  %v11540_v47 = vld [vmem:[%s13308_s2 + $0x6] ss:$8 sm:$0xf0] }
0x24ae   :  { %8638 = vmatpush1.bf16.msra.mxu1 %v11543_v20  ;;  %v11574_v20 = vcombine.high %v8360_v49, %v8368_v31 }
0x2569   :  { %v8217_v1 = vpop.f32.mrf.mxu1 }
0x256a   :  { %v8218_v46 = vadd.f32 %v11529_v34, %v8217_v1 }
0x256b   :  { %v11850_v5 = vpop.f32.mrf.mxu1 }
0x256c   :  { %v8223_v7 = vadd.f32 %v8218_v46, %v8167_v62  ;;  %v8363_v62 = vld [vmem:[#allocation5 + $0x6d0] sm:$0xff]  ;;  %v8364_v46 = vld [vmem:[#allocation5 + $0x6d8] sm:$0xff] }
0x256d   :  { %v8220_v51 = vpop.f32.mrf.mxu1  ;;  %v11563_v34 = vcombine.low %v8355_v56, %v8363_v62  ;;  %v11564_v1 = vcombine.high %v8355_v56, %v8363_v62  ;;  %v11565_v5 = vcombine.low %v8356_v25, %v8364_v46  ;;  %v8344_v56 = vld [vmem:[#allocation5 + $0x638] sm:$0xff] }
0x256e   :  { %v8224_v4 = vsel %vm148_vm2, %v8223_v7, 0.0  ;;  %v8352_v62 = vld [vmem:[#allocation5 + $0x678] sm:$0xff] }
0x256f   :  { %8225 = vadd.xlane.f32.xlu1 %v8224_v4  ;;  %v11851_v59 = vpop.f32.mrf.mxu1  ;;  %8717 = vmatprep.subr.bf16.mxu1 %v11564_v1  ;;  %v11556_v1 = vcombine.high %v8343_v21, %v8351_v55 }
0x25f8   :  { %v8226_v53 = vpop.xlane.xlu1 %8225 }
0x25f9   :  { %v8227_v45 = vmul.f32 0.03125, %v8226_v53 }
0x25fb   :  { %v8228_v50 = vsub.f32 %v8223_v7, %v8227_v45  ;;  %v11566_v7 = vcombine.high %v8356_v25, %v8364_v46  ;;  %v11537_v45 = vld [vmem:[%s13307_s1 + $0x49] ss:$0 sm:$0xff]  ;;  %v11571_v25 = vcombine.low %v8359_v36, %v8367_v17  ;;  %v11558_v46 = vcombine.high %v8344_v56, %v8352_v62 }
0x25fd   :  { %v8229_v61 = vmul.f32 %v8228_v50, %v8228_v50  ;;  %8758 = vmatprep.subr.bf16.mxu0 %v11566_v7  ;;  %v8992_v7 = vld [vmem:[#allocation7 + $0x6c0] sm:$0xff] }
0x25ff   :  { %v8230_v9 = vsel %vm148_vm2, %v8229_v61, 0.0  ;;  %v11538_v61 = vld [vmem:[%s13307_s1 + $0x4a] ss:$0 sm:$0xff] }
0x2600   :  { %8231 = vadd.xlane.f32.xlu0 %v8230_v9 }
0x2689   :  { %v8232_v63 = vpop.xlane.xlu0 %8231 }
0x268a   :  { %v8233_v19 = vmul.f32 0.03125, %v8232_v63  ;;  %v8339_v63 = vld [vmem:[#allocation5 + $0x610] sm:$0xff] }
0x268c   :  { %v8234_v16 = vadd.f32 1e-05, %v8233_v19  ;;  %v8347_v19 = vld [vmem:[#allocation5 + $0x650] sm:$0xff] }
0x268d   :  { %v11548_v8 = vcombine.high %v8339_v63, %v8347_v19 }
0x268e   :  { %11938 = vrsqrt.f32 %v8234_v16  ;;  %v8340_v16 = vld [vmem:[#allocation5 + $0x618] sm:$0xff] }
0x269b   :  { %v11939_v54 = vpop.eup %11938 }
0x269c   :  { %v8236_v13 = vmul.f32 %v11939_v54, %v8228_v50  ;;  %v8348_v54 = vld [vmem:[#allocation5 + $0x658] sm:$0xff] }
0x269e   :  { %v8242_v2 = vmul.f32 %v11531_v32, %v8236_v13 }
0x26a0   :  { %v8248_v10 = vadd.f32 %v11532_v24, %v8242_v2  ;;  %v11550_v24 = vcombine.high %v8340_v16, %v8348_v54  ;;  %v8357_v2 = vld [vmem:[#allocation5 + $0x6a0] sm:$0xff] }
0x26a2   :  { %v8310_v23 = vadd.f32 %v8305_v12, %v8248_v10  ;;  %v8365_v12 = vld [vmem:[#allocation5 + $0x6e0] sm:$0xff]  ;;  %v8358_v10 = vld [vmem:[#allocation5 + $0x6a8] sm:$0xff] }
0x26a3   :  { %v11567_v33 = vcombine.low %v8357_v2, %v8365_v12 }
0x26a4   :  { %v8311_v3 = vsel %vm148_vm2, %v8310_v23, 0.0 }
0x26a5   :  { %8312 = vadd.xlane.f32.xlu0 %v8311_v3  ;;  %v11547_v3 = vcombine.low %v8339_v63, %v8347_v19  ;;  %v8968_v63 = vld [vmem:[#allocation7 + $0x600] sm:$0xff] }
0x26a6   :  { %v8976_v19 = vld [vmem:[#allocation7 + $0x640] sm:$0xff] }
0x272e   :  { %v8313_v41 = vpop.xlane.xlu0 %8312 }
0x272f   :  { %v8314_v35 = vmul.f32 0.03125, %v8313_v41  ;;  %v11549_v41 = vcombine.low %v8340_v16, %v8348_v54  ;;  %v8969_v16 = vld [vmem:[#allocation7 + $0x608] sm:$0xff]  ;;  %v11585_v54 = vcombine.high %v8968_v63, %v8976_v19 }
0x2731   :  { %v8315_v22 = vsub.f32 %v8310_v23, %v8314_v35  ;;  %v8366_v23 = vld [vmem:[#allocation5 + $0x6e8] sm:$0xff]  ;;  %v11568_v35 = vcombine.high %v8357_v2, %v8365_v12 }
0x2732   :  { %v11569_v40 = vcombine.low %v8358_v10, %v8366_v23 }
0x2733   :  { %v8316_v14 = vmul.f32 %v8315_v22, %v8315_v22 }
0x2735   :  { %v8317_v26 = vsel %vm148_vm2, %v8316_v14, 0.0  ;;  %v8341_v14 = vld [vmem:[#allocation5 + $0x620] sm:$0xff] }
0x2736   :  { %8318 = vadd.xlane.f32.xlu1 %v8317_v26  ;;  %v8349_v26 = vld [vmem:[#allocation5 + $0x660] sm:$0xff] }
0x2737   :  { %v11552_v48 = vcombine.high %v8341_v14, %v8349_v26  ;;  %v11551_v18 = vcombine.low %v8341_v14, %v8349_v26  ;;  %v11539_v26 = vld [vmem:[%s13308_s2 + $0x6] ss:$8 sm:$0xf] }
0x2738   :  { %v13080_v11 = vor.u32 %v11540_v47, %v11539_v26  ;;  %v8988_v26 = vld [vmem:[#allocation7 + $0x6a0] sm:$0xff] }
0x27bf   :  { %v8319_v51 = vpop.xlane.xlu1 %8318 }
0x27c0   :  { %v8320_v4 = vmul.f32 0.03125, %v8319_v51  ;;  %v8985_v51 = vld [vmem:[#allocation7 + $0x688] sm:$0xff] }
0x27c2   :  { %v8321_v59 = vadd.f32 1e-05, %v8320_v4  ;;  %v8993_v4 = vld [vmem:[#allocation7 + $0x6c8] sm:$0xff] }
0x27c4   :  { %11940 = vrsqrt.f32 %v8321_v59  ;;  %v11555_v59 = vcombine.low %v8343_v21, %v8351_v55 }
0x27d1   :  { %v11941_v53 = vpop.eup %11940 }
0x27d2   :  { %v8323_v50 = vmul.f32 %v11941_v53, %v8315_v22  ;;  %v11570_v22 = vcombine.high %v8358_v10, %v8366_v23  ;;  %v11557_v53 = vcombine.low %v8344_v56, %v8352_v62  ;;  %v8986_v10 = vld [vmem:[#allocation7 + $0x690] sm:$0xff] }
0x27d3   :  { %v8994_v23 = vld [vmem:[#allocation7 + $0x6d0] sm:$0xff] }
0x27d4   :  { %v8329_v9 = vmul.f32 %v11537_v45, %v8323_v50  ;;  %v11603_v50 = vcombine.high %v8985_v51, %v8993_v4 }
0x27d6   :  { %v13046_v32 = vadd.f32 %v11538_v61, %v8329_v9  ;;  %v11602_v9 = vcombine.low %v8985_v51, %v8993_v4 }
0x27d8   :  { %v13050_v13 = vpack.c.bf16 %v13046_v32, %v13046_v32 }
0x27da   :  { %11575 = vmatmul.mubr.msk.bf16.vlgmr.msra.gmra.mxu1 %vm197_vm3, %v13050_v13  ;;  %11576 = vmatmul.mubr.msk.bf16.vlgmr.msra.gmra.mxu0 %vm197_vm3, %v13050_v13 }
0x27db   :  { %8718 = vmatpush1.bf16.msra.mxu1 %v11563_v34  ;;  %8759 = vmatpush1.bf16.msra.mxu0 %v11565_v5  ;;  %v11573_v34 = vcombine.low %v8360_v49, %v8368_v31  ;;  %v8984_v5 = vld [vmem:[#allocation7 + $0x680] sm:$0xff] }
0x27dc   :  { %8719 = vmatprep.subr.bf16.mxu1 %v11548_v8  ;;  %8760 = vmatprep.subr.bf16.mxu0 %v11550_v24  ;;  %v11601_v45 = vcombine.high %v8984_v5, %v8992_v7  ;;  %v11600_v61 = vcombine.low %v8984_v5, %v8992_v7  ;;  %v8977_v8 = vld [vmem:[#allocation7 + $0x648] sm:$0xff]  ;;  %v11584_v24 = vcombine.low %v8968_v63, %v8976_v19  ;;  %v8971_v5 = vld [vmem:[#allocation7 + $0x618] sm:$0xff] }
0x27dd   :  { %8737 = vmatprep.mubr.bf16.mxu1 %v12056_v60  ;;  %8778 = vmatprep.mubr.bf16.mxu0 %v12056_v60  ;;  %v11586_v2 = vcombine.low %v8969_v16, %v8977_v8  ;;  %v11587_v12 = vcombine.high %v8969_v16, %v8977_v8  ;;  %v8979_v7 = vld [vmem:[#allocation7 + $0x658] sm:$0xff] }
0x27df   :  { %8720 = vmatpush1.bf16.msra.mxu1 %v11547_v3  ;;  %8761 = vmatpush1.bf16.msra.mxu0 %v11549_v41  ;;  %v8987_v3 = vld [vmem:[#allocation7 + $0x698] sm:$0xff]  ;;  %v11605_v41 = vcombine.high %v8986_v10, %v8994_v23 }
0x27e0   :  { %8799 = vmatprep.subr.bf16.mxu1 %v11568_v35  ;;  %8840 = vmatprep.subr.bf16.mxu0 %v11570_v22  ;;  %v8995_v35 = vld [vmem:[#allocation7 + $0x6d8] sm:$0xff] }
0x27e1   :  { %v11606_v22 = vcombine.low %v8987_v3, %v8995_v35  ;;  %v11607_v14 = vcombine.high %v8987_v3, %v8995_v35  ;;  %v8399_v3 = vrot.slane %v13080_v11, %v12236_v57 }
0x27e2   :  { %11577 = vmatmul.mubr.msk.bf16.vlgmr.msra.gmra.mxu1 %vm197_vm3, %v13050_v13  ;;  %11578 = vmatmul.mubr.msk.bf16.vlgmr.msra.gmra.mxu0 %vm197_vm3, %v13050_v13 }
0x27e3   :  { %8800 = vmatpush1.bf16.msra.mxu1 %v11567_v33  ;;  %8841 = vmatpush1.bf16.msra.mxu0 %v11569_v40  ;;  %v8383_v33 = vrot.slane %v13080_v11, %v12214_v27  ;;  %v8391_v40 = vrot.slane %v13080_v11, %v12216_v28 }
0x27e4   :  { %8801 = vmatprep.subr.bf16.mxu1 %v11552_v48  ;;  %8842 = vmatprep.subr.bf16.mxu0 %v11554_v37  ;;  %v8387_v48 = vrot.slane %v13080_v11, %v12218_v29  ;;  %v8395_v37 = vrot.slane %v13080_v11, %v12220_v30 }
0x27e5   :  { %8819 = vmatprep.mubr.bf16.mxu1 %v12056_v60  ;;  %8860 = vmatprep.mubr.bf16.mxu0 %v12056_v60 }
0x27e7   :  { %8802 = vmatpush1.bf16.msra.mxu1 %v11551_v18  ;;  %8843 = vmatpush1.bf16.msra.mxu0 %v11553_v42 }
0x27e8   :  { %8881 = vmatprep.subr.bf16.mxu1 %v11572_v52  ;;  %8922 = vmatprep.subr.bf16.mxu0 %v11574_v20 }
0x27ea   :  { %11579 = vmatmul.mubr.msk.bf16.vlgmr.msra.gmra.mxu1 %vm197_vm3, %v13050_v13  ;;  %11580 = vmatmul.mubr.msk.bf16.vlgmr.msra.gmra.mxu0 %vm197_vm3, %v13050_v13 }
0x27eb   :  { %8882 = vmatpush1.bf16.msra.mxu1 %v11571_v25  ;;  %8923 = vmatpush1.bf16.msra.mxu0 %v11573_v34  ;;  %v13090_v25 = vld [vmem:[#allocation7 + $0x610] sm:$0xff] }
0x27ec   :  { %8883 = vmatprep.subr.bf16.mxu1 %v11556_v1  ;;  %8924 = vmatprep.subr.bf16.mxu0 %v11558_v46  ;;  %v8978_v46 = vld [vmem:[#allocation7 + $0x650] sm:$0xff] }
0x27ed   :  { %8901 = vmatprep.mubr.bf16.mxu1 %v12056_v60  ;;  %8942 = vmatprep.mubr.bf16.mxu0 %v12056_v60  ;;  %v11589_v16 = vcombine.high %v13090_v25, %v8978_v46 }
0x27ef   :  { %8884 = vmatpush1.bf16.msra.mxu1 %v11555_v59  ;;  %8925 = vmatpush1.bf16.msra.mxu0 %v11557_v53 }
0x27f0   :  { %9193 = vmatprep.subr.bf16.mxu1 %v11601_v45  ;;  %9233 = vmatprep.subr.bf16.mxu0 %v11603_v50  ;;  %v8403_v45 = vrot.slane %v13080_v11, %v12230_v43  ;;  %v8411_v50 = vrot.slane %v13080_v11, %v12232_v44 }
0x27f2   :  { %11581 = vmatmul.mubr.msk.bf16.vlgmr.msra.gmra.mxu1 %vm197_vm3, %v13050_v13  ;;  %11582 = vmatmul.mubr.msk.bf16.vlgmr.msra.gmra.mxu0 %vm197_vm3, %v13050_v13  ;;  %v11604_v13 = vcombine.low %v8986_v10, %v8994_v23 }
0x27f3   :  { %9194 = vmatpush1.bf16.xpose.msra.mxu1 %v11600_v61  ;;  %9234 = vmatpush1.bf16.xpose.msra.mxu0 %v11602_v9 }
0x27f4   :  { %9195 = vmatprep.subr.bf16.mxu1 %v11585_v54  ;;  %9235 = vmatprep.subr.bf16.mxu0 %v11587_v12  ;;  %v11591_v54 = vcombine.high %v8971_v5, %v8979_v7  ;;  %v11542_v12 = vld [vmem:[%s13308_s2 + $0x46] ss:$8 sm:$0xf0] }
0x27fb   :  { %9196 = vmatpush1.bf16.xpose.msra.mxu1 %v11584_v24  ;;  %9236 = vmatpush1.bf16.xpose.msra.mxu0 %v11586_v2  ;;  %v11541_v2 = vld [vmem:[%s13308_s2 + $0x46] ss:$8 sm:$0xf] }
0x27fc   :  { %9273 = vmatprep.subr.bf16.mxu1 %v11605_v41  ;;  %9313 = vmatprep.subr.bf16.mxu0 %v11607_v14  ;;  %v8407_v41 = vrot.slane %v13080_v11, %v12238_v58 }
0x289a   :  { %v8657_v36 = vpop.f32.mrf.mxu1  ;;  %v8698_v17 = vpop.f32.mrf.mxu0 }
0x289b   :  { %v8658_v49 = vadd.f32 %v8657_v36, %v8383_v33  ;;  %v8699_v31 = vadd.f32 %v8698_v17, %v8391_v40  ;;  %v13107_v40 = vor.u32 %v11542_v12, %v11541_v2  ;;  %v8997_v36 = vld [vmem:[#allocation7 + $0x6e8] sm:$0xff]  ;;  %v11588_v17 = vcombine.low %v13090_v25, %v8978_v46 }
0x289c   :  { %v8659_v18 = vpop.f32.mrf.mxu1  ;;  %v8700_v42 = vpop.f32.mrf.mxu0 }
0x289d   :  { %v8660_v52 = vadd.f32 %v8659_v18, %v8387_v48  ;;  %v8701_v20 = vadd.f32 %v8700_v42, %v8395_v37  ;;  %v8951_v21 = vmax.f32 %v8658_v49, 0.0  ;;  %v8953_v55 = vmax.f32 %v8699_v31, 0.0  ;;  %v8996_v48 = vld [vmem:[#allocation7 + $0x6e0] sm:$0xff]  ;;  %v8989_v37 = vld [vmem:[#allocation7 + $0x6a8] sm:$0xff] }
0x289e   :  { %v8661_v56 = vpop.f32.mrf.mxu1  ;;  %v8702_v62 = vpop.f32.mrf.mxu0  ;;  %v11590_v49 = vcombine.low %v8971_v5, %v8979_v7  ;;  %v8419_v11 = vrot.slane %v13107_v40, %v12218_v29  ;;  %v8427_v42 = vrot.slane %v13107_v40, %v12220_v30 }
0x289f   :  { %v8952_v34 = vmax.f32 %v8660_v52, 0.0  ;;  %v8954_v1 = vmax.f32 %v8701_v20, 0.0  ;;  %v9001_v61 = vpack.c.bf16 %v8951_v21, %v8951_v21  ;;  %v9003_v9 = vpack.c.bf16 %v8953_v55, %v8953_v55 }
0x28a0   :  { %v8662_v51 = vpop.f32.mrf.mxu1  ;;  %v8703_v4 = vpop.f32.mrf.mxu0  ;;  %v11609_v56 = vcombine.high %v8988_v26, %v8996_v48  ;;  %v11611_v62 = vcombine.high %v8989_v37, %v8997_v36 }
0x28a1   :  { %v9002_v59 = vpack.c.bf16 %v8952_v34, %v8952_v34  ;;  %v9004_v53 = vpack.c.bf16 %v8954_v1, %v8954_v1 }
0x28a2   :  { %v8739_v63 = vpop.f32.mrf.mxu1  ;;  %v8780_v19 = vpop.f32.mrf.mxu0 }
0x28a3   :  { %9213 = vmatprep.mubr.bf16.mxu1 %v9002_v59  ;;  %9253 = vmatprep.mubr.bf16.mxu0 %v9004_v53  ;;  %v8740_v52 = vadd.f32 %v8739_v63, %v8399_v3  ;;  %v8781_v20 = vadd.f32 %v8780_v19, %v8407_v41  ;;  %v8973_v63 = vld [vmem:[#allocation7 + $0x628] sm:$0xff] }
0x28a4   :  { %v8741_v8 = vpop.f32.mrf.mxu1  ;;  %v8782_v24 = vpop.f32.mrf.mxu0  ;;  %9214 = vmatmul.mubr.bf16.vlgmr.msra.gmra.mxu1 %v9001_v61  ;;  %9254 = vmatmul.mubr.bf16.vlgmr.msra.gmra.mxu0 %v9003_v9  ;;  %v8980_v9 = vld [vmem:[#allocation7 + $0x660] sm:$0xff]  ;;  %v8981_v19 = vld [vmem:[#allocation7 + $0x668] sm:$0xff] }
0x28a5   :  { %v8742_v10 = vadd.f32 %v8741_v8, %v8403_v45  ;;  %v8783_v23 = vadd.f32 %v8782_v24, %v8411_v50  ;;  %9274 = vmatpush1.bf16.xpose.msra.mxu1 %v11604_v13  ;;  %9314 = vmatpush1.bf16.xpose.msra.mxu0 %v11606_v22  ;;  %v8955_v5 = vmax.f32 %v8740_v52, 0.0  ;;  %v8957_v7 = vmax.f32 %v8781_v20, 0.0  ;;  %v8972_v45 = vld [vmem:[#allocation7 + $0x620] sm:$0xff] }
0x28a6   :  { %v8743_v35 = vpop.f32.mrf.mxu1  ;;  %v8784_v14 = vpop.f32.mrf.mxu0  ;;  %9275 = vmatprep.subr.bf16.mxu1 %v11589_v16  ;;  %9315 = vmatprep.subr.bf16.mxu0 %v11591_v54  ;;  %v11608_v54 = vcombine.low %v8988_v26, %v8996_v48  ;;  %v11593_v3 = vcombine.high %v8972_v45, %v8980_v9  ;;  %v11595_v41 = vcombine.high %v8973_v63, %v8981_v19 }
0x28a7   :  { %v8956_v47 = vmax.f32 %v8742_v10, 0.0  ;;  %v8958_v33 = vmax.f32 %v8783_v23, 0.0  ;;  %v9005_v8 = vpack.c.bf16 %v8955_v5, %v8955_v5  ;;  %v9007_v24 = vpack.c.bf16 %v8957_v7, %v8957_v7  ;;  %v8974_v7 = vld [vmem:[#allocation7 + $0x630] sm:$0xff] }
0x28a8   :  { %v8744_v13 = vpop.f32.mrf.mxu1  ;;  %v8785_v22 = vpop.f32.mrf.mxu0  ;;  %v11610_v23 = vcombine.low %v8989_v37, %v8997_v36  ;;  %v8423_v48 = vrot.slane %v13107_v40, %v12216_v28  ;;  %v8990_v37 = vld [vmem:[#allocation7 + $0x6b0] sm:$0xff]  ;;  %v11594_v52 = vcombine.low %v8973_v63, %v8981_v19 }
0x28a9   :  { %v9006_v31 = vpack.c.bf16 %v8956_v47, %v8956_v47  ;;  %v9008_v18 = vpack.c.bf16 %v8958_v33, %v8958_v33  ;;  %v8415_v47 = vrot.slane %v13107_v40, %v12214_v27  ;;  %v8998_v36 = vld [vmem:[#allocation7 + $0x6f0] sm:$0xff]  ;;  %v8435_v13 = vrot.slane %v13107_v40, %v12230_v43 }
0x28aa   :  { %v8821_v21 = vpop.f32.mrf.mxu1  ;;  %v8862_v55 = vpop.f32.mrf.mxu0  ;;  %v11613_v20 = vcombine.high %v8990_v37, %v8998_v36 }
0x28ab   :  { %9293 = vmatprep.mubr.bf16.mxu1 %v9006_v31  ;;  %9333 = vmatprep.mubr.bf16.mxu0 %v9008_v18  ;;  %v8999_v31 = vld [vmem:[#allocation7 + $0x6f8] sm:$0xff]  ;;  %v8443_v18 = vrot.slane %v13107_v40, %v12232_v44 }
0x28ac   :  { %v8823_v34 = vpop.f32.mrf.mxu1  ;;  %v8864_v1 = vpop.f32.mrf.mxu0 }
0x28ad   :  { %v8824_v25 = vadd.f32 %v8823_v34, %v8419_v11  ;;  %v8865_v46 = vadd.f32 %v8864_v1, %v8427_v42  ;;  %9276 = vmatpush1.bf16.xpose.msra.mxu1 %v11588_v17  ;;  %9316 = vmatpush1.bf16.xpose.msra.mxu0 %v11590_v49  ;;  %v8991_v49 = vld [vmem:[#allocation7 + $0x6b8] sm:$0xff]  ;;  %v11592_v11 = vcombine.low %v8972_v45, %v8980_v9 }
0x28ae   :  { %v8825_v51 = vpop.f32.mrf.mxu1  ;;  %v8866_v4 = vpop.f32.mrf.mxu0  ;;  %9353 = vmatprep.subr.bf16.mxu1 %v11609_v56  ;;  %9393 = vmatprep.subr.bf16.mxu0 %v11611_v62  ;;  %v8822_v42 = vadd.f32 %v8821_v21, %v8415_v47  ;;  %v8863_v56 = vadd.f32 %v8862_v55, %v8423_v48  ;;  %v11615_v62 = vcombine.high %v8991_v49, %v8999_v31  ;;  %v8983_v45 = vld [vmem:[#allocation7 + $0x678] sm:$0xff] }
0x28af   :  { %v8960_v59 = vmax.f32 %v8824_v25, 0.0  ;;  %v8962_v53 = vmax.f32 %v8865_v46, 0.0  ;;  %v8982_v51 = vld [vmem:[#allocation7 + $0x670] sm:$0xff] }
0x28b0   :  { %v8826_v50 = vpop.f32.mrf.mxu1  ;;  %v8867_v61 = vpop.f32.mrf.mxu0  ;;  %v8959_v25 = vmax.f32 %v8822_v42, 0.0  ;;  %v8961_v46 = vmax.f32 %v8863_v56, 0.0  ;;  %v11597_v55 = vcombine.high %v8974_v7, %v8982_v51  ;;  %v11583_v42 = vld [vmem:[%s13307_s1 + $0x4b] ss:$0 sm:$0xff] }
0x28b1   :  { %v9010_v16 = vpack.c.bf16 %v8960_v59, %v8960_v59  ;;  %v9012_v2 = vpack.c.bf16 %v8962_v53, %v8962_v53  ;;  %v11612_v59 = vcombine.low %v8990_v37, %v8998_v36  ;;  %v8975_v53 = vld [vmem:[#allocation7 + $0x638] sm:$0xff]  ;;  %v11614_v50 = vcombine.low %v8991_v49, %v8999_v31 }
0x28b2   :  { %v13114_v12 = vpop.f32.mrf.mxu1  ;;  %v13116_v10 = vpop.f32.mrf.mxu0  ;;  %v9009_v21 = vpack.c.bf16 %v8959_v25, %v8959_v25  ;;  %v9011_v61 = vpack.c.bf16 %v8961_v46, %v8961_v46  ;;  %v11599_v63 = vcombine.high %v8975_v53, %v8983_v45 }
0x28b4   :  { %9294 = vmatmul.mubr.bf16.vlgmr.msra.gmra.mxu1 %v9005_v8  ;;  %9334 = vmatmul.mubr.bf16.vlgmr.msra.gmra.mxu0 %v9007_v24  ;;  %v8905_v35 = vpop.f32.mrf.mxu1  ;;  %v8946_v14 = vpop.f32.mrf.mxu0  ;;  %v11596_v8 = vcombine.low %v8974_v7, %v8982_v51 }
0x28b5   :  { %9354 = vmatpush1.bf16.xpose.msra.mxu1 %v11608_v54  ;;  %9373 = vmatprep.mubr.bf16.mxu1 %v9010_v16  ;;  %v8906_v34 = vadd.f32 %v8905_v35, %v8435_v13  ;;  %v8947_v1 = vadd.f32 %v8946_v14, %v8443_v18  ;;  %v8431_v16 = vrot.slane %v13107_v40, %v12236_v57 }
0x28b6   :  { %9394 = vmatpush1.bf16.xpose.msra.mxu0 %v11610_v23  ;;  %9413 = vmatprep.mubr.bf16.mxu0 %v9012_v2  ;;  %v8907_v26 = vpop.f32.mrf.mxu1  ;;  %v8948_v33 = vpop.f32.mrf.mxu0  ;;  %v8439_v54 = vrot.slane %v13107_v40, %v12238_v58  ;;  %v11598_v2 = vcombine.low %v8975_v53, %v8983_v45 }
0x28b7   :  { %9355 = vmatprep.subr.bf16.mxu1 %v11593_v3  ;;  %9395 = vmatprep.subr.bf16.mxu0 %v11595_v41  ;;  %v8964_v5 = vmax.f32 %v8906_v34, 0.0  ;;  %v8966_v4 = vmax.f32 %v8947_v1, 0.0  ;;  %v8904_v24 = vadd.f32 %v13114_v12, %v8431_v16 }
0x28b8   :  { %v8908_v22 = vpop.f32.mrf.mxu1  ;;  %v8949_v17 = vpop.f32.mrf.mxu0  ;;  %v8945_v23 = vadd.f32 %v13116_v10, %v8439_v54 }
0x28b9   :  { %v9014_v9 = vpack.c.bf16 %v8964_v5, %v8964_v5  ;;  %v9016_v19 = vpack.c.bf16 %v8966_v4, %v8966_v4  ;;  %v8963_v3 = vmax.f32 %v8904_v24, 0.0 }
0x28ba   :  { %v8965_v41 = vmax.f32 %v8945_v23, 0.0 }
0x28bb   :  { %v9013_v35 = vpack.c.bf16 %v8963_v3, %v8963_v3 }
0x28bc   :  { %v9015_v14 = vpack.c.bf16 %v8965_v41, %v8965_v41 }
0x28bd   :  { %9356 = vmatpush1.bf16.xpose.msra.mxu1 %v11592_v11 }
0x28be   :  { %9396 = vmatpush1.bf16.xpose.msra.mxu0 %v11594_v52  ;;  %9433 = vmatprep.subr.bf16.mxu1 %v11613_v20 }
0x28bf   :  { %9473 = vmatprep.subr.bf16.mxu0 %v11615_v62 }
0x28c4   :  { %9374 = vmatmul.mubr.bf16.vlgmr.msra.gmra.mxu1 %v9009_v21 }
0x28c5   :  { %9414 = vmatmul.mubr.bf16.vlgmr.msra.gmra.mxu0 %v9011_v61  ;;  %9434 = vmatpush1.bf16.xpose.msra.mxu1 %v11612_v59 }
0x28c6   :  { %9453 = vmatprep.mubr.bf16.mxu1 %v9014_v9  ;;  %9474 = vmatpush1.bf16.xpose.msra.mxu0 %v11614_v50 }
0x28c7   :  { %9493 = vmatprep.mubr.bf16.mxu0 %v9016_v19  ;;  %9435 = vmatprep.subr.bf16.mxu1 %v11597_v55 }
0x28c8   :  { %9475 = vmatprep.subr.bf16.mxu0 %v11599_v63 }
0x28cd   :  { %9436 = vmatpush1.bf16.xpose.msra.mxu1 %v11596_v8 }
0x28ce   :  { %9476 = vmatpush1.bf16.xpose.msra.mxu0 %v11598_v2  ;;  %11860 = vmatprep.subr.bf16.mxu1 %v12054_v0 }
0x28cf   :  { %11868 = vmatprep.subr.bf16.mxu0 %v12054_v0 }
0x28d4   :  { %9454 = vmatmul.mubr.bf16.vlgmr.msra.gmra.mxu1 %v9013_v35 }
0x28d5   :  { %9494 = vmatmul.mubr.bf16.vlgmr.msra.gmra.mxu0 %v9015_v14  ;;  %11864 = vmatprep.mubr.msk.bf16.mxu1 %vm12055_vm0, %v12054_v0  ;;  %v11960_v14 = vld [vmem:[#allocation2 + $0x2c] ss:$16 sps:$4 sm:$0xff]  }
0x28d6   :  { %11872 = vmatprep.mubr.msk.bf16.mxu0 %vm12055_vm0, %v12054_v0 }
0x2964   :  { %v9215_v40 = vpop.f32.mrf.mxu1  ;;  %v9255_v12 = vpop.f32.mrf.mxu0 }
0x2965   :  { %v9216_v52 = vadd.f32 %v11583_v42, %v9215_v40 }
0x2966   :  { %v9217_v10 = vpop.f32.mrf.mxu1  ;;  %v9257_v47 = vpop.f32.mrf.mxu0 }
0x2967   :  { %v9256_v34 = vadd.f32 %v9255_v12, %v9216_v52 }
0x2968   :  { %v9218_v26 = vpop.f32.mrf.mxu1  ;;  %v9258_v33 = vpop.f32.mrf.mxu0 }
0x2969   :  { %v11616_v26 = vld [vmem:[%s13307_s1 + $0x4c] ss:$0 sm:$0xff] }
0x296a   :  { %v9219_v48 = vpop.f32.mrf.mxu1  ;;  %v9259_v37 = vpop.f32.mrf.mxu0 }
0x296b   :  { %v11617_v48 = vld [vmem:[%s13307_s1 + $0x4d] ss:$0 sm:$0xff] }
0x2974   :  { %v9295_v36 = vpop.f32.mrf.mxu1  ;;  %v9335_v13 = vpop.f32.mrf.mxu0 }
0x2975   :  { %v9296_v46 = vadd.f32 %v9295_v36, %v9256_v34 }
0x2976   :  { %v9297_v22 = vpop.f32.mrf.mxu1  ;;  %v9337_v17 = vpop.f32.mrf.mxu0 }
0x2977   :  { %v9336_v4 = vadd.f32 %v9335_v13, %v9296_v46 }
0x2978   :  { %v9298_v49 = vpop.f32.mrf.mxu1  ;;  %v9338_v31 = vpop.f32.mrf.mxu0 }
0x2979   :  { %v11618_v31 = vld [vmem:[%s13307_s1 + $0x4e] ss:$0 sm:$0xff] }
0x297a   :  { %v9299_v18 = vpop.f32.mrf.mxu1  ;;  %v9339_v11 = vpop.f32.mrf.mxu0 }
0x2984   :  { %v9375_v20 = vpop.f32.mrf.mxu1 }
0x2985   :  { %v9415_v56 = vpop.f32.mrf.mxu0  ;;  %v9376_v59 = vadd.f32 %v9375_v20, %v9336_v4 }
0x2986   :  { %v9377_v62 = vpop.f32.mrf.mxu1 }
0x2987   :  { %v9417_v1 = vpop.f32.mrf.mxu0  ;;  %v9416_v53 = vadd.f32 %v9415_v56, %v9376_v59 }
0x2988   :  { %v9378_v25 = vpop.f32.mrf.mxu1 }
0x2989   :  { %v9418_v5 = vpop.f32.mrf.mxu0 }
0x298a   :  { %v9379_v7 = vpop.f32.mrf.mxu1 }
0x298b   :  { %v9419_v51 = vpop.f32.mrf.mxu0 }
0x2994   :  { %v9455_v45 = vpop.f32.mrf.mxu1 }
0x2995   :  { %v9456_v21 = vadd.f32 %v9455_v45, %v9416_v53  ;;  %v9495_v50 = vpop.f32.mrf.mxu0  ;;  %v11620_v53 = vld [vmem:[%s13307_s1 + $0x4f] ss:$0 sm:$0xff] }
0x2996   :  { %v9457_v61 = vpop.f32.mrf.mxu1 }
0x2997   :  { %v9496_v55 = vadd.f32 %v9495_v50, %v9456_v21  ;;  %v9497_v9 = vpop.f32.mrf.mxu0  ;;  %v11622_v21 = vld [vmem:[%s13307_s1 + $0x51] ss:$0 sm:$0xff]  ;;  %v11621_v50 = vld [vmem:[%s13307_s1 + $0x50] ss:$0 sm:$0xff] }
0x2998   :  { %v9458_v63 = vpop.f32.mrf.mxu1 }
0x2999   :  { %v9498_v19 = vpop.f32.mrf.mxu0  ;;  %v9501_v16 = vadd.f32 %v9496_v55, %v13046_v32 }
0x299a   :  { %v9459_v54 = vpop.f32.mrf.mxu1 }
0x299b   :  { %v9499_v8 = vpop.f32.mrf.mxu0  ;;  %v9502_v24 = vsel %vm148_vm2, %v9501_v16, 0.0 }
0x299c   :  { %9503 = vadd.xlane.f32.xlu0 %v9502_v24 }
0x29b2   :  { %9535 = vrot.lane.b32.xlu0 %v13006_v39, %s12058_s14 }
0x2a25   :  { %v9504_v2 = vpop.xlane.xlu0 %9503 }
0x2a26   :  { %v9505_v23 = vmul.f32 0.03125, %v9504_v2 }
0x2a28   :  { %v9506_v3 = vsub.f32 %v9501_v16, %v9505_v23  ;;  %v9702_v23 = vld [vmem:[#allocation5 + $0x780] sm:$0xff] }
0x2a29   :  { %v9536_v32 = vpop.permute.xlu0 %9535 }
0x2a2a   :  { %v9507_v41 = vmul.f32 %v9506_v3, %v9506_v3  ;;  %11861 = vmatpush3.bf16.msra.mxu1 %v9536_v32 }
0x2a2b   :  { %11862 = vmatprep.subr.bf16.mxu1 %v12054_v0 }
0x2a2c   :  { %v9508_v35 = vsel %vm148_vm2, %v9507_v41, 0.0  ;;  %v9703_v41 = vld [vmem:[#allocation5 + $0x788] sm:$0xff] }
0x2a2d   :  { %9509 = vadd.xlane.f32.xlu1 %v9508_v35 }
0x2a3e   :  { %9533 = vrot.lane.b32.xlu1 %v13011_v15, %s12058_s14 }
0x2a42   :  { %9615 = vrot.lane.b32.xlu1 %v11960_v14, %s12057_s15  ;;  %v9711_v14 = vld [vmem:[#allocation5 + $0x7c8] sm:$0xff] }
0x2a46   :  { %9613 = vrot.lane.b32.xlu1 %v12992_v38, %s12057_s15 }
0x2ab6   :  { %v9510_v39 = vpop.xlane.xlu1 %9509 }
0x2ab7   :  { %v9511_v40 = vmul.f32 0.03125, %v9510_v39  ;;  %v11648_v39 = vcombine.low %v9703_v41, %v9711_v14 }
0x2ab9   :  { %v9512_v12 = vadd.f32 1e-05, %v9511_v40  ;;  %v11649_v40 = vcombine.high %v9703_v41, %v9711_v14  ;;  %v9708_v41 = vld [vmem:[#allocation5 + $0x7b0] sm:$0xff]  ;;  %v9709_v14 = vld [vmem:[#allocation5 + $0x7b8] sm:$0xff] }
0x2aba   :  { %v9534_v10 = vpop.permute.xlu1 %9533 }
0x2abb   :  { %11942 = vrsqrt.f32 %v9512_v12  ;;  %11863 = vmatpush3.bf16.msra.mxu1 %v9534_v10  ;;  %v9686_v12 = vld [vmem:[#allocation5 + $0x700] sm:$0xff] }
0x2abc   :  { %v9694_v10 = vld [vmem:[#allocation5 + $0x740] sm:$0xff] }
0x2abe   :  { %v9616_v47 = vpop.permute.xlu1 %9615 }
0x2abf   :  { %11869 = vmatpush3.bf16.msra.mxu0 %v9616_v47  ;;  %v9687_v47 = vld [vmem:[#allocation5 + $0x708] sm:$0xff] }
0x2ac0   :  { %11870 = vmatprep.subr.bf16.mxu0 %v12054_v0 }
0x2ac2   :  { %v9614_v15 = vpop.permute.xlu1 %9613 }
0x2ac3   :  { %11871 = vmatpush3.bf16.msra.mxu0 %v9614_v15  ;;  %v11631_v15 = vcombine.high %v9686_v12, %v9694_v10 }
0x2ac4   :  { %10025 = vmatprep.subr.bf16.mxu0 %v11649_v40 }
0x2ac6   :  { %11873 = vmatmul.mubr.msk.bf16.vlgmr.msra.gmra.mxu0 %vm197_vm3, %v12450_v6 }
0x2ac7   :  { %10045 = vmatprep.mubr.bf16.mxu0 %v12056_v60  ;;  %10026 = vmatpush1.bf16.msra.mxu0 %v11648_v39 }
0x2ac8   :  { %v11943_v38 = vpop.eup %11942 }
0x2ac9   :  { %v9514_v33 = vmul.f32 %v11943_v38, %v9506_v3  ;;  %v9710_v3 = vld [vmem:[#allocation5 + $0x7c0] sm:$0xff]  ;;  %v9695_v38 = vld [vmem:[#allocation5 + $0x748] sm:$0xff] }
0x2aca   :  { %v11647_v35 = vcombine.high %v9702_v23, %v9710_v3  ;;  %v11646_v32 = vcombine.low %v9702_v23, %v9710_v3 }
0x2acb   :  { %v9520_v37 = vmul.f32 %v11616_v26, %v9514_v33  ;;  %v11630_v26 = vcombine.low %v9686_v12, %v9694_v10  ;;  %v11632_v33 = vcombine.low %v9687_v47, %v9695_v38 }
0x2acc   :  { %9984 = vmatprep.subr.bf16.mxu1 %v11647_v35  ;;  %v9716_v35 = vld [vmem:[#allocation5 + $0x7f0] sm:$0xff] }
0x2acd   :  { %v9526_v36 = vadd.f32 %v11617_v48, %v9520_v37  ;;  %v11633_v48 = vcombine.high %v9687_v47, %v9695_v38  ;;  %v9704_v37 = vld [vmem:[#allocation5 + $0x790] sm:$0xff]  ;;  %v11659_v12 = vcombine.high %v9708_v41, %v9716_v35  ;;  %v9693_v38 = vld [vmem:[#allocation5 + $0x738] sm:$0xff] }
0x2ace   :  { %v9692_v47 = vld [vmem:[#allocation5 + $0x730] sm:$0xff] }
0x2acf   :  { %v9528_v13 = vpack.c.bf16 %v9526_v36, %v9526_v36  ;;  %10027 = vmatprep.subr.bf16.mxu0 %v11633_v48 }
0x2ad0   :  { %10028 = vmatpush1.bf16.msra.mxu0 %v11632_v33  ;;  %v11658_v33 = vcombine.low %v9708_v41, %v9716_v35 }
0x2ad1   :  { %11865 = vmatmul.mubr.msk.bf16.vlgmr.msra.gmra.mxu1 %vm197_vm3, %v9528_v13  ;;  %v9705_v13 = vld [vmem:[#allocation5 + $0x798] sm:$0xff] }
0x2ad2   :  { %10004 = vmatprep.mubr.bf16.mxu1 %v12056_v60  ;;  %9985 = vmatpush1.bf16.msra.mxu1 %v11646_v32  ;;  %v9717_v32 = vld [vmem:[#allocation5 + $0x7f8] sm:$0xff] }
0x2ad3   :  { %9986 = vmatprep.subr.bf16.mxu1 %v11631_v15  ;;  %v11661_v10 = vcombine.high %v9709_v14, %v9717_v32  ;;  %v9700_v15 = vld [vmem:[#allocation5 + $0x770] sm:$0xff]  ;;  %v11660_v48 = vcombine.low %v9709_v14, %v9717_v32 }
0x2ad6   :  { %9987 = vmatpush1.bf16.msra.mxu1 %v11630_v26  ;;  %v9701_v26 = vld [vmem:[#allocation5 + $0x778] sm:$0xff] }
0x2b86   :  { %v9653_v6 = vpop.f32.mrf.mxu0 }
0x2b87   :  { %v9654_v55 = vadd.f32 %v11622_v21, %v9653_v6  ;;  %v9707_v21 = vld [vmem:[#allocation5 + $0x7a8] sm:$0xff] }
0x2b88   :  { %v11874_v22 = vpop.f32.mrf.mxu0 }
0x2b8a   :  { %v9656_v17 = vpop.f32.mrf.mxu0 }
0x2b8b   :  { %v9713_v17 = vld [vmem:[#allocation5 + $0x7d8] sm:$0xff] }
0x2b8c   :  { %v11875_v49 = vpop.f32.mrf.mxu0 }
0x2b8d   :  { %v11652_v49 = vcombine.low %v9705_v13, %v9713_v17 }
0x2b91   :  { %v9576_v18 = vpop.f32.mrf.mxu1 }
0x2b92   :  { %v9577_v11 = vadd.f32 %v11618_v31, %v9576_v18  ;;  %v11653_v31 = vcombine.high %v9705_v13, %v9713_v17  ;;  %v10333_v13 = vld [vmem:[#allocation7 + $0x780] sm:$0xff]  ;;  %v10342_v17 = vld [vmem:[#allocation7 + $0x7c8] sm:$0xff] }
0x2b93   :  { %v11866_v42 = vpop.f32.mrf.mxu1 }
0x2b94   :  { %v9582_v52 = vadd.f32 %v9577_v11, %v9526_v36  ;;  %v9712_v36 = vld [vmem:[#allocation5 + $0x7d0] sm:$0xff]  ;;  %10107 = vmatprep.subr.bf16.mxu0 %v11653_v31  ;;  %v11644_v31 = vcombine.low %v9693_v38, %v9701_v26 }
0x2b95   :  { %v9579_v20 = vpop.f32.mrf.mxu1  ;;  %v11650_v6 = vcombine.low %v9704_v37, %v9712_v36  ;;  %v11651_v22 = vcombine.high %v9704_v37, %v9712_v36  ;;  %v11643_v37 = vcombine.high %v9692_v47, %v9700_v15  ;;  %v11645_v36 = vcombine.high %v9693_v38, %v9701_v26  ;;  %v10327_v38 = vld [vmem:[#allocation7 + $0x750] sm:$0xff]  ;;  %v10320_v26 = vld [vmem:[#allocation7 + $0x718] sm:$0xff] }
0x2b96   :  { %v9583_v56 = vsel %vm148_vm2, %v9582_v52, 0.0  ;;  %v11624_v20 = vld [vmem:[%s13307_s1 + $0x52] ss:$0 sm:$0xff] }
0x2b97   :  { %9584 = vadd.xlane.f32.xlu0 %v9583_v56  ;;  %v11867_v62 = vpop.f32.mrf.mxu1  ;;  %10066 = vmatprep.subr.bf16.mxu1 %v11651_v22  ;;  %v10334_v22 = vld [vmem:[#allocation7 + $0x788] sm:$0xff] }
0x2b98   :  { %v11625_v62 = vld [vmem:[%s13307_s1 + $0x53] ss:$0 sm:$0xff] }
0x2c20   :  { %v9585_v34 = vpop.xlane.xlu0 %9584 }
0x2c21   :  { %v9586_v1 = vmul.f32 0.03125, %v9585_v34 }
0x2c23   :  { %v9587_v25 = vsub.f32 %v9582_v52, %v9586_v1  ;;  %v9688_v1 = vld [vmem:[#allocation5 + $0x710] sm:$0xff] }
0x2c25   :  { %v9588_v46 = vmul.f32 %v9587_v25, %v9587_v25 }
0x2c27   :  { %v9589_v5 = vsel %vm148_vm2, %v9588_v46, 0.0  ;;  %v9689_v46 = vld [vmem:[#allocation5 + $0x718] sm:$0xff] }
0x2c28   :  { %9590 = vadd.xlane.f32.xlu1 %v9589_v5  ;;  %v9697_v5 = vld [vmem:[#allocation5 + $0x758] sm:$0xff] }
0x2cb1   :  { %v9591_v7 = vpop.xlane.xlu1 %9590 }
0x2cb2   :  { %v9592_v51 = vmul.f32 0.03125, %v9591_v7 }
0x2cb4   :  { %v9593_v4 = vadd.f32 1e-05, %v9592_v51 }
0x2cb6   :  { %11944 = vrsqrt.f32 %v9593_v4 }
0x2cc3   :  { %v11945_v59 = vpop.eup %11944 }
0x2cc4   :  { %v9595_v45 = vmul.f32 %v11945_v59, %v9587_v25  ;;  %v9696_v25 = vld [vmem:[#allocation5 + $0x750] sm:$0xff]  ;;  %v11637_v59 = vcombine.high %v9689_v46, %v9697_v5 }
0x2cc5   :  { %v11635_v4 = vcombine.high %v9688_v1, %v9696_v25 }
0x2cc6   :  { %v9601_v61 = vmul.f32 %v11620_v53, %v9595_v45  ;;  %v9706_v53 = vld [vmem:[#allocation5 + $0x7a0] sm:$0xff] }
0x2cc7   :  { %v9714_v45 = vld [vmem:[#allocation5 + $0x7e0] sm:$0xff] }
0x2cc8   :  { %v9607_v9 = vadd.f32 %v11621_v50, %v9601_v61  ;;  %v9715_v50 = vld [vmem:[#allocation5 + $0x7e8] sm:$0xff]  ;;  %v11634_v61 = vcombine.low %v9688_v1, %v9696_v25 }
0x2cc9   :  { %v10326_v1 = vld [vmem:[#allocation7 + $0x748] sm:$0xff] }
0x2cca   :  { %v9659_v63 = vadd.f32 %v9654_v55, %v9607_v9  ;;  %v11636_v55 = vcombine.low %v9689_v46, %v9697_v5  ;;  %v11655_v9 = vcombine.high %v9706_v53, %v9714_v45  ;;  %v10335_v5 = vld [vmem:[#allocation7 + $0x790] sm:$0xff] }
0x2ccc   :  { %v9660_v19 = vsel %vm148_vm2, %v9659_v63, 0.0 }
0x2ccd   :  { %9661 = vadd.xlane.f32.xlu0 %v9660_v19  ;;  %v9690_v19 = vld [vmem:[#allocation5 + $0x720] sm:$0xff] }
0x2d56   :  { %v9662_v16 = vpop.xlane.xlu0 %9661 }
0x2d57   :  { %v9663_v54 = vmul.f32 0.03125, %v9662_v16  ;;  %v9698_v16 = vld [vmem:[#allocation5 + $0x760] sm:$0xff] }
0x2d58   :  { %v11639_v23 = vcombine.high %v9690_v19, %v9698_v16  ;;  %v11638_v39 = vcombine.low %v9690_v19, %v9698_v16 }
0x2d59   :  { %v9664_v8 = vsub.f32 %v9659_v63, %v9663_v54  ;;  %v11657_v63 = vcombine.high %v9707_v21, %v9715_v50  ;;  %v9691_v54 = vld [vmem:[#allocation5 + $0x728] sm:$0xff] }
0x2d5b   :  { %v9665_v24 = vmul.f32 %v9664_v8, %v9664_v8 }
0x2d5d   :  { %v9666_v2 = vsel %vm148_vm2, %v9665_v24, 0.0  ;;  %v11654_v24 = vcombine.low %v9706_v53, %v9714_v45  ;;  %v10344_v45 = vld [vmem:[#allocation7 + $0x7d8] sm:$0xff] }
0x2d5e   :  { %9667 = vadd.xlane.f32.xlu0 %v9666_v2  ;;  %v11656_v2 = vcombine.low %v9707_v21, %v9715_v50 }
0x2de7   :  { %v9668_v18 = vpop.xlane.xlu0 %9667 }
0x2de8   :  { %v9669_v11 = vmul.f32 0.03125, %v9668_v18 }
0x2dea   :  { %v9670_v42 = vadd.f32 1e-05, %v9669_v11  ;;  %v11690_v11 = vcombine.high %v10334_v22, %v10342_v17 }
0x2dec   :  { %11946 = vrsqrt.f32 %v9670_v42 }
0x2df9   :  { %v11947_v52 = vpop.eup %11946 }
0x2dfa   :  { %v9672_v56 = vmul.f32 %v11947_v52, %v9664_v8  ;;  %v9699_v8 = vld [vmem:[#allocation5 + $0x768] sm:$0xff]  ;;  %v11689_v52 = vcombine.low %v10334_v22, %v10342_v17 }
0x2dfb   :  { %v11641_v3 = vcombine.high %v9691_v54, %v9699_v8  ;;  %v11640_v40 = vcombine.low %v9691_v54, %v9699_v8 }
0x2dfc   :  { %v9678_v34 = vmul.f32 %v11624_v20, %v9672_v56  ;;  %v10317_v20 = vld [vmem:[#allocation7 + $0x700] sm:$0xff] }
0x2dfd   :  { %v10325_v56 = vld [vmem:[#allocation7 + $0x740] sm:$0xff] }
0x2dfe   :  { %v13186_v7 = vadd.f32 %v11625_v62, %v9678_v34  ;;  %v10318_v62 = vld [vmem:[#allocation7 + $0x708] sm:$0xff]  ;;  %v11672_v34 = vcombine.high %v10317_v20, %v10325_v56 }
0x2dff   :  { %v11673_v25 = vcombine.low %v10318_v62, %v10326_v1  ;;  %v11674_v46 = vcombine.high %v10318_v62, %v10326_v1  ;;  %v11629_v62 = vld [vmem:[%s13308_s2 + $0x47] ss:$8 sm:$0xf0] }
0x2e00   :  { %v13190_v51 = vpack.c.bf16 %v13186_v7, %v13186_v7 }
0x2e02   :  { %11662 = vmatmul.mubr.msk.bf16.vlgmr.msra.gmra.mxu1 %vm197_vm3, %v13190_v51  ;;  %11663 = vmatmul.mubr.msk.bf16.vlgmr.msra.gmra.mxu0 %vm197_vm3, %v13190_v51 }
0x2e03   :  { %10067 = vmatpush1.bf16.msra.mxu1 %v11650_v6  ;;  %10108 = vmatpush1.bf16.msra.mxu0 %v11652_v49  ;;  %v10341_v6 = vld [vmem:[#allocation7 + $0x7c0] sm:$0xff]  ;;  %v11642_v49 = vcombine.low %v9692_v47, %v9700_v15 }
0x2e04   :  { %10068 = vmatprep.subr.bf16.mxu1 %v11635_v4  ;;  %10109 = vmatprep.subr.bf16.mxu0 %v11637_v59  ;;  %v11688_v18 = vcombine.high %v10333_v13, %v10341_v6  ;;  %v11687_v42 = vcombine.low %v10333_v13, %v10341_v6  ;;  %v10343_v4 = vld [vmem:[#allocation7 + $0x7d0] sm:$0xff]  ;;  %v10336_v59 = vld [vmem:[#allocation7 + $0x798] sm:$0xff] }
0x2e05   :  { %10086 = vmatprep.mubr.bf16.mxu1 %v12056_v60  ;;  %10127 = vmatprep.mubr.bf16.mxu0 %v12056_v60  ;;  %v11692_v53 = vcombine.high %v10335_v5, %v10343_v4  ;;  %v11693_v21 = vcombine.low %v10336_v59, %v10344_v45  ;;  %v11694_v50 = vcombine.high %v10336_v59, %v10344_v45 }
0x2e07   :  { %10069 = vmatpush1.bf16.msra.mxu1 %v11634_v61  ;;  %10110 = vmatpush1.bf16.msra.mxu0 %v11636_v55  ;;  %v11626_v61 = vld [vmem:[%s13308_s2 + $0x7] ss:$8 sm:$0xf] }
0x2e08   :  { %10148 = vmatprep.subr.bf16.mxu1 %v11655_v9  ;;  %10189 = vmatprep.subr.bf16.mxu0 %v11657_v63  ;;  %v11627_v55 = vld [vmem:[%s13308_s2 + $0x7] ss:$8 sm:$0xf0] }
0x2e09   :  { %v13220_v9 = vor.u32 %v11627_v55, %v11626_v61  ;;  %v10338_v61 = vld [vmem:[#allocation7 + $0x7a8] sm:$0xff] }
0x2e0a   :  { %11664 = vmatmul.mubr.msk.bf16.vlgmr.msra.gmra.mxu1 %vm197_vm3, %v13190_v51  ;;  %11665 = vmatmul.mubr.msk.bf16.vlgmr.msra.gmra.mxu0 %vm197_vm3, %v13190_v51  ;;  %v10346_v55 = vld [vmem:[#allocation7 + $0x7e8] sm:$0xff] }
0x2e0b   :  { %10149 = vmatpush1.bf16.msra.mxu1 %v11654_v24  ;;  %10190 = vmatpush1.bf16.msra.mxu0 %v11656_v2  ;;  %v9732_v63 = vrot.slane %v13220_v9, %v12214_v27  ;;  %v9740_v19 = vrot.slane %v13220_v9, %v12216_v28  ;;  %v9736_v16 = vrot.slane %v13220_v9, %v12218_v29 }
0x2e0c   :  { %10150 = vmatprep.subr.bf16.mxu1 %v11639_v23  ;;  %10191 = vmatprep.subr.bf16.mxu0 %v11641_v3  ;;  %v9744_v54 = vrot.slane %v13220_v9, %v12220_v30  ;;  %v9752_v6 = vrot.slane %v13220_v9, %v12230_v43  ;;  %v9760_v22 = vrot.slane %v13220_v9, %v12232_v44 }
0x2e0d   :  { %10168 = vmatprep.mubr.bf16.mxu1 %v12056_v60  ;;  %10209 = vmatprep.mubr.bf16.mxu0 %v12056_v60 }
0x2e0f   :  { %10151 = vmatpush1.bf16.msra.mxu1 %v11638_v39  ;;  %10192 = vmatpush1.bf16.msra.mxu0 %v11640_v40 }
0x2e10   :  { %10230 = vmatprep.subr.bf16.mxu1 %v11659_v12  ;;  %10271 = vmatprep.subr.bf16.mxu0 %v11661_v10  ;;  %v13230_v10 = vld [vmem:[#allocation7 + $0x710] sm:$0xff] }
0x2e12   :  { %11666 = vmatmul.mubr.msk.bf16.vlgmr.msra.gmra.mxu1 %vm197_vm3, %v13190_v51  ;;  %11667 = vmatmul.mubr.msk.bf16.vlgmr.msra.gmra.mxu0 %vm197_vm3, %v13190_v51 }
0x2e13   :  { %10231 = vmatpush1.bf16.msra.mxu1 %v11658_v33  ;;  %10272 = vmatpush1.bf16.msra.mxu0 %v11660_v48  ;;  %v10328_v33 = vld [vmem:[#allocation7 + $0x758] sm:$0xff] }
0x2e14   :  { %10232 = vmatprep.subr.bf16.mxu1 %v11643_v37  ;;  %10273 = vmatprep.subr.bf16.mxu0 %v11645_v36 }
0x2e15   :  { %10250 = vmatprep.mubr.bf16.mxu1 %v12056_v60  ;;  %10291 = vmatprep.mubr.bf16.mxu0 %v12056_v60  ;;  %v11671_v60 = vcombine.low %v10317_v20, %v10325_v56  ;;  %v11628_v56 = vld [vmem:[%s13308_s2 + $0x47] ss:$8 sm:$0xf] }
0x2e16   :  { %v13247_v45 = vor.u32 %v11629_v62, %v11628_v56 }
0x2e17   :  { %10233 = vmatpush1.bf16.msra.mxu1 %v11642_v49  ;;  %10274 = vmatpush1.bf16.msra.mxu0 %v11644_v31 }
0x2e18   :  { %10542 = vmatprep.subr.bf16.mxu1 %v11688_v18  ;;  %10582 = vmatprep.subr.bf16.mxu0 %v11690_v11  ;;  %v11676_v11 = vcombine.high %v13230_v10, %v10327_v38  ;;  %v9764_v62 = vrot.slane %v13247_v45, %v12214_v27  ;;  %v9792_v27 = vrot.slane %v13247_v45, %v12232_v44  ;;  %v10324_v44 = vld [vmem:[#allocation7 + $0x738] sm:$0xff] }
0x2e1a   :  { %11668 = vmatmul.mubr.msk.bf16.vlgmr.msra.gmra.mxu1 %vm197_vm3, %v13190_v51  ;;  %11669 = vmatmul.mubr.msk.bf16.vlgmr.msra.gmra.mxu0 %vm197_vm3, %v13190_v51  ;;  %v11691_v51 = vcombine.low %v10335_v5, %v10343_v4  ;;  %v10337_v4 = vld [vmem:[#allocation7 + $0x7a0] sm:$0xff] }
0x2e1b   :  { %10543 = vmatpush1.bf16.xpose.msra.mxu1 %v11687_v42  ;;  %10583 = vmatpush1.bf16.xpose.msra.mxu0 %v11689_v52  ;;  %v11678_v42 = vcombine.high %v10320_v26, %v10328_v33 }
0x2e1c   :  { %10544 = vmatprep.subr.bf16.mxu1 %v11672_v34  ;;  %10584 = vmatprep.subr.bf16.mxu0 %v11674_v46 }
0x2e23   :  { %10545 = vmatpush1.bf16.xpose.msra.mxu1 %v11671_v60  ;;  %10585 = vmatpush1.bf16.xpose.msra.mxu0 %v11673_v25  ;;  %v9748_v60 = vrot.slane %v13220_v9, %v12236_v57  ;;  %v9756_v25 = vrot.slane %v13220_v9, %v12238_v58  ;;  %v9768_v9 = vrot.slane %v13247_v45, %v12218_v29 }
0x2e24   :  { %10622 = vmatprep.subr.bf16.mxu1 %v11692_v53  ;;  %10662 = vmatprep.subr.bf16.mxu0 %v11694_v50  ;;  %v10345_v50 = vld [vmem:[#allocation7 + $0x7e0] sm:$0xff] }
0x2ec2   :  { %v10006_v8 = vpop.f32.mrf.mxu1  ;;  %v10047_v24 = vpop.f32.mrf.mxu0 }
0x2ec3   :  { %v10007_v2 = vadd.f32 %v10006_v8, %v9732_v63  ;;  %v10048_v23 = vadd.f32 %v10047_v24, %v9740_v19  ;;  %v11675_v63 = vcombine.low %v13230_v10, %v10327_v38  ;;  %v11677_v19 = vcombine.low %v10320_v26, %v10328_v33  ;;  %v10321_v38 = vld [vmem:[#allocation7 + $0x720] sm:$0xff] }
0x2ec4   :  { %v10008_v3 = vpop.f32.mrf.mxu1  ;;  %v10049_v41 = vpop.f32.mrf.mxu0  ;;  %v9776_v8 = vrot.slane %v13247_v45, %v12220_v30 }
0x2ec5   :  { %v10009_v35 = vadd.f32 %v10008_v3, %v9736_v16  ;;  %v10050_v14 = vadd.f32 %v10049_v41, %v9744_v54  ;;  %v10300_v32 = vmax.f32 %v10007_v2, 0.0  ;;  %v10302_v39 = vmax.f32 %v10048_v23, 0.0 }
0x2ec6   :  { %v10010_v40 = vpop.f32.mrf.mxu1  ;;  %v10051_v12 = vpop.f32.mrf.mxu0  ;;  %v11696_v41 = vcombine.high %v10337_v4, %v10345_v50 }
0x2ec7   :  { %v10301_v47 = vmax.f32 %v10009_v35, 0.0  ;;  %v10303_v15 = vmax.f32 %v10050_v14, 0.0  ;;  %v10350_v17 = vpack.c.bf16 %v10300_v32, %v10300_v32  ;;  %v10352_v49 = vpack.c.bf16 %v10302_v39, %v10302_v39 }
0x2ec8   :  { %v10011_v48 = vpop.f32.mrf.mxu1  ;;  %v10052_v37 = vpop.f32.mrf.mxu0  ;;  %v11698_v35 = vcombine.high %v10338_v61, %v10346_v55 }
0x2ec9   :  { %v10351_v36 = vpack.c.bf16 %v10301_v47, %v10301_v47  ;;  %v10353_v13 = vpack.c.bf16 %v10303_v15, %v10303_v15  ;;  %v10329_v48 = vld [vmem:[#allocation7 + $0x760] sm:$0xff]  ;;  %v10322_v37 = vld [vmem:[#allocation7 + $0x728] sm:$0xff] }
0x2eca   :  { %v10088_v31 = vpop.f32.mrf.mxu1  ;;  %v10129_v18 = vpop.f32.mrf.mxu0 }
0x2ecb   :  { %10562 = vmatprep.mubr.bf16.mxu1 %v10351_v36  ;;  %10602 = vmatprep.mubr.bf16.mxu0 %v10353_v13  ;;  %v10089_v24 = vadd.f32 %v10088_v31, %v9748_v60  ;;  %v10130_v2 = vadd.f32 %v10129_v18, %v9756_v25  ;;  %v10330_v36 = vld [vmem:[#allocation7 + $0x768] sm:$0xff]  ;;  %v9772_v60 = vrot.slane %v13247_v45, %v12216_v28  ;;  %v10339_v25 = vld [vmem:[#allocation7 + $0x7b0] sm:$0xff] }
0x2ecc   :  { %v10090_v52 = vpop.f32.mrf.mxu1  ;;  %v10131_v20 = vpop.f32.mrf.mxu0  ;;  %10563 = vmatmul.mubr.bf16.vlgmr.msra.gmra.mxu1 %v10350_v17  ;;  %10603 = vmatmul.mubr.bf16.vlgmr.msra.gmra.mxu0 %v10352_v49 }
0x2ecd   :  { %v10091_v34 = vadd.f32 %v10090_v52, %v9752_v6  ;;  %v10132_v1 = vadd.f32 %v10131_v20, %v9760_v22  ;;  %10623 = vmatpush1.bf16.xpose.msra.mxu1 %v11691_v51  ;;  %10663 = vmatpush1.bf16.xpose.msra.mxu0 %v11693_v21  ;;  %v10304_v12 = vmax.f32 %v10089_v24, 0.0  ;;  %v10306_v10 = vmax.f32 %v10130_v2, 0.0  ;;  %v10331_v24 = vld [vmem:[#allocation7 + $0x770] sm:$0xff] }
0x2ece   :  { %v10092_v46 = vpop.f32.mrf.mxu1  ;;  %v10133_v5 = vpop.f32.mrf.mxu0  ;;  %10624 = vmatprep.subr.bf16.mxu1 %v11676_v11  ;;  %10664 = vmatprep.subr.bf16.mxu0 %v11678_v42  ;;  %v11695_v6 = vcombine.low %v10337_v4, %v10345_v50  ;;  %v11697_v11 = vcombine.low %v10338_v61, %v10346_v55  ;;  %v11680_v42 = vcombine.high %v10321_v38, %v10329_v48  ;;  %v10348_v50 = vld [vmem:[#allocation7 + $0x7f8] sm:$0xff] }
0x2ecf   :  { %v10305_v59 = vmax.f32 %v10091_v34, 0.0  ;;  %v10307_v53 = vmax.f32 %v10132_v1, 0.0  ;;  %v10354_v22 = vpack.c.bf16 %v10304_v12, %v10304_v12  ;;  %v10356_v17 = vpack.c.bf16 %v10306_v10, %v10306_v10  ;;  %v10347_v46 = vld [vmem:[#allocation7 + $0x7f0] sm:$0xff] }
0x2ed0   :  { %v10093_v51 = vpop.f32.mrf.mxu1  ;;  %v10134_v21 = vpop.f32.mrf.mxu0  ;;  %v11682_v52 = vcombine.high %v10322_v37, %v10330_v36  ;;  %v9784_v5 = vrot.slane %v13247_v45, %v12230_v43  ;;  %v11679_v61 = vcombine.low %v10321_v38, %v10329_v48  ;;  %v9780_v10 = vrot.slane %v13247_v45, %v12236_v57 }
0x2ed1   :  { %v10355_v16 = vpack.c.bf16 %v10305_v59, %v10305_v59  ;;  %v10357_v54 = vpack.c.bf16 %v10307_v53, %v10307_v53  ;;  %v10340_v53 = vld [vmem:[#allocation7 + $0x7b8] sm:$0xff]  ;;  %v11681_v51 = vcombine.low %v10322_v37, %v10330_v36  ;;  %v11700_v21 = vcombine.high %v10339_v25, %v10347_v46 }
0x2ed2   :  { %v10170_v23 = vpop.f32.mrf.mxu1  ;;  %v10211_v3 = vpop.f32.mrf.mxu0  ;;  %v11702_v28 = vcombine.high %v10340_v53, %v10348_v50 }
0x2ed3   :  { %10642 = vmatprep.mubr.bf16.mxu1 %v10355_v16  ;;  %10682 = vmatprep.mubr.bf16.mxu0 %v10357_v54  ;;  %v10171_v55 = vadd.f32 %v10170_v23, %v9764_v62 }
0x2ed4   :  { %v10172_v14 = vpop.f32.mrf.mxu1  ;;  %v10213_v32 = vpop.f32.mrf.mxu0 }
0x2ed5   :  { %v10173_v39 = vadd.f32 %v10172_v14, %v9768_v9  ;;  %v10214_v40 = vadd.f32 %v10213_v32, %v9776_v8  ;;  %10625 = vmatpush1.bf16.xpose.msra.mxu1 %v11675_v63  ;;  %10665 = vmatpush1.bf16.xpose.msra.mxu0 %v11677_v19  ;;  %v10212_v63 = vadd.f32 %v10211_v3, %v9772_v60  ;;  %v10308_v54 = vmax.f32 %v10171_v55, 0.0  ;;  %v10323_v8 = vld [vmem:[#allocation7 + $0x730] sm:$0xff] }
0x2ed6   :  { %v10174_v29 = vpop.f32.mrf.mxu1  ;;  %v10215_v47 = vpop.f32.mrf.mxu0  ;;  %10702 = vmatprep.subr.bf16.mxu1 %v11696_v41  ;;  %10742 = vmatprep.subr.bf16.mxu0 %v11698_v35  ;;  %v11699_v41 = vcombine.low %v10339_v25, %v10347_v46  ;;  %v10332_v35 = vld [vmem:[#allocation7 + $0x778] sm:$0xff]  ;;  %v11701_v14 = vcombine.low %v10340_v53, %v10348_v50  ;;  %v11684_v3 = vcombine.high %v10323_v8, %v10331_v24 }
0x2ed7   :  { %v10309_v30 = vmax.f32 %v10173_v39, 0.0  ;;  %v10311_v15 = vmax.f32 %v10214_v40, 0.0  ;;  %v10310_v43 = vmax.f32 %v10212_v63, 0.0  ;;  %v10358_v23 = vpack.c.bf16 %v10308_v54, %v10308_v54 }
0x2ed8   :  { %v10175_v26 = vpop.f32.mrf.mxu1  ;;  %v10216_v33 = vpop.f32.mrf.mxu0  ;;  %v11686_v40 = vcombine.high %v10324_v44, %v10332_v35  ;;  %v9788_v29 = vrot.slane %v13247_v45, %v12238_v58  ;;  %v11683_v47 = vcombine.low %v10323_v8, %v10331_v24 }
0x2ed9   :  { %v10359_v13 = vpack.c.bf16 %v10309_v30, %v10309_v30  ;;  %v10361_v49 = vpack.c.bf16 %v10311_v15, %v10311_v15  ;;  %v10360_v32 = vpack.c.bf16 %v10310_v43, %v10310_v43  ;;  %v11685_v15 = vcombine.low %v10324_v44, %v10332_v35 }
0x2eda   :  { %v13254_v31 = vpop.f32.mrf.mxu1  ;;  %v13256_v18 = vpop.f32.mrf.mxu0 }
0x2edb   :  { %v10253_v30 = vadd.f32 %v13254_v31, %v9780_v10  ;;  %v10294_v38 = vadd.f32 %v13256_v18, %v9788_v29  ;;  %v11704_v10 = vld [vmem:[%s13307_s1 + $0x56] ss:$0 sm:$0xff] }
0x2edc   :  { %10643 = vmatmul.mubr.bf16.vlgmr.msra.gmra.mxu1 %v10354_v22  ;;  %10683 = vmatmul.mubr.bf16.vlgmr.msra.gmra.mxu0 %v10356_v17  ;;  %v10254_v20 = vpop.f32.mrf.mxu1  ;;  %v10295_v56 = vpop.f32.mrf.mxu0 }
0x2edd   :  { %10703 = vmatpush1.bf16.xpose.msra.mxu1 %v11695_v6  ;;  %10722 = vmatprep.mubr.bf16.mxu1 %v10359_v13  ;;  %v10255_v19 = vadd.f32 %v10254_v20, %v9784_v5  ;;  %v10296_v16 = vadd.f32 %v10295_v56, %v9792_v27  ;;  %v10312_v26 = vmax.f32 %v10253_v30, 0.0  ;;  %v10314_v57 = vmax.f32 %v10294_v38, 0.0 }
0x2ede   :  { %10743 = vmatpush1.bf16.xpose.msra.mxu0 %v11697_v11  ;;  %10762 = vmatprep.mubr.bf16.mxu0 %v10361_v49  ;;  %v10256_v34 = vpop.f32.mrf.mxu1  ;;  %v10297_v1 = vpop.f32.mrf.mxu0 }
0x2edf   :  { %10704 = vmatprep.subr.bf16.mxu1 %v11680_v42  ;;  %10744 = vmatprep.subr.bf16.mxu0 %v11682_v52  ;;  %v10313_v9 = vmax.f32 %v10255_v19, 0.0  ;;  %v10315_v2 = vmax.f32 %v10296_v16, 0.0  ;;  %v10362_v33 = vpack.c.bf16 %v10312_v26, %v10312_v26  ;;  %v10364_v48 = vpack.c.bf16 %v10314_v57, %v10314_v57 }
0x2ee0   :  { %v10257_v4 = vpop.f32.mrf.mxu1  ;;  %v10298_v59 = vpop.f32.mrf.mxu0 }
0x2ee1   :  { %v10363_v39 = vpack.c.bf16 %v10313_v9, %v10313_v9  ;;  %v10365_v12 = vpack.c.bf16 %v10315_v2, %v10315_v2 }
0x2ee5   :  { %10705 = vmatpush1.bf16.xpose.msra.mxu1 %v11679_v61 }
0x2ee6   :  { %10745 = vmatpush1.bf16.xpose.msra.mxu0 %v11681_v51  ;;  %10782 = vmatprep.subr.bf16.mxu1 %v11700_v21 }
0x2ee7   :  { %10822 = vmatprep.subr.bf16.mxu0 %v11702_v28 }
0x2eec   :  { %10723 = vmatmul.mubr.bf16.vlgmr.msra.gmra.mxu1 %v10358_v23 }
0x2eed   :  { %10763 = vmatmul.mubr.bf16.vlgmr.msra.gmra.mxu0 %v10360_v32  ;;  %10783 = vmatpush1.bf16.xpose.msra.mxu1 %v11699_v41 }
0x2eee   :  { %10802 = vmatprep.mubr.bf16.mxu1 %v10363_v39  ;;  %10823 = vmatpush1.bf16.xpose.msra.mxu0 %v11701_v14 }
0x2eef   :  { %10842 = vmatprep.mubr.bf16.mxu0 %v10365_v12  ;;  %10784 = vmatprep.subr.bf16.mxu1 %v11684_v3 }
0x2ef0   :  { %10824 = vmatprep.subr.bf16.mxu0 %v11686_v40 }
0x2ef5   :  { %10785 = vmatpush1.bf16.xpose.msra.mxu1 %v11683_v47 }
0x2ef6   :  { %10825 = vmatpush1.bf16.xpose.msra.mxu0 %v11685_v15  ;;  %11876 = vmatprep.subr.mxu1 %v12054_v0 }
0x2efc   :  { %10803 = vmatmul.mubr.bf16.vlgmr.msra.gmra.mxu1 %v10362_v33 }
0x2efd   :  { %10843 = vmatmul.mubr.bf16.vlgmr.msra.gmra.mxu0 %v10364_v48  ;;  %11878 = vmatprep.mubr.msk.f32.mxu1 %vm12055_vm0, %v12054_v0  ;;  %v11670_v0 = vld [vmem:[%s13307_s1 + $0x54] ss:$0 sm:$0xff]  ;;  %v10901_v48 = vld [vmem:[%s13307_s1 + $0x60] sm:$0xf] }
0x2efe   :  { %11877 = vmatpush3.xpose.msk.msra.mxu1 %vm197_vm3, %v10901_v48 }
0x2f8c   :  { %v10564_v58 = vpop.f32.mrf.mxu1  ;;  %v10604_v45 = vpop.f32.mrf.mxu0 }
0x2f8d   :  { %v10565_v62 = vadd.f32 %v11670_v0, %v10564_v58 }
0x2f8e   :  { %v10566_v37 = vpop.f32.mrf.mxu1  ;;  %v10606_v36 = vpop.f32.mrf.mxu0 }
0x2f8f   :  { %v10605_v25 = vadd.f32 %v10604_v45, %v10565_v62 }
0x2f90   :  { %v10567_v13 = vpop.f32.mrf.mxu1  ;;  %v10607_v6 = vpop.f32.mrf.mxu0 }
0x2f91   :  { %v11705_v13 = vld [vmem:[%s13307_s1 + $0x57] ss:$0 sm:$0xff] }
0x2f92   :  { %v10568_v22 = vpop.f32.mrf.mxu1  ;;  %v10608_v17 = vpop.f32.mrf.mxu0 }
0x2f93   :  { %v11706_v22 = vld [vmem:[%s13307_s1 + $0x58] ss:$0 sm:$0xff] }
0x2f9c   :  { %v10644_v49 = vpop.f32.mrf.mxu1  ;;  %v10684_v31 = vpop.f32.mrf.mxu0 }
0x2f9d   :  { %v10645_v4 = vadd.f32 %v10644_v49, %v10605_v25 }
0x2f9e   :  { %v10646_v18 = vpop.f32.mrf.mxu1  ;;  %v10686_v11 = vpop.f32.mrf.mxu0 }
0x2f9f   :  { %v10685_v27 = vadd.f32 %v10684_v31, %v10645_v4  ;;  %v11707_v31 = vld [vmem:[%s13307_s1 + $0x64] ss:$0 sm:$0xff] }
0x2fa0   :  { %v10647_v42 = vpop.f32.mrf.mxu1  ;;  %v10687_v52 = vpop.f32.mrf.mxu0 }
0x2fa2   :  { %v10648_v20 = vpop.f32.mrf.mxu1  ;;  %v10688_v56 = vpop.f32.mrf.mxu0 }
0x2fac   :  { %v10724_v34 = vpop.f32.mrf.mxu1 }
0x2fad   :  { %v10764_v1 = vpop.f32.mrf.mxu0  ;;  %v10725_v61 = vadd.f32 %v10724_v34, %v10685_v27 }
0x2fae   :  { %v10726_v60 = vpop.f32.mrf.mxu1 }
0x2faf   :  { %v10766_v46 = vpop.f32.mrf.mxu0  ;;  %v10765_v55 = vadd.f32 %v10764_v1, %v10725_v61 }
0x2fb0   :  { %v10727_v5 = vpop.f32.mrf.mxu1 }
0x2fb1   :  { %v10767_v59 = vpop.f32.mrf.mxu0 }
0x2fb2   :  { %v10728_v53 = vpop.f32.mrf.mxu1 }
0x2fb3   :  { %v10768_v50 = vpop.f32.mrf.mxu0 }
0x2fbc   :  { %v10804_v51 = vpop.f32.mrf.mxu1 }
0x2fbd   :  { %v10805_v21 = vadd.f32 %v10804_v51, %v10765_v55  ;;  %v10844_v63 = vpop.f32.mrf.mxu0 }
0x2fbe   :  { %v10806_v28 = vpop.f32.mrf.mxu1 }
0x2fbf   :  { %v10845_v19 = vadd.f32 %v10844_v63, %v10805_v21  ;;  %v10846_v16 = vpop.f32.mrf.mxu0 }
0x2fc0   :  { %v10807_v54 = vpop.f32.mrf.mxu1 }
0x2fc1   :  { %v10847_v43 = vpop.f32.mrf.mxu0  ;;  %v10850_v9 = vadd.f32 %v10845_v19, %v13186_v7  ;;  %v11703_v7 = vld [vmem:[%s13307_s1 + $0x55] ss:$0 sm:$0xff] }
0x2fc2   :  { %v10808_v8 = vpop.f32.mrf.mxu1 }
0x2fc3   :  { %v10848_v24 = vpop.f32.mrf.mxu0  ;;  %v10851_v2 = vsel %vm148_vm2, %v10850_v9, 0.0 }
0x2fc4   :  { %10852 = vadd.xlane.f32.xlu0 %v10851_v2 }
0x304d   :  { %v10853_v41 = vpop.xlane.xlu0 %10852 }
0x304e   :  { %v10854_v44 = vmul.f32 0.03125, %v10853_v41 }
0x3050   :  { %v10855_v35 = vsub.f32 %v10850_v9, %v10854_v44 }
0x3052   :  { %v10856_v23 = vmul.f32 %v10855_v35, %v10855_v35 }
0x3054   :  { %v10857_v14 = vsel %vm148_vm2, %v10856_v23, 0.0 }
0x3055   :  { %10858 = vadd.xlane.f32.xlu1 %v10857_v14 }
0x30de   :  { %v10859_v32 = vpop.xlane.xlu1 %10858 }
0x30df   :  { %v10860_v3 = vmul.f32 0.03125, %v10859_v32 }
0x30e1   :  { %v10861_v39 = vadd.f32 1e-05, %v10860_v3 }
0x30e3   :  { %11948 = vrsqrt.f32 %v10861_v39 }
0x30f0   :  { %v11949_v40 = vpop.eup %11948 }
0x30f1   :  { %v10863_v12 = vmul.f32 %v11949_v40, %v10855_v35 }
0x30f3   :  { %v10869_v29 = vmul.f32 %v11703_v7, %v10863_v12 }
0x30f5   :  { %v10875_v47 = vadd.f32 %v11704_v10, %v10869_v29 }
0x30f7   :  { %v10876_v30 = vsel %vm148_vm2, %v10875_v47, 0.0 }
0x30f8   :  { %10877 = vadd.xlane.f32.xlu0 %v10876_v30 }
0x3181   :  { %v10878_v15 = vpop.xlane.xlu0 %10877 }
0x3182   :  { %v10879_v38 = vmul.f32 0.03125, %v10878_v15 }
0x3184   :  { %v10880_v26 = vsub.f32 %v10875_v47, %v10879_v38 }
0x3186   :  { %v10881_v57 = vmul.f32 %v10880_v26, %v10880_v26 }
0x3188   :  { %v10882_v33 = vsel %vm148_vm2, %v10881_v57, 0.0 }
0x3189   :  { %10883 = vadd.xlane.f32.xlu1 %v10882_v33 }
0x3212   :  { %v10884_v58 = vpop.xlane.xlu1 %10883 }
0x3213   :  { %v10885_v45 = vmul.f32 0.03125, %v10884_v58 }
0x3215   :  { %v10886_v37 = vadd.f32 1e-05, %v10885_v45 }
0x3217   :  { %11950 = vrsqrt.f32 %v10886_v37 }
0x3224   :  { %v11951_v36 = vpop.eup %11950 }
0x3225   :  { %v10888_v6 = vmul.f32 %v11951_v36, %v10880_v26 }
0x3227   :  { %v10894_v17 = vmul.f32 %v11705_v13, %v10888_v6 }
0x3229   :  { %v10900_v49 = vadd.f32 %v11706_v22, %v10894_v17 }
0x322b   :  { %11879 = vmatmul.mubr.msk.f32.vlgmr.msra.gmra.mxu1 %vm197_vm3, %v10900_v49 }
0x32eb   :  { %v10979_v18 = vpop.f32.mrf.mxu1 }
0x32ec   :  { %v10980_v11 = vadd.f32 %v11707_v31, %v10979_v18 }
0x32ed   :  { %v11880_v42 = vpop.f32.mrf.mxu1 }
0x32ee   :  { %v10983_v52 = vmul.f32 0.5, %v10980_v11 }
0x32f0   :  { %11952 = vtanh.f32 %v10983_v52 }
0x32fd   :  { %v11953_v20 = vpop.eup %11952 }
0x32fe   :  { %v10985_v56 = vadd.f32 1.0, %v11953_v20 }
0x3300   :  { %v10986_v0 = vmul.f32 0.5, %v10985_v56 }
0x3302   :  { %10988 = vst.msk [vmem:[#allocation8] sm:$0x3] %vm10987_vm4, %v10986_v0 }
0x3303   :  { %12032 = shalt.err (!%p12029_p5)
}
0x3304   :  { %10998 = dma.vmem_to_hbm [thread:$0]  %s10996_s23, 32, %s13312_s6, [#allocation4]  }
0x3305   :  { %12045 = dma.done.wait [#allocation4], 32  }
0x3306   :  { %12046 = vsyncadd [#allocation4], 4294967264 }
0x3307   :  { %11002 = vsyncpa [#allocation3], 1 }
0x3308   :  { %11003 = vsyncpa [#allocation6], 1 }
0x3309   :  { %11004 = vsyncpa [#allocation4], 1 }

</bundles_post_ra>
